<compile_context>
chip_gen: v6e
topology: v6e:2x2x1
jax: 0.10.0
libtpu: 0.0.40
codegen_flags: <defaults>
</compile_context>

<pallas_src>
import functools

import jax
import jax.numpy as jnp
from jax.experimental import pallas as pl
from jax.experimental.pallas import tpu as pltpu


# ----------------------------------------------------------------------------
# Small helpers
# ----------------------------------------------------------------------------
def _bf16(a):
    return a.astype(jnp.bfloat16)


@functools.lru_cache(maxsize=1)
def _vmem_limit_bytes():
    cap = 128 * 1024 * 1024
    try:
        info = pltpu.get_tpu_info()
        cap = int(getattr(info, "vmem_capacity_bytes", cap))
    except Exception:
        pass
    # ~40% of per-core VMEM, clamped to a sane range.
    return int(min(max(cap * 2 // 5, 16 * 1024 * 1024), 96 * 1024 * 1024))


def _compiler_params():
    return pltpu.CompilerParams(
        dimension_semantics=("parallel",),
        vmem_limit_bytes=_vmem_limit_bytes(),
    )


def _pick_tile_m(m):
    # Whole row for small m; lane-dense multiples of 128 otherwise.
    # TODO(synk): for very large images add an H-tiled grid with a halo so the
    # im2col slab never exceeds the per-chip VMEM budget (matters most on v7x).
    if m <= 2048 or m % 128 != 0:
        return m
    for t in (2048, 1024, 512, 256, 128):
        if m % t == 0:
            return t
    return m


# ----------------------------------------------------------------------------
# One fused transposed-matmul kernel:
#   [LN] -> dot1 (+b1) -> [gelu] -> [gate] -> [dot2 (+b2)] -> [LN_out] -> [+res]
# x: (K, M) with M (pixels) on lanes, weights (N, K).
# ----------------------------------------------------------------------------
def _make_fused_kernel(*, has_ln, eps_in, act, gate, has_w2, has_ln_out,
                       eps_out, has_res):
    def kernel(*refs):
        it = iter(refs)
        x = next(it)[...]
        if has_ln:
            g = next(it)[...]
            b = next(it)[...]
            xf = x.astype(jnp.float32)
            mu = jnp.mean(xf, axis=0, keepdims=True)
            var = jnp.mean((xf - mu) ** 2, axis=0, keepdims=True)
            xf = (xf - mu) * jax.lax.rsqrt(var + eps_in)
            xb = (xf * g + b).astype(jnp.bfloat16)
        else:
            xb = x.astype(jnp.bfloat16)
        w1 = next(it)[...]
        b1 = next(it)[...]
        y = jnp.dot(w1.astype(jnp.bfloat16), xb,
                    preferred_element_type=jnp.float32) + b1
        if act == "gelu":
            # TODO(synk): PyTorch nn.GELU default is exact erf; tanh approx used
            # here for a guaranteed Mosaic lowering.
            y = jax.nn.gelu(y, approximate=True)
        if gate:
            h = y.shape[0] // 2
            y = y[:h, :] * y[h:, :]            # SimpleGate: sublane split, f32 VPU
        if has_w2:
            w2 = next(it)[...]
            b2 = next(it)[...]
            y = jnp.dot(w2.astype(jnp.bfloat16), y.astype(jnp.bfloat16),
                        preferred_element_type=jnp.float32) + b2
        if has_ln_out:
            g2 = next(it)[...]
            b2o = next(it)[...]
            mu = jnp.mean(y, axis=0, keepdims=True)
            var = jnp.mean((y - mu) ** 2, axis=0, keepdims=True)
            y = (y - mu) * jax.lax.rsqrt(var + eps_out) * g2 + b2o
        if has_res:
            y = y + next(it)[...].astype(jnp.float32)
        o_ref = next(it)
        o_ref[...] = y.astype(o_ref.dtype)

    return kernel


def fused_mm(x, w1, b1=None, *, ln=None, act=None, gate=False, w2=None, b2=None,
             ln_out=None, residual=None, out_dtype=jnp.bfloat16):
    """x: (K, M); w1: (N1, K); optional w2: (N2, K2). Returns (Nout, M)."""
    K, M = x.shape
    N1 = w1.shape[0]
    mid = N1 // 2 if gate else N1
    Nout = w2.shape[0] if w2 is not None else mid
    if b1 is None:
        b1 = jnp.zeros((N1,), jnp.float32)
    if w2 is not None and b2 is None:
        b2 = jnp.zeros((Nout,), jnp.float32)

    tm = _pick_tile_m(M)
    grid = (M // tm,)

    def col_spec(rows):
        return pl.BlockSpec((rows, tm), lambda i: (0, i))

    def full_spec(r, c):
        return pl.BlockSpec((r, c), lambda i: (0, 0))

    args = [x]
    specs = [col_spec(K)]
    if ln is not None:
        g, b, eps_in = ln
        args += [g.reshape(K, 1).astype(jnp.float32),
                 b.reshape(K, 1).astype(jnp.float32)]
        specs += [full_spec(K, 1), full_spec(K, 1)]
    else:
        eps_in = 0.0
    args += [w1, b1.reshape(N1, 1).astype(jnp.float32)]
    specs += [full_spec(N1, K), full_spec(N1, 1)]
    if w2 is not None:
        K2 = w2.shape[1]
        args += [w2, b2.reshape(Nout, 1).astype(jnp.float32)]
        specs += [full_spec(Nout, K2), full_spec(Nout, 1)]
    if ln_out is not None:
        g2, b2o, eps_out = ln_out
        args += [g2.reshape(Nout, 1).astype(jnp.float32),
                 b2o.reshape(Nout, 1).astype(jnp.float32)]
        specs += [full_spec(Nout, 1), full_spec(Nout, 1)]
    else:
        eps_out = 0.0
    if residual is not None:
        args.append(residual)
        specs.append(col_spec(Nout))

    kernel = _make_fused_kernel(
        has_ln=ln is not None, eps_in=eps_in, act=act, gate=gate,
        has_w2=w2 is not None, has_ln_out=ln_out is not None, eps_out=eps_out,
        has_res=residual is not None)

    return pl.pallas_call(
        kernel,
        grid=grid,
        out_shape=jax.ShapeDtypeStruct((Nout, M), out_dtype),
        in_specs=specs,
        out_specs=col_spec(Nout),
        compiler_params=_compiler_params(),
    )(*args)


# ----------------------------------------------------------------------------
# k x k conv (stride 1, 'same' pad) as ONE deep-K dot over a wrapper im2col.
# x: (C, B, H, W); wmat: (Co, k*k*C) ordered [o, tap*C + c].
# Optional fused: pre-LN (wrapper side, before zero-pad), gate, second 1x1 dot,
# residual add.
# ----------------------------------------------------------------------------
def conv2d_as_mm(x, wmat, b=None, *, k, gate=False, w2=None, b2=None,
                 residual=None, ln_pre=None, out_dtype=jnp.bfloat16):
    C, B, H, W = x.shape
    if ln_pre is not None:
        g, bb, eps = ln_pre
        xf = x.astype(jnp.float32)
        mu = xf.mean(axis=0, keepdims=True)
        var = ((xf - mu) ** 2).mean(axis=0, keepdims=True)
        x = ((xf - mu) * jax.lax.rsqrt(var + eps) * g.reshape(-1, 1, 1, 1)
             + bb.reshape(-1, 1, 1, 1)).astype(jnp.bfloat16)
    p = (k - 1) // 2
    xp = jnp.pad(x, ((0, 0), (0, 0), (p, p), (p, p)))
    cols = jnp.concatenate(
        [xp[:, :, dy:dy + H, dx:dx + W] for dy in range(k) for dx in range(k)],
        axis=0)                                   # (k*k*C, B, H, W), tap-major
    xc = cols.reshape(k * k * C, B * H * W)
    res = None if residual is None else residual.reshape(residual.shape[0], -1)
    y = fused_mm(xc, wmat, b, gate=gate, w2=w2, b2=b2, residual=res,
                 out_dtype=out_dtype)
    return y.reshape(y.shape[0], B, H, W)


# ----------------------------------------------------------------------------
# Haar DWT / IDWT, downsample (CBHW layout, JAX glue)
# ----------------------------------------------------------------------------
# TODO(synk): DWT/IDWT class definitions not in the provided source; standard
# Haar transform assumed (same as revision 2).
def dwt(x):                                        # (C, B, H, W)
    x1 = x[:, :, 0::2, 0::2] / 2
    x2 = x[:, :, 1::2, 0::2] / 2
    x3 = x[:, :, 0::2, 1::2] / 2
    x4 = x[:, :, 1::2, 1::2] / 2
    ll = x1 + x2 + x3 + x4
    hl = -x1 - x2 + x3 + x4
    lh = -x1 + x2 - x3 + x4
    hh = x1 - x2 - x3 + x4
    return ll, hl, lh, hh


def idwt(x):                                       # (C, 4B, Hh, Wh)
    C, B4, Hh, Wh = x.shape
    b = B4 // 4
    ll, hl, lh, hh = x[:, :b] / 2, x[:, b:2 * b] / 2, x[:, 2 * b:3 * b] / 2, x[:, 3 * b:] / 2
    out = jnp.zeros((C, b, Hh * 2, Wh * 2), x.dtype)
    out = out.at[:, :, 0::2, 0::2].set(ll - hl - lh + hh)
    out = out.at[:, :, 1::2, 0::2].set(ll - hl + lh - hh)
    out = out.at[:, :, 0::2, 1::2].set(ll + hl - lh - hh)
    out = out.at[:, :, 1::2, 1::2].set(ll + hl + lh + hh)
    return out


def downsample(x, w, b):
    """2x2 stride-2 conv as space-to-depth + fused matmul. w: (Co, 4*Ci)."""
    patches = [x[:, :, dy::2, dx::2] for dy in (0, 1) for dx in (0, 1)]
    xd = jnp.concatenate(patches, axis=0)          # (4C, B, H/2, W/2)
    C4, B, Ho, Wo = xd.shape
    y = fused_mm(xd.reshape(C4, -1), w, b)
    return y.reshape(-1, B, Ho, Wo)


# ----------------------------------------------------------------------------
# Deterministic parameter init (weights stored in kernel-friendly layouts, bf16)
# ----------------------------------------------------------------------------
class Init:
    def __init__(self, key):
        self.key = key

    def normal(self, shape, scale=0.05):
        self.key, k = jax.random.split(self.key)
        return scale * jax.random.normal(k, shape, jnp.float32)


def _dw_to_dense(kdw):
    """Depthwise kernel (C, T) -> block-diagonal dense conv matrix (C, T*C)."""
    C, T = kdw.shape
    w = kdw[:, :, None] * jnp.eye(C, dtype=kdw.dtype)[:, None, :]   # (o, t, c)
    return w.reshape(C, T * C)


def _compose_depth_point(kdw, bdw, wpw, bpw):
    """Depthwise (C,T)+b then pointwise (Co,C)+b -> dense (Co, T*C), bias (Co,)."""
    w = wpw[:, None, :] * jnp.swapaxes(kdw, 0, 1)[None, :, :]        # (o, t, c)
    return w.reshape(wpw.shape[0], -1), wpw @ bdw + bpw


def _wave_dense(C):
    """The three fixed 3x3 wave kernels tiled over every (co, ci) -> (3, 9*C)."""
    h = jnp.array([1, 0, -1, 1, 0, -1, 1, 0, -1], jnp.float32)
    v = jnp.array([1, 1, 1, 0, 0, 0, -1, -1, -1], jnp.float32)
    d = jnp.array([0, 1, 0, 1, -4, 1, 0, 1, 0], jnp.float32)
    wk = jnp.stack([h, v, d], axis=0)                                # (3, 9)
    w = jnp.repeat(wk[:, :, None], C, axis=2)                        # (o, t, c)
    return w.reshape(3, 9 * C)


def init_prenorm_ff(rng, dim):
    # TODO(synk): FeedForward/PreNorm definitions not in the provided source;
    # assumed LayerNorm -> Linear(dim,4*dim) -> GELU -> Linear(4*dim,dim).
    hid = dim * 4
    return dict(
        ln_g=jnp.ones((dim,), jnp.float32), ln_b=jnp.zeros((dim,), jnp.float32),
        w1=_bf16(rng.normal((hid, dim))), b1=jnp.zeros((hid,), jnp.float32),
        w2=_bf16(rng.normal((dim, hid))), b2=jnp.zeros((dim,), jnp.float32))


def init_lightblock(rng, dim):
    return dict(
        sim_g=jnp.ones((dim,), jnp.float32), sim_b=jnp.zeros((dim,), jnp.float32),
        sim_w5=_bf16(rng.normal((dim, 25 * dim))), sim_b5=jnp.zeros((dim,), jnp.float32),
        sim_w1=_bf16(rng.normal((dim, dim // 2))), sim_b1=jnp.zeros((dim,), jnp.float32),
        cim_g=jnp.ones((dim,), jnp.float32), cim_b=jnp.zeros((dim,), jnp.float32),
        cim_wa=_bf16(rng.normal((4 * dim, dim))), cim_ba=jnp.zeros((4 * dim,), jnp.float32),
        cim_wb=_bf16(rng.normal((dim, 2 * dim))), cim_bb=jnp.zeros((dim,), jnp.float32),
    )


def init_processblock(rng, dim, n_l, n_h):
    hh_dw = rng.normal((dim, 9))
    hh_pw = rng.normal((dim, dim))
    hh_w, hh_b = _compose_depth_point(hh_dw, jnp.zeros((dim,), jnp.float32),
                                      hh_pw, jnp.zeros((dim,), jnp.float32))
    return dict(
        # TODO(synk): WTConv2d multi-level wavelet branches not in source; base
        # depthwise 5x5 convolution only (as a block-diagonal dense matmul).
        ll1_w=_bf16(_dw_to_dense(rng.normal((dim, 25)))),
        ll1_b=jnp.zeros((dim,), jnp.float32),
        ll2_w=_bf16(_dw_to_dense(rng.normal((dim, 25)))),
        ll2_b=jnp.zeros((dim,), jnp.float32),
        hh_w=_bf16(hh_w), hh_b=hh_b,                     # depthwise3x3 + 1x1 composed
        wave_w=_bf16(_wave_dense(dim)),
        fuse_w=_bf16(rng.normal((dim, 2 * dim))),
        n2_g=jnp.ones((dim,), jnp.float32), n2_b=jnp.zeros((dim,), jnp.float32),
        ff=[init_prenorm_ff(rng, dim) for _ in range(n_h)],
        pos=[init_lightblock(rng, dim) for _ in range(n_l)],
    )


def init_cwnet(rng, nc, n_l, n_h):
    return dict(
        conv0_w=_bf16(rng.normal((nc, 3))), conv0_b=jnp.zeros((nc,), jnp.float32),
        pb1=init_processblock(rng, nc, n_l[0], n_h[0]),
        down1_w=_bf16(rng.normal((2 * nc, 4 * nc))), down1_b=jnp.zeros((2 * nc,), jnp.float32),
        pb2=init_processblock(rng, 2 * nc, n_l[1], n_h[1]),
        down2_w=_bf16(rng.normal((3 * nc, 8 * nc))), down2_b=jnp.zeros((3 * nc,), jnp.float32),
        pb3=init_processblock(rng, 3 * nc, n_l[2], n_h[2]),
        up1_w=_bf16(rng.normal((2 * nc, 5 * nc))), up1_b=jnp.zeros((2 * nc,), jnp.float32),
        pb4=init_processblock(rng, 2 * nc, n_l[3], n_h[3]),
        up2_w=_bf16(rng.normal((nc, 3 * nc))), up2_b=jnp.zeros((nc,), jnp.float32),
        pb5=init_processblock(rng, nc, n_l[4], n_h[4]),
        convout_w=_bf16(rng.normal((3, nc))), convout_b=jnp.zeros((3,), jnp.float32),
    )


# ----------------------------------------------------------------------------
# Forward passes (activations carried as (C, B, H, W) bf16)
# ----------------------------------------------------------------------------
def lightblock_fwd(p, x):
    dim, B, H, W = x.shape
    # SIM: LN(1e-6) -> [TODO(synk): FFCResnetBlock not in source; identity]
    #      -> 5x5 conv -> SimpleGate -> 1x1 conv -> + x       (ONE pallas call)
    y = conv2d_as_mm(x, p['sim_w5'], p['sim_b5'], k=5, gate=True,
                     w2=p['sim_w1'], b2=p['sim_b1'], residual=x,
                     ln_pre=(p['sim_g'], p['sim_b'], 1e-6))
    # CIM: LN(1e-6) -> [FFC identity] -> 1x1 (dim->4dim) -> gate -> 1x1 -> + y
    yf = y.reshape(dim, -1)
    z = fused_mm(yf, p['cim_wa'], p['cim_ba'],
                 ln=(p['cim_g'], p['cim_b'], 1e-6), gate=True,
                 w2=p['cim_wb'], b2=p['cim_bb'], residual=yf)
    return z.reshape(dim, B, H, W)


def processblock_fwd(p, x):
    dim, B, H, W = x.shape
    Hh, Wh = H // 2, W // 2
    xori = x
    ll, hl, lh, hh = dwt(x)
    ll = conv2d_as_mm(ll, p['ll1_w'], p['ll1_b'], k=5)
    ll = conv2d_as_mm(ll, p['ll2_w'], p['ll2_b'], k=5)
    hhc = jnp.concatenate((hl, lh, hh), axis=1)               # batch axis
    hhc = conv2d_as_mm(hhc, p['hh_w'], p['hh_b'], k=3)        # dw3x3 + 1x1 fused
    e_hl, e_lh, e_hh = hhc[:, :B], hhc[:, B:2 * B], hhc[:, 2 * B:]
    # Wave convs: one 3x3 kernel tiled over every (co, ci) pair -> one 3-channel
    # dense conv of the channel sum; broadcast back to dim channels.
    wv = conv2d_as_mm(ll, p['wave_w'], None, k=3)             # (3, B, Hh, Wh)
    ll_hl = jnp.broadcast_to(wv[0:1], ll.shape)
    ll_lh = jnp.broadcast_to(wv[1:2], ll.shape)
    ll_hh = jnp.broadcast_to(wv[2:3], ll.shape)
    e_hl = jnp.concatenate((e_hl, ll_hl), axis=0)
    e_lh = jnp.concatenate((e_lh, ll_lh), axis=0)
    e_hh = jnp.concatenate((e_hh, ll_hh), axis=0)
    e_high = jnp.concatenate((e_hl, e_lh, e_hh), axis=1)      # (2dim, 3B, Hh, Wh)
    # 1x1 fuse conv (no bias) with the channel LayerNorm fused as an epilogue.
    eh = fused_mm(e_high.reshape(2 * dim, -1), p['fuse_w'], None,
                  ln_out=(p['n2_g'], p['n2_b'], 1e-5))
    for blk in p['ff']:
        # TODO(synk): SS2D6 (2D selective scan) not in provided source; identity,
        # which makes ss2d(y) + y == 2*y.
        e2 = eh * 2.0
        eh = fused_mm(e2, blk['w1'], blk['b1'],
                      ln=(blk['ln_g'], blk['ln_b'], 1e-5), act="gelu",
                      w2=blk['w2'], b2=blk['b2'], residual=e2)
    e_high = eh.reshape(dim, 3 * B, Hh, Wh)
    x_out = idwt(jnp.concatenate((ll, e_high), axis=1)) + xori
    for lb in p['pos']:
        x_out = lightblock_fwd(lb, x_out)
    return x_out


def cwnet_fwd(P, x_nchw):
    # NCHW -> (C, B, H, W) once at entry; back once at exit.
    x_cb = jnp.transpose(x_nchw, (1, 0, 2, 3))
    x_ori = x_cb.astype(jnp.float32)
    _, B, H, W = x_cb.shape
    xb = x_cb.astype(jnp.bfloat16)

    x = fused_mm(xb.reshape(3, -1), P['conv0_w'], P['conv0_b']).reshape(-1, B, H, W)
    x01 = processblock_fwd(P['pb1'], x)
    x1 = downsample(x01, P['down1_w'], P['down1_b'])
    x12 = processblock_fwd(P['pb2'], x1)
    x2 = downsample(x12, P['down2_w'], P['down2_b'])
    x3 = processblock_fwd(P['pb3'], x2)

    x3u = jax.image.resize(
        x3.astype(jnp.float32),
        (x3.shape[0], x3.shape[1], x12.shape[2], x12.shape[3]),
        method="bilinear").astype(jnp.bfloat16)
    cat1 = jnp.concatenate([x3u, x12], axis=0)
    x34 = fused_mm(cat1.reshape(cat1.shape[0], -1), P['up1_w'], P['up1_b'])
    x34 = x34.reshape(-1, B, x12.shape[2], x12.shape[3])
    x4 = processblock_fwd(P['pb4'], x34)

    x4u = jax.image.resize(
        x4.astype(jnp.float32),
        (x4.shape[0], x4.shape[1], x01.shape[2], x01.shape[3]),
        method="bilinear").astype(jnp.bfloat16)
    cat2 = jnp.concatenate([x4u, x01], axis=0)
    x4b = fused_mm(cat2.reshape(cat2.shape[0], -1), P['up2_w'], P['up2_b'])
    x4b = x4b.reshape(-1, B, H, W)
    x5 = processblock_fwd(P['pb5'], x4b)

    # Final 1x1 conv with the global residual fused into the kernel epilogue.
    xout = fused_mm(x5.reshape(x5.shape[0], -1), P['convout_w'], P['convout_b'],
                    residual=x_ori.reshape(3, -1), out_dtype=jnp.float32)
    return jnp.transpose(xout.reshape(3, B, H, W), (1, 0, 2, 3))


if __name__ == "__main__":
    nc = 4
    n_l_blocks = [1, 1, 1, 1, 1]
    n_h_blocks = [1, 1, 1, 1, 1]

    key = jax.random.PRNGKey(0)
    k_x, k_p = jax.random.split(key)
    x = jax.random.normal(k_x, (2, 3, 16, 16), jnp.float32)   # NCHW, small shapes

    params = init_cwnet(Init(k_p), nc, n_l_blocks, n_h_blocks)
    fwd = jax.jit(cwnet_fwd)
    out = jax.block_until_ready(fwd(params, x))

    assert out.shape == x.shape, out.shape
    assert jnp.all(jnp.isfinite(out))
    print("KERNEL_OK")
</pallas_src>

<mosaic_0001>
module attributes {stable_mosaic.version = 11 : i64} {
  func.func @kernel(%arg0: i32, %arg1: memref<3x512xbf16, #tpu.memory_space<vmem>>, %arg2: memref<4x3xbf16, #tpu.memory_space<vmem>>, %arg3: memref<4x1xf32, #tpu.memory_space<vmem>>, %arg4: memref<4x512xbf16, #tpu.memory_space<vmem>>) attributes {dimension_semantics = [#tpu.dimension_semantics<parallel>], iteration_bounds = array<i64: 1>, scalar_prefetch = 0 : i64, scratch_operands = 0 : i64, tpu.core_type = #tpu.core_type<tc>, window_params = [{transform_indices = @transform_0, window_bounds = array<i64: 3, 512>}, {pipeline_mode = #tpu.pipeline_mode<synchronous>, transform_indices = @transform_1, window_bounds = array<i64: 4, 3>}, {pipeline_mode = #tpu.pipeline_mode<synchronous>, transform_indices = @transform_2, window_bounds = array<i64: 4, 1>}, {transform_indices = @transform_3, window_bounds = array<i64: 4, 512>}]} {
    %c0 = arith.constant 0 : index
    %c0_0 = arith.constant 0 : index
    %0 = vector.load %arg1[%c0, %c0_0] : memref<3x512xbf16, #tpu.memory_space<vmem>>, vector<3x512xbf16>
    %c0_1 = arith.constant 0 : index
    %c0_2 = arith.constant 0 : index
    %1 = vector.load %arg2[%c0_1, %c0_2] : memref<4x3xbf16, #tpu.memory_space<vmem>>, vector<4x3xbf16>
    %c0_3 = arith.constant 0 : index
    %c0_4 = arith.constant 0 : index
    %2 = vector.load %arg3[%c0_3, %c0_4] : memref<4x1xf32, #tpu.memory_space<vmem>>, vector<4x1xf32>
    %cst = arith.constant dense<0.000000e+00> : vector<4x512xf32>
    %3 = tpu.matmul %1, %0, %cst {dimension_numbers = #tpu.dot_dimension_numbers<[1], [0], [0], [1], [0, 0, 1, 1], [], []>} : vector<4x3xbf16>, vector<3x512xbf16>, vector<4x512xf32> -> vector<4x512xf32>
    %4 = vector.broadcast %2 : vector<4x1xf32> to vector<4x512xf32>
    %5 = arith.addf %3, %4 : vector<4x512xf32>
    %6 = arith.truncf %5 : vector<4x512xf32> to vector<4x512xbf16>
    %c0_5 = arith.constant 0 : index
    %c0_6 = arith.constant 0 : index
    %7 = vector.load %arg4[%c0_5, %c0_6] : memref<4x512xbf16, #tpu.memory_space<vmem>>, vector<4x512xbf16>
    tpu.vector_store %arg4[%c0_5, %c0_6], %6 {strides = array<i32>} : memref<4x512xbf16, #tpu.memory_space<vmem>>, vector<4x512xbf16>,
    return
  }
  func.func @transform_0(%arg0: i32) -> (i32, i32) {
    %c0_i32 = arith.constant 0 : i32
    %c0_i32_0 = arith.constant 0 : i32
    return %c0_i32, %arg0 : i32, i32
  }
  func.func @transform_1(%arg0: i32) -> (i32, i32) {
    %c0_i32 = arith.constant 0 : i32
    %c0_i32_0 = arith.constant 0 : i32
    %c0_i32_1 = arith.constant 0 : i32
    return %c0_i32, %c0_i32_0 : i32, i32
  }
  func.func @transform_2(%arg0: i32) -> (i32, i32) {
    %c0_i32 = arith.constant 0 : i32
    %c0_i32_0 = arith.constant 0 : i32
    %c0_i32_1 = arith.constant 0 : i32
    return %c0_i32, %c0_i32_0 : i32, i32
  }
  func.func @transform_3(%arg0: i32) -> (i32, i32) {
    %c0_i32 = arith.constant 0 : i32
    %c0_i32_0 = arith.constant 0 : i32
    return %c0_i32, %arg0 : i32, i32
  }
}

module attributes {stable_mosaic.version = 11 : i64} {
  func.func @kernel(%arg0: i32, %arg1: memref<100x128xbf16, #tpu.memory_space<vmem>>, %arg2: memref<4x100xbf16, #tpu.memory_space<vmem>>, %arg3: memref<4x1xf32, #tpu.memory_space<vmem>>, %arg4: memref<4x128xbf16, #tpu.memory_space<vmem>>) attributes {dimension_semantics = [#tpu.dimension_semantics<parallel>], iteration_bounds = array<i64: 1>, scalar_prefetch = 0 : i64, scratch_operands = 0 : i64, tpu.core_type = #tpu.core_type<tc>, window_params = [{transform_indices = @transform_0, window_bounds = array<i64: 100, 128>}, {pipeline_mode = #tpu.pipeline_mode<synchronous>, transform_indices = @transform_1, window_bounds = array<i64: 4, 100>}, {pipeline_mode = #tpu.pipeline_mode<synchronous>, transform_indices = @transform_2, window_bounds = array<i64: 4, 1>}, {transform_indices = @transform_3, window_bounds = array<i64: 4, 128>}]} {
    %c0 = arith.constant 0 : index
    %c0_0 = arith.constant 0 : index
    %0 = vector.load %arg1[%c0, %c0_0] : memref<100x128xbf16, #tpu.memory_space<vmem>>, vector<100x128xbf16>
    %c0_1 = arith.constant 0 : index
    %c0_2 = arith.constant 0 : index
    %1 = vector.load %arg2[%c0_1, %c0_2] : memref<4x100xbf16, #tpu.memory_space<vmem>>, vector<4x100xbf16>
    %c0_3 = arith.constant 0 : index
    %c0_4 = arith.constant 0 : index
    %2 = vector.load %arg3[%c0_3, %c0_4] : memref<4x1xf32, #tpu.memory_space<vmem>>, vector<4x1xf32>
    %cst = arith.constant dense<0.000000e+00> : vector<4x128xf32>
    %3 = tpu.matmul %1, %0, %cst {dimension_numbers = #tpu.dot_dimension_numbers<[1], [0], [0], [1], [0, 0, 1, 1], [], []>} : vector<4x100xbf16>, vector<100x128xbf16>, vector<4x128xf32> -> vector<4x128xf32>
    %4 = vector.broadcast %2 : vector<4x1xf32> to vector<4x128xf32>
    %5 = arith.addf %3, %4 : vector<4x128xf32>
    %6 = arith.truncf %5 : vector<4x128xf32> to vector<4x128xbf16>
    %c0_5 = arith.constant 0 : index
    %c0_6 = arith.constant 0 : index
    %7 = vector.load %arg4[%c0_5, %c0_6] : memref<4x128xbf16, #tpu.memory_space<vmem>>, vector<4x128xbf16>
    tpu.vector_store %arg4[%c0_5, %c0_6], %6 {strides = array<i32>} : memref<4x128xbf16, #tpu.memory_space<vmem>>, vector<4x128xbf16>,
    return
  }
  func.func @transform_0(%arg0: i32) -> (i32, i32) {
    %c0_i32 = arith.constant 0 : i32
    %c0_i32_0 = arith.constant 0 : i32
    return %c0_i32, %arg0 : i32, i32
  }
  func.func @transform_1(%arg0: i32) -> (i32, i32) {
    %c0_i32 = arith.constant 0 : i32
    %c0_i32_0 = arith.constant 0 : i32
    %c0_i32_1 = arith.constant 0 : i32
    return %c0_i32, %c0_i32_0 : i32, i32
  }
  func.func @transform_2(%arg0: i32) -> (i32, i32) {
    %c0_i32 = arith.constant 0 : i32
    %c0_i32_0 = arith.constant 0 : i32
    %c0_i32_1 = arith.constant 0 : i32
    return %c0_i32, %c0_i32_0 : i32, i32
  }
  func.func @transform_3(%arg0: i32) -> (i32, i32) {
    %c0_i32 = arith.constant 0 : i32
    %c0_i32_0 = arith.constant 0 : i32
    return %c0_i32, %arg0 : i32, i32
  }
}

module attributes {stable_mosaic.version = 11 : i64} {
  func.func @kernel(%arg0: i32, %arg1: memref<36x128xbf16, #tpu.memory_space<vmem>>, %arg2: memref<3x36xbf16, #tpu.memory_space<vmem>>, %arg3: memref<3x1xf32, #tpu.memory_space<vmem>>, %arg4: memref<3x128xbf16, #tpu.memory_space<vmem>>) attributes {dimension_semantics = [#tpu.dimension_semantics<parallel>], iteration_bounds = array<i64: 1>, scalar_prefetch = 0 : i64, scratch_operands = 0 : i64, tpu.core_type = #tpu.core_type<tc>, window_params = [{transform_indices = @transform_0, window_bounds = array<i64: 36, 128>}, {pipeline_mode = #tpu.pipeline_mode<synchronous>, transform_indices = @transform_1, window_bounds = array<i64: 3, 36>}, {pipeline_mode = #tpu.pipeline_mode<synchronous>, transform_indices = @transform_2, window_bounds = array<i64: 3, 1>}, {transform_indices = @transform_3, window_bounds = array<i64: 3, 128>}]} {
    %c0 = arith.constant 0 : index
    %c0_0 = arith.constant 0 : index
    %0 = vector.load %arg1[%c0, %c0_0] : memref<36x128xbf16, #tpu.memory_space<vmem>>, vector<36x128xbf16>
    %c0_1 = arith.constant 0 : index
    %c0_2 = arith.constant 0 : index
    %1 = vector.load %arg2[%c0_1, %c0_2] : memref<3x36xbf16, #tpu.memory_space<vmem>>, vector<3x36xbf16>
    %c0_3 = arith.constant 0 : index
    %c0_4 = arith.constant 0 : index
    %2 = vector.load %arg3[%c0_3, %c0_4] : memref<3x1xf32, #tpu.memory_space<vmem>>, vector<3x1xf32>
    %cst = arith.constant dense<0.000000e+00> : vector<3x128xf32>
    %3 = tpu.matmul %1, %0, %cst {dimension_numbers = #tpu.dot_dimension_numbers<[1], [0], [0], [1], [0, 0, 1, 1], [], []>} : vector<3x36xbf16>, vector<36x128xbf16>, vector<3x128xf32> -> vector<3x128xf32>
    %4 = vector.broadcast %2 : vector<3x1xf32> to vector<3x128xf32>
    %5 = arith.addf %3, %4 : vector<3x128xf32>
    %6 = arith.truncf %5 : vector<3x128xf32> to vector<3x128xbf16>
    %c0_5 = arith.constant 0 : index
    %c0_6 = arith.constant 0 : index
    %7 = vector.load %arg4[%c0_5, %c0_6] : memref<3x128xbf16, #tpu.memory_space<vmem>>, vector<3x128xbf16>
    tpu.vector_store %arg4[%c0_5, %c0_6], %6 {strides = array<i32>} : memref<3x128xbf16, #tpu.memory_space<vmem>>, vector<3x128xbf16>,
    return
  }
  func.func @transform_0(%arg0: i32) -> (i32, i32) {
    %c0_i32 = arith.constant 0 : i32
    %c0_i32_0 = arith.constant 0 : i32
    return %c0_i32, %arg0 : i32, i32
  }
  func.func @transform_1(%arg0: i32) -> (i32, i32) {
    %c0_i32 = arith.constant 0 : i32
    %c0_i32_0 = arith.constant 0 : i32
    %c0_i32_1 = arith.constant 0 : i32
    return %c0_i32, %c0_i32_0 : i32, i32
  }
  func.func @transform_2(%arg0: i32) -> (i32, i32) {
    %c0_i32 = arith.constant 0 : i32
    %c0_i32_0 = arith.constant 0 : i32
    %c0_i32_1 = arith.constant 0 : i32
    return %c0_i32, %c0_i32_0 : i32, i32
  }
  func.func @transform_3(%arg0: i32) -> (i32, i32) {
    %c0_i32 = arith.constant 0 : i32
    %c0_i32_0 = arith.constant 0 : i32
    return %c0_i32, %arg0 : i32, i32
  }
}

module attributes {stable_mosaic.version = 11 : i64} {
  func.func @kernel(%arg0: i32, %arg1: memref<36x384xbf16, #tpu.memory_space<vmem>>, %arg2: memref<4x36xbf16, #tpu.memory_space<vmem>>, %arg3: memref<4x1xf32, #tpu.memory_space<vmem>>, %arg4: memref<4x384xbf16, #tpu.memory_space<vmem>>) attributes {dimension_semantics = [#tpu.dimension_semantics<parallel>], iteration_bounds = array<i64: 1>, scalar_prefetch = 0 : i64, scratch_operands = 0 : i64, tpu.core_type = #tpu.core_type<tc>, window_params = [{transform_indices = @transform_0, window_bounds = array<i64: 36, 384>}, {pipeline_mode = #tpu.pipeline_mode<synchronous>, transform_indices = @transform_1, window_bounds = array<i64: 4, 36>}, {pipeline_mode = #tpu.pipeline_mode<synchronous>, transform_indices = @transform_2, window_bounds = array<i64: 4, 1>}, {transform_indices = @transform_3, window_bounds = array<i64: 4, 384>}]} {
    %c0 = arith.constant 0 : index
    %c0_0 = arith.constant 0 : index
    %0 = vector.load %arg1[%c0, %c0_0] : memref<36x384xbf16, #tpu.memory_space<vmem>>, vector<36x384xbf16>
    %c0_1 = arith.constant 0 : index
    %c0_2 = arith.constant 0 : index
    %1 = vector.load %arg2[%c0_1, %c0_2] : memref<4x36xbf16, #tpu.memory_space<vmem>>, vector<4x36xbf16>
    %c0_3 = arith.constant 0 : index
    %c0_4 = arith.constant 0 : index
    %2 = vector.load %arg3[%c0_3, %c0_4] : memref<4x1xf32, #tpu.memory_space<vmem>>, vector<4x1xf32>
    %cst = arith.constant dense<0.000000e+00> : vector<4x384xf32>
    %3 = tpu.matmul %1, %0, %cst {dimension_numbers = #tpu.dot_dimension_numbers<[1], [0], [0], [1], [0, 0, 1, 1], [], []>} : vector<4x36xbf16>, vector<36x384xbf16>, vector<4x384xf32> -> vector<4x384xf32>
    %4 = vector.broadcast %2 : vector<4x1xf32> to vector<4x384xf32>
    %5 = arith.addf %3, %4 : vector<4x384xf32>
    %6 = arith.truncf %5 : vector<4x384xf32> to vector<4x384xbf16>
    %c0_5 = arith.constant 0 : index
    %c0_6 = arith.constant 0 : index
    %7 = vector.load %arg4[%c0_5, %c0_6] : memref<4x384xbf16, #tpu.memory_space<vmem>>, vector<4x384xbf16>
    tpu.vector_store %arg4[%c0_5, %c0_6], %6 {strides = array<i32>} : memref<4x384xbf16, #tpu.memory_space<vmem>>, vector<4x384xbf16>,
    return
  }
  func.func @transform_0(%arg0: i32) -> (i32, i32) {
    %c0_i32 = arith.constant 0 : i32
    %c0_i32_0 = arith.constant 0 : i32
    return %c0_i32, %arg0 : i32, i32
  }
  func.func @transform_1(%arg0: i32) -> (i32, i32) {
    %c0_i32 = arith.constant 0 : i32
    %c0_i32_0 = arith.constant 0 : i32
    %c0_i32_1 = arith.constant 0 : i32
    return %c0_i32, %c0_i32_0 : i32, i32
  }
  func.func @transform_2(%arg0: i32) -> (i32, i32) {
    %c0_i32 = arith.constant 0 : i32
    %c0_i32_0 = arith.constant 0 : i32
    %c0_i32_1 = arith.constant 0 : i32
    return %c0_i32, %c0_i32_0 : i32, i32
  }
  func.func @transform_3(%arg0: i32) -> (i32, i32) {
    %c0_i32 = arith.constant 0 : i32
    %c0_i32_0 = arith.constant 0 : i32
    return %c0_i32, %arg0 : i32, i32
  }
}

module attributes {stable_mosaic.version = 11 : i64} {
  func.func @kernel(%arg0: i32, %arg1: memref<8x384xbf16, #tpu.memory_space<vmem>>, %arg2: memref<4x8xbf16, #tpu.memory_space<vmem>>, %arg3: memref<4x1xf32, #tpu.memory_space<vmem>>, %arg4: memref<4x1xf32, #tpu.memory_space<vmem>>, %arg5: memref<4x1xf32, #tpu.memory_space<vmem>>, %arg6: memref<4x384xbf16, #tpu.memory_space<vmem>>) attributes {dimension_semantics = [#tpu.dimension_semantics<parallel>], iteration_bounds = array<i64: 1>, scalar_prefetch = 0 : i64, scratch_operands = 0 : i64, tpu.core_type = #tpu.core_type<tc>, window_params = [{transform_indices = @transform_0, window_bounds = array<i64: 8, 384>}, {pipeline_mode = #tpu.pipeline_mode<synchronous>, transform_indices = @transform_1, window_bounds = array<i64: 4, 8>}, {pipeline_mode = #tpu.pipeline_mode<synchronous>, transform_indices = @transform_2, window_bounds = array<i64: 4, 1>}, {pipeline_mode = #tpu.pipeline_mode<synchronous>, transform_indices = @transform_3, window_bounds = array<i64: 4, 1>}, {pipeline_mode = #tpu.pipeline_mode<synchronous>, transform_indices = @transform_4, window_bounds = array<i64: 4, 1>}, {transform_indices = @transform_5, window_bounds = array<i64: 4, 384>}]} {
    %c0 = arith.constant 0 : index
    %c0_0 = arith.constant 0 : index
    %0 = vector.load %arg1[%c0, %c0_0] : memref<8x384xbf16, #tpu.memory_space<vmem>>, vector<8x384xbf16>
    %c0_1 = arith.constant 0 : index
    %c0_2 = arith.constant 0 : index
    %1 = vector.load %arg2[%c0_1, %c0_2] : memref<4x8xbf16, #tpu.memory_space<vmem>>, vector<4x8xbf16>
    %c0_3 = arith.constant 0 : index
    %c0_4 = arith.constant 0 : index
    %2 = vector.load %arg3[%c0_3, %c0_4] : memref<4x1xf32, #tpu.memory_space<vmem>>, vector<4x1xf32>
    %cst = arith.constant dense<0.000000e+00> : vector<4x384xf32>
    %3 = tpu.matmul %1, %0, %cst {dimension_numbers = #tpu.dot_dimension_numbers<[1], [0], [0], [1], [0, 0, 1, 1], [], []>} : vector<4x8xbf16>, vector<8x384xbf16>, vector<4x384xf32> -> vector<4x384xf32>
    %4 = vector.broadcast %2 : vector<4x1xf32> to vector<4x384xf32>
    %5 = arith.addf %3, %4 : vector<4x384xf32>
    %c0_5 = arith.constant 0 : index
    %c0_6 = arith.constant 0 : index
    %6 = vector.load %arg4[%c0_5, %c0_6] : memref<4x1xf32, #tpu.memory_space<vmem>>, vector<4x1xf32>
    %c0_7 = arith.constant 0 : index
    %c0_8 = arith.constant 0 : index
    %7 = vector.load %arg5[%c0_7, %c0_8] : memref<4x1xf32, #tpu.memory_space<vmem>>, vector<4x1xf32>
    %cst_9 = arith.constant dense<0.000000e+00> : vector<384xf32>
    %8 = vector.multi_reduction <add>, %5, %cst_9 [0] : vector<4x384xf32> to vector<384xf32>
    %9 = vector.shape_cast %8 : vector<384xf32> to vector<1x384xf32>
    %cst_10 = arith.constant 4.000000e+00 : f32
    %10 = vector.broadcast %cst_10 : f32 to vector<1x384xf32>
    %11 = arith.divf %9, %10 : vector<1x384xf32>
    %12 = vector.broadcast %11 : vector<1x384xf32> to vector<4x384xf32>
    %13 = arith.subf %5, %12 : vector<4x384xf32>
    %14 = arith.mulf %13, %13 : vector<4x384xf32>
    %cst_11 = arith.constant dense<0.000000e+00> : vector<384xf32>
    %15 = vector.multi_reduction <add>, %14, %cst_11 [0] : vector<4x384xf32> to vector<384xf32>
    %16 = vector.shape_cast %15 : vector<384xf32> to vector<1x384xf32>
    %cst_12 = arith.constant 4.000000e+00 : f32
    %17 = vector.broadcast %cst_12 : f32 to vector<1x384xf32>
    %18 = arith.divf %16, %17 : vector<1x384xf32>
    %19 = vector.broadcast %11 : vector<1x384xf32> to vector<4x384xf32>
    %20 = arith.subf %5, %19 : vector<4x384xf32>
    %cst_13 = arith.constant 9.99999974E-6 : f32
    %21 = vector.broadcast %cst_13 : f32 to vector<1x384xf32>
    %22 = arith.addf %18, %21 : vector<1x384xf32>
    %23 = math.rsqrt %22 : vector<1x384xf32>
    %24 = vector.broadcast %23 : vector<1x384xf32> to vector<4x384xf32>
    %25 = arith.mulf %20, %24 : vector<4x384xf32>
    %26 = vector.broadcast %6 : vector<4x1xf32> to vector<4x384xf32>
    %27 = arith.mulf %25, %26 : vector<4x384xf32>
    %28 = vector.broadcast %7 : vector<4x1xf32> to vector<4x384xf32>
    %29 = arith.addf %27, %28 : vector<4x384xf32>
    %30 = arith.truncf %29 : vector<4x384xf32> to vector<4x384xbf16>
    %c0_14 = arith.constant 0 : index
    %c0_15 = arith.constant 0 : index
    %31 = vector.load %arg6[%c0_14, %c0_15] : memref<4x384xbf16, #tpu.memory_space<vmem>>, vector<4x384xbf16>
    tpu.vector_store %arg6[%c0_14, %c0_15], %30 {strides = array<i32>} : memref<4x384xbf16, #tpu.memory_space<vmem>>, vector<4x384xbf16>,
    return
  }
  func.func @transform_0(%arg0: i32) -> (i32, i32) {
    %c0_i32 = arith.constant 0 : i32
    %c0_i32_0 = arith.constant 0 : i32
    return %c0_i32, %arg0 : i32, i32
  }
  func.func @transform_1(%arg0: i32) -> (i32, i32) {
    %c0_i32 = arith.constant 0 : i32
    %c0_i32_0 = arith.constant 0 : i32
    %c0_i32_1 = arith.constant 0 : i32
    return %c0_i32, %c0_i32_0 : i32, i32
  }
  func.func @transform_2(%arg0: i32) -> (i32, i32) {
    %c0_i32 = arith.constant 0 : i32
    %c0_i32_0 = arith.constant 0 : i32
    %c0_i32_1 = arith.constant 0 : i32
    return %c0_i32, %c0_i32_0 : i32, i32
  }
  func.func @transform_3(%arg0: i32) -> (i32, i32) {
    %c0_i32 = arith.constant 0 : i32
    %c0_i32_0 = arith.constant 0 : i32
    %c0_i32_1 = arith.constant 0 : i32
    return %c0_i32, %c0_i32_0 : i32, i32
  }
  func.func @transform_4(%arg0: i32) -> (i32, i32) {
    %c0_i32 = arith.constant 0 : i32
    %c0_i32_0 = arith.constant 0 : i32
    %c0_i32_1 = arith.constant 0 : i32
    return %c0_i32, %c0_i32_0 : i32, i32
  }
  func.func @transform_5(%arg0: i32) -> (i32, i32) {
    %c0_i32 = arith.constant 0 : i32
    %c0_i32_0 = arith.constant 0 : i32
    return %c0_i32, %arg0 : i32, i32
  }
}

module attributes {stable_mosaic.version = 11 : i64} {
  func.func @kernel(%arg0: i32, %arg1: memref<4x384xbf16, #tpu.memory_space<vmem>>, %arg2: memref<4x1xf32, #tpu.memory_space<vmem>>, %arg3: memref<4x1xf32, #tpu.memory_space<vmem>>, %arg4: memref<16x4xbf16, #tpu.memory_space<vmem>>, %arg5: memref<16x1xf32, #tpu.memory_space<vmem>>, %arg6: memref<4x16xbf16, #tpu.memory_space<vmem>>, %arg7: memref<4x1xf32, #tpu.memory_space<vmem>>, %arg8: memref<4x384xbf16, #tpu.memory_space<vmem>>, %arg9: memref<4x384xbf16, #tpu.memory_space<vmem>>) attributes {dimension_semantics = [#tpu.dimension_semantics<parallel>], iteration_bounds = array<i64: 1>, scalar_prefetch = 0 : i64, scratch_operands = 0 : i64, tpu.core_type = #tpu.core_type<tc>, window_params = [{transform_indices = @transform_0, window_bounds = array<i64: 4, 384>}, {pipeline_mode = #tpu.pipeline_mode<synchronous>, transform_indices = @transform_1, window_bounds = array<i64: 4, 1>}, {pipeline_mode = #tpu.pipeline_mode<synchronous>, transform_indices = @transform_2, window_bounds = array<i64: 4, 1>}, {pipeline_mode = #tpu.pipeline_mode<synchronous>, transform_indices = @transform_3, window_bounds = array<i64: 16, 4>}, {pipeline_mode = #tpu.pipeline_mode<synchronous>, transform_indices = @transform_4, window_bounds = array<i64: 16, 1>}, {pipeline_mode = #tpu.pipeline_mode<synchronous>, transform_indices = @transform_5, window_bounds = array<i64: 4, 16>}, {pipeline_mode = #tpu.pipeline_mode<synchronous>, transform_indices = @transform_6, window_bounds = array<i64: 4, 1>}, {transform_indices = @transform_7, window_bounds = array<i64: 4, 384>}, {transform_indices = @transform_8, window_bounds = array<i64: 4, 384>}]} {
    %c0 = arith.constant 0 : index
    %c0_0 = arith.constant 0 : index
    %0 = vector.load %arg1[%c0, %c0_0] : memref<4x384xbf16, #tpu.memory_space<vmem>>, vector<4x384xbf16>
    %c0_1 = arith.constant 0 : index
    %c0_2 = arith.constant 0 : index
    %1 = vector.load %arg2[%c0_1, %c0_2] : memref<4x1xf32, #tpu.memory_space<vmem>>, vector<4x1xf32>
    %c0_3 = arith.constant 0 : index
    %c0_4 = arith.constant 0 : index
    %2 = vector.load %arg3[%c0_3, %c0_4] : memref<4x1xf32, #tpu.memory_space<vmem>>, vector<4x1xf32>
    %3 = arith.extf %0 : vector<4x384xbf16> to vector<4x384xf32>
    %cst = arith.constant dense<0.000000e+00> : vector<384xf32>
    %4 = vector.multi_reduction <add>, %3, %cst [0] : vector<4x384xf32> to vector<384xf32>
    %5 = vector.shape_cast %4 : vector<384xf32> to vector<1x384xf32>
    %cst_5 = arith.constant 4.000000e+00 : f32
    %6 = vector.broadcast %cst_5 : f32 to vector<1x384xf32>
    %7 = arith.divf %5, %6 : vector<1x384xf32>
    %8 = vector.broadcast %7 : vector<1x384xf32> to vector<4x384xf32>
    %9 = arith.subf %3, %8 : vector<4x384xf32>
    %10 = arith.mulf %9, %9 : vector<4x384xf32>
    %cst_6 = arith.constant dense<0.000000e+00> : vector<384xf32>
    %11 = vector.multi_reduction <add>, %10, %cst_6 [0] : vector<4x384xf32> to vector<384xf32>
    %12 = vector.shape_cast %11 : vector<384xf32> to vector<1x384xf32>
    %cst_7 = arith.constant 4.000000e+00 : f32
    %13 = vector.broadcast %cst_7 : f32 to vector<1x384xf32>
    %14 = arith.divf %12, %13 : vector<1x384xf32>
    %15 = vector.broadcast %7 : vector<1x384xf32> to vector<4x384xf32>
    %16 = arith.subf %3, %15 : vector<4x384xf32>
    %cst_8 = arith.constant 9.99999974E-6 : f32
    %17 = vector.broadcast %cst_8 : f32 to vector<1x384xf32>
    %18 = arith.addf %14, %17 : vector<1x384xf32>
    %19 = math.rsqrt %18 : vector<1x384xf32>
    %20 = vector.broadcast %19 : vector<1x384xf32> to vector<4x384xf32>
    %21 = arith.mulf %16, %20 : vector<4x384xf32>
    %22 = vector.broadcast %1 : vector<4x1xf32> to vector<4x384xf32>
    %23 = arith.mulf %21, %22 : vector<4x384xf32>
    %24 = vector.broadcast %2 : vector<4x1xf32> to vector<4x384xf32>
    %25 = arith.addf %23, %24 : vector<4x384xf32>
    %26 = arith.truncf %25 : vector<4x384xf32> to vector<4x384xbf16>
    %c0_9 = arith.constant 0 : index
    %c0_10 = arith.constant 0 : index
    %27 = vector.load %arg4[%c0_9, %c0_10] : memref<16x4xbf16, #tpu.memory_space<vmem>>, vector<16x4xbf16>
    %c0_11 = arith.constant 0 : index
    %c0_12 = arith.constant 0 : index
    %28 = vector.load %arg5[%c0_11, %c0_12] : memref<16x1xf32, #tpu.memory_space<vmem>>, vector<16x1xf32>
    %cst_13 = arith.constant dense<0.000000e+00> : vector<16x384xf32>
    %29 = tpu.matmul %27, %26, %cst_13 {dimension_numbers = #tpu.dot_dimension_numbers<[1], [0], [0], [1], [0, 0, 1, 1], [], []>} : vector<16x4xbf16>, vector<4x384xbf16>, vector<16x384xf32> -> vector<16x384xf32>
    %30 = vector.broadcast %28 : vector<16x1xf32> to vector<16x384xf32>
    %31 = arith.addf %29, %30 : vector<16x384xf32>
    %32 = arith.mulf %31, %31 : vector<16x384xf32>
    %33 = arith.mulf %31, %32 : vector<16x384xf32>
    %cst_14 = arith.constant 4.471500e-02 : f32
    %34 = vector.broadcast %cst_14 : f32 to vector<16x384xf32>
    %35 = arith.mulf %34, %33 : vector<16x384xf32>
    %36 = arith.addf %31, %35 : vector<16x384xf32>
    %cst_15 = arith.constant 0.797884583 : f32
    %37 = vector.broadcast %cst_15 : f32 to vector<16x384xf32>
    %38 = arith.mulf %37, %36 : vector<16x384xf32>
    %39 = math.tanh %38 : vector<16x384xf32>
    %cst_16 = arith.constant 1.000000e+00 : f32
    %40 = vector.broadcast %cst_16 : f32 to vector<16x384xf32>
    %41 = arith.addf %40, %39 : vector<16x384xf32>
    %cst_17 = arith.constant 5.000000e-01 : f32
    %42 = vector.broadcast %cst_17 : f32 to vector<16x384xf32>
    %43 = arith.mulf %42, %41 : vector<16x384xf32>
    %44 = arith.mulf %31, %43 : vector<16x384xf32>
    %c0_18 = arith.constant 0 : index
    %c0_19 = arith.constant 0 : index
    %45 = vector.load %arg6[%c0_18, %c0_19] : memref<4x16xbf16, #tpu.memory_space<vmem>>, vector<4x16xbf16>
    %c0_20 = arith.constant 0 : index
    %c0_21 = arith.constant 0 : index
    %46 = vector.load %arg7[%c0_20, %c0_21] : memref<4x1xf32, #tpu.memory_space<vmem>>, vector<4x1xf32>
    %47 = arith.truncf %44 : vector<16x384xf32> to vector<16x384xbf16>
    %cst_22 = arith.constant dense<0.000000e+00> : vector<4x384xf32>
    %48 = tpu.matmul %45, %47, %cst_22 {dimension_numbers = #tpu.dot_dimension_numbers<[1], [0], [0], [1], [0, 0, 1, 1], [], []>} : vector<4x16xbf16>, vector<16x384xbf16>, vector<4x384xf32> -> vector<4x384xf32>
    %49 = vector.broadcast %46 : vector<4x1xf32> to vector<4x384xf32>
    %50 = arith.addf %48, %49 : vector<4x384xf32>
    %c0_23 = arith.constant 0 : index
    %c0_24 = arith.constant 0 : index
    %51 = vector.load %arg8[%c0_23, %c0_24] : memref<4x384xbf16, #tpu.memory_space<vmem>>, vector<4x384xbf16>
    %52 = arith.extf %51 : vector<4x384xbf16> to vector<4x384xf32>
    %53 = arith.addf %50, %52 : vector<4x384xf32>
    %54 = arith.truncf %53 : vector<4x384xf32> to vector<4x384xbf16>
    %c0_25 = arith.constant 0 : index
    %c0_26 = arith.constant 0 : index
    %55 = vector.load %arg9[%c0_25, %c0_26] : memref<4x384xbf16, #tpu.memory_space<vmem>>, vector<4x384xbf16>
    tpu.vector_store %arg9[%c0_25, %c0_26], %54 {strides = array<i32>} : memref<4x384xbf16, #tpu.memory_space<vmem>>, vector<4x384xbf16>,
    return
  }
  func.func @transform_0(%arg0: i32) -> (i32, i32) {
    %c0_i32 = arith.constant 0 : i32
    %c0_i32_0 = arith.constant 0 : i32
    return %c0_i32, %arg0 : i32, i32
  }
  func.func @transform_1(%arg0: i32) -> (i32, i32) {
    %c0_i32 = arith.constant 0 : i32
    %c0_i32_0 = arith.constant 0 : i32
    %c0_i32_1 = arith.constant 0 : i32
    return %c0_i32, %c0_i32_0 : i32, i32
  }
  func.func @transform_2(%arg0: i32) -> (i32, i32) {
    %c0_i32 = arith.constant 0 : i32
    %c0_i32_0 = arith.constant 0 : i32
    %c0_i32_1 = arith.constant 0 : i32
    return %c0_i32, %c0_i32_0 : i32, i32
  }
  func.func @transform_3(%arg0: i32) -> (i32, i32) {
    %c0_i32 = arith.constant 0 : i32
    %c0_i32_0 = arith.constant 0 : i32
    %c0_i32_1 = arith.constant 0 : i32
    return %c0_i32, %c0_i32_0 : i32, i32
  }
  func.func @transform_4(%arg0: i32) -> (i32, i32) {
    %c0_i32 = arith.constant 0 : i32
    %c0_i32_0 = arith.constant 0 : i32
    %c0_i32_1 = arith.constant 0 : i32
    return %c0_i32, %c0_i32_0 : i32, i32
  }
  func.func @transform_5(%arg0: i32) -> (i32, i32) {
    %c0_i32 = arith.constant 0 : i32
    %c0_i32_0 = arith.constant 0 : i32
    %c0_i32_1 = arith.constant 0 : i32
    return %c0_i32, %c0_i32_0 : i32, i32
  }
  func.func @transform_6(%arg0: i32) -> (i32, i32) {
    %c0_i32 = arith.constant 0 : i32
    %c0_i32_0 = arith.constant 0 : i32
    %c0_i32_1 = arith.constant 0 : i32
    return %c0_i32, %c0_i32_0 : i32, i32
  }
  func.func @transform_7(%arg0: i32) -> (i32, i32) {
    %c0_i32 = arith.constant 0 : i32
    %c0_i32_0 = arith.constant 0 : i32
    return %c0_i32, %arg0 : i32, i32
  }
  func.func @transform_8(%arg0: i32) -> (i32, i32) {
    %c0_i32 = arith.constant 0 : i32
    %c0_i32_0 = arith.constant 0 : i32
    return %c0_i32, %arg0 : i32, i32
  }
}

module attributes {stable_mosaic.version = 11 : i64} {
  func.func @kernel(%arg0: i32, %arg1: memref<100x512xbf16, #tpu.memory_space<vmem>>, %arg2: memref<4x100xbf16, #tpu.memory_space<vmem>>, %arg3: memref<4x1xf32, #tpu.memory_space<vmem>>, %arg4: memref<4x2xbf16, #tpu.memory_space<vmem>>, %arg5: memref<4x1xf32, #tpu.memory_space<vmem>>, %arg6: memref<4x512xbf16, #tpu.memory_space<vmem>>, %arg7: memref<4x512xbf16, #tpu.memory_space<vmem>>) attributes {dimension_semantics = [#tpu.dimension_semantics<parallel>], iteration_bounds = array<i64: 1>, scalar_prefetch = 0 : i64, scratch_operands = 0 : i64, tpu.core_type = #tpu.core_type<tc>, window_params = [{transform_indices = @transform_0, window_bounds = array<i64: 100, 512>}, {pipeline_mode = #tpu.pipeline_mode<synchronous>, transform_indices = @transform_1, window_bounds = array<i64: 4, 100>}, {pipeline_mode = #tpu.pipeline_mode<synchronous>, transform_indices = @transform_2, window_bounds = array<i64: 4, 1>}, {pipeline_mode = #tpu.pipeline_mode<synchronous>, transform_indices = @transform_3, window_bounds = array<i64: 4, 2>}, {pipeline_mode = #tpu.pipeline_mode<synchronous>, transform_indices = @transform_4, window_bounds = array<i64: 4, 1>}, {transform_indices = @transform_5, window_bounds = array<i64: 4, 512>}, {transform_indices = @transform_6, window_bounds = array<i64: 4, 512>}]} {
    %c0 = arith.constant 0 : index
    %c0_0 = arith.constant 0 : index
    %0 = vector.load %arg1[%c0, %c0_0] : memref<100x512xbf16, #tpu.memory_space<vmem>>, vector<100x512xbf16>
    %c0_1 = arith.constant 0 : index
    %c0_2 = arith.constant 0 : index
    %1 = vector.load %arg2[%c0_1, %c0_2] : memref<4x100xbf16, #tpu.memory_space<vmem>>, vector<4x100xbf16>
    %c0_3 = arith.constant 0 : index
    %c0_4 = arith.constant 0 : index
    %2 = vector.load %arg3[%c0_3, %c0_4] : memref<4x1xf32, #tpu.memory_space<vmem>>, vector<4x1xf32>
    %cst = arith.constant dense<0.000000e+00> : vector<4x512xf32>
    %3 = tpu.matmul %1, %0, %cst {dimension_numbers = #tpu.dot_dimension_numbers<[1], [0], [0], [1], [0, 0, 1, 1], [], []>} : vector<4x100xbf16>, vector<100x512xbf16>, vector<4x512xf32> -> vector<4x512xf32>
    %4 = vector.broadcast %2 : vector<4x1xf32> to vector<4x512xf32>
    %5 = arith.addf %3, %4 : vector<4x512xf32>
    %6 = vector.extract_strided_slice %5 {offsets = [0, 0], sizes = [2, 512], strides = [1, 1]} : vector<4x512xf32> to vector<2x512xf32>
    %7 = vector.extract_strided_slice %5 {offsets = [2, 0], sizes = [2, 512], strides = [1, 1]} : vector<4x512xf32> to vector<2x512xf32>
    %8 = arith.mulf %6, %7 : vector<2x512xf32>
    %c0_5 = arith.constant 0 : index
    %c0_6 = arith.constant 0 : index
    %9 = vector.load %arg4[%c0_5, %c0_6] : memref<4x2xbf16, #tpu.memory_space<vmem>>, vector<4x2xbf16>
    %c0_7 = arith.constant 0 : index
    %c0_8 = arith.constant 0 : index
    %10 = vector.load %arg5[%c0_7, %c0_8] : memref<4x1xf32, #tpu.memory_space<vmem>>, vector<4x1xf32>
    %11 = arith.truncf %8 : vector<2x512xf32> to vector<2x512xbf16>
    %cst_9 = arith.constant dense<0.000000e+00> : vector<4x512xf32>
    %12 = tpu.matmul %9, %11, %cst_9 {dimension_numbers = #tpu.dot_dimension_numbers<[1], [0], [0], [1], [0, 0, 1, 1], [], []>} : vector<4x2xbf16>, vector<2x512xbf16>, vector<4x512xf32> -> vector<4x512xf32>
    %13 = vector.broadcast %10 : vector<4x1xf32> to vector<4x512xf32>
    %14 = arith.addf %12, %13 : vector<4x512xf32>
    %c0_10 = arith.constant 0 : index
    %c0_11 = arith.constant 0 : index
    %15 = vector.load %arg6[%c0_10, %c0_11] : memref<4x512xbf16, #tpu.memory_space<vmem>>, vector<4x512xbf16>
    %16 = arith.extf %15 : vector<4x512xbf16> to vector<4x512xf32>
    %17 = arith.addf %14, %16 : vector<4x512xf32>
    %18 = arith.truncf %17 : vector<4x512xf32> to vector<4x512xbf16>
    %c0_12 = arith.constant 0 : index
    %c0_13 = arith.constant 0 : index
    %19 = vector.load %arg7[%c0_12, %c0_13] : memref<4x512xbf16, #tpu.memory_space<vmem>>, vector<4x512xbf16>
    tpu.vector_store %arg7[%c0_12, %c0_13], %18 {strides = array<i32>} : memref<4x512xbf16, #tpu.memory_space<vmem>>, vector<4x512xbf16>,
    return
  }
  func.func @transform_0(%arg0: i32) -> (i32, i32) {
    %c0_i32 = arith.constant 0 : i32
    %c0_i32_0 = arith.constant 0 : i32
    return %c0_i32, %arg0 : i32, i32
  }
  func.func @transform_1(%arg0: i32) -> (i32, i32) {
    %c0_i32 = arith.constant 0 : i32
    %c0_i32_0 = arith.constant 0 : i32
    %c0_i32_1 = arith.constant 0 : i32
    return %c0_i32, %c0_i32_0 : i32, i32
  }
  func.func @transform_2(%arg0: i32) -> (i32, i32) {
    %c0_i32 = arith.constant 0 : i32
    %c0_i32_0 = arith.constant 0 : i32
    %c0_i32_1 = arith.constant 0 : i32
    return %c0_i32, %c0_i32_0 : i32, i32
  }
  func.func @transform_3(%arg0: i32) -> (i32, i32) {
    %c0_i32 = arith.constant 0 : i32
    %c0_i32_0 = arith.constant 0 : i32
    %c0_i32_1 = arith.constant 0 : i32
    return %c0_i32, %c0_i32_0 : i32, i32
  }
  func.func @transform_4(%arg0: i32) -> (i32, i32) {
    %c0_i32 = arith.constant 0 : i32
    %c0_i32_0 = arith.constant 0 : i32
    %c0_i32_1 = arith.constant 0 : i32
    return %c0_i32, %c0_i32_0 : i32, i32
  }
  func.func @transform_5(%arg0: i32) -> (i32, i32) {
    %c0_i32 = arith.constant 0 : i32
    %c0_i32_0 = arith.constant 0 : i32
    return %c0_i32, %arg0 : i32, i32
  }
  func.func @transform_6(%arg0: i32) -> (i32, i32) {
    %c0_i32 = arith.constant 0 : i32
    %c0_i32_0 = arith.constant 0 : i32
    return %c0_i32, %arg0 : i32, i32
  }
}

module attributes {stable_mosaic.version = 11 : i64} {
  func.func @kernel(%arg0: i32, %arg1: memref<4x512xbf16, #tpu.memory_space<vmem>>, %arg2: memref<4x1xf32, #tpu.memory_space<vmem>>, %arg3: memref<4x1xf32, #tpu.memory_space<vmem>>, %arg4: memref<16x4xbf16, #tpu.memory_space<vmem>>, %arg5: memref<16x1xf32, #tpu.memory_space<vmem>>, %arg6: memref<4x8xbf16, #tpu.memory_space<vmem>>, %arg7: memref<4x1xf32, #tpu.memory_space<vmem>>, %arg8: memref<4x512xbf16, #tpu.memory_space<vmem>>, %arg9: memref<4x512xbf16, #tpu.memory_space<vmem>>) attributes {dimension_semantics = [#tpu.dimension_semantics<parallel>], iteration_bounds = array<i64: 1>, scalar_prefetch = 0 : i64, scratch_operands = 0 : i64, tpu.core_type = #tpu.core_type<tc>, window_params = [{transform_indices = @transform_0, window_bounds = array<i64: 4, 512>}, {pipeline_mode = #tpu.pipeline_mode<synchronous>, transform_indices = @transform_1, window_bounds = array<i64: 4, 1>}, {pipeline_mode = #tpu.pipeline_mode<synchronous>, transform_indices = @transform_2, window_bounds = array<i64: 4, 1>}, {pipeline_mode = #tpu.pipeline_mode<synchronous>, transform_indices = @transform_3, window_bounds = array<i64: 16, 4>}, {pipeline_mode = #tpu.pipeline_mode<synchronous>, transform_indices = @transform_4, window_bounds = array<i64: 16, 1>}, {pipeline_mode = #tpu.pipeline_mode<synchronous>, transform_indices = @transform_5, window_bounds = array<i64: 4, 8>}, {pipeline_mode = #tpu.pipeline_mode<synchronous>, transform_indices = @transform_6, window_bounds = array<i64: 4, 1>}, {transform_indices = @transform_7, window_bounds = array<i64: 4, 512>}, {transform_indices = @transform_8, window_bounds = array<i64: 4, 512>}]} {
    %c0 = arith.constant 0 : index
    %c0_0 = arith.constant 0 : index
    %0 = vector.load %arg1[%c0, %c0_0] : memref<4x512xbf16, #tpu.memory_space<vmem>>, vector<4x512xbf16>
    %c0_1 = arith.constant 0 : index
    %c0_2 = arith.constant 0 : index
    %1 = vector.load %arg2[%c0_1, %c0_2] : memref<4x1xf32, #tpu.memory_space<vmem>>, vector<4x1xf32>
    %c0_3 = arith.constant 0 : index
    %c0_4 = arith.constant 0 : index
    %2 = vector.load %arg3[%c0_3, %c0_4] : memref<4x1xf32, #tpu.memory_space<vmem>>, vector<4x1xf32>
    %3 = arith.extf %0 : vector<4x512xbf16> to vector<4x512xf32>
    %cst = arith.constant dense<0.000000e+00> : vector<512xf32>
    %4 = vector.multi_reduction <add>, %3, %cst [0] : vector<4x512xf32> to vector<512xf32>
    %5 = vector.shape_cast %4 : vector<512xf32> to vector<1x512xf32>
    %cst_5 = arith.constant 4.000000e+00 : f32
    %6 = vector.broadcast %cst_5 : f32 to vector<1x512xf32>
    %7 = arith.divf %5, %6 : vector<1x512xf32>
    %8 = vector.broadcast %7 : vector<1x512xf32> to vector<4x512xf32>
    %9 = arith.subf %3, %8 : vector<4x512xf32>
    %10 = arith.mulf %9, %9 : vector<4x512xf32>
    %cst_6 = arith.constant dense<0.000000e+00> : vector<512xf32>
    %11 = vector.multi_reduction <add>, %10, %cst_6 [0] : vector<4x512xf32> to vector<512xf32>
    %12 = vector.shape_cast %11 : vector<512xf32> to vector<1x512xf32>
    %cst_7 = arith.constant 4.000000e+00 : f32
    %13 = vector.broadcast %cst_7 : f32 to vector<1x512xf32>
    %14 = arith.divf %12, %13 : vector<1x512xf32>
    %15 = vector.broadcast %7 : vector<1x512xf32> to vector<4x512xf32>
    %16 = arith.subf %3, %15 : vector<4x512xf32>
    %cst_8 = arith.constant 9.99999997E-7 : f32
    %17 = vector.broadcast %cst_8 : f32 to vector<1x512xf32>
    %18 = arith.addf %14, %17 : vector<1x512xf32>
    %19 = math.rsqrt %18 : vector<1x512xf32>
    %20 = vector.broadcast %19 : vector<1x512xf32> to vector<4x512xf32>
    %21 = arith.mulf %16, %20 : vector<4x512xf32>
    %22 = vector.broadcast %1 : vector<4x1xf32> to vector<4x512xf32>
    %23 = arith.mulf %21, %22 : vector<4x512xf32>
    %24 = vector.broadcast %2 : vector<4x1xf32> to vector<4x512xf32>
    %25 = arith.addf %23, %24 : vector<4x512xf32>
    %26 = arith.truncf %25 : vector<4x512xf32> to vector<4x512xbf16>
    %c0_9 = arith.constant 0 : index
    %c0_10 = arith.constant 0 : index
    %27 = vector.load %arg4[%c0_9, %c0_10] : memref<16x4xbf16, #tpu.memory_space<vmem>>, vector<16x4xbf16>
    %c0_11 = arith.constant 0 : index
    %c0_12 = arith.constant 0 : index
    %28 = vector.load %arg5[%c0_11, %c0_12] : memref<16x1xf32, #tpu.memory_space<vmem>>, vector<16x1xf32>
    %cst_13 = arith.constant dense<0.000000e+00> : vector<16x512xf32>
    %29 = tpu.matmul %27, %26, %cst_13 {dimension_numbers = #tpu.dot_dimension_numbers<[1], [0], [0], [1], [0, 0, 1, 1], [], []>} : vector<16x4xbf16>, vector<4x512xbf16>, vector<16x512xf32> -> vector<16x512xf32>
    %30 = vector.broadcast %28 : vector<16x1xf32> to vector<16x512xf32>
    %31 = arith.addf %29, %30 : vector<16x512xf32>
    %32 = vector.extract_strided_slice %31 {offsets = [0, 0], sizes = [8, 512], strides = [1, 1]} : vector<16x512xf32> to vector<8x512xf32>
    %33 = vector.extract_strided_slice %31 {offsets = [8, 0], sizes = [8, 512], strides = [1, 1]} : vector<16x512xf32> to vector<8x512xf32>
    %34 = arith.mulf %32, %33 : vector<8x512xf32>
    %c0_14 = arith.constant 0 : index
    %c0_15 = arith.constant 0 : index
    %35 = vector.load %arg6[%c0_14, %c0_15] : memref<4x8xbf16, #tpu.memory_space<vmem>>, vector<4x8xbf16>
    %c0_16 = arith.constant 0 : index
    %c0_17 = arith.constant 0 : index
    %36 = vector.load %arg7[%c0_16, %c0_17] : memref<4x1xf32, #tpu.memory_space<vmem>>, vector<4x1xf32>
    %37 = arith.truncf %34 : vector<8x512xf32> to vector<8x512xbf16>
    %cst_18 = arith.constant dense<0.000000e+00> : vector<4x512xf32>
    %38 = tpu.matmul %35, %37, %cst_18 {dimension_numbers = #tpu.dot_dimension_numbers<[1], [0], [0], [1], [0, 0, 1, 1], [], []>} : vector<4x8xbf16>, vector<8x512xbf16>, vector<4x512xf32> -> vector<4x512xf32>
    %39 = vector.broadcast %36 : vector<4x1xf32> to vector<4x512xf32>
    %40 = arith.addf %38, %39 : vector<4x512xf32>
    %c0_19 = arith.constant 0 : index
    %c0_20 = arith.constant 0 : index
    %41 = vector.load %arg8[%c0_19, %c0_20] : memref<4x512xbf16, #tpu.memory_space<vmem>>, vector<4x512xbf16>
    %42 = arith.extf %41 : vector<4x512xbf16> to vector<4x512xf32>
    %43 = arith.addf %40, %42 : vector<4x512xf32>
    %44 = arith.truncf %43 : vector<4x512xf32> to vector<4x512xbf16>
    %c0_21 = arith.constant 0 : index
    %c0_22 = arith.constant 0 : index
    %45 = vector.load %arg9[%c0_21, %c0_22] : memref<4x512xbf16, #tpu.memory_space<vmem>>, vector<4x512xbf16>
    tpu.vector_store %arg9[%c0_21, %c0_22], %44 {strides = array<i32>} : memref<4x512xbf16, #tpu.memory_space<vmem>>, vector<4x512xbf16>,
    return
  }
  func.func @transform_0(%arg0: i32) -> (i32, i32) {
    %c0_i32 = arith.constant 0 : i32
    %c0_i32_0 = arith.constant 0 : i32
    return %c0_i32, %arg0 : i32, i32
  }
  func.func @transform_1(%arg0: i32) -> (i32, i32) {
    %c0_i32 = arith.constant 0 : i32
    %c0_i32_0 = arith.constant 0 : i32
    %c0_i32_1 = arith.constant 0 : i32
    return %c0_i32, %c0_i32_0 : i32, i32
  }
  func.func @transform_2(%arg0: i32) -> (i32, i32) {
    %c0_i32 = arith.constant 0 : i32
    %c0_i32_0 = arith.constant 0 : i32
    %c0_i32_1 = arith.constant 0 : i32
    return %c0_i32, %c0_i32_0 : i32, i32
  }
  func.func @transform_3(%arg0: i32) -> (i32, i32) {
    %c0_i32 = arith.constant 0 : i32
    %c0_i32_0 = arith.constant 0 : i32
    %c0_i32_1 = arith.constant 0 : i32
    return %c0_i32, %c0_i32_0 : i32, i32
  }
  func.func @transform_4(%arg0: i32) -> (i32, i32) {
    %c0_i32 = arith.constant 0 : i32
    %c0_i32_0 = arith.constant 0 : i32
    %c0_i32_1 = arith.constant 0 : i32
    return %c0_i32, %c0_i32_0 : i32, i32
  }
  func.func @transform_5(%arg0: i32) -> (i32, i32) {
    %c0_i32 = arith.constant 0 : i32
    %c0_i32_0 = arith.constant 0 : i32
    %c0_i32_1 = arith.constant 0 : i32
    return %c0_i32, %c0_i32_0 : i32, i32
  }
  func.func @transform_6(%arg0: i32) -> (i32, i32) {
    %c0_i32 = arith.constant 0 : i32
    %c0_i32_0 = arith.constant 0 : i32
    %c0_i32_1 = arith.constant 0 : i32
    return %c0_i32, %c0_i32_0 : i32, i32
  }
  func.func @transform_7(%arg0: i32) -> (i32, i32) {
    %c0_i32 = arith.constant 0 : i32
    %c0_i32_0 = arith.constant 0 : i32
    return %c0_i32, %arg0 : i32, i32
  }
  func.func @transform_8(%arg0: i32) -> (i32, i32) {
    %c0_i32 = arith.constant 0 : i32
    %c0_i32_0 = arith.constant 0 : i32
    return %c0_i32, %arg0 : i32, i32
  }
}

module attributes {stable_mosaic.version = 11 : i64} {
  func.func @kernel(%arg0: i32, %arg1: memref<16x128xbf16, #tpu.memory_space<vmem>>, %arg2: memref<8x16xbf16, #tpu.memory_space<vmem>>, %arg3: memref<8x1xf32, #tpu.memory_space<vmem>>, %arg4: memref<8x128xbf16, #tpu.memory_space<vmem>>) attributes {dimension_semantics = [#tpu.dimension_semantics<parallel>], iteration_bounds = array<i64: 1>, scalar_prefetch = 0 : i64, scratch_operands = 0 : i64, tpu.core_type = #tpu.core_type<tc>, window_params = [{transform_indices = @transform_0, window_bounds = array<i64: 16, 128>}, {pipeline_mode = #tpu.pipeline_mode<synchronous>, transform_indices = @transform_1, window_bounds = array<i64: 8, 16>}, {pipeline_mode = #tpu.pipeline_mode<synchronous>, transform_indices = @transform_2, window_bounds = array<i64: 8, 1>}, {transform_indices = @transform_3, window_bounds = array<i64: 8, 128>}]} {
    %c0 = arith.constant 0 : index
    %c0_0 = arith.constant 0 : index
    %0 = vector.load %arg1[%c0, %c0_0] : memref<16x128xbf16, #tpu.memory_space<vmem>>, vector<16x128xbf16>
    %c0_1 = arith.constant 0 : index
    %c0_2 = arith.constant 0 : index
    %1 = vector.load %arg2[%c0_1, %c0_2] : memref<8x16xbf16, #tpu.memory_space<vmem>>, vector<8x16xbf16>
    %c0_3 = arith.constant 0 : index
    %c0_4 = arith.constant 0 : index
    %2 = vector.load %arg3[%c0_3, %c0_4] : memref<8x1xf32, #tpu.memory_space<vmem>>, vector<8x1xf32>
    %cst = arith.constant dense<0.000000e+00> : vector<8x128xf32>
    %3 = tpu.matmul %1, %0, %cst {dimension_numbers = #tpu.dot_dimension_numbers<[1], [0], [0], [1], [0, 0, 1, 1], [], []>} : vector<8x16xbf16>, vector<16x128xbf16>, vector<8x128xf32> -> vector<8x128xf32>
    %4 = vector.broadcast %2 : vector<8x1xf32> to vector<8x128xf32>
    %5 = arith.addf %3, %4 : vector<8x128xf32>
    %6 = arith.truncf %5 : vector<8x128xf32> to vector<8x128xbf16>
    %c0_5 = arith.constant 0 : index
    %c0_6 = arith.constant 0 : index
    %7 = vector.load %arg4[%c0_5, %c0_6] : memref<8x128xbf16, #tpu.memory_space<vmem>>, vector<8x128xbf16>
    tpu.vector_store %arg4[%c0_5, %c0_6], %6 {strides = array<i32>} : memref<8x128xbf16, #tpu.memory_space<vmem>>, vector<8x128xbf16>,
    return
  }
  func.func @transform_0(%arg0: i32) -> (i32, i32) {
    %c0_i32 = arith.constant 0 : i32
    %c0_i32_0 = arith.constant 0 : i32
    return %c0_i32, %arg0 : i32, i32
  }
  func.func @transform_1(%arg0: i32) -> (i32, i32) {
    %c0_i32 = arith.constant 0 : i32
    %c0_i32_0 = arith.constant 0 : i32
    %c0_i32_1 = arith.constant 0 : i32
    return %c0_i32, %c0_i32_0 : i32, i32
  }
  func.func @transform_2(%arg0: i32) -> (i32, i32) {
    %c0_i32 = arith.constant 0 : i32
    %c0_i32_0 = arith.constant 0 : i32
    %c0_i32_1 = arith.constant 0 : i32
    return %c0_i32, %c0_i32_0 : i32, i32
  }
  func.func @transform_3(%arg0: i32) -> (i32, i32) {
    %c0_i32 = arith.constant 0 : i32
    %c0_i32_0 = arith.constant 0 : i32
    return %c0_i32, %arg0 : i32, i32
  }
}

module attributes {stable_mosaic.version = 11 : i64} {
  func.func @kernel(%arg0: i32, %arg1: memref<72x96xbf16, #tpu.memory_space<vmem>>, %arg2: memref<8x72xbf16, #tpu.memory_space<vmem>>, %arg3: memref<8x1xf32, #tpu.memory_space<vmem>>, %arg4: memref<8x96xbf16, #tpu.memory_space<vmem>>) attributes {dimension_semantics = [#tpu.dimension_semantics<parallel>], iteration_bounds = array<i64: 1>, scalar_prefetch = 0 : i64, scratch_operands = 0 : i64, tpu.core_type = #tpu.core_type<tc>, window_params = [{transform_indices = @transform_0, window_bounds = array<i64: 72, 96>}, {pipeline_mode = #tpu.pipeline_mode<synchronous>, transform_indices = @transform_1, window_bounds = array<i64: 8, 72>}, {pipeline_mode = #tpu.pipeline_mode<synchronous>, transform_indices = @transform_2, window_bounds = array<i64: 8, 1>}, {transform_indices = @transform_3, window_bounds = array<i64: 8, 96>}]} {
    %c0 = arith.constant 0 : index
    %c0_0 = arith.constant 0 : index
    %0 = vector.load %arg1[%c0, %c0_0] : memref<72x96xbf16, #tpu.memory_space<vmem>>, vector<72x96xbf16>
    %c0_1 = arith.constant 0 : index
    %c0_2 = arith.constant 0 : index
    %1 = vector.load %arg2[%c0_1, %c0_2] : memref<8x72xbf16, #tpu.memory_space<vmem>>, vector<8x72xbf16>
    %c0_3 = arith.constant 0 : index
    %c0_4 = arith.constant 0 : index
    %2 = vector.load %arg3[%c0_3, %c0_4] : memref<8x1xf32, #tpu.memory_space<vmem>>, vector<8x1xf32>
    %cst = arith.constant dense<0.000000e+00> : vector<8x96xf32>
    %3 = tpu.matmul %1, %0, %cst {dimension_numbers = #tpu.dot_dimension_numbers<[1], [0], [0], [1], [0, 0, 1, 1], [], []>} : vector<8x72xbf16>, vector<72x96xbf16>, vector<8x96xf32> -> vector<8x96xf32>
    %4 = vector.broadcast %2 : vector<8x1xf32> to vector<8x96xf32>
    %5 = arith.addf %3, %4 : vector<8x96xf32>
    %6 = arith.truncf %5 : vector<8x96xf32> to vector<8x96xbf16>
    %c0_5 = arith.constant 0 : index
    %c0_6 = arith.constant 0 : index
    %7 = vector.load %arg4[%c0_5, %c0_6] : memref<8x96xbf16, #tpu.memory_space<vmem>>, vector<8x96xbf16>
    tpu.vector_store %arg4[%c0_5, %c0_6], %6 {strides = array<i32>} : memref<8x96xbf16, #tpu.memory_space<vmem>>, vector<8x96xbf16>,
    return
  }
  func.func @transform_0(%arg0: i32) -> (i32, i32) {
    %c0_i32 = arith.constant 0 : i32
    %c0_i32_0 = arith.constant 0 : i32
    return %c0_i32, %arg0 : i32, i32
  }
  func.func @transform_1(%arg0: i32) -> (i32, i32) {
    %c0_i32 = arith.constant 0 : i32
    %c0_i32_0 = arith.constant 0 : i32
    %c0_i32_1 = arith.constant 0 : i32
    return %c0_i32, %c0_i32_0 : i32, i32
  }
  func.func @transform_2(%arg0: i32) -> (i32, i32) {
    %c0_i32 = arith.constant 0 : i32
    %c0_i32_0 = arith.constant 0 : i32
    %c0_i32_1 = arith.constant 0 : i32
    return %c0_i32, %c0_i32_0 : i32, i32
  }
  func.func @transform_3(%arg0: i32) -> (i32, i32) {
    %c0_i32 = arith.constant 0 : i32
    %c0_i32_0 = arith.constant 0 : i32
    return %c0_i32, %arg0 : i32, i32
  }
}

module attributes {stable_mosaic.version = 11 : i64} {
  func.func @kernel(%arg0: i32, %arg1: memref<200x32xbf16, #tpu.memory_space<vmem>>, %arg2: memref<8x200xbf16, #tpu.memory_space<vmem>>, %arg3: memref<8x1xf32, #tpu.memory_space<vmem>>, %arg4: memref<8x32xbf16, #tpu.memory_space<vmem>>) attributes {dimension_semantics = [#tpu.dimension_semantics<parallel>], iteration_bounds = array<i64: 1>, scalar_prefetch = 0 : i64, scratch_operands = 0 : i64, tpu.core_type = #tpu.core_type<tc>, window_params = [{transform_indices = @transform_0, window_bounds = array<i64: 200, 32>}, {pipeline_mode = #tpu.pipeline_mode<synchronous>, transform_indices = @transform_1, window_bounds = array<i64: 8, 200>}, {pipeline_mode = #tpu.pipeline_mode<synchronous>, transform_indices = @transform_2, window_bounds = array<i64: 8, 1>}, {transform_indices = @transform_3, window_bounds = array<i64: 8, 32>}]} {
    %c0 = arith.constant 0 : index
    %c0_0 = arith.constant 0 : index
    %0 = vector.load %arg1[%c0, %c0_0] : memref<200x32xbf16, #tpu.memory_space<vmem>>, vector<200x32xbf16>
    %c0_1 = arith.constant 0 : index
    %c0_2 = arith.constant 0 : index
    %1 = vector.load %arg2[%c0_1, %c0_2] : memref<8x200xbf16, #tpu.memory_space<vmem>>, vector<8x200xbf16>
    %c0_3 = arith.constant 0 : index
    %c0_4 = arith.constant 0 : index
    %2 = vector.load %arg3[%c0_3, %c0_4] : memref<8x1xf32, #tpu.memory_space<vmem>>, vector<8x1xf32>
    %cst = arith.constant dense<0.000000e+00> : vector<8x32xf32>
    %3 = tpu.matmul %1, %0, %cst {dimension_numbers = #tpu.dot_dimension_numbers<[1], [0], [0], [1], [0, 0, 1, 1], [], []>} : vector<8x200xbf16>, vector<200x32xbf16>, vector<8x32xf32> -> vector<8x32xf32>
    %4 = vector.broadcast %2 : vector<8x1xf32> to vector<8x32xf32>
    %5 = arith.addf %3, %4 : vector<8x32xf32>
    %6 = arith.truncf %5 : vector<8x32xf32> to vector<8x32xbf16>
    %c0_5 = arith.constant 0 : index
    %c0_6 = arith.constant 0 : index
    %7 = vector.load %arg4[%c0_5, %c0_6] : memref<8x32xbf16, #tpu.memory_space<vmem>>, vector<8x32xbf16>
    tpu.vector_store %arg4[%c0_5, %c0_6], %6 {strides = array<i32>} : memref<8x32xbf16, #tpu.memory_space<vmem>>, vector<8x32xbf16>,
    return
  }
  func.func @transform_0(%arg0: i32) -> (i32, i32) {
    %c0_i32 = arith.constant 0 : i32
    %c0_i32_0 = arith.constant 0 : i32
    return %c0_i32, %arg0 : i32, i32
  }
  func.func @transform_1(%arg0: i32) -> (i32, i32) {
    %c0_i32 = arith.constant 0 : i32
    %c0_i32_0 = arith.constant 0 : i32
    %c0_i32_1 = arith.constant 0 : i32
    return %c0_i32, %c0_i32_0 : i32, i32
  }
  func.func @transform_2(%arg0: i32) -> (i32, i32) {
    %c0_i32 = arith.constant 0 : i32
    %c0_i32_0 = arith.constant 0 : i32
    %c0_i32_1 = arith.constant 0 : i32
    return %c0_i32, %c0_i32_0 : i32, i32
  }
  func.func @transform_3(%arg0: i32) -> (i32, i32) {
    %c0_i32 = arith.constant 0 : i32
    %c0_i32_0 = arith.constant 0 : i32
    return %c0_i32, %arg0 : i32, i32
  }
}

module attributes {stable_mosaic.version = 11 : i64} {
  func.func @kernel(%arg0: i32, %arg1: memref<72x32xbf16, #tpu.memory_space<vmem>>, %arg2: memref<3x72xbf16, #tpu.memory_space<vmem>>, %arg3: memref<3x1xf32, #tpu.memory_space<vmem>>, %arg4: memref<3x32xbf16, #tpu.memory_space<vmem>>) attributes {dimension_semantics = [#tpu.dimension_semantics<parallel>], iteration_bounds = array<i64: 1>, scalar_prefetch = 0 : i64, scratch_operands = 0 : i64, tpu.core_type = #tpu.core_type<tc>, window_params = [{transform_indices = @transform_0, window_bounds = array<i64: 72, 32>}, {pipeline_mode = #tpu.pipeline_mode<synchronous>, transform_indices = @transform_1, window_bounds = array<i64: 3, 72>}, {pipeline_mode = #tpu.pipeline_mode<synchronous>, transform_indices = @transform_2, window_bounds = array<i64: 3, 1>}, {transform_indices = @transform_3, window_bounds = array<i64: 3, 32>}]} {
    %c0 = arith.constant 0 : index
    %c0_0 = arith.constant 0 : index
    %0 = vector.load %arg1[%c0, %c0_0] : memref<72x32xbf16, #tpu.memory_space<vmem>>, vector<72x32xbf16>
    %c0_1 = arith.constant 0 : index
    %c0_2 = arith.constant 0 : index
    %1 = vector.load %arg2[%c0_1, %c0_2] : memref<3x72xbf16, #tpu.memory_space<vmem>>, vector<3x72xbf16>
    %c0_3 = arith.constant 0 : index
    %c0_4 = arith.constant 0 : index
    %2 = vector.load %arg3[%c0_3, %c0_4] : memref<3x1xf32, #tpu.memory_space<vmem>>, vector<3x1xf32>
    %cst = arith.constant dense<0.000000e+00> : vector<3x32xf32>
    %3 = tpu.matmul %1, %0, %cst {dimension_numbers = #tpu.dot_dimension_numbers<[1], [0], [0], [1], [0, 0, 1, 1], [], []>} : vector<3x72xbf16>, vector<72x32xbf16>, vector<3x32xf32> -> vector<3x32xf32>
    %4 = vector.broadcast %2 : vector<3x1xf32> to vector<3x32xf32>
    %5 = arith.addf %3, %4 : vector<3x32xf32>
    %6 = arith.truncf %5 : vector<3x32xf32> to vector<3x32xbf16>
    %c0_5 = arith.constant 0 : index
    %c0_6 = arith.constant 0 : index
    %7 = vector.load %arg4[%c0_5, %c0_6] : memref<3x32xbf16, #tpu.memory_space<vmem>>, vector<3x32xbf16>
    tpu.vector_store %arg4[%c0_5, %c0_6], %6 {strides = array<i32>} : memref<3x32xbf16, #tpu.memory_space<vmem>>, vector<3x32xbf16>,
    return
  }
  func.func @transform_0(%arg0: i32) -> (i32, i32) {
    %c0_i32 = arith.constant 0 : i32
    %c0_i32_0 = arith.constant 0 : i32
    return %c0_i32, %arg0 : i32, i32
  }
  func.func @transform_1(%arg0: i32) -> (i32, i32) {
    %c0_i32 = arith.constant 0 : i32
    %c0_i32_0 = arith.constant 0 : i32
    %c0_i32_1 = arith.constant 0 : i32
    return %c0_i32, %c0_i32_0 : i32, i32
  }
  func.func @transform_2(%arg0: i32) -> (i32, i32) {
    %c0_i32 = arith.constant 0 : i32
    %c0_i32_0 = arith.constant 0 : i32
    %c0_i32_1 = arith.constant 0 : i32
    return %c0_i32, %c0_i32_0 : i32, i32
  }
  func.func @transform_3(%arg0: i32) -> (i32, i32) {
    %c0_i32 = arith.constant 0 : i32
    %c0_i32_0 = arith.constant 0 : i32
    return %c0_i32, %arg0 : i32, i32
  }
}

module attributes {stable_mosaic.version = 11 : i64} {
  func.func @kernel(%arg0: i32, %arg1: memref<16x96xbf16, #tpu.memory_space<vmem>>, %arg2: memref<8x16xbf16, #tpu.memory_space<vmem>>, %arg3: memref<8x1xf32, #tpu.memory_space<vmem>>, %arg4: memref<8x1xf32, #tpu.memory_space<vmem>>, %arg5: memref<8x1xf32, #tpu.memory_space<vmem>>, %arg6: memref<8x96xbf16, #tpu.memory_space<vmem>>) attributes {dimension_semantics = [#tpu.dimension_semantics<parallel>], iteration_bounds = array<i64: 1>, scalar_prefetch = 0 : i64, scratch_operands = 0 : i64, tpu.core_type = #tpu.core_type<tc>, window_params = [{transform_indices = @transform_0, window_bounds = array<i64: 16, 96>}, {pipeline_mode = #tpu.pipeline_mode<synchronous>, transform_indices = @transform_1, window_bounds = array<i64: 8, 16>}, {pipeline_mode = #tpu.pipeline_mode<synchronous>, transform_indices = @transform_2, window_bounds = array<i64: 8, 1>}, {pipeline_mode = #tpu.pipeline_mode<synchronous>, transform_indices = @transform_3, window_bounds = array<i64: 8, 1>}, {pipeline_mode = #tpu.pipeline_mode<synchronous>, transform_indices = @transform_4, window_bounds = array<i64: 8, 1>}, {transform_indices = @transform_5, window_bounds = array<i64: 8, 96>}]} {
    %c0 = arith.constant 0 : index
    %c0_0 = arith.constant 0 : index
    %0 = vector.load %arg1[%c0, %c0_0] : memref<16x96xbf16, #tpu.memory_space<vmem>>, vector<16x96xbf16>
    %c0_1 = arith.constant 0 : index
    %c0_2 = arith.constant 0 : index
    %1 = vector.load %arg2[%c0_1, %c0_2] : memref<8x16xbf16, #tpu.memory_space<vmem>>, vector<8x16xbf16>
    %c0_3 = arith.constant 0 : index
    %c0_4 = arith.constant 0 : index
    %2 = vector.load %arg3[%c0_3, %c0_4] : memref<8x1xf32, #tpu.memory_space<vmem>>, vector<8x1xf32>
    %cst = arith.constant dense<0.000000e+00> : vector<8x96xf32>
    %3 = tpu.matmul %1, %0, %cst {dimension_numbers = #tpu.dot_dimension_numbers<[1], [0], [0], [1], [0, 0, 1, 1], [], []>} : vector<8x16xbf16>, vector<16x96xbf16>, vector<8x96xf32> -> vector<8x96xf32>
    %4 = vector.broadcast %2 : vector<8x1xf32> to vector<8x96xf32>
    %5 = arith.addf %3, %4 : vector<8x96xf32>
    %c0_5 = arith.constant 0 : index
    %c0_6 = arith.constant 0 : index
    %6 = vector.load %arg4[%c0_5, %c0_6] : memref<8x1xf32, #tpu.memory_space<vmem>>, vector<8x1xf32>
    %c0_7 = arith.constant 0 : index
    %c0_8 = arith.constant 0 : index
    %7 = vector.load %arg5[%c0_7, %c0_8] : memref<8x1xf32, #tpu.memory_space<vmem>>, vector<8x1xf32>
    %cst_9 = arith.constant dense<0.000000e+00> : vector<96xf32>
    %8 = vector.multi_reduction <add>, %5, %cst_9 [0] : vector<8x96xf32> to vector<96xf32>
    %9 = vector.shape_cast %8 : vector<96xf32> to vector<1x96xf32>
    %cst_10 = arith.constant 8.000000e+00 : f32
    %10 = vector.broadcast %cst_10 : f32 to vector<1x96xf32>
    %11 = arith.divf %9, %10 : vector<1x96xf32>
    %12 = vector.broadcast %11 : vector<1x96xf32> to vector<8x96xf32>
    %13 = arith.subf %5, %12 : vector<8x96xf32>
    %14 = arith.mulf %13, %13 : vector<8x96xf32>
    %cst_11 = arith.constant dense<0.000000e+00> : vector<96xf32>
    %15 = vector.multi_reduction <add>, %14, %cst_11 [0] : vector<8x96xf32> to vector<96xf32>
    %16 = vector.shape_cast %15 : vector<96xf32> to vector<1x96xf32>
    %cst_12 = arith.constant 8.000000e+00 : f32
    %17 = vector.broadcast %cst_12 : f32 to vector<1x96xf32>
    %18 = arith.divf %16, %17 : vector<1x96xf32>
    %19 = vector.broadcast %11 : vector<1x96xf32> to vector<8x96xf32>
    %20 = arith.subf %5, %19 : vector<8x96xf32>
    %cst_13 = arith.constant 9.99999974E-6 : f32
    %21 = vector.broadcast %cst_13 : f32 to vector<1x96xf32>
    %22 = arith.addf %18, %21 : vector<1x96xf32>
    %23 = math.rsqrt %22 : vector<1x96xf32>
    %24 = vector.broadcast %23 : vector<1x96xf32> to vector<8x96xf32>
    %25 = arith.mulf %20, %24 : vector<8x96xf32>
    %26 = vector.broadcast %6 : vector<8x1xf32> to vector<8x96xf32>
    %27 = arith.mulf %25, %26 : vector<8x96xf32>
    %28 = vector.broadcast %7 : vector<8x1xf32> to vector<8x96xf32>
    %29 = arith.addf %27, %28 : vector<8x96xf32>
    %30 = arith.truncf %29 : vector<8x96xf32> to vector<8x96xbf16>
    %c0_14 = arith.constant 0 : index
    %c0_15 = arith.constant 0 : index
    %31 = vector.load %arg6[%c0_14, %c0_15] : memref<8x96xbf16, #tpu.memory_space<vmem>>, vector<8x96xbf16>
    tpu.vector_store %arg6[%c0_14, %c0_15], %30 {strides = array<i32>} : memref<8x96xbf16, #tpu.memory_space<vmem>>, vector<8x96xbf16>,
    return
  }
  func.func @transform_0(%arg0: i32) -> (i32, i32) {
    %c0_i32 = arith.constant 0 : i32
    %c0_i32_0 = arith.constant 0 : i32
    return %c0_i32, %arg0 : i32, i32
  }
  func.func @transform_1(%arg0: i32) -> (i32, i32) {
    %c0_i32 = arith.constant 0 : i32
    %c0_i32_0 = arith.constant 0 : i32
    %c0_i32_1 = arith.constant 0 : i32
    return %c0_i32, %c0_i32_0 : i32, i32
  }
  func.func @transform_2(%arg0: i32) -> (i32, i32) {
    %c0_i32 = arith.constant 0 : i32
    %c0_i32_0 = arith.constant 0 : i32
    %c0_i32_1 = arith.constant 0 : i32
    return %c0_i32, %c0_i32_0 : i32, i32
  }
  func.func @transform_3(%arg0: i32) -> (i32, i32) {
    %c0_i32 = arith.constant 0 : i32
    %c0_i32_0 = arith.constant 0 : i32
    %c0_i32_1 = arith.constant 0 : i32
    return %c0_i32, %c0_i32_0 : i32, i32
  }
  func.func @transform_4(%arg0: i32) -> (i32, i32) {
    %c0_i32 = arith.constant 0 : i32
    %c0_i32_0 = arith.constant 0 : i32
    %c0_i32_1 = arith.constant 0 : i32
    return %c0_i32, %c0_i32_0 : i32, i32
  }
  func.func @transform_5(%arg0: i32) -> (i32, i32) {
    %c0_i32 = arith.constant 0 : i32
    %c0_i32_0 = arith.constant 0 : i32
    return %c0_i32, %arg0 : i32, i32
  }
}

module attributes {stable_mosaic.version = 11 : i64} {
  func.func @kernel(%arg0: i32, %arg1: memref<8x96xbf16, #tpu.memory_space<vmem>>, %arg2: memref<8x1xf32, #tpu.memory_space<vmem>>, %arg3: memref<8x1xf32, #tpu.memory_space<vmem>>, %arg4: memref<32x8xbf16, #tpu.memory_space<vmem>>, %arg5: memref<32x1xf32, #tpu.memory_space<vmem>>, %arg6: memref<8x32xbf16, #tpu.memory_space<vmem>>, %arg7: memref<8x1xf32, #tpu.memory_space<vmem>>, %arg8: memref<8x96xbf16, #tpu.memory_space<vmem>>, %arg9: memref<8x96xbf16, #tpu.memory_space<vmem>>) attributes {dimension_semantics = [#tpu.dimension_semantics<parallel>], iteration_bounds = array<i64: 1>, scalar_prefetch = 0 : i64, scratch_operands = 0 : i64, tpu.core_type = #tpu.core_type<tc>, window_params = [{transform_indices = @transform_0, window_bounds = array<i64: 8, 96>}, {pipeline_mode = #tpu.pipeline_mode<synchronous>, transform_indices = @transform_1, window_bounds = array<i64: 8, 1>}, {pipeline_mode = #tpu.pipeline_mode<synchronous>, transform_indices = @transform_2, window_bounds = array<i64: 8, 1>}, {pipeline_mode = #tpu.pipeline_mode<synchronous>, transform_indices = @transform_3, window_bounds = array<i64: 32, 8>}, {pipeline_mode = #tpu.pipeline_mode<synchronous>, transform_indices = @transform_4, window_bounds = array<i64: 32, 1>}, {pipeline_mode = #tpu.pipeline_mode<synchronous>, transform_indices = @transform_5, window_bounds = array<i64: 8, 32>}, {pipeline_mode = #tpu.pipeline_mode<synchronous>, transform_indices = @transform_6, window_bounds = array<i64: 8, 1>}, {transform_indices = @transform_7, window_bounds = array<i64: 8, 96>}, {transform_indices = @transform_8, window_bounds = array<i64: 8, 96>}]} {
    %c0 = arith.constant 0 : index
    %c0_0 = arith.constant 0 : index
    %0 = vector.load %arg1[%c0, %c0_0] : memref<8x96xbf16, #tpu.memory_space<vmem>>, vector<8x96xbf16>
    %c0_1 = arith.constant 0 : index
    %c0_2 = arith.constant 0 : index
    %1 = vector.load %arg2[%c0_1, %c0_2] : memref<8x1xf32, #tpu.memory_space<vmem>>, vector<8x1xf32>
    %c0_3 = arith.constant 0 : index
    %c0_4 = arith.constant 0 : index
    %2 = vector.load %arg3[%c0_3, %c0_4] : memref<8x1xf32, #tpu.memory_space<vmem>>, vector<8x1xf32>
    %3 = arith.extf %0 : vector<8x96xbf16> to vector<8x96xf32>
    %cst = arith.constant dense<0.000000e+00> : vector<96xf32>
    %4 = vector.multi_reduction <add>, %3, %cst [0] : vector<8x96xf32> to vector<96xf32>
    %5 = vector.shape_cast %4 : vector<96xf32> to vector<1x96xf32>
    %cst_5 = arith.constant 8.000000e+00 : f32
    %6 = vector.broadcast %cst_5 : f32 to vector<1x96xf32>
    %7 = arith.divf %5, %6 : vector<1x96xf32>
    %8 = vector.broadcast %7 : vector<1x96xf32> to vector<8x96xf32>
    %9 = arith.subf %3, %8 : vector<8x96xf32>
    %10 = arith.mulf %9, %9 : vector<8x96xf32>
    %cst_6 = arith.constant dense<0.000000e+00> : vector<96xf32>
    %11 = vector.multi_reduction <add>, %10, %cst_6 [0] : vector<8x96xf32> to vector<96xf32>
    %12 = vector.shape_cast %11 : vector<96xf32> to vector<1x96xf32>
    %cst_7 = arith.constant 8.000000e+00 : f32
    %13 = vector.broadcast %cst_7 : f32 to vector<1x96xf32>
    %14 = arith.divf %12, %13 : vector<1x96xf32>
    %15 = vector.broadcast %7 : vector<1x96xf32> to vector<8x96xf32>
    %16 = arith.subf %3, %15 : vector<8x96xf32>
    %cst_8 = arith.constant 9.99999974E-6 : f32
    %17 = vector.broadcast %cst_8 : f32 to vector<1x96xf32>
    %18 = arith.addf %14, %17 : vector<1x96xf32>
    %19 = math.rsqrt %18 : vector<1x96xf32>
    %20 = vector.broadcast %19 : vector<1x96xf32> to vector<8x96xf32>
    %21 = arith.mulf %16, %20 : vector<8x96xf32>
    %22 = vector.broadcast %1 : vector<8x1xf32> to vector<8x96xf32>
    %23 = arith.mulf %21, %22 : vector<8x96xf32>
    %24 = vector.broadcast %2 : vector<8x1xf32> to vector<8x96xf32>
    %25 = arith.addf %23, %24 : vector<8x96xf32>
    %26 = arith.truncf %25 : vector<8x96xf32> to vector<8x96xbf16>
    %c0_9 = arith.constant 0 : index
    %c0_10 = arith.constant 0 : index
    %27 = vector.load %arg4[%c0_9, %c0_10] : memref<32x8xbf16, #tpu.memory_space<vmem>>, vector<32x8xbf16>
    %c0_11 = arith.constant 0 : index
    %c0_12 = arith.constant 0 : index
    %28 = vector.load %arg5[%c0_11, %c0_12] : memref<32x1xf32, #tpu.memory_space<vmem>>, vector<32x1xf32>
    %cst_13 = arith.constant dense<0.000000e+00> : vector<32x96xf32>
    %29 = tpu.matmul %27, %26, %cst_13 {dimension_numbers = #tpu.dot_dimension_numbers<[1], [0], [0], [1], [0, 0, 1, 1], [], []>} : vector<32x8xbf16>, vector<8x96xbf16>, vector<32x96xf32> -> vector<32x96xf32>
    %30 = vector.broadcast %28 : vector<32x1xf32> to vector<32x96xf32>
    %31 = arith.addf %29, %30 : vector<32x96xf32>
    %32 = arith.mulf %31, %31 : vector<32x96xf32>
    %33 = arith.mulf %31, %32 : vector<32x96xf32>
    %cst_14 = arith.constant 4.471500e-02 : f32
    %34 = vector.broadcast %cst_14 : f32 to vector<32x96xf32>
    %35 = arith.mulf %34, %33 : vector<32x96xf32>
    %36 = arith.addf %31, %35 : vector<32x96xf32>
    %cst_15 = arith.constant 0.797884583 : f32
    %37 = vector.broadcast %cst_15 : f32 to vector<32x96xf32>
    %38 = arith.mulf %37, %36 : vector<32x96xf32>
    %39 = math.tanh %38 : vector<32x96xf32>
    %cst_16 = arith.constant 1.000000e+00 : f32
    %40 = vector.broadcast %cst_16 : f32 to vector<32x96xf32>
    %41 = arith.addf %40, %39 : vector<32x96xf32>
    %cst_17 = arith.constant 5.000000e-01 : f32
    %42 = vector.broadcast %cst_17 : f32 to vector<32x96xf32>
    %43 = arith.mulf %42, %41 : vector<32x96xf32>
    %44 = arith.mulf %31, %43 : vector<32x96xf32>
    %c0_18 = arith.constant 0 : index
    %c0_19 = arith.constant 0 : index
    %45 = vector.load %arg6[%c0_18, %c0_19] : memref<8x32xbf16, #tpu.memory_space<vmem>>, vector<8x32xbf16>
    %c0_20 = arith.constant 0 : index
    %c0_21 = arith.constant 0 : index
    %46 = vector.load %arg7[%c0_20, %c0_21] : memref<8x1xf32, #tpu.memory_space<vmem>>, vector<8x1xf32>
    %47 = arith.truncf %44 : vector<32x96xf32> to vector<32x96xbf16>
    %cst_22 = arith.constant dense<0.000000e+00> : vector<8x96xf32>
    %48 = tpu.matmul %45, %47, %cst_22 {dimension_numbers = #tpu.dot_dimension_numbers<[1], [0], [0], [1], [0, 0, 1, 1], [], []>} : vector<8x32xbf16>, vector<32x96xbf16>, vector<8x96xf32> -> vector<8x96xf32>
    %49 = vector.broadcast %46 : vector<8x1xf32> to vector<8x96xf32>
    %50 = arith.addf %48, %49 : vector<8x96xf32>
    %c0_23 = arith.constant 0 : index
    %c0_24 = arith.constant 0 : index
    %51 = vector.load %arg8[%c0_23, %c0_24] : memref<8x96xbf16, #tpu.memory_space<vmem>>, vector<8x96xbf16>
    %52 = arith.extf %51 : vector<8x96xbf16> to vector<8x96xf32>
    %53 = arith.addf %50, %52 : vector<8x96xf32>
    %54 = arith.truncf %53 : vector<8x96xf32> to vector<8x96xbf16>
    %c0_25 = arith.constant 0 : index
    %c0_26 = arith.constant 0 : index
    %55 = vector.load %arg9[%c0_25, %c0_26] : memref<8x96xbf16, #tpu.memory_space<vmem>>, vector<8x96xbf16>
    tpu.vector_store %arg9[%c0_25, %c0_26], %54 {strides = array<i32>} : memref<8x96xbf16, #tpu.memory_space<vmem>>, vector<8x96xbf16>,
    return
  }
  func.func @transform_0(%arg0: i32) -> (i32, i32) {
    %c0_i32 = arith.constant 0 : i32
    %c0_i32_0 = arith.constant 0 : i32
    return %c0_i32, %arg0 : i32, i32
  }
  func.func @transform_1(%arg0: i32) -> (i32, i32) {
    %c0_i32 = arith.constant 0 : i32
    %c0_i32_0 = arith.constant 0 : i32
    %c0_i32_1 = arith.constant 0 : i32
    return %c0_i32, %c0_i32_0 : i32, i32
  }
  func.func @transform_2(%arg0: i32) -> (i32, i32) {
    %c0_i32 = arith.constant 0 : i32
    %c0_i32_0 = arith.constant 0 : i32
    %c0_i32_1 = arith.constant 0 : i32
    return %c0_i32, %c0_i32_0 : i32, i32
  }
  func.func @transform_3(%arg0: i32) -> (i32, i32) {
    %c0_i32 = arith.constant 0 : i32
    %c0_i32_0 = arith.constant 0 : i32
    %c0_i32_1 = arith.constant 0 : i32
    return %c0_i32, %c0_i32_0 : i32, i32
  }
  func.func @transform_4(%arg0: i32) -> (i32, i32) {
    %c0_i32 = arith.constant 0 : i32
    %c0_i32_0 = arith.constant 0 : i32
    %c0_i32_1 = arith.constant 0 : i32
    return %c0_i32, %c0_i32_0 : i32, i32
  }
  func.func @transform_5(%arg0: i32) -> (i32, i32) {
    %c0_i32 = arith.constant 0 : i32
    %c0_i32_0 = arith.constant 0 : i32
    %c0_i32_1 = arith.constant 0 : i32
    return %c0_i32, %c0_i32_0 : i32, i32
  }
  func.func @transform_6(%arg0: i32) -> (i32, i32) {
    %c0_i32 = arith.constant 0 : i32
    %c0_i32_0 = arith.constant 0 : i32
    %c0_i32_1 = arith.constant 0 : i32
    return %c0_i32, %c0_i32_0 : i32, i32
  }
  func.func @transform_7(%arg0: i32) -> (i32, i32) {
    %c0_i32 = arith.constant 0 : i32
    %c0_i32_0 = arith.constant 0 : i32
    return %c0_i32, %arg0 : i32, i32
  }
  func.func @transform_8(%arg0: i32) -> (i32, i32) {
    %c0_i32 = arith.constant 0 : i32
    %c0_i32_0 = arith.constant 0 : i32
    return %c0_i32, %arg0 : i32, i32
  }
}

module attributes {stable_mosaic.version = 11 : i64} {
  func.func @kernel(%arg0: i32, %arg1: memref<200x128xbf16, #tpu.memory_space<vmem>>, %arg2: memref<8x200xbf16, #tpu.memory_space<vmem>>, %arg3: memref<8x1xf32, #tpu.memory_space<vmem>>, %arg4: memref<8x4xbf16, #tpu.memory_space<vmem>>, %arg5: memref<8x1xf32, #tpu.memory_space<vmem>>, %arg6: memref<8x128xbf16, #tpu.memory_space<vmem>>, %arg7: memref<8x128xbf16, #tpu.memory_space<vmem>>) attributes {dimension_semantics = [#tpu.dimension_semantics<parallel>], iteration_bounds = array<i64: 1>, scalar_prefetch = 0 : i64, scratch_operands = 0 : i64, tpu.core_type = #tpu.core_type<tc>, window_params = [{transform_indices = @transform_0, window_bounds = array<i64: 200, 128>}, {pipeline_mode = #tpu.pipeline_mode<synchronous>, transform_indices = @transform_1, window_bounds = array<i64: 8, 200>}, {pipeline_mode = #tpu.pipeline_mode<synchronous>, transform_indices = @transform_2, window_bounds = array<i64: 8, 1>}, {pipeline_mode = #tpu.pipeline_mode<synchronous>, transform_indices = @transform_3, window_bounds = array<i64: 8, 4>}, {pipeline_mode = #tpu.pipeline_mode<synchronous>, transform_indices = @transform_4, window_bounds = array<i64: 8, 1>}, {transform_indices = @transform_5, window_bounds = array<i64: 8, 128>}, {transform_indices = @transform_6, window_bounds = array<i64: 8, 128>}]} {
    %c0 = arith.constant 0 : index
    %c0_0 = arith.constant 0 : index
    %0 = vector.load %arg1[%c0, %c0_0] : memref<200x128xbf16, #tpu.memory_space<vmem>>, vector<200x128xbf16>
    %c0_1 = arith.constant 0 : index
    %c0_2 = arith.constant 0 : index
    %1 = vector.load %arg2[%c0_1, %c0_2] : memref<8x200xbf16, #tpu.memory_space<vmem>>, vector<8x200xbf16>
    %c0_3 = arith.constant 0 : index
    %c0_4 = arith.constant 0 : index
    %2 = vector.load %arg3[%c0_3, %c0_4] : memref<8x1xf32, #tpu.memory_space<vmem>>, vector<8x1xf32>
    %cst = arith.constant dense<0.000000e+00> : vector<8x128xf32>
    %3 = tpu.matmul %1, %0, %cst {dimension_numbers = #tpu.dot_dimension_numbers<[1], [0], [0], [1], [0, 0, 1, 1], [], []>} : vector<8x200xbf16>, vector<200x128xbf16>, vector<8x128xf32> -> vector<8x128xf32>
    %4 = vector.broadcast %2 : vector<8x1xf32> to vector<8x128xf32>
    %5 = arith.addf %3, %4 : vector<8x128xf32>
    %6 = vector.extract_strided_slice %5 {offsets = [0, 0], sizes = [4, 128], strides = [1, 1]} : vector<8x128xf32> to vector<4x128xf32>
    %7 = vector.extract_strided_slice %5 {offsets = [4, 0], sizes = [4, 128], strides = [1, 1]} : vector<8x128xf32> to vector<4x128xf32>
    %8 = arith.mulf %6, %7 : vector<4x128xf32>
    %c0_5 = arith.constant 0 : index
    %c0_6 = arith.constant 0 : index
    %9 = vector.load %arg4[%c0_5, %c0_6] : memref<8x4xbf16, #tpu.memory_space<vmem>>, vector<8x4xbf16>
    %c0_7 = arith.constant 0 : index
    %c0_8 = arith.constant 0 : index
    %10 = vector.load %arg5[%c0_7, %c0_8] : memref<8x1xf32, #tpu.memory_space<vmem>>, vector<8x1xf32>
    %11 = arith.truncf %8 : vector<4x128xf32> to vector<4x128xbf16>
    %cst_9 = arith.constant dense<0.000000e+00> : vector<8x128xf32>
    %12 = tpu.matmul %9, %11, %cst_9 {dimension_numbers = #tpu.dot_dimension_numbers<[1], [0], [0], [1], [0, 0, 1, 1], [], []>} : vector<8x4xbf16>, vector<4x128xbf16>, vector<8x128xf32> -> vector<8x128xf32>
    %13 = vector.broadcast %10 : vector<8x1xf32> to vector<8x128xf32>
    %14 = arith.addf %12, %13 : vector<8x128xf32>
    %c0_10 = arith.constant 0 : index
    %c0_11 = arith.constant 0 : index
    %15 = vector.load %arg6[%c0_10, %c0_11] : memref<8x128xbf16, #tpu.memory_space<vmem>>, vector<8x128xbf16>
    %16 = arith.extf %15 : vector<8x128xbf16> to vector<8x128xf32>
    %17 = arith.addf %14, %16 : vector<8x128xf32>
    %18 = arith.truncf %17 : vector<8x128xf32> to vector<8x128xbf16>
    %c0_12 = arith.constant 0 : index
    %c0_13 = arith.constant 0 : index
    %19 = vector.load %arg7[%c0_12, %c0_13] : memref<8x128xbf16, #tpu.memory_space<vmem>>, vector<8x128xbf16>
    tpu.vector_store %arg7[%c0_12, %c0_13], %18 {strides = array<i32>} : memref<8x128xbf16, #tpu.memory_space<vmem>>, vector<8x128xbf16>,
    return
  }
  func.func @transform_0(%arg0: i32) -> (i32, i32) {
    %c0_i32 = arith.constant 0 : i32
    %c0_i32_0 = arith.constant 0 : i32
    return %c0_i32, %arg0 : i32, i32
  }
  func.func @transform_1(%arg0: i32) -> (i32, i32) {
    %c0_i32 = arith.constant 0 : i32
    %c0_i32_0 = arith.constant 0 : i32
    %c0_i32_1 = arith.constant 0 : i32
    return %c0_i32, %c0_i32_0 : i32, i32
  }
  func.func @transform_2(%arg0: i32) -> (i32, i32) {
    %c0_i32 = arith.constant 0 : i32
    %c0_i32_0 = arith.constant 0 : i32
    %c0_i32_1 = arith.constant 0 : i32
    return %c0_i32, %c0_i32_0 : i32, i32
  }
  func.func @transform_3(%arg0: i32) -> (i32, i32) {
    %c0_i32 = arith.constant 0 : i32
    %c0_i32_0 = arith.constant 0 : i32
    %c0_i32_1 = arith.constant 0 : i32
    return %c0_i32, %c0_i32_0 : i32, i32
  }
  func.func @transform_4(%arg0: i32) -> (i32, i32) {
    %c0_i32 = arith.constant 0 : i32
    %c0_i32_0 = arith.constant 0 : i32
    %c0_i32_1 = arith.constant 0 : i32
    return %c0_i32, %c0_i32_0 : i32, i32
  }
  func.func @transform_5(%arg0: i32) -> (i32, i32) {
    %c0_i32 = arith.constant 0 : i32
    %c0_i32_0 = arith.constant 0 : i32
    return %c0_i32, %arg0 : i32, i32
  }
  func.func @transform_6(%arg0: i32) -> (i32, i32) {
    %c0_i32 = arith.constant 0 : i32
    %c0_i32_0 = arith.constant 0 : i32
    return %c0_i32, %arg0 : i32, i32
  }
}

module attributes {stable_mosaic.version = 11 : i64} {
  func.func @kernel(%arg0: i32, %arg1: memref<8x128xbf16, #tpu.memory_space<vmem>>, %arg2: memref<8x1xf32, #tpu.memory_space<vmem>>, %arg3: memref<8x1xf32, #tpu.memory_space<vmem>>, %arg4: memref<32x8xbf16, #tpu.memory_space<vmem>>, %arg5: memref<32x1xf32, #tpu.memory_space<vmem>>, %arg6: memref<8x16xbf16, #tpu.memory_space<vmem>>, %arg7: memref<8x1xf32, #tpu.memory_space<vmem>>, %arg8: memref<8x128xbf16, #tpu.memory_space<vmem>>, %arg9: memref<8x128xbf16, #tpu.memory_space<vmem>>) attributes {dimension_semantics = [#tpu.dimension_semantics<parallel>], iteration_bounds = array<i64: 1>, scalar_prefetch = 0 : i64, scratch_operands = 0 : i64, tpu.core_type = #tpu.core_type<tc>, window_params = [{transform_indices = @transform_0, window_bounds = array<i64: 8, 128>}, {pipeline_mode = #tpu.pipeline_mode<synchronous>, transform_indices = @transform_1, window_bounds = array<i64: 8, 1>}, {pipeline_mode = #tpu.pipeline_mode<synchronous>, transform_indices = @transform_2, window_bounds = array<i64: 8, 1>}, {pipeline_mode = #tpu.pipeline_mode<synchronous>, transform_indices = @transform_3, window_bounds = array<i64: 32, 8>}, {pipeline_mode = #tpu.pipeline_mode<synchronous>, transform_indices = @transform_4, window_bounds = array<i64: 32, 1>}, {pipeline_mode = #tpu.pipeline_mode<synchronous>, transform_indices = @transform_5, window_bounds = array<i64: 8, 16>}, {pipeline_mode = #tpu.pipeline_mode<synchronous>, transform_indices = @transform_6, window_bounds = array<i64: 8, 1>}, {transform_indices = @transform_7, window_bounds = array<i64: 8, 128>}, {transform_indices = @transform_8, window_bounds = array<i64: 8, 128>}]} {
    %c0 = arith.constant 0 : index
    %c0_0 = arith.constant 0 : index
    %0 = vector.load %arg1[%c0, %c0_0] : memref<8x128xbf16, #tpu.memory_space<vmem>>, vector<8x128xbf16>
    %c0_1 = arith.constant 0 : index
    %c0_2 = arith.constant 0 : index
    %1 = vector.load %arg2[%c0_1, %c0_2] : memref<8x1xf32, #tpu.memory_space<vmem>>, vector<8x1xf32>
    %c0_3 = arith.constant 0 : index
    %c0_4 = arith.constant 0 : index
    %2 = vector.load %arg3[%c0_3, %c0_4] : memref<8x1xf32, #tpu.memory_space<vmem>>, vector<8x1xf32>
    %3 = arith.extf %0 : vector<8x128xbf16> to vector<8x128xf32>
    %cst = arith.constant dense<0.000000e+00> : vector<128xf32>
    %4 = vector.multi_reduction <add>, %3, %cst [0] : vector<8x128xf32> to vector<128xf32>
    %5 = vector.shape_cast %4 : vector<128xf32> to vector<1x128xf32>
    %cst_5 = arith.constant 8.000000e+00 : f32
    %6 = vector.broadcast %cst_5 : f32 to vector<1x128xf32>
    %7 = arith.divf %5, %6 : vector<1x128xf32>
    %8 = vector.broadcast %7 : vector<1x128xf32> to vector<8x128xf32>
    %9 = arith.subf %3, %8 : vector<8x128xf32>
    %10 = arith.mulf %9, %9 : vector<8x128xf32>
    %cst_6 = arith.constant dense<0.000000e+00> : vector<128xf32>
    %11 = vector.multi_reduction <add>, %10, %cst_6 [0] : vector<8x128xf32> to vector<128xf32>
    %12 = vector.shape_cast %11 : vector<128xf32> to vector<1x128xf32>
    %cst_7 = arith.constant 8.000000e+00 : f32
    %13 = vector.broadcast %cst_7 : f32 to vector<1x128xf32>
    %14 = arith.divf %12, %13 : vector<1x128xf32>
    %15 = vector.broadcast %7 : vector<1x128xf32> to vector<8x128xf32>
    %16 = arith.subf %3, %15 : vector<8x128xf32>
    %cst_8 = arith.constant 9.99999997E-7 : f32
    %17 = vector.broadcast %cst_8 : f32 to vector<1x128xf32>
    %18 = arith.addf %14, %17 : vector<1x128xf32>
    %19 = math.rsqrt %18 : vector<1x128xf32>
    %20 = vector.broadcast %19 : vector<1x128xf32> to vector<8x128xf32>
    %21 = arith.mulf %16, %20 : vector<8x128xf32>
    %22 = vector.broadcast %1 : vector<8x1xf32> to vector<8x128xf32>
    %23 = arith.mulf %21, %22 : vector<8x128xf32>
    %24 = vector.broadcast %2 : vector<8x1xf32> to vector<8x128xf32>
    %25 = arith.addf %23, %24 : vector<8x128xf32>
    %26 = arith.truncf %25 : vector<8x128xf32> to vector<8x128xbf16>
    %c0_9 = arith.constant 0 : index
    %c0_10 = arith.constant 0 : index
    %27 = vector.load %arg4[%c0_9, %c0_10] : memref<32x8xbf16, #tpu.memory_space<vmem>>, vector<32x8xbf16>
    %c0_11 = arith.constant 0 : index
    %c0_12 = arith.constant 0 : index
    %28 = vector.load %arg5[%c0_11, %c0_12] : memref<32x1xf32, #tpu.memory_space<vmem>>, vector<32x1xf32>
    %cst_13 = arith.constant dense<0.000000e+00> : vector<32x128xf32>
    %29 = tpu.matmul %27, %26, %cst_13 {dimension_numbers = #tpu.dot_dimension_numbers<[1], [0], [0], [1], [0, 0, 1, 1], [], []>} : vector<32x8xbf16>, vector<8x128xbf16>, vector<32x128xf32> -> vector<32x128xf32>
    %30 = vector.broadcast %28 : vector<32x1xf32> to vector<32x128xf32>
    %31 = arith.addf %29, %30 : vector<32x128xf32>
    %32 = vector.extract_strided_slice %31 {offsets = [0, 0], sizes = [16, 128], strides = [1, 1]} : vector<32x128xf32> to vector<16x128xf32>
    %33 = vector.extract_strided_slice %31 {offsets = [16, 0], sizes = [16, 128], strides = [1, 1]} : vector<32x128xf32> to vector<16x128xf32>
    %34 = arith.mulf %32, %33 : vector<16x128xf32>
    %c0_14 = arith.constant 0 : index
    %c0_15 = arith.constant 0 : index
    %35 = vector.load %arg6[%c0_14, %c0_15] : memref<8x16xbf16, #tpu.memory_space<vmem>>, vector<8x16xbf16>
    %c0_16 = arith.constant 0 : index
    %c0_17 = arith.constant 0 : index
    %36 = vector.load %arg7[%c0_16, %c0_17] : memref<8x1xf32, #tpu.memory_space<vmem>>, vector<8x1xf32>
    %37 = arith.truncf %34 : vector<16x128xf32> to vector<16x128xbf16>
    %cst_18 = arith.constant dense<0.000000e+00> : vector<8x128xf32>
    %38 = tpu.matmul %35, %37, %cst_18 {dimension_numbers = #tpu.dot_dimension_numbers<[1], [0], [0], [1], [0, 0, 1, 1], [], []>} : vector<8x16xbf16>, vector<16x128xbf16>, vector<8x128xf32> -> vector<8x128xf32>
    %39 = vector.broadcast %36 : vector<8x1xf32> to vector<8x128xf32>
    %40 = arith.addf %38, %39 : vector<8x128xf32>
    %c0_19 = arith.constant 0 : index
    %c0_20 = arith.constant 0 : index
    %41 = vector.load %arg8[%c0_19, %c0_20] : memref<8x128xbf16, #tpu.memory_space<vmem>>, vector<8x128xbf16>
    %42 = arith.extf %41 : vector<8x128xbf16> to vector<8x128xf32>
    %43 = arith.addf %40, %42 : vector<8x128xf32>
    %44 = arith.truncf %43 : vector<8x128xf32> to vector<8x128xbf16>
    %c0_21 = arith.constant 0 : index
    %c0_22 = arith.constant 0 : index
    %45 = vector.load %arg9[%c0_21, %c0_22] : memref<8x128xbf16, #tpu.memory_space<vmem>>, vector<8x128xbf16>
    tpu.vector_store %arg9[%c0_21, %c0_22], %44 {strides = array<i32>} : memref<8x128xbf16, #tpu.memory_space<vmem>>, vector<8x128xbf16>,
    return
  }
  func.func @transform_0(%arg0: i32) -> (i32, i32) {
    %c0_i32 = arith.constant 0 : i32
    %c0_i32_0 = arith.constant 0 : i32
    return %c0_i32, %arg0 : i32, i32
  }
  func.func @transform_1(%arg0: i32) -> (i32, i32) {
    %c0_i32 = arith.constant 0 : i32
    %c0_i32_0 = arith.constant 0 : i32
    %c0_i32_1 = arith.constant 0 : i32
    return %c0_i32, %c0_i32_0 : i32, i32
  }
  func.func @transform_2(%arg0: i32) -> (i32, i32) {
    %c0_i32 = arith.constant 0 : i32
    %c0_i32_0 = arith.constant 0 : i32
    %c0_i32_1 = arith.constant 0 : i32
    return %c0_i32, %c0_i32_0 : i32, i32
  }
  func.func @transform_3(%arg0: i32) -> (i32, i32) {
    %c0_i32 = arith.constant 0 : i32
    %c0_i32_0 = arith.constant 0 : i32
    %c0_i32_1 = arith.constant 0 : i32
    return %c0_i32, %c0_i32_0 : i32, i32
  }
  func.func @transform_4(%arg0: i32) -> (i32, i32) {
    %c0_i32 = arith.constant 0 : i32
    %c0_i32_0 = arith.constant 0 : i32
    %c0_i32_1 = arith.constant 0 : i32
    return %c0_i32, %c0_i32_0 : i32, i32
  }
  func.func @transform_5(%arg0: i32) -> (i32, i32) {
    %c0_i32 = arith.constant 0 : i32
    %c0_i32_0 = arith.constant 0 : i32
    %c0_i32_1 = arith.constant 0 : i32
    return %c0_i32, %c0_i32_0 : i32, i32
  }
  func.func @transform_6(%arg0: i32) -> (i32, i32) {
    %c0_i32 = arith.constant 0 : i32
    %c0_i32_0 = arith.constant 0 : i32
    %c0_i32_1 = arith.constant 0 : i32
    return %c0_i32, %c0_i32_0 : i32, i32
  }
  func.func @transform_7(%arg0: i32) -> (i32, i32) {
    %c0_i32 = arith.constant 0 : i32
    %c0_i32_0 = arith.constant 0 : i32
    return %c0_i32, %arg0 : i32, i32
  }
  func.func @transform_8(%arg0: i32) -> (i32, i32) {
    %c0_i32 = arith.constant 0 : i32
    %c0_i32_0 = arith.constant 0 : i32
    return %c0_i32, %arg0 : i32, i32
  }
}

module attributes {stable_mosaic.version = 11 : i64} {
  func.func @kernel(%arg0: i32, %arg1: memref<32x32xbf16, #tpu.memory_space<vmem>>, %arg2: memref<12x32xbf16, #tpu.memory_space<vmem>>, %arg3: memref<12x1xf32, #tpu.memory_space<vmem>>, %arg4: memref<12x32xbf16, #tpu.memory_space<vmem>>) attributes {dimension_semantics = [#tpu.dimension_semantics<parallel>], iteration_bounds = array<i64: 1>, scalar_prefetch = 0 : i64, scratch_operands = 0 : i64, tpu.core_type = #tpu.core_type<tc>, window_params = [{transform_indices = @transform_0, window_bounds = array<i64: 32, 32>}, {pipeline_mode = #tpu.pipeline_mode<synchronous>, transform_indices = @transform_1, window_bounds = array<i64: 12, 32>}, {pipeline_mode = #tpu.pipeline_mode<synchronous>, transform_indices = @transform_2, window_bounds = array<i64: 12, 1>}, {transform_indices = @transform_3, window_bounds = array<i64: 12, 32>}]} {
    %c0 = arith.constant 0 : index
    %c0_0 = arith.constant 0 : index
    %0 = vector.load %arg1[%c0, %c0_0] : memref<32x32xbf16, #tpu.memory_space<vmem>>, vector<32x32xbf16>
    %c0_1 = arith.constant 0 : index
    %c0_2 = arith.constant 0 : index
    %1 = vector.load %arg2[%c0_1, %c0_2] : memref<12x32xbf16, #tpu.memory_space<vmem>>, vector<12x32xbf16>
    %c0_3 = arith.constant 0 : index
    %c0_4 = arith.constant 0 : index
    %2 = vector.load %arg3[%c0_3, %c0_4] : memref<12x1xf32, #tpu.memory_space<vmem>>, vector<12x1xf32>
    %cst = arith.constant dense<0.000000e+00> : vector<12x32xf32>
    %3 = tpu.matmul %1, %0, %cst {dimension_numbers = #tpu.dot_dimension_numbers<[1], [0], [0], [1], [0, 0, 1, 1], [], []>} : vector<12x32xbf16>, vector<32x32xbf16>, vector<12x32xf32> -> vector<12x32xf32>
    %4 = vector.broadcast %2 : vector<12x1xf32> to vector<12x32xf32>
    %5 = arith.addf %3, %4 : vector<12x32xf32>
    %6 = arith.truncf %5 : vector<12x32xf32> to vector<12x32xbf16>
    %c0_5 = arith.constant 0 : index
    %c0_6 = arith.constant 0 : index
    %7 = vector.load %arg4[%c0_5, %c0_6] : memref<12x32xbf16, #tpu.memory_space<vmem>>, vector<12x32xbf16>
    tpu.vector_store %arg4[%c0_5, %c0_6], %6 {strides = array<i32>} : memref<12x32xbf16, #tpu.memory_space<vmem>>, vector<12x32xbf16>,
    return
  }
  func.func @transform_0(%arg0: i32) -> (i32, i32) {
    %c0_i32 = arith.constant 0 : i32
    %c0_i32_0 = arith.constant 0 : i32
    return %c0_i32, %arg0 : i32, i32
  }
  func.func @transform_1(%arg0: i32) -> (i32, i32) {
    %c0_i32 = arith.constant 0 : i32
    %c0_i32_0 = arith.constant 0 : i32
    %c0_i32_1 = arith.constant 0 : i32
    return %c0_i32, %c0_i32_0 : i32, i32
  }
  func.func @transform_2(%arg0: i32) -> (i32, i32) {
    %c0_i32 = arith.constant 0 : i32
    %c0_i32_0 = arith.constant 0 : i32
    %c0_i32_1 = arith.constant 0 : i32
    return %c0_i32, %c0_i32_0 : i32, i32
  }
  func.func @transform_3(%arg0: i32) -> (i32, i32) {
    %c0_i32 = arith.constant 0 : i32
    %c0_i32_0 = arith.constant 0 : i32
    return %c0_i32, %arg0 : i32, i32
  }
}

module attributes {stable_mosaic.version = 11 : i64} {
  func.func @kernel(%arg0: i32, %arg1: memref<108x24xbf16, #tpu.memory_space<vmem>>, %arg2: memref<12x108xbf16, #tpu.memory_space<vmem>>, %arg3: memref<12x1xf32, #tpu.memory_space<vmem>>, %arg4: memref<12x24xbf16, #tpu.memory_space<vmem>>) attributes {dimension_semantics = [#tpu.dimension_semantics<parallel>], iteration_bounds = array<i64: 1>, scalar_prefetch = 0 : i64, scratch_operands = 0 : i64, tpu.core_type = #tpu.core_type<tc>, window_params = [{transform_indices = @transform_0, window_bounds = array<i64: 108, 24>}, {pipeline_mode = #tpu.pipeline_mode<synchronous>, transform_indices = @transform_1, window_bounds = array<i64: 12, 108>}, {pipeline_mode = #tpu.pipeline_mode<synchronous>, transform_indices = @transform_2, window_bounds = array<i64: 12, 1>}, {transform_indices = @transform_3, window_bounds = array<i64: 12, 24>}]} {
    %c0 = arith.constant 0 : index
    %c0_0 = arith.constant 0 : index
    %0 = vector.load %arg1[%c0, %c0_0] : memref<108x24xbf16, #tpu.memory_space<vmem>>, vector<108x24xbf16>
    %c0_1 = arith.constant 0 : index
    %c0_2 = arith.constant 0 : index
    %1 = vector.load %arg2[%c0_1, %c0_2] : memref<12x108xbf16, #tpu.memory_space<vmem>>, vector<12x108xbf16>
    %c0_3 = arith.constant 0 : index
    %c0_4 = arith.constant 0 : index
    %2 = vector.load %arg3[%c0_3, %c0_4] : memref<12x1xf32, #tpu.memory_space<vmem>>, vector<12x1xf32>
    %cst = arith.constant dense<0.000000e+00> : vector<12x24xf32>
    %3 = tpu.matmul %1, %0, %cst {dimension_numbers = #tpu.dot_dimension_numbers<[1], [0], [0], [1], [0, 0, 1, 1], [], []>} : vector<12x108xbf16>, vector<108x24xbf16>, vector<12x24xf32> -> vector<12x24xf32>
    %4 = vector.broadcast %2 : vector<12x1xf32> to vector<12x24xf32>
    %5 = arith.addf %3, %4 : vector<12x24xf32>
    %6 = arith.truncf %5 : vector<12x24xf32> to vector<12x24xbf16>
    %c0_5 = arith.constant 0 : index
    %c0_6 = arith.constant 0 : index
    %7 = vector.load %arg4[%c0_5, %c0_6] : memref<12x24xbf16, #tpu.memory_space<vmem>>, vector<12x24xbf16>
    tpu.vector_store %arg4[%c0_5, %c0_6], %6 {strides = array<i32>} : memref<12x24xbf16, #tpu.memory_space<vmem>>, vector<12x24xbf16>,
    return
  }
  func.func @transform_0(%arg0: i32) -> (i32, i32) {
    %c0_i32 = arith.constant 0 : i32
    %c0_i32_0 = arith.constant 0 : i32
    return %c0_i32, %arg0 : i32, i32
  }
  func.func @transform_1(%arg0: i32) -> (i32, i32) {
    %c0_i32 = arith.constant 0 : i32
    %c0_i32_0 = arith.constant 0 : i32
    %c0_i32_1 = arith.constant 0 : i32
    return %c0_i32, %c0_i32_0 : i32, i32
  }
  func.func @transform_2(%arg0: i32) -> (i32, i32) {
    %c0_i32 = arith.constant 0 : i32
    %c0_i32_0 = arith.constant 0 : i32
    %c0_i32_1 = arith.constant 0 : i32
    return %c0_i32, %c0_i32_0 : i32, i32
  }
  func.func @transform_3(%arg0: i32) -> (i32, i32) {
    %c0_i32 = arith.constant 0 : i32
    %c0_i32_0 = arith.constant 0 : i32
    return %c0_i32, %arg0 : i32, i32
  }
}

module attributes {stable_mosaic.version = 11 : i64} {
  func.func @kernel(%arg0: i32, %arg1: memref<300x8xbf16, #tpu.memory_space<vmem>>, %arg2: memref<12x300xbf16, #tpu.memory_space<vmem>>, %arg3: memref<12x1xf32, #tpu.memory_space<vmem>>, %arg4: memref<12x8xbf16, #tpu.memory_space<vmem>>) attributes {dimension_semantics = [#tpu.dimension_semantics<parallel>], iteration_bounds = array<i64: 1>, scalar_prefetch = 0 : i64, scratch_operands = 0 : i64, tpu.core_type = #tpu.core_type<tc>, window_params = [{transform_indices = @transform_0, window_bounds = array<i64: 300, 8>}, {pipeline_mode = #tpu.pipeline_mode<synchronous>, transform_indices = @transform_1, window_bounds = array<i64: 12, 300>}, {pipeline_mode = #tpu.pipeline_mode<synchronous>, transform_indices = @transform_2, window_bounds = array<i64: 12, 1>}, {transform_indices = @transform_3, window_bounds = array<i64: 12, 8>}]} {
    %c0 = arith.constant 0 : index
    %c0_0 = arith.constant 0 : index
    %0 = vector.load %arg1[%c0, %c0_0] : memref<300x8xbf16, #tpu.memory_space<vmem>>, vector<300x8xbf16>
    %c0_1 = arith.constant 0 : index
    %c0_2 = arith.constant 0 : index
    %1 = vector.load %arg2[%c0_1, %c0_2] : memref<12x300xbf16, #tpu.memory_space<vmem>>, vector<12x300xbf16>
    %c0_3 = arith.constant 0 : index
    %c0_4 = arith.constant 0 : index
    %2 = vector.load %arg3[%c0_3, %c0_4] : memref<12x1xf32, #tpu.memory_space<vmem>>, vector<12x1xf32>
    %cst = arith.constant dense<0.000000e+00> : vector<12x8xf32>
    %3 = tpu.matmul %1, %0, %cst {dimension_numbers = #tpu.dot_dimension_numbers<[1], [0], [0], [1], [0, 0, 1, 1], [], []>} : vector<12x300xbf16>, vector<300x8xbf16>, vector<12x8xf32> -> vector<12x8xf32>
    %4 = vector.broadcast %2 : vector<12x1xf32> to vector<12x8xf32>
    %5 = arith.addf %3, %4 : vector<12x8xf32>
    %6 = arith.truncf %5 : vector<12x8xf32> to vector<12x8xbf16>
    %c0_5 = arith.constant 0 : index
    %c0_6 = arith.constant 0 : index
    %7 = vector.load %arg4[%c0_5, %c0_6] : memref<12x8xbf16, #tpu.memory_space<vmem>>, vector<12x8xbf16>
    tpu.vector_store %arg4[%c0_5, %c0_6], %6 {strides = array<i32>} : memref<12x8xbf16, #tpu.memory_space<vmem>>, vector<12x8xbf16>,
    return
  }
  func.func @transform_0(%arg0: i32) -> (i32, i32) {
    %c0_i32 = arith.constant 0 : i32
    %c0_i32_0 = arith.constant 0 : i32
    return %c0_i32, %arg0 : i32, i32
  }
  func.func @transform_1(%arg0: i32) -> (i32, i32) {
    %c0_i32 = arith.constant 0 : i32
    %c0_i32_0 = arith.constant 0 : i32
    %c0_i32_1 = arith.constant 0 : i32
    return %c0_i32, %c0_i32_0 : i32, i32
  }
  func.func @transform_2(%arg0: i32) -> (i32, i32) {
    %c0_i32 = arith.constant 0 : i32
    %c0_i32_0 = arith.constant 0 : i32
    %c0_i32_1 = arith.constant 0 : i32
    return %c0_i32, %c0_i32_0 : i32, i32
  }
  func.func @transform_3(%arg0: i32) -> (i32, i32) {
    %c0_i32 = arith.constant 0 : i32
    %c0_i32_0 = arith.constant 0 : i32
    return %c0_i32, %arg0 : i32, i32
  }
}

module attributes {stable_mosaic.version = 11 : i64} {
  func.func @kernel(%arg0: i32, %arg1: memref<108x8xbf16, #tpu.memory_space<vmem>>, %arg2: memref<3x108xbf16, #tpu.memory_space<vmem>>, %arg3: memref<3x1xf32, #tpu.memory_space<vmem>>, %arg4: memref<3x8xbf16, #tpu.memory_space<vmem>>) attributes {dimension_semantics = [#tpu.dimension_semantics<parallel>], iteration_bounds = array<i64: 1>, scalar_prefetch = 0 : i64, scratch_operands = 0 : i64, tpu.core_type = #tpu.core_type<tc>, window_params = [{transform_indices = @transform_0, window_bounds = array<i64: 108, 8>}, {pipeline_mode = #tpu.pipeline_mode<synchronous>, transform_indices = @transform_1, window_bounds = array<i64: 3, 108>}, {pipeline_mode = #tpu.pipeline_mode<synchronous>, transform_indices = @transform_2, window_bounds = array<i64: 3, 1>}, {transform_indices = @transform_3, window_bounds = array<i64: 3, 8>}]} {
    %c0 = arith.constant 0 : index
    %c0_0 = arith.constant 0 : index
    %0 = vector.load %arg1[%c0, %c0_0] : memref<108x8xbf16, #tpu.memory_space<vmem>>, vector<108x8xbf16>
    %c0_1 = arith.constant 0 : index
    %c0_2 = arith.constant 0 : index
    %1 = vector.load %arg2[%c0_1, %c0_2] : memref<3x108xbf16, #tpu.memory_space<vmem>>, vector<3x108xbf16>
    %c0_3 = arith.constant 0 : index
    %c0_4 = arith.constant 0 : index
    %2 = vector.load %arg3[%c0_3, %c0_4] : memref<3x1xf32, #tpu.memory_space<vmem>>, vector<3x1xf32>
    %cst = arith.constant dense<0.000000e+00> : vector<3x8xf32>
    %3 = tpu.matmul %1, %0, %cst {dimension_numbers = #tpu.dot_dimension_numbers<[1], [0], [0], [1], [0, 0, 1, 1], [], []>} : vector<3x108xbf16>, vector<108x8xbf16>, vector<3x8xf32> -> vector<3x8xf32>
    %4 = vector.broadcast %2 : vector<3x1xf32> to vector<3x8xf32>
    %5 = arith.addf %3, %4 : vector<3x8xf32>
    %6 = arith.truncf %5 : vector<3x8xf32> to vector<3x8xbf16>
    %c0_5 = arith.constant 0 : index
    %c0_6 = arith.constant 0 : index
    %7 = vector.load %arg4[%c0_5, %c0_6] : memref<3x8xbf16, #tpu.memory_space<vmem>>, vector<3x8xbf16>
    tpu.vector_store %arg4[%c0_5, %c0_6], %6 {strides = array<i32>} : memref<3x8xbf16, #tpu.memory_space<vmem>>, vector<3x8xbf16>,
    return
  }
  func.func @transform_0(%arg0: i32) -> (i32, i32) {
    %c0_i32 = arith.constant 0 : i32
    %c0_i32_0 = arith.constant 0 : i32
    return %c0_i32, %arg0 : i32, i32
  }
  func.func @transform_1(%arg0: i32) -> (i32, i32) {
    %c0_i32 = arith.constant 0 : i32
    %c0_i32_0 = arith.constant 0 : i32
    %c0_i32_1 = arith.constant 0 : i32
    return %c0_i32, %c0_i32_0 : i32, i32
  }
  func.func @transform_2(%arg0: i32) -> (i32, i32) {
    %c0_i32 = arith.constant 0 : i32
    %c0_i32_0 = arith.constant 0 : i32
    %c0_i32_1 = arith.constant 0 : i32
    return %c0_i32, %c0_i32_0 : i32, i32
  }
  func.func @transform_3(%arg0: i32) -> (i32, i32) {
    %c0_i32 = arith.constant 0 : i32
    %c0_i32_0 = arith.constant 0 : i32
    return %c0_i32, %arg0 : i32, i32
  }
}

module attributes {stable_mosaic.version = 11 : i64} {
  func.func @kernel(%arg0: i32, %arg1: memref<24x24xbf16, #tpu.memory_space<vmem>>, %arg2: memref<12x24xbf16, #tpu.memory_space<vmem>>, %arg3: memref<12x1xf32, #tpu.memory_space<vmem>>, %arg4: memref<12x1xf32, #tpu.memory_space<vmem>>, %arg5: memref<12x1xf32, #tpu.memory_space<vmem>>, %arg6: memref<12x24xbf16, #tpu.memory_space<vmem>>) attributes {dimension_semantics = [#tpu.dimension_semantics<parallel>], iteration_bounds = array<i64: 1>, scalar_prefetch = 0 : i64, scratch_operands = 0 : i64, tpu.core_type = #tpu.core_type<tc>, window_params = [{transform_indices = @transform_0, window_bounds = array<i64: 24, 24>}, {pipeline_mode = #tpu.pipeline_mode<synchronous>, transform_indices = @transform_1, window_bounds = array<i64: 12, 24>}, {pipeline_mode = #tpu.pipeline_mode<synchronous>, transform_indices = @transform_2, window_bounds = array<i64: 12, 1>}, {pipeline_mode = #tpu.pipeline_mode<synchronous>, transform_indices = @transform_3, window_bounds = array<i64: 12, 1>}, {pipeline_mode = #tpu.pipeline_mode<synchronous>, transform_indices = @transform_4, window_bounds = array<i64: 12, 1>}, {transform_indices = @transform_5, window_bounds = array<i64: 12, 24>}]} {
    %c0 = arith.constant 0 : index
    %c0_0 = arith.constant 0 : index
    %0 = vector.load %arg1[%c0, %c0_0] : memref<24x24xbf16, #tpu.memory_space<vmem>>, vector<24x24xbf16>
    %c0_1 = arith.constant 0 : index
    %c0_2 = arith.constant 0 : index
    %1 = vector.load %arg2[%c0_1, %c0_2] : memref<12x24xbf16, #tpu.memory_space<vmem>>, vector<12x24xbf16>
    %c0_3 = arith.constant 0 : index
    %c0_4 = arith.constant 0 : index
    %2 = vector.load %arg3[%c0_3, %c0_4] : memref<12x1xf32, #tpu.memory_space<vmem>>, vector<12x1xf32>
    %cst = arith.constant dense<0.000000e+00> : vector<12x24xf32>
    %3 = tpu.matmul %1, %0, %cst {dimension_numbers = #tpu.dot_dimension_numbers<[1], [0], [0], [1], [0, 0, 1, 1], [], []>} : vector<12x24xbf16>, vector<24x24xbf16>, vector<12x24xf32> -> vector<12x24xf32>
    %4 = vector.broadcast %2 : vector<12x1xf32> to vector<12x24xf32>
    %5 = arith.addf %3, %4 : vector<12x24xf32>
    %c0_5 = arith.constant 0 : index
    %c0_6 = arith.constant 0 : index
    %6 = vector.load %arg4[%c0_5, %c0_6] : memref<12x1xf32, #tpu.memory_space<vmem>>, vector<12x1xf32>
    %c0_7 = arith.constant 0 : index
    %c0_8 = arith.constant 0 : index
    %7 = vector.load %arg5[%c0_7, %c0_8] : memref<12x1xf32, #tpu.memory_space<vmem>>, vector<12x1xf32>
    %cst_9 = arith.constant dense<0.000000e+00> : vector<24xf32>
    %8 = vector.multi_reduction <add>, %5, %cst_9 [0] : vector<12x24xf32> to vector<24xf32>
    %9 = vector.shape_cast %8 : vector<24xf32> to vector<1x24xf32>
    %cst_10 = arith.constant 1.200000e+01 : f32
    %10 = vector.broadcast %cst_10 : f32 to vector<1x24xf32>
    %11 = arith.divf %9, %10 : vector<1x24xf32>
    %12 = vector.broadcast %11 : vector<1x24xf32> to vector<12x24xf32>
    %13 = arith.subf %5, %12 : vector<12x24xf32>
    %14 = arith.mulf %13, %13 : vector<12x24xf32>
    %cst_11 = arith.constant dense<0.000000e+00> : vector<24xf32>
    %15 = vector.multi_reduction <add>, %14, %cst_11 [0] : vector<12x24xf32> to vector<24xf32>
    %16 = vector.shape_cast %15 : vector<24xf32> to vector<1x24xf32>
    %cst_12 = arith.constant 1.200000e+01 : f32
    %17 = vector.broadcast %cst_12 : f32 to vector<1x24xf32>
    %18 = arith.divf %16, %17 : vector<1x24xf32>
    %19 = vector.broadcast %11 : vector<1x24xf32> to vector<12x24xf32>
    %20 = arith.subf %5, %19 : vector<12x24xf32>
    %cst_13 = arith.constant 9.99999974E-6 : f32
    %21 = vector.broadcast %cst_13 : f32 to vector<1x24xf32>
    %22 = arith.addf %18, %21 : vector<1x24xf32>
    %23 = math.rsqrt %22 : vector<1x24xf32>
    %24 = vector.broadcast %23 : vector<1x24xf32> to vector<12x24xf32>
    %25 = arith.mulf %20, %24 : vector<12x24xf32>
    %26 = vector.broadcast %6 : vector<12x1xf32> to vector<12x24xf32>
    %27 = arith.mulf %25, %26 : vector<12x24xf32>
    %28 = vector.broadcast %7 : vector<12x1xf32> to vector<12x24xf32>
    %29 = arith.addf %27, %28 : vector<12x24xf32>
    %30 = arith.truncf %29 : vector<12x24xf32> to vector<12x24xbf16>
    %c0_14 = arith.constant 0 : index
    %c0_15 = arith.constant 0 : index
    %31 = vector.load %arg6[%c0_14, %c0_15] : memref<12x24xbf16, #tpu.memory_space<vmem>>, vector<12x24xbf16>
    tpu.vector_store %arg6[%c0_14, %c0_15], %30 {strides = array<i32>} : memref<12x24xbf16, #tpu.memory_space<vmem>>, vector<12x24xbf16>,
    return
  }
  func.func @transform_0(%arg0: i32) -> (i32, i32) {
    %c0_i32 = arith.constant 0 : i32
    %c0_i32_0 = arith.constant 0 : i32
    return %c0_i32, %arg0 : i32, i32
  }
  func.func @transform_1(%arg0: i32) -> (i32, i32) {
    %c0_i32 = arith.constant 0 : i32
    %c0_i32_0 = arith.constant 0 : i32
    %c0_i32_1 = arith.constant 0 : i32
    return %c0_i32, %c0_i32_0 : i32, i32
  }
  func.func @transform_2(%arg0: i32) -> (i32, i32) {
    %c0_i32 = arith.constant 0 : i32
    %c0_i32_0 = arith.constant 0 : i32
    %c0_i32_1 = arith.constant 0 : i32
    return %c0_i32, %c0_i32_0 : i32, i32
  }
  func.func @transform_3(%arg0: i32) -> (i32, i32) {
    %c0_i32 = arith.constant 0 : i32
    %c0_i32_0 = arith.constant 0 : i32
    %c0_i32_1 = arith.constant 0 : i32
    return %c0_i32, %c0_i32_0 : i32, i32
  }
  func.func @transform_4(%arg0: i32) -> (i32, i32) {
    %c0_i32 = arith.constant 0 : i32
    %c0_i32_0 = arith.constant 0 : i32
    %c0_i32_1 = arith.constant 0 : i32
    return %c0_i32, %c0_i32_0 : i32, i32
  }
  func.func @transform_5(%arg0: i32) -> (i32, i32) {
    %c0_i32 = arith.constant 0 : i32
    %c0_i32_0 = arith.constant 0 : i32
    return %c0_i32, %arg0 : i32, i32
  }
}

module attributes {stable_mosaic.version = 11 : i64} {
  func.func @kernel(%arg0: i32, %arg1: memref<12x24xbf16, #tpu.memory_space<vmem>>, %arg2: memref<12x1xf32, #tpu.memory_space<vmem>>, %arg3: memref<12x1xf32, #tpu.memory_space<vmem>>, %arg4: memref<48x12xbf16, #tpu.memory_space<vmem>>, %arg5: memref<48x1xf32, #tpu.memory_space<vmem>>, %arg6: memref<12x48xbf16, #tpu.memory_space<vmem>>, %arg7: memref<12x1xf32, #tpu.memory_space<vmem>>, %arg8: memref<12x24xbf16, #tpu.memory_space<vmem>>, %arg9: memref<12x24xbf16, #tpu.memory_space<vmem>>) attributes {dimension_semantics = [#tpu.dimension_semantics<parallel>], iteration_bounds = array<i64: 1>, scalar_prefetch = 0 : i64, scratch_operands = 0 : i64, tpu.core_type = #tpu.core_type<tc>, window_params = [{transform_indices = @transform_0, window_bounds = array<i64: 12, 24>}, {pipeline_mode = #tpu.pipeline_mode<synchronous>, transform_indices = @transform_1, window_bounds = array<i64: 12, 1>}, {pipeline_mode = #tpu.pipeline_mode<synchronous>, transform_indices = @transform_2, window_bounds = array<i64: 12, 1>}, {pipeline_mode = #tpu.pipeline_mode<synchronous>, transform_indices = @transform_3, window_bounds = array<i64: 48, 12>}, {pipeline_mode = #tpu.pipeline_mode<synchronous>, transform_indices = @transform_4, window_bounds = array<i64: 48, 1>}, {pipeline_mode = #tpu.pipeline_mode<synchronous>, transform_indices = @transform_5, window_bounds = array<i64: 12, 48>}, {pipeline_mode = #tpu.pipeline_mode<synchronous>, transform_indices = @transform_6, window_bounds = array<i64: 12, 1>}, {transform_indices = @transform_7, window_bounds = array<i64: 12, 24>}, {transform_indices = @transform_8, window_bounds = array<i64: 12, 24>}]} {
    %c0 = arith.constant 0 : index
    %c0_0 = arith.constant 0 : index
    %0 = vector.load %arg1[%c0, %c0_0] : memref<12x24xbf16, #tpu.memory_space<vmem>>, vector<12x24xbf16>
    %c0_1 = arith.constant 0 : index
    %c0_2 = arith.constant 0 : index
    %1 = vector.load %arg2[%c0_1, %c0_2] : memref<12x1xf32, #tpu.memory_space<vmem>>, vector<12x1xf32>
    %c0_3 = arith.constant 0 : index
    %c0_4 = arith.constant 0 : index
    %2 = vector.load %arg3[%c0_3, %c0_4] : memref<12x1xf32, #tpu.memory_space<vmem>>, vector<12x1xf32>
    %3 = arith.extf %0 : vector<12x24xbf16> to vector<12x24xf32>
    %cst = arith.constant dense<0.000000e+00> : vector<24xf32>
    %4 = vector.multi_reduction <add>, %3, %cst [0] : vector<12x24xf32> to vector<24xf32>
    %5 = vector.shape_cast %4 : vector<24xf32> to vector<1x24xf32>
    %cst_5 = arith.constant 1.200000e+01 : f32
    %6 = vector.broadcast %cst_5 : f32 to vector<1x24xf32>
    %7 = arith.divf %5, %6 : vector<1x24xf32>
    %8 = vector.broadcast %7 : vector<1x24xf32> to vector<12x24xf32>
    %9 = arith.subf %3, %8 : vector<12x24xf32>
    %10 = arith.mulf %9, %9 : vector<12x24xf32>
    %cst_6 = arith.constant dense<0.000000e+00> : vector<24xf32>
    %11 = vector.multi_reduction <add>, %10, %cst_6 [0] : vector<12x24xf32> to vector<24xf32>
    %12 = vector.shape_cast %11 : vector<24xf32> to vector<1x24xf32>
    %cst_7 = arith.constant 1.200000e+01 : f32
    %13 = vector.broadcast %cst_7 : f32 to vector<1x24xf32>
    %14 = arith.divf %12, %13 : vector<1x24xf32>
    %15 = vector.broadcast %7 : vector<1x24xf32> to vector<12x24xf32>
    %16 = arith.subf %3, %15 : vector<12x24xf32>
    %cst_8 = arith.constant 9.99999974E-6 : f32
    %17 = vector.broadcast %cst_8 : f32 to vector<1x24xf32>
    %18 = arith.addf %14, %17 : vector<1x24xf32>
    %19 = math.rsqrt %18 : vector<1x24xf32>
    %20 = vector.broadcast %19 : vector<1x24xf32> to vector<12x24xf32>
    %21 = arith.mulf %16, %20 : vector<12x24xf32>
    %22 = vector.broadcast %1 : vector<12x1xf32> to vector<12x24xf32>
    %23 = arith.mulf %21, %22 : vector<12x24xf32>
    %24 = vector.broadcast %2 : vector<12x1xf32> to vector<12x24xf32>
    %25 = arith.addf %23, %24 : vector<12x24xf32>
    %26 = arith.truncf %25 : vector<12x24xf32> to vector<12x24xbf16>
    %c0_9 = arith.constant 0 : index
    %c0_10 = arith.constant 0 : index
    %27 = vector.load %arg4[%c0_9, %c0_10] : memref<48x12xbf16, #tpu.memory_space<vmem>>, vector<48x12xbf16>
    %c0_11 = arith.constant 0 : index
    %c0_12 = arith.constant 0 : index
    %28 = vector.load %arg5[%c0_11, %c0_12] : memref<48x1xf32, #tpu.memory_space<vmem>>, vector<48x1xf32>
    %cst_13 = arith.constant dense<0.000000e+00> : vector<48x24xf32>
    %29 = tpu.matmul %27, %26, %cst_13 {dimension_numbers = #tpu.dot_dimension_numbers<[1], [0], [0], [1], [0, 0, 1, 1], [], []>} : vector<48x12xbf16>, vector<12x24xbf16>, vector<48x24xf32> -> vector<48x24xf32>
    %30 = vector.broadcast %28 : vector<48x1xf32> to vector<48x24xf32>
    %31 = arith.addf %29, %30 : vector<48x24xf32>
    %32 = arith.mulf %31, %31 : vector<48x24xf32>
    %33 = arith.mulf %31, %32 : vector<48x24xf32>
    %cst_14 = arith.constant 4.471500e-02 : f32
    %34 = vector.broadcast %cst_14 : f32 to vector<48x24xf32>
    %35 = arith.mulf %34, %33 : vector<48x24xf32>
    %36 = arith.addf %31, %35 : vector<48x24xf32>
    %cst_15 = arith.constant 0.797884583 : f32
    %37 = vector.broadcast %cst_15 : f32 to vector<48x24xf32>
    %38 = arith.mulf %37, %36 : vector<48x24xf32>
    %39 = math.tanh %38 : vector<48x24xf32>
    %cst_16 = arith.constant 1.000000e+00 : f32
    %40 = vector.broadcast %cst_16 : f32 to vector<48x24xf32>
    %41 = arith.addf %40, %39 : vector<48x24xf32>
    %cst_17 = arith.constant 5.000000e-01 : f32
    %42 = vector.broadcast %cst_17 : f32 to vector<48x24xf32>
    %43 = arith.mulf %42, %41 : vector<48x24xf32>
    %44 = arith.mulf %31, %43 : vector<48x24xf32>
    %c0_18 = arith.constant 0 : index
    %c0_19 = arith.constant 0 : index
    %45 = vector.load %arg6[%c0_18, %c0_19] : memref<12x48xbf16, #tpu.memory_space<vmem>>, vector<12x48xbf16>
    %c0_20 = arith.constant 0 : index
    %c0_21 = arith.constant 0 : index
    %46 = vector.load %arg7[%c0_20, %c0_21] : memref<12x1xf32, #tpu.memory_space<vmem>>, vector<12x1xf32>
    %47 = arith.truncf %44 : vector<48x24xf32> to vector<48x24xbf16>
    %cst_22 = arith.constant dense<0.000000e+00> : vector<12x24xf32>
    %48 = tpu.matmul %45, %47, %cst_22 {dimension_numbers = #tpu.dot_dimension_numbers<[1], [0], [0], [1], [0, 0, 1, 1], [], []>} : vector<12x48xbf16>, vector<48x24xbf16>, vector<12x24xf32> -> vector<12x24xf32>
    %49 = vector.broadcast %46 : vector<12x1xf32> to vector<12x24xf32>
    %50 = arith.addf %48, %49 : vector<12x24xf32>
    %c0_23 = arith.constant 0 : index
    %c0_24 = arith.constant 0 : index
    %51 = vector.load %arg8[%c0_23, %c0_24] : memref<12x24xbf16, #tpu.memory_space<vmem>>, vector<12x24xbf16>
    %52 = arith.extf %51 : vector<12x24xbf16> to vector<12x24xf32>
    %53 = arith.addf %50, %52 : vector<12x24xf32>
    %54 = arith.truncf %53 : vector<12x24xf32> to vector<12x24xbf16>
    %c0_25 = arith.constant 0 : index
    %c0_26 = arith.constant 0 : index
    %55 = vector.load %arg9[%c0_25, %c0_26] : memref<12x24xbf16, #tpu.memory_space<vmem>>, vector<12x24xbf16>
    tpu.vector_store %arg9[%c0_25, %c0_26], %54 {strides = array<i32>} : memref<12x24xbf16, #tpu.memory_space<vmem>>, vector<12x24xbf16>,
    return
  }
  func.func @transform_0(%arg0: i32) -> (i32, i32) {
    %c0_i32 = arith.constant 0 : i32
    %c0_i32_0 = arith.constant 0 : i32
    return %c0_i32, %arg0 : i32, i32
  }
  func.func @transform_1(%arg0: i32) -> (i32, i32) {
    %c0_i32 = arith.constant 0 : i32
    %c0_i32_0 = arith.constant 0 : i32
    %c0_i32_1 = arith.constant 0 : i32
    return %c0_i32, %c0_i32_0 : i32, i32
  }
  func.func @transform_2(%arg0: i32) -> (i32, i32) {
    %c0_i32 = arith.constant 0 : i32
    %c0_i32_0 = arith.constant 0 : i32
    %c0_i32_1 = arith.constant 0 : i32
    return %c0_i32, %c0_i32_0 : i32, i32
  }
  func.func @transform_3(%arg0: i32) -> (i32, i32) {
    %c0_i32 = arith.constant 0 : i32
    %c0_i32_0 = arith.constant 0 : i32
    %c0_i32_1 = arith.constant 0 : i32
    return %c0_i32, %c0_i32_0 : i32, i32
  }
  func.func @transform_4(%arg0: i32) -> (i32, i32) {
    %c0_i32 = arith.constant 0 : i32
    %c0_i32_0 = arith.constant 0 : i32
    %c0_i32_1 = arith.constant 0 : i32
    return %c0_i32, %c0_i32_0 : i32, i32
  }
  func.func @transform_5(%arg0: i32) -> (i32, i32) {
    %c0_i32 = arith.constant 0 : i32
    %c0_i32_0 = arith.constant 0 : i32
    %c0_i32_1 = arith.constant 0 : i32
    return %c0_i32, %c0_i32_0 : i32, i32
  }
  func.func @transform_6(%arg0: i32) -> (i32, i32) {
    %c0_i32 = arith.constant 0 : i32
    %c0_i32_0 = arith.constant 0 : i32
    %c0_i32_1 = arith.constant 0 : i32
    return %c0_i32, %c0_i32_0 : i32, i32
  }
  func.func @transform_7(%arg0: i32) -> (i32, i32) {
    %c0_i32 = arith.constant 0 : i32
    %c0_i32_0 = arith.constant 0 : i32
    return %c0_i32, %arg0 : i32, i32
  }
  func.func @transform_8(%arg0: i32) -> (i32, i32) {
    %c0_i32 = arith.constant 0 : i32
    %c0_i32_0 = arith.constant 0 : i32
    return %c0_i32, %arg0 : i32, i32
  }
}

module attributes {stable_mosaic.version = 11 : i64} {
  func.func @kernel(%arg0: i32, %arg1: memref<12x32xbf16, #tpu.memory_space<vmem>>, %arg2: memref<12x1xf32, #tpu.memory_space<vmem>>, %arg3: memref<12x1xf32, #tpu.memory_space<vmem>>, %arg4: memref<48x12xbf16, #tpu.memory_space<vmem>>, %arg5: memref<48x1xf32, #tpu.memory_space<vmem>>, %arg6: memref<12x24xbf16, #tpu.memory_space<vmem>>, %arg7: memref<12x1xf32, #tpu.memory_space<vmem>>, %arg8: memref<12x32xbf16, #tpu.memory_space<vmem>>, %arg9: memref<12x32xbf16, #tpu.memory_space<vmem>>) attributes {dimension_semantics = [#tpu.dimension_semantics<parallel>], iteration_bounds = array<i64: 1>, scalar_prefetch = 0 : i64, scratch_operands = 0 : i64, tpu.core_type = #tpu.core_type<tc>, window_params = [{transform_indices = @transform_0, window_bounds = array<i64: 12, 32>}, {pipeline_mode = #tpu.pipeline_mode<synchronous>, transform_indices = @transform_1, window_bounds = array<i64: 12, 1>}, {pipeline_mode = #tpu.pipeline_mode<synchronous>, transform_indices = @transform_2, window_bounds = array<i64: 12, 1>}, {pipeline_mode = #tpu.pipeline_mode<synchronous>, transform_indices = @transform_3, window_bounds = array<i64: 48, 12>}, {pipeline_mode = #tpu.pipeline_mode<synchronous>, transform_indices = @transform_4, window_bounds = array<i64: 48, 1>}, {pipeline_mode = #tpu.pipeline_mode<synchronous>, transform_indices = @transform_5, window_bounds = array<i64: 12, 24>}, {pipeline_mode = #tpu.pipeline_mode<synchronous>, transform_indices = @transform_6, window_bounds = array<i64: 12, 1>}, {transform_indices = @transform_7, window_bounds = array<i64: 12, 32>}, {transform_indices = @transform_8, window_bounds = array<i64: 12, 32>}]} {
    %c0 = arith.constant 0 : index
    %c0_0 = arith.constant 0 : index
    %0 = vector.load %arg1[%c0, %c0_0] : memref<12x32xbf16, #tpu.memory_space<vmem>>, vector<12x32xbf16>
    %c0_1 = arith.constant 0 : index
    %c0_2 = arith.constant 0 : index
    %1 = vector.load %arg2[%c0_1, %c0_2] : memref<12x1xf32, #tpu.memory_space<vmem>>, vector<12x1xf32>
    %c0_3 = arith.constant 0 : index
    %c0_4 = arith.constant 0 : index
    %2 = vector.load %arg3[%c0_3, %c0_4] : memref<12x1xf32, #tpu.memory_space<vmem>>, vector<12x1xf32>
    %3 = arith.extf %0 : vector<12x32xbf16> to vector<12x32xf32>
    %cst = arith.constant dense<0.000000e+00> : vector<32xf32>
    %4 = vector.multi_reduction <add>, %3, %cst [0] : vector<12x32xf32> to vector<32xf32>
    %5 = vector.shape_cast %4 : vector<32xf32> to vector<1x32xf32>
    %cst_5 = arith.constant 1.200000e+01 : f32
    %6 = vector.broadcast %cst_5 : f32 to vector<1x32xf32>
    %7 = arith.divf %5, %6 : vector<1x32xf32>
    %8 = vector.broadcast %7 : vector<1x32xf32> to vector<12x32xf32>
    %9 = arith.subf %3, %8 : vector<12x32xf32>
    %10 = arith.mulf %9, %9 : vector<12x32xf32>
    %cst_6 = arith.constant dense<0.000000e+00> : vector<32xf32>
    %11 = vector.multi_reduction <add>, %10, %cst_6 [0] : vector<12x32xf32> to vector<32xf32>
    %12 = vector.shape_cast %11 : vector<32xf32> to vector<1x32xf32>
    %cst_7 = arith.constant 1.200000e+01 : f32
    %13 = vector.broadcast %cst_7 : f32 to vector<1x32xf32>
    %14 = arith.divf %12, %13 : vector<1x32xf32>
    %15 = vector.broadcast %7 : vector<1x32xf32> to vector<12x32xf32>
    %16 = arith.subf %3, %15 : vector<12x32xf32>
    %cst_8 = arith.constant 9.99999997E-7 : f32
    %17 = vector.broadcast %cst_8 : f32 to vector<1x32xf32>
    %18 = arith.addf %14, %17 : vector<1x32xf32>
    %19 = math.rsqrt %18 : vector<1x32xf32>
    %20 = vector.broadcast %19 : vector<1x32xf32> to vector<12x32xf32>
    %21 = arith.mulf %16, %20 : vector<12x32xf32>
    %22 = vector.broadcast %1 : vector<12x1xf32> to vector<12x32xf32>
    %23 = arith.mulf %21, %22 : vector<12x32xf32>
    %24 = vector.broadcast %2 : vector<12x1xf32> to vector<12x32xf32>
    %25 = arith.addf %23, %24 : vector<12x32xf32>
    %26 = arith.truncf %25 : vector<12x32xf32> to vector<12x32xbf16>
    %c0_9 = arith.constant 0 : index
    %c0_10 = arith.constant 0 : index
    %27 = vector.load %arg4[%c0_9, %c0_10] : memref<48x12xbf16, #tpu.memory_space<vmem>>, vector<48x12xbf16>
    %c0_11 = arith.constant 0 : index
    %c0_12 = arith.constant 0 : index
    %28 = vector.load %arg5[%c0_11, %c0_12] : memref<48x1xf32, #tpu.memory_space<vmem>>, vector<48x1xf32>
    %cst_13 = arith.constant dense<0.000000e+00> : vector<48x32xf32>
    %29 = tpu.matmul %27, %26, %cst_13 {dimension_numbers = #tpu.dot_dimension_numbers<[1], [0], [0], [1], [0, 0, 1, 1], [], []>} : vector<48x12xbf16>, vector<12x32xbf16>, vector<48x32xf32> -> vector<48x32xf32>
    %30 = vector.broadcast %28 : vector<48x1xf32> to vector<48x32xf32>
    %31 = arith.addf %29, %30 : vector<48x32xf32>
    %32 = vector.extract_strided_slice %31 {offsets = [0, 0], sizes = [24, 32], strides = [1, 1]} : vector<48x32xf32> to vector<24x32xf32>
    %33 = vector.extract_strided_slice %31 {offsets = [24, 0], sizes = [24, 32], strides = [1, 1]} : vector<48x32xf32> to vector<24x32xf32>
    %34 = arith.mulf %32, %33 : vector<24x32xf32>
    %c0_14 = arith.constant 0 : index
    %c0_15 = arith.constant 0 : index
    %35 = vector.load %arg6[%c0_14, %c0_15] : memref<12x24xbf16, #tpu.memory_space<vmem>>, vector<12x24xbf16>
    %c0_16 = arith.constant 0 : index
    %c0_17 = arith.constant 0 : index
    %36 = vector.load %arg7[%c0_16, %c0_17] : memref<12x1xf32, #tpu.memory_space<vmem>>, vector<12x1xf32>
    %37 = arith.truncf %34 : vector<24x32xf32> to vector<24x32xbf16>
    %cst_18 = arith.constant dense<0.000000e+00> : vector<12x32xf32>
    %38 = tpu.matmul %35, %37, %cst_18 {dimension_numbers = #tpu.dot_dimension_numbers<[1], [0], [0], [1], [0, 0, 1, 1], [], []>} : vector<12x24xbf16>, vector<24x32xbf16>, vector<12x32xf32> -> vector<12x32xf32>
    %39 = vector.broadcast %36 : vector<12x1xf32> to vector<12x32xf32>
    %40 = arith.addf %38, %39 : vector<12x32xf32>
    %c0_19 = arith.constant 0 : index
    %c0_20 = arith.constant 0 : index
    %41 = vector.load %arg8[%c0_19, %c0_20] : memref<12x32xbf16, #tpu.memory_space<vmem>>, vector<12x32xbf16>
    %42 = arith.extf %41 : vector<12x32xbf16> to vector<12x32xf32>
    %43 = arith.addf %40, %42 : vector<12x32xf32>
    %44 = arith.truncf %43 : vector<12x32xf32> to vector<12x32xbf16>
    %c0_21 = arith.constant 0 : index
    %c0_22 = arith.constant 0 : index
    %45 = vector.load %arg9[%c0_21, %c0_22] : memref<12x32xbf16, #tpu.memory_space<vmem>>, vector<12x32xbf16>
    tpu.vector_store %arg9[%c0_21, %c0_22], %44 {strides = array<i32>} : memref<12x32xbf16, #tpu.memory_space<vmem>>, vector<12x32xbf16>,
    return
  }
  func.func @transform_0(%arg0: i32) -> (i32, i32) {
    %c0_i32 = arith.constant 0 : i32
    %c0_i32_0 = arith.constant 0 : i32
    return %c0_i32, %arg0 : i32, i32
  }
  func.func @transform_1(%arg0: i32) -> (i32, i32) {
    %c0_i32 = arith.constant 0 : i32
    %c0_i32_0 = arith.constant 0 : i32
    %c0_i32_1 = arith.constant 0 : i32
    return %c0_i32, %c0_i32_0 : i32, i32
  }
  func.func @transform_2(%arg0: i32) -> (i32, i32) {
    %c0_i32 = arith.constant 0 : i32
    %c0_i32_0 = arith.constant 0 : i32
    %c0_i32_1 = arith.constant 0 : i32
    return %c0_i32, %c0_i32_0 : i32, i32
  }
  func.func @transform_3(%arg0: i32) -> (i32, i32) {
    %c0_i32 = arith.constant 0 : i32
    %c0_i32_0 = arith.constant 0 : i32
    %c0_i32_1 = arith.constant 0 : i32
    return %c0_i32, %c0_i32_0 : i32, i32
  }
  func.func @transform_4(%arg0: i32) -> (i32, i32) {
    %c0_i32 = arith.constant 0 : i32
    %c0_i32_0 = arith.constant 0 : i32
    %c0_i32_1 = arith.constant 0 : i32
    return %c0_i32, %c0_i32_0 : i32, i32
  }
  func.func @transform_5(%arg0: i32) -> (i32, i32) {
    %c0_i32 = arith.constant 0 : i32
    %c0_i32_0 = arith.constant 0 : i32
    %c0_i32_1 = arith.constant 0 : i32
    return %c0_i32, %c0_i32_0 : i32, i32
  }
  func.func @transform_6(%arg0: i32) -> (i32, i32) {
    %c0_i32 = arith.constant 0 : i32
    %c0_i32_0 = arith.constant 0 : i32
    %c0_i32_1 = arith.constant 0 : i32
    return %c0_i32, %c0_i32_0 : i32, i32
  }
  func.func @transform_7(%arg0: i32) -> (i32, i32) {
    %c0_i32 = arith.constant 0 : i32
    %c0_i32_0 = arith.constant 0 : i32
    return %c0_i32, %arg0 : i32, i32
  }
  func.func @transform_8(%arg0: i32) -> (i32, i32) {
    %c0_i32 = arith.constant 0 : i32
    %c0_i32_0 = arith.constant 0 : i32
    return %c0_i32, %arg0 : i32, i32
  }
}

module attributes {stable_mosaic.version = 11 : i64} {
  func.func @kernel(%arg0: i32, %arg1: memref<300x32xbf16, #tpu.memory_space<vmem>>, %arg2: memref<12x300xbf16, #tpu.memory_space<vmem>>, %arg3: memref<12x1xf32, #tpu.memory_space<vmem>>, %arg4: memref<12x6xbf16, #tpu.memory_space<vmem>>, %arg5: memref<12x1xf32, #tpu.memory_space<vmem>>, %arg6: memref<12x32xbf16, #tpu.memory_space<vmem>>, %arg7: memref<12x32xbf16, #tpu.memory_space<vmem>>) attributes {dimension_semantics = [#tpu.dimension_semantics<parallel>], iteration_bounds = array<i64: 1>, scalar_prefetch = 0 : i64, scratch_operands = 0 : i64, tpu.core_type = #tpu.core_type<tc>, window_params = [{transform_indices = @transform_0, window_bounds = array<i64: 300, 32>}, {pipeline_mode = #tpu.pipeline_mode<synchronous>, transform_indices = @transform_1, window_bounds = array<i64: 12, 300>}, {pipeline_mode = #tpu.pipeline_mode<synchronous>, transform_indices = @transform_2, window_bounds = array<i64: 12, 1>}, {pipeline_mode = #tpu.pipeline_mode<synchronous>, transform_indices = @transform_3, window_bounds = array<i64: 12, 6>}, {pipeline_mode = #tpu.pipeline_mode<synchronous>, transform_indices = @transform_4, window_bounds = array<i64: 12, 1>}, {transform_indices = @transform_5, window_bounds = array<i64: 12, 32>}, {transform_indices = @transform_6, window_bounds = array<i64: 12, 32>}]} {
    %c0 = arith.constant 0 : index
    %c0_0 = arith.constant 0 : index
    %0 = vector.load %arg1[%c0, %c0_0] : memref<300x32xbf16, #tpu.memory_space<vmem>>, vector<300x32xbf16>
    %c0_1 = arith.constant 0 : index
    %c0_2 = arith.constant 0 : index
    %1 = vector.load %arg2[%c0_1, %c0_2] : memref<12x300xbf16, #tpu.memory_space<vmem>>, vector<12x300xbf16>
    %c0_3 = arith.constant 0 : index
    %c0_4 = arith.constant 0 : index
    %2 = vector.load %arg3[%c0_3, %c0_4] : memref<12x1xf32, #tpu.memory_space<vmem>>, vector<12x1xf32>
    %cst = arith.constant dense<0.000000e+00> : vector<12x32xf32>
    %3 = tpu.matmul %1, %0, %cst {dimension_numbers = #tpu.dot_dimension_numbers<[1], [0], [0], [1], [0, 0, 1, 1], [], []>} : vector<12x300xbf16>, vector<300x32xbf16>, vector<12x32xf32> -> vector<12x32xf32>
    %4 = vector.broadcast %2 : vector<12x1xf32> to vector<12x32xf32>
    %5 = arith.addf %3, %4 : vector<12x32xf32>
    %6 = vector.extract_strided_slice %5 {offsets = [0, 0], sizes = [6, 32], strides = [1, 1]} : vector<12x32xf32> to vector<6x32xf32>
    %7 = vector.extract_strided_slice %5 {offsets = [6, 0], sizes = [6, 32], strides = [1, 1]} : vector<12x32xf32> to vector<6x32xf32>
    %8 = arith.mulf %6, %7 : vector<6x32xf32>
    %c0_5 = arith.constant 0 : index
    %c0_6 = arith.constant 0 : index
    %9 = vector.load %arg4[%c0_5, %c0_6] : memref<12x6xbf16, #tpu.memory_space<vmem>>, vector<12x6xbf16>
    %c0_7 = arith.constant 0 : index
    %c0_8 = arith.constant 0 : index
    %10 = vector.load %arg5[%c0_7, %c0_8] : memref<12x1xf32, #tpu.memory_space<vmem>>, vector<12x1xf32>
    %11 = arith.truncf %8 : vector<6x32xf32> to vector<6x32xbf16>
    %cst_9 = arith.constant dense<0.000000e+00> : vector<12x32xf32>
    %12 = tpu.matmul %9, %11, %cst_9 {dimension_numbers = #tpu.dot_dimension_numbers<[1], [0], [0], [1], [0, 0, 1, 1], [], []>} : vector<12x6xbf16>, vector<6x32xbf16>, vector<12x32xf32> -> vector<12x32xf32>
    %13 = vector.broadcast %10 : vector<12x1xf32> to vector<12x32xf32>
    %14 = arith.addf %12, %13 : vector<12x32xf32>
    %c0_10 = arith.constant 0 : index
    %c0_11 = arith.constant 0 : index
    %15 = vector.load %arg6[%c0_10, %c0_11] : memref<12x32xbf16, #tpu.memory_space<vmem>>, vector<12x32xbf16>
    %16 = arith.extf %15 : vector<12x32xbf16> to vector<12x32xf32>
    %17 = arith.addf %14, %16 : vector<12x32xf32>
    %18 = arith.truncf %17 : vector<12x32xf32> to vector<12x32xbf16>
    %c0_12 = arith.constant 0 : index
    %c0_13 = arith.constant 0 : index
    %19 = vector.load %arg7[%c0_12, %c0_13] : memref<12x32xbf16, #tpu.memory_space<vmem>>, vector<12x32xbf16>
    tpu.vector_store %arg7[%c0_12, %c0_13], %18 {strides = array<i32>} : memref<12x32xbf16, #tpu.memory_space<vmem>>, vector<12x32xbf16>,
    return
  }
  func.func @transform_0(%arg0: i32) -> (i32, i32) {
    %c0_i32 = arith.constant 0 : i32
    %c0_i32_0 = arith.constant 0 : i32
    return %c0_i32, %arg0 : i32, i32
  }
  func.func @transform_1(%arg0: i32) -> (i32, i32) {
    %c0_i32 = arith.constant 0 : i32
    %c0_i32_0 = arith.constant 0 : i32
    %c0_i32_1 = arith.constant 0 : i32
    return %c0_i32, %c0_i32_0 : i32, i32
  }
  func.func @transform_2(%arg0: i32) -> (i32, i32) {
    %c0_i32 = arith.constant 0 : i32
    %c0_i32_0 = arith.constant 0 : i32
    %c0_i32_1 = arith.constant 0 : i32
    return %c0_i32, %c0_i32_0 : i32, i32
  }
  func.func @transform_3(%arg0: i32) -> (i32, i32) {
    %c0_i32 = arith.constant 0 : i32
    %c0_i32_0 = arith.constant 0 : i32
    %c0_i32_1 = arith.constant 0 : i32
    return %c0_i32, %c0_i32_0 : i32, i32
  }
  func.func @transform_4(%arg0: i32) -> (i32, i32) {
    %c0_i32 = arith.constant 0 : i32
    %c0_i32_0 = arith.constant 0 : i32
    %c0_i32_1 = arith.constant 0 : i32
    return %c0_i32, %c0_i32_0 : i32, i32
  }
  func.func @transform_5(%arg0: i32) -> (i32, i32) {
    %c0_i32 = arith.constant 0 : i32
    %c0_i32_0 = arith.constant 0 : i32
    return %c0_i32, %arg0 : i32, i32
  }
  func.func @transform_6(%arg0: i32) -> (i32, i32) {
    %c0_i32 = arith.constant 0 : i32
    %c0_i32_0 = arith.constant 0 : i32
    return %c0_i32, %arg0 : i32, i32
  }
}

module attributes {stable_mosaic.version = 11 : i64} {
  func.func @kernel(%arg0: i32, %arg1: memref<20x128xbf16, #tpu.memory_space<vmem>>, %arg2: memref<8x20xbf16, #tpu.memory_space<vmem>>, %arg3: memref<8x1xf32, #tpu.memory_space<vmem>>, %arg4: memref<8x128xbf16, #tpu.memory_space<vmem>>) attributes {dimension_semantics = [#tpu.dimension_semantics<parallel>], iteration_bounds = array<i64: 1>, scalar_prefetch = 0 : i64, scratch_operands = 0 : i64, tpu.core_type = #tpu.core_type<tc>, window_params = [{transform_indices = @transform_0, window_bounds = array<i64: 20, 128>}, {pipeline_mode = #tpu.pipeline_mode<synchronous>, transform_indices = @transform_1, window_bounds = array<i64: 8, 20>}, {pipeline_mode = #tpu.pipeline_mode<synchronous>, transform_indices = @transform_2, window_bounds = array<i64: 8, 1>}, {transform_indices = @transform_3, window_bounds = array<i64: 8, 128>}]} {
    %c0 = arith.constant 0 : index
    %c0_0 = arith.constant 0 : index
    %0 = vector.load %arg1[%c0, %c0_0] : memref<20x128xbf16, #tpu.memory_space<vmem>>, vector<20x128xbf16>
    %c0_1 = arith.constant 0 : index
    %c0_2 = arith.constant 0 : index
    %1 = vector.load %arg2[%c0_1, %c0_2] : memref<8x20xbf16, #tpu.memory_space<vmem>>, vector<8x20xbf16>
    %c0_3 = arith.constant 0 : index
    %c0_4 = arith.constant 0 : index
    %2 = vector.load %arg3[%c0_3, %c0_4] : memref<8x1xf32, #tpu.memory_space<vmem>>, vector<8x1xf32>
    %cst = arith.constant dense<0.000000e+00> : vector<8x128xf32>
    %3 = tpu.matmul %1, %0, %cst {dimension_numbers = #tpu.dot_dimension_numbers<[1], [0], [0], [1], [0, 0, 1, 1], [], []>} : vector<8x20xbf16>, vector<20x128xbf16>, vector<8x128xf32> -> vector<8x128xf32>
    %4 = vector.broadcast %2 : vector<8x1xf32> to vector<8x128xf32>
    %5 = arith.addf %3, %4 : vector<8x128xf32>
    %6 = arith.truncf %5 : vector<8x128xf32> to vector<8x128xbf16>
    %c0_5 = arith.constant 0 : index
    %c0_6 = arith.constant 0 : index
    %7 = vector.load %arg4[%c0_5, %c0_6] : memref<8x128xbf16, #tpu.memory_space<vmem>>, vector<8x128xbf16>
    tpu.vector_store %arg4[%c0_5, %c0_6], %6 {strides = array<i32>} : memref<8x128xbf16, #tpu.memory_space<vmem>>, vector<8x128xbf16>,
    return
  }
  func.func @transform_0(%arg0: i32) -> (i32, i32) {
    %c0_i32 = arith.constant 0 : i32
    %c0_i32_0 = arith.constant 0 : i32
    return %c0_i32, %arg0 : i32, i32
  }
  func.func @transform_1(%arg0: i32) -> (i32, i32) {
    %c0_i32 = arith.constant 0 : i32
    %c0_i32_0 = arith.constant 0 : i32
    %c0_i32_1 = arith.constant 0 : i32
    return %c0_i32, %c0_i32_0 : i32, i32
  }
  func.func @transform_2(%arg0: i32) -> (i32, i32) {
    %c0_i32 = arith.constant 0 : i32
    %c0_i32_0 = arith.constant 0 : i32
    %c0_i32_1 = arith.constant 0 : i32
    return %c0_i32, %c0_i32_0 : i32, i32
  }
  func.func @transform_3(%arg0: i32) -> (i32, i32) {
    %c0_i32 = arith.constant 0 : i32
    %c0_i32_0 = arith.constant 0 : i32
    return %c0_i32, %arg0 : i32, i32
  }
}

module attributes {stable_mosaic.version = 11 : i64} {
  func.func @kernel(%arg0: i32, %arg1: memref<12x512xbf16, #tpu.memory_space<vmem>>, %arg2: memref<4x12xbf16, #tpu.memory_space<vmem>>, %arg3: memref<4x1xf32, #tpu.memory_space<vmem>>, %arg4: memref<4x512xbf16, #tpu.memory_space<vmem>>) attributes {dimension_semantics = [#tpu.dimension_semantics<parallel>], iteration_bounds = array<i64: 1>, scalar_prefetch = 0 : i64, scratch_operands = 0 : i64, tpu.core_type = #tpu.core_type<tc>, window_params = [{transform_indices = @transform_0, window_bounds = array<i64: 12, 512>}, {pipeline_mode = #tpu.pipeline_mode<synchronous>, transform_indices = @transform_1, window_bounds = array<i64: 4, 12>}, {pipeline_mode = #tpu.pipeline_mode<synchronous>, transform_indices = @transform_2, window_bounds = array<i64: 4, 1>}, {transform_indices = @transform_3, window_bounds = array<i64: 4, 512>}]} {
    %c0 = arith.constant 0 : index
    %c0_0 = arith.constant 0 : index
    %0 = vector.load %arg1[%c0, %c0_0] : memref<12x512xbf16, #tpu.memory_space<vmem>>, vector<12x512xbf16>
    %c0_1 = arith.constant 0 : index
    %c0_2 = arith.constant 0 : index
    %1 = vector.load %arg2[%c0_1, %c0_2] : memref<4x12xbf16, #tpu.memory_space<vmem>>, vector<4x12xbf16>
    %c0_3 = arith.constant 0 : index
    %c0_4 = arith.constant 0 : index
    %2 = vector.load %arg3[%c0_3, %c0_4] : memref<4x1xf32, #tpu.memory_space<vmem>>, vector<4x1xf32>
    %cst = arith.constant dense<0.000000e+00> : vector<4x512xf32>
    %3 = tpu.matmul %1, %0, %cst {dimension_numbers = #tpu.dot_dimension_numbers<[1], [0], [0], [1], [0, 0, 1, 1], [], []>} : vector<4x12xbf16>, vector<12x512xbf16>, vector<4x512xf32> -> vector<4x512xf32>
    %4 = vector.broadcast %2 : vector<4x1xf32> to vector<4x512xf32>
    %5 = arith.addf %3, %4 : vector<4x512xf32>
    %6 = arith.truncf %5 : vector<4x512xf32> to vector<4x512xbf16>
    %c0_5 = arith.constant 0 : index
    %c0_6 = arith.constant 0 : index
    %7 = vector.load %arg4[%c0_5, %c0_6] : memref<4x512xbf16, #tpu.memory_space<vmem>>, vector<4x512xbf16>
    tpu.vector_store %arg4[%c0_5, %c0_6], %6 {strides = array<i32>} : memref<4x512xbf16, #tpu.memory_space<vmem>>, vector<4x512xbf16>,
    return
  }
  func.func @transform_0(%arg0: i32) -> (i32, i32) {
    %c0_i32 = arith.constant 0 : i32
    %c0_i32_0 = arith.constant 0 : i32
    return %c0_i32, %arg0 : i32, i32
  }
  func.func @transform_1(%arg0: i32) -> (i32, i32) {
    %c0_i32 = arith.constant 0 : i32
    %c0_i32_0 = arith.constant 0 : i32
    %c0_i32_1 = arith.constant 0 : i32
    return %c0_i32, %c0_i32_0 : i32, i32
  }
  func.func @transform_2(%arg0: i32) -> (i32, i32) {
    %c0_i32 = arith.constant 0 : i32
    %c0_i32_0 = arith.constant 0 : i32
    %c0_i32_1 = arith.constant 0 : i32
    return %c0_i32, %c0_i32_0 : i32, i32
  }
  func.func @transform_3(%arg0: i32) -> (i32, i32) {
    %c0_i32 = arith.constant 0 : i32
    %c0_i32_0 = arith.constant 0 : i32
    return %c0_i32, %arg0 : i32, i32
  }
}

module attributes {stable_mosaic.version = 11 : i64} {
  func.func @kernel(%arg0: i32, %arg1: memref<4x512xbf16, #tpu.memory_space<vmem>>, %arg2: memref<3x4xbf16, #tpu.memory_space<vmem>>, %arg3: memref<3x1xf32, #tpu.memory_space<vmem>>, %arg4: memref<3x512xf32, #tpu.memory_space<vmem>>, %arg5: memref<3x512xf32, #tpu.memory_space<vmem>>) attributes {dimension_semantics = [#tpu.dimension_semantics<parallel>], iteration_bounds = array<i64: 1>, scalar_prefetch = 0 : i64, scratch_operands = 0 : i64, tpu.core_type = #tpu.core_type<tc>, window_params = [{transform_indices = @transform_0, window_bounds = array<i64: 4, 512>}, {pipeline_mode = #tpu.pipeline_mode<synchronous>, transform_indices = @transform_1, window_bounds = array<i64: 3, 4>}, {pipeline_mode = #tpu.pipeline_mode<synchronous>, transform_indices = @transform_2, window_bounds = array<i64: 3, 1>}, {transform_indices = @transform_3, window_bounds = array<i64: 3, 512>}, {transform_indices = @transform_4, window_bounds = array<i64: 3, 512>}]} {
    %c0 = arith.constant 0 : index
    %c0_0 = arith.constant 0 : index
    %0 = vector.load %arg1[%c0, %c0_0] : memref<4x512xbf16, #tpu.memory_space<vmem>>, vector<4x512xbf16>
    %c0_1 = arith.constant 0 : index
    %c0_2 = arith.constant 0 : index
    %1 = vector.load %arg2[%c0_1, %c0_2] : memref<3x4xbf16, #tpu.memory_space<vmem>>, vector<3x4xbf16>
    %c0_3 = arith.constant 0 : index
    %c0_4 = arith.constant 0 : index
    %2 = vector.load %arg3[%c0_3, %c0_4] : memref<3x1xf32, #tpu.memory_space<vmem>>, vector<3x1xf32>
    %cst = arith.constant dense<0.000000e+00> : vector<3x512xf32>
    %3 = tpu.matmul %1, %0, %cst {dimension_numbers = #tpu.dot_dimension_numbers<[1], [0], [0], [1], [0, 0, 1, 1], [], []>} : vector<3x4xbf16>, vector<4x512xbf16>, vector<3x512xf32> -> vector<3x512xf32>
    %4 = vector.broadcast %2 : vector<3x1xf32> to vector<3x512xf32>
    %5 = arith.addf %3, %4 : vector<3x512xf32>
    %c0_5 = arith.constant 0 : index
    %c0_6 = arith.constant 0 : index
    %6 = vector.load %arg4[%c0_5, %c0_6] : memref<3x512xf32, #tpu.memory_space<vmem>>, vector<3x512xf32>
    %7 = arith.addf %5, %6 : vector<3x512xf32>
    %c0_7 = arith.constant 0 : index
    %c0_8 = arith.constant 0 : index
    %8 = vector.load %arg5[%c0_7, %c0_8] : memref<3x512xf32, #tpu.memory_space<vmem>>, vector<3x512xf32>
    tpu.vector_store %arg5[%c0_7, %c0_8], %7 {strides = array<i32>} : memref<3x512xf32, #tpu.memory_space<vmem>>, vector<3x512xf32>,
    return
  }
  func.func @transform_0(%arg0: i32) -> (i32, i32) {
    %c0_i32 = arith.constant 0 : i32
    %c0_i32_0 = arith.constant 0 : i32
    return %c0_i32, %arg0 : i32, i32
  }
  func.func @transform_1(%arg0: i32) -> (i32, i32) {
    %c0_i32 = arith.constant 0 : i32
    %c0_i32_0 = arith.constant 0 : i32
    %c0_i32_1 = arith.constant 0 : i32
    return %c0_i32, %c0_i32_0 : i32, i32
  }
  func.func @transform_2(%arg0: i32) -> (i32, i32) {
    %c0_i32 = arith.constant 0 : i32
    %c0_i32_0 = arith.constant 0 : i32
    %c0_i32_1 = arith.constant 0 : i32
    return %c0_i32, %c0_i32_0 : i32, i32
  }
  func.func @transform_3(%arg0: i32) -> (i32, i32) {
    %c0_i32 = arith.constant 0 : i32
    %c0_i32_0 = arith.constant 0 : i32
    return %c0_i32, %arg0 : i32, i32
  }
  func.func @transform_4(%arg0: i32) -> (i32, i32) {
    %c0_i32 = arith.constant 0 : i32
    %c0_i32_0 = arith.constant 0 : i32
    return %c0_i32, %arg0 : i32, i32
  }
}

</mosaic_0001>

<bundles_post_ra>
// kernel: cwnet_fwd.46
= control target key start
LH: loop header
LB: loop body
LE: loop exit
PB: predicated region body
PF: predicated region fallthrough
CT: control target
= control target key end

     0   :  { %v28_v0 = vlaneseq  ;;  %v183_v2 = vmov 1983009808   ;;  %vm45_vm0 = vcmask 1040384   ;;  %v184_v5 = vmov 0   ;;  %s218_s0 = inlined_call_operand.vmem [shape: bf16[3,512], index: 0, kind: input, shape index: {}]   ;;  %s219_s2 = inlined_call_operand.vmem [shape: f32[4,1], index: 2, kind: input, shape index: {}]   ;;  %s220_s1 = inlined_call_operand.vmem [shape: bf16[4,3], index: 1, kind: input, shape index: {}]   ;;  %s221_s3 = inlined_call_operand.vmem [shape: bf16[4,512], index: 3, kind: output, shape index: {}]  }
   0x1   :  { %v15_v1 = vld [vmem:[%s218_s0] sm:$0xff]  ;;  %v26_v3 = vunpack.c.l.s4 %v183_v2  ;;  %93 = vmatprep.mubr.bf16.mxu0 %v184_v5  ;;  %134 = vmatprep.mubr.bf16.mxu1 %v184_v5  ;;  %vm46_vm1 = vcmask 1041408   ;;  %v185_v9 = vmov 65535   ;;  %vm41_vm2 = vcmask 23552  }
   0x2   :  { %v29_v4 = vshrl.u32 %v28_v0, 7  ;;  %v17_v6 = vld [vmem:[%s219_s2] sm:$0xf]  ;;  %v24_v8 = vcombine.high %v15_v1, %v15_v1  ;;  %181 = vset.pattern.permute.xlu0 %v184_v5  ;;  %v47_v10 = vsel %vm45_vm0, 4294967295, %v185_v9 }
   0x3   :  { %v27_v7 = vunpack.c.0.s8 %v26_v3  ;;  %20 = vperm.xlu0 %181, %v17_v6   ;;  %v48_v13 = vsel %vm46_vm1, %v47_v10, 0  ;;  %v16_v21 = vld [vmem:[%s220_s1] sm:$0x3] }
   0x5   :  { %v30_v11 = vsub.s32 %v27_v7, %v29_v4 }
   0x7   :  { %v31_v12 = vrot.slane %v15_v1, %v30_v11  ;;  %v38_v14 = vrot.slane %v24_v8, %v30_v11 }
   0x9   :  { %v39_v15 = vcombine.high %v31_v12, %v31_v12  ;;  %v40_v16 = vcombine.high %v38_v14, %v38_v14  ;;  %v50_v17 = vand.u32 %v48_v13, %v31_v12  ;;  %v56_v18 = vand.u32 %v48_v13, %v38_v14 }
   0xb   :  { %v53_v19 = vand.u32 %v48_v13, %v39_v15  ;;  %v59_v20 = vand.u32 %v48_v13, %v40_v16 }
   0xd   :  { %75 = vmatprep.subr.bf16.mxu0 %v53_v19  ;;  %116 = vmatprep.subr.bf16.mxu1 %v59_v20 }
   0xe   :  { %76 = vmatpush1.bf16.msra.mxu0 %v50_v17  ;;  %117 = vmatpush1.bf16.msra.mxu1 %v56_v18 }
  0x11   :  { %174 = vmatmul.mubr.msk.bf16.vlgmr.msra.gmra.mxu0 %vm41_vm2, %v16_v21  ;;  %175 = vmatmul.mubr.msk.bf16.vlgmr.msra.gmra.mxu1 %vm41_vm2, %v16_v21 }
  0x7e   :  { %v21_v22 = vpop.permute.xlu0 %20 }
  0xd1   :  { %v95_v23 = vpop.f32.mrf.mxu0  ;;  %v136_v24 = vpop.f32.mrf.mxu1 }
  0xd2   :  { %v96_v27 = vadd.f32 %v95_v23, %v21_v22  ;;  %v137_v28 = vadd.f32 %v136_v24, %v21_v22 }
  0xd3   :  { %v97_v25 = vpop.f32.mrf.mxu0  ;;  %v138_v26 = vpop.f32.mrf.mxu1 }
  0xd4   :  { %v98_v29 = vadd.f32 %v97_v25, %v21_v22  ;;  %v139_v30 = vadd.f32 %v138_v26, %v21_v22 }
  0xd5   :  { %v99_v31 = vpop.f32.mrf.mxu0  ;;  %v140_v32 = vpop.f32.mrf.mxu1 }
  0xd6   :  { %v176_v33 = vpack.c.bf16 %v98_v29, %v96_v27  ;;  %v177_v34 = vpack.c.bf16 %v139_v30, %v137_v28 }
  0xd7   :  { %v100_v35 = vpop.f32.mrf.mxu0  ;;  %v141_v36 = vpop.f32.mrf.mxu1 }
  0xd8   :  { %v159_v37 = vrot.slane %v176_v33, %v30_v11  ;;  %v166_v38 = vrot.slane %v177_v34, %v30_v11 }
  0xda   :  { %v167_v39 = vcombine.low %v159_v37, %v166_v38 }
  0xdc   :  { %169 = vst [vmem:[%s221_s3] sm:$0xff] %v167_v39 }

// kernel: cwnet_fwd.47
= control target key start
LH: loop header
LB: loop body
LE: loop exit
PB: predicated region body
PF: predicated region fallthrough
CT: control target
= control target key end

     0   :  { %vm78_vm0 = vcmask 1041408   ;;  %v173_v0 = vmov 0.0   ;;  %vm174_vm1 = vmmov 0   ;;  %v175_v4 = vmov 0   ;;  %s226_s0 = inlined_call_operand.vmem [shape: bf16[100,128], index: 0, kind: input, shape index: {}]   ;;  %s227_s2 = inlined_call_operand.vmem [shape: f32[4,1], index: 2, kind: input, shape index: {}]   ;;  %s228_s1 = inlined_call_operand.vmem [shape: bf16[4,100], index: 1, kind: input, shape index: {}]   ;;  %s229_s3 = inlined_call_operand.vmem [shape: bf16[4,128], index: 3, kind: output, shape index: {}]  }
   0x1   :  { %144 = vmatprep.subr.bf16.mxu0 %v173_v0  ;;  %v166_v1 = vld [vmem:[%s226_s0 + $0x30] ss:$0 sps:$4 sm:$0x33]   ;;  %158 = vmatprep.mubr.msk.bf16.mxu0 %vm174_vm1, %v173_v0  ;;  %v167_v3 = vld [vmem:[%s226_s0 + $0x28] sm:$0xff]   ;;  %v168_v5 = vld [vmem:[%s226_s0 + $0x20] sm:$0xff]   ;;  %vm74_vm2 = vcmask 818176  }
   0x2   :  { %v80_v2 = vsel %vm78_vm0, %v166_v1, 0  ;;  %165 = vset.pattern.permute.xlu0 %v175_v4  ;;  %v29_v6 = vld [vmem:[%s227_s2] sm:$0xf]  ;;  %v169_v7 = vld [vmem:[%s226_s0 + $0x18] sm:$0xff]   ;;  %v170_v8 = vld [vmem:[%s226_s0 + $0x10] sm:$0xff]  }
   0x3   :  { %145 = vmatpush3.bf16.msra.mxu0 %v80_v2  ;;  %32 = vperm.xlu0 %165, %v29_v6   ;;  %v171_v9 = vld [vmem:[%s226_s0 + $0x8] sm:$0xff]   ;;  %v172_v10 = vld [vmem:[%s226_s0] sm:$0xff]  }
   0x4   :  { %146 = vmatprep.subr.bf16.mxu0 %v173_v0  ;;  %v28_v11 = vld [vmem:[%s228_s1] sm:$0x3] }
   0x7   :  { %147 = vmatpush3.bf16.msra.mxu0 %v167_v3 }
   0x8   :  { %148 = vmatprep.subr.bf16.mxu0 %v173_v0 }
   0xb   :  { %149 = vmatpush3.bf16.msra.mxu0 %v168_v5 }
   0xc   :  { %150 = vmatprep.subr.bf16.mxu0 %v173_v0 }
   0xf   :  { %151 = vmatpush3.bf16.msra.mxu0 %v169_v7 }
  0x10   :  { %152 = vmatprep.subr.bf16.mxu0 %v173_v0 }
  0x13   :  { %153 = vmatpush3.bf16.msra.mxu0 %v170_v8 }
  0x14   :  { %154 = vmatprep.subr.bf16.mxu0 %v173_v0 }
  0x17   :  { %155 = vmatpush3.bf16.msra.mxu0 %v171_v9 }
  0x18   :  { %156 = vmatprep.subr.bf16.mxu0 %v173_v0 }
  0x1b   :  { %157 = vmatpush3.bf16.msra.mxu0 %v172_v10 }
  0x1e   :  { %159 = vmatmul.mubr.msk.bf16.vlgmr.msra.gmra.mxu0 %vm74_vm2, %v28_v11 }
  0x7e   :  { %v33_v12 = vpop.permute.xlu0 %32 }
  0xde   :  { %v116_v13 = vpop.f32.mrf.mxu0 }
  0xdf   :  { %v117_v14 = vadd.f32 %v116_v13, %v33_v12 }
  0xe0   :  { %v160_v15 = vpop.f32.mrf.mxu0 }
  0xe1   :  { %v122_v16 = vpack.c.bf16 %v117_v14, %v117_v14 }
  0xe2   :  { %v119_v17 = vpop.f32.mrf.mxu0 }
  0xe3   :  { %123 = vst [vmem:[%s229_s3] sm:$0x3] %v122_v16 }
  0xe4   :  { %v161_v18 = vpop.f32.mrf.mxu0 }

// kernel: cwnet_fwd.50
= control target key start
LH: loop header
LB: loop body
LE: loop exit
PB: predicated region body
PF: predicated region fallthrough
CT: control target
= control target key end

     0   :  { %vm46_vm0 = vcmask 1041408   ;;  %v126_v0 = vmov 0.0   ;;  %vm127_vm1 = vmmov 0   ;;  %v128_v3 = vmov 0   ;;  %s172_s0 = inlined_call_operand.vmem [shape: bf16[36,128], index: 0, kind: input, shape index: {}]   ;;  %s173_s2 = inlined_call_operand.vmem [shape: f32[3,1], index: 2, kind: input, shape index: {}]   ;;  %s174_s1 = inlined_call_operand.vmem [shape: bf16[3,36], index: 1, kind: input, shape index: {}]   ;;  %s175_s3 = inlined_call_operand.vmem [shape: bf16[3,128], index: 3, kind: output, shape index: {}]  }
   0x1   :  { %109 = vmatprep.subr.bf16.mxu0 %v126_v0  ;;  %v123_v1 = vld [vmem:[%s172_s0 + $0x10] ss:$0 sps:$4 sm:$0x33]   ;;  %115 = vmatprep.mubr.msk.bf16.mxu0 %vm127_vm1, %v126_v0  ;;  %v124_v4 = vld [vmem:[%s172_s0 + $0x8] sm:$0xff]   ;;  %v21_v5 = vld [vmem:[%s173_s2] sm:$0x7] }
   0x2   :  { %v48_v2 = vsel %vm46_vm0, %v123_v1, 0  ;;  %122 = vset.pattern.permute.xlu0 %v128_v3  ;;  %v125_v6 = vld [vmem:[%s172_s0] sm:$0xff]   ;;  %vm42_vm2 = vcmask 293888   ;;  %vm92_vm3 = vsmask.f32 1280 }
   0x3   :  { %110 = vmatpush3.bf16.msra.mxu0 %v48_v2  ;;  %24 = vperm.xlu0 %122, %v21_v5   ;;  %v20_v7 = vld [vmem:[%s174_s1] sm:$0x3]  ;;  %vm93_vm4 = vmand %vm46_vm0, %vm92_vm3 }
   0x4   :  { %111 = vmatprep.subr.bf16.mxu0 %v126_v0  ;;  %v94_v11 = vld [vmem:[%s175_s3] sm:$0x3] }
   0x7   :  { %112 = vmatpush3.bf16.msra.mxu0 %v124_v4 }
   0x8   :  { %113 = vmatprep.subr.bf16.mxu0 %v126_v0 }
   0xb   :  { %114 = vmatpush3.bf16.msra.mxu0 %v125_v6 }
   0xe   :  { %116 = vmatmul.mubr.msk.bf16.vlgmr.msra.gmra.mxu0 %vm42_vm2, %v20_v7 }
  0x7e   :  { %v25_v8 = vpop.permute.xlu0 %24 }
  0xce   :  { %v84_v9 = vpop.f32.mrf.mxu0 }
  0xcf   :  { %v85_v10 = vadd.f32 %v84_v9, %v25_v8 }
  0xd0   :  { %v117_v12 = vpop.f32.mrf.mxu0 }
  0xd1   :  { %v90_v13 = vpack.c.bf16 %v85_v10, %v85_v10 }
  0xd2   :  { %v87_v14 = vpop.f32.mrf.mxu0 }
  0xd3   :  { %v95_v15 = vsel %vm93_vm4, %v90_v13, %v94_v11 }
  0xd4   :  { %96 = vst [vmem:[%s175_s3] sm:$0x3] %v95_v15  ;;  %v118_v16 = vpop.f32.mrf.mxu0 }

// kernel: cwnet_fwd.49
= control target key start
LH: loop header
LB: loop body
LE: loop exit
PB: predicated region body
PF: predicated region fallthrough
CT: control target
= control target key end

     0   :  { %vm76_vm0 = vcmask 1041408   ;;  %v238_v1 = vmov 0.0   ;;  %v239_v2 = vmov 0   ;;  %vm240_vm1 = vmmov 0   ;;  %s295_s0 = inlined_call_operand.vmem [shape: bf16[36,384], index: 0, kind: input, shape index: {}]   ;;  %s296_s2 = inlined_call_operand.vmem [shape: f32[4,1], index: 2, kind: input, shape index: {}]   ;;  %s297_s1 = inlined_call_operand.vmem [shape: bf16[4,36], index: 1, kind: input, shape index: {}]   ;;  %s298_s3 = inlined_call_operand.vmem [shape: bf16[4,384], index: 3, kind: output, shape index: {}]  }
   0x1   :  { %v23_v0 = vld [vmem:[%s295_s0 + $0x30] sm:$0x33]  ;;  %212 = vmatprep.subr.bf16.mxu1 %v238_v1  ;;  %118 = vmatprep.mubr.bf16.mxu0 %v239_v2  ;;  %v229_v5 = vld [vmem:[%s295_s0 + $0x38] ss:$0 sps:$4 sm:$0x33]   ;;  %vm72_vm2 = vcmask 293888   ;;  %v177_v18 = vlaneseq }
   0x2   :  { %v202_v3 = vcombine.high %v23_v0, %v23_v0  ;;  %v201_v4 = vcombine.low %v23_v0, %v23_v0  ;;  %v230_v6 = vld [vmem:[%s295_s0 + $0x1c] ss:$12 sps:$4 sm:$0xff]   ;;  %218 = vmatprep.mubr.msk.bf16.mxu1 %vm240_vm1, %v238_v1  ;;  %226 = vset.pattern.permute.xlu0 %v239_v2  ;;  %v84_v8 = vsel %vm76_vm0, %v229_v5, 0  ;;  %v232_v9 = vld [vmem:[%s295_s0 + $0x18] ss:$12 sps:$4 sm:$0xff]  }
   0x3   :  { %213 = vmatpush3.bf16.msra.mxu1 %v84_v8  ;;  %v233_v10 = vld [vmem:[%s295_s0 + $0x20] ss:$12 sps:$4 sm:$0xff]   ;;  %v234_v11 = vld [vmem:[%s295_s0 + $0x4] ss:$12 sps:$4 sm:$0xff]   ;;  %v237_v14 = vld [vmem:[%s295_s0 + $0x8] ss:$12 sps:$4 sm:$0xff]  }
   0x4   :  { %204 = vmatprep.subr.msk.bf16.mxu0 %vm76_vm0, %v202_v3  ;;  %v78_v7 = vsel %vm76_vm0, %v201_v4, 0  ;;  %214 = vmatprep.subr.bf16.mxu1 %v238_v1  ;;  %v26_v12 = vld [vmem:[%s296_s2] sm:$0xf]  ;;  %v241_v16 = vmov 1983009808   ;;  %v178_v20 = vshrl.u32 %v177_v18, 7 }
   0x5   :  { %97 = vmatpush1.bf16.msra.mxu0 %v78_v7  ;;  %29 = vperm.xlu0 %226, %v26_v12   ;;  %v236_v13 = vld [vmem:[%s295_s0] ss:$12 sps:$4 sm:$0xff]   ;;  %v175_v17 = vunpack.c.l.s4 %v241_v16 }
   0x6   :  { %98 = vmatprep.subr.bf16.mxu0 %v230_v6  ;;  %v25_v15 = vld [vmem:[%s297_s1] sm:$0x3] }
   0x7   :  { %215 = vmatpush3.bf16.msra.mxu1 %v233_v10  ;;  %v176_v19 = vunpack.c.0.s8 %v175_v17 }
   0x8   :  { %216 = vmatprep.subr.bf16.mxu1 %v238_v1 }
   0x9   :  { %99 = vmatpush1.bf16.msra.mxu0 %v232_v9  ;;  %v179_v25 = vsub.s32 %v176_v19, %v178_v20 }
   0xa   :  { %100 = vmatprep.subr.bf16.mxu0 %v234_v11 }
   0xb   :  { %217 = vmatpush3.bf16.msra.mxu1 %v237_v14 }
   0xd   :  { %101 = vmatpush1.bf16.msra.mxu0 %v236_v13 }
   0xe   :  { %219 = vmatmul.mubr.msk.bf16.vlgmr.msra.gmra.mxu1 %vm72_vm2, %v25_v15 }
  0x10   :  { %205 = vmatmul.mubr.msk.bf16.vlgmr.msra.gmra.mxu0 %vm72_vm2, %v25_v15 }
  0x80   :  { %v30_v21 = vpop.permute.xlu0 %29 }
  0xce   :  { %v161_v23 = vpop.f32.mrf.mxu1 }
  0xcf   :  { %v162_v24 = vadd.f32 %v161_v23, %v30_v21 }
  0xd0   :  { %v120_v22 = vpop.f32.mrf.mxu0  ;;  %v220_v27 = vpop.f32.mrf.mxu1 }
  0xd1   :  { %v121_v28 = vadd.f32 %v120_v22, %v30_v21  ;;  %v169_v29 = vpack.c.bf16 %v162_v24, %v162_v24 }
  0xd2   :  { %v122_v26 = vpop.f32.mrf.mxu0  ;;  %v164_v32 = vpop.f32.mrf.mxu1 }
  0xd3   :  { %v123_v30 = vadd.f32 %v122_v26, %v30_v21  ;;  %v187_v33 = vrot.slane %v169_v29, %v179_v25 }
  0xd4   :  { %v124_v31 = vpop.f32.mrf.mxu0  ;;  %v221_v36 = vpop.f32.mrf.mxu1 }
  0xd5   :  { %v207_v34 = vpack.c.bf16 %v123_v30, %v121_v28 }
  0xd6   :  { %v125_v35 = vpop.f32.mrf.mxu0 }
  0xd7   :  { %v180_v37 = vrot.slane %v207_v34, %v179_v25 }
  0xd9   :  { %v188_v38 = vcombine.low %v180_v37, %v187_v33 }
  0xdb   :  { %190 = vst [vmem:[%s298_s3] sm:$0x3f] %v188_v38 }

// kernel: cwnet_fwd.51
= control target key start
LH: loop header
LB: loop body
LE: loop exit
PB: predicated region body
PF: predicated region fallthrough
CT: control target
= control target key end

     0   :  { %vm42_vm0 = vcmask 1043456   ;;  %v273_v1 = vmov 0.0   ;;  %v274_v3 = vmov 0   ;;  %vm275_vm1 = vmmov 0   ;;  %s337_s0 = inlined_call_operand.vmem [shape: bf16[8,384], index: 0, kind: input, shape index: {}]   ;;  %s338_s2 = inlined_call_operand.vmem [shape: f32[4,1], index: 2, kind: input, shape index: {}]   ;;  %s339_s4 = inlined_call_operand.vmem [shape: f32[4,1], index: 4, kind: input, shape index: {}]   ;;  %s340_s1 = inlined_call_operand.vmem [shape: bf16[4,8], index: 1, kind: input, shape index: {}]   ;;  %s341_s3 = inlined_call_operand.vmem [shape: f32[4,1], index: 3, kind: input, shape index: {}]   ;;  %s342_s5 = inlined_call_operand.vmem [shape: bf16[4,384], index: 5, kind: output, shape index: {}]  }
   0x1   :  { %v21_v0 = vld [vmem:[%s337_s0] sm:$0xff]  ;;  %252 = vmatprep.subr.bf16.mxu1 %v273_v1  ;;  %v266_v2 = vld [vmem:[%s337_s0 + $0x8] ss:$0 sps:$4 sm:$0xff]   ;;  %84 = vmatprep.mubr.bf16.mxu0 %v274_v3  ;;  %vm38_vm2 = vcmask 64512  }
   0x2   :  { %v244_v4 = vcombine.high %v21_v0, %v21_v0  ;;  %v243_v5 = vcombine.low %v21_v0, %v21_v0  ;;  %254 = vmatprep.mubr.msk.bf16.mxu1 %vm275_vm1, %v273_v1  ;;  %262 = vset.pattern.permute.xlu0 %v274_v3  ;;  %v24_v6 = vld [vmem:[%s338_s2] sm:$0xf]  ;;  %v50_v7 = vsel %vm42_vm0, %v266_v2, 0 }
   0x3   :  { %27 = vperm.xlu0 %262, %v24_v6   ;;  %263 = vset.pattern.permute.xlu1 %v274_v3  ;;  %v134_v8 = vld [vmem:[%s339_s4] sm:$0xf] }
   0x4   :  { %246 = vmatprep.subr.msk.bf16.mxu0 %vm42_vm0, %v244_v4  ;;  %v44_v9 = vsel %vm42_vm0, %v243_v5, 0  ;;  %253 = vmatpush3.bf16.msra.mxu1 %v50_v7  ;;  %v23_v10 = vld [vmem:[%s340_s1] sm:$0x3] }
   0x5   :  { %v133_v11 = vld [vmem:[%s341_s3] sm:$0xf]  ;;  %67 = vmatpush1.bf16.msra.mxu0 %v44_v9  ;;  %209 = vperm.xlu1 %263, %v134_v8  }
   0x7   :  { %255 = vmatmul.mubr.msk.bf16.vlgmr.msra.gmra.mxu1 %vm38_vm2, %v23_v10  ;;  %201 = vperm.xlu0 %262, %v133_v11  }
   0x8   :  { %247 = vmatmul.mubr.msk.bf16.vlgmr.msra.gmra.mxu0 %vm38_vm2, %v23_v10 }
  0x7e   :  { %v28_v12 = vpop.permute.xlu0 %27 }
  0xc7   :  { %v127_v13 = vpop.f32.mrf.mxu1 }
  0xc8   :  { %v86_v14 = vpop.f32.mrf.mxu0  ;;  %v128_v15 = vadd.f32 %v127_v13, %v28_v12 }
  0xc9   :  { %v87_v16 = vadd.f32 %v86_v14, %v28_v12  ;;  %v256_v17 = vpop.f32.mrf.mxu1 }
  0xca   :  { %v149_v18 = vsel %vm42_vm0, %v128_v15, 0.0  ;;  %v88_v19 = vpop.f32.mrf.mxu0 }
  0xcb   :  { %v135_v20 = vsel %vm42_vm0, %v87_v16, 0.0  ;;  %v150_v21 = vrot.slane %v149_v18, 4  ;;  %v89_v22 = vadd.f32 %v88_v19, %v28_v12  ;;  %v130_v23 = vpop.f32.mrf.mxu1 }
  0xcc   :  { %v136_v24 = vrot.slane %v135_v20, 4  ;;  %v90_v25 = vpop.f32.mrf.mxu0  ;;  %v202_v23 = vpop.permute.xlu0 %201 }
  0xcd   :  { %v151_v26 = vadd.f32 %v150_v21, %v149_v18  ;;  %v142_v27 = vsel %vm42_vm0, %v89_v22, 0.0  ;;  %v257_v28 = vpop.f32.mrf.mxu1  ;;  %v276_v18 = vmov 1983009808   ;;  %v210_v25 = vpop.permute.xlu1 %209 }
  0xce   :  { %v137_v29 = vadd.f32 %v136_v24, %v135_v20  ;;  %v143_v30 = vrot.slane %v142_v27, 4  ;;  %v91_v31 = vpop.f32.mrf.mxu0  ;;  %v223_v19 = vunpack.c.l.s4 %v276_v18  ;;  %v225_v20 = vlaneseq }
  0xcf   :  { %v152_v32 = vrot.slane %v151_v26, 2 }
  0xd0   :  { %v138_v33 = vrot.slane %v137_v29, 2  ;;  %v144_v34 = vadd.f32 %v143_v30, %v142_v27  ;;  %v224_v30 = vunpack.c.0.s8 %v223_v19  ;;  %v226_v31 = vshrl.u32 %v225_v20, 7 }
  0xd1   :  { %v153_v35 = vadd.f32 %v152_v32, %v151_v26 }
  0xd2   :  { %v139_v36 = vadd.f32 %v138_v33, %v137_v29  ;;  %v145_v37 = vrot.slane %v144_v34, 2 }
  0xd3   :  { %v154_v38 = vrot.slane %v153_v35, 1 }
  0xd4   :  { %v140_v39 = vrot.slane %v139_v36, 1  ;;  %v146_v40 = vadd.f32 %v145_v37, %v144_v34  ;;  %v227_v34 = vsub.s32 %v224_v30, %v226_v31 }
  0xd5   :  { %v155_v41 = vadd.f32 %v154_v38, %v153_v35 }
  0xd6   :  { %v141_v42 = vadd.f32 %v140_v39, %v139_v36  ;;  %v147_v43 = vrot.slane %v146_v40, 1 }
  0xd7   :  { %v159_v44 = vmul.f32 0.25, %v155_v41 }
  0xd8   :  { %v157_v45 = vmul.f32 0.25, %v141_v42  ;;  %v148_v46 = vadd.f32 %v147_v43, %v146_v40 }
  0xd9   :  { %v162_v47 = vsub.f32 %v128_v15, %v159_v44 }
  0xda   :  { %v160_v48 = vsub.f32 %v87_v16, %v157_v45  ;;  %v158_v49 = vmul.f32 0.25, %v148_v46 }
  0xdb   :  { %v165_v50 = vmul.f32 %v162_v47, %v162_v47 }
  0xdc   :  { %v163_v51 = vmul.f32 %v160_v48, %v160_v48  ;;  %v161_v52 = vsub.f32 %v89_v22, %v158_v49 }
  0xdd   :  { %v180_v53 = vsel %vm42_vm0, %v165_v50, 0.0 }
  0xde   :  { %v166_v54 = vsel %vm42_vm0, %v163_v51, 0.0  ;;  %v181_v55 = vrot.slane %v180_v53, 4  ;;  %v164_v56 = vmul.f32 %v161_v52, %v161_v52 }
  0xdf   :  { %v167_v57 = vrot.slane %v166_v54, 4 }
  0xe0   :  { %v182_v58 = vadd.f32 %v181_v55, %v180_v53  ;;  %v173_v59 = vsel %vm42_vm0, %v164_v56, 0.0 }
  0xe1   :  { %v168_v60 = vadd.f32 %v167_v57, %v166_v54  ;;  %v174_v61 = vrot.slane %v173_v59, 4 }
  0xe2   :  { %v183_v62 = vrot.slane %v182_v58, 2 }
  0xe3   :  { %v169_v63 = vrot.slane %v168_v60, 2  ;;  %v175_v0 = vadd.f32 %v174_v61, %v173_v59 }
  0xe4   :  { %v184_v1 = vadd.f32 %v183_v62, %v182_v58 }
  0xe5   :  { %v170_v2 = vadd.f32 %v169_v63, %v168_v60  ;;  %v176_v3 = vrot.slane %v175_v0, 2 }
  0xe6   :  { %v185_v4 = vrot.slane %v184_v1, 1 }
  0xe7   :  { %v171_v5 = vrot.slane %v170_v2, 1  ;;  %v177_v6 = vadd.f32 %v176_v3, %v175_v0 }
  0xe8   :  { %v186_v7 = vadd.f32 %v185_v4, %v184_v1 }
  0xe9   :  { %v172_v8 = vadd.f32 %v171_v5, %v170_v2  ;;  %v178_v9 = vrot.slane %v177_v6, 1 }
  0xea   :  { %v189_v10 = vmul.f32 0.25, %v186_v7 }
  0xeb   :  { %v187_v11 = vmul.f32 0.25, %v172_v8  ;;  %v179_v12 = vadd.f32 %v178_v9, %v177_v6 }
  0xec   :  { %v192_v13 = vadd.f32 1e-05, %v189_v10 }
  0xed   :  { %v190_v14 = vadd.f32 1e-05, %v187_v11  ;;  %v188_v15 = vmul.f32 0.25, %v179_v12 }
  0xee   :  { %267 = vrsqrt.f32 %v192_v13 }
  0xef   :  { %269 = vrsqrt.f32 %v190_v14  ;;  %v191_v16 = vadd.f32 1e-05, %v188_v15 }
  0xf1   :  { %271 = vrsqrt.f32 %v191_v16 }
  0xfb   :  { %v268_v17 = vpop.eup %267 }
  0xfc   :  { %v270_v21 = vpop.eup %269  ;;  %v198_v22 = vmul.f32 %v268_v17, %v162_v47 }
  0xfd   :  { %v196_v24 = vmul.f32 %v270_v21, %v160_v48 }
  0xfe   :  { %v272_v26 = vpop.eup %271  ;;  %v206_v27 = vmul.f32 %v202_v23, %v198_v22 }
  0xff   :  { %v204_v28 = vmul.f32 %v202_v23, %v196_v24  ;;  %v197_v29 = vmul.f32 %v272_v26, %v161_v52 }
 0x100   :  { %v214_v32 = vadd.f32 %v210_v25, %v206_v27 }
 0x101   :  { %v205_v33 = vmul.f32 %v202_v23, %v197_v29  ;;  %v212_v35 = vadd.f32 %v210_v25, %v204_v28 }
 0x102   :  { %v217_v37 = vpack.c.bf16 %v214_v32, %v214_v32 }
 0x103   :  { %v213_v36 = vadd.f32 %v210_v25, %v205_v33 }
 0x104   :  { %v235_v40 = vrot.slane %v217_v37, %v227_v34 }
 0x105   :  { %v249_v38 = vpack.c.bf16 %v213_v36, %v212_v35 }
 0x107   :  { %v228_v39 = vrot.slane %v249_v38, %v227_v34 }
 0x109   :  { %v236_v41 = vcombine.low %v228_v39, %v235_v40 }
 0x10b   :  { %238 = vst [vmem:[%s342_s5] sm:$0x3f] %v236_v41 }

// kernel: cwnet_fwd.52
= control target key start
LH: loop header
LB: loop body
LE: loop exit
PB: predicated region body
PF: predicated region fallthrough
CT: control target
= control target key end

     0   :  { %v497_v0 = vmov 0   ;;  %v498_v4 = vmov 0.0   ;;  %vm499_vm0 = vmmov 0   ;;  %vm38_vm1 = vcmask 1043456   ;;  %s618_s1 = inlined_call_operand.vmem [shape: f32[4,1], index: 1, kind: input, shape index: {}]   ;;  %s619_s2 = inlined_call_operand.vmem [shape: f32[4,1], index: 2, kind: input, shape index: {}]   ;;  %s620_s6 = inlined_call_operand.vmem [shape: f32[4,1], index: 6, kind: input, shape index: {}]   ;;  %s621_s3 = inlined_call_operand.vmem [shape: bf16[16,4], index: 3, kind: input, shape index: {}]   ;;  %s622_s0 = inlined_call_operand.vmem [shape: bf16[4,384], index: 0, kind: input, shape index: {}, may-alias: {0,7}]   ;;  %s623_s4 = inlined_call_operand.vmem [shape: f32[16,1], index: 4, kind: input, shape index: {}]   ;;  %s624_s5 = inlined_call_operand.vmem [shape: bf16[4,16], index: 5, kind: input, shape index: {}]   ;;  %s625_s7 = inlined_call_operand.vmem [shape: bf16[4,384], index: 7, kind: input, shape index: {}, may-alias: {0,7}]   ;;  %s626_s8 = inlined_call_operand.vmem [shape: bf16[4,384], index: 8, kind: output, shape index: {}]  }
   0x1   :  { %476 = vset.pattern.permute.xlu0 %v497_v0  ;;  %v31_v1 = vld [vmem:[%s618_s1] sm:$0xf]  ;;  %210 = vmatprep.mubr.bf16.mxu0 %v497_v0  ;;  %v148_v8 = vld [vmem:[%s623_s4 + $0x8] sm:$0xff]  ;;  %vm168_vm2 = vcmask 1041408   ;;  %vm164_vm3 = vcmask 31744   ;;  %vm326_vm4 = vcmask 130048  }
   0x2   :  { %113 = vperm.xlu0 %476, %v31_v1   ;;  %477 = vset.pattern.permute.xlu1 %v497_v0  ;;  %v32_v2 = vld [vmem:[%s619_s2] sm:$0xf] }
   0x3   :  { %v317_v3 = vld [vmem:[%s620_s6] sm:$0xf]  ;;  %459 = vmatprep.subr.bf16.mxu1 %v498_v4  ;;  %461 = vmatprep.mubr.msk.bf16.mxu1 %vm499_vm0, %v498_v4 }
   0x4   :  { %v30_v5 = vld [vmem:[%s622_s0] sm:$0x3f] }
   0x5   :  { %v147_v6 = vld [vmem:[%s623_s4] sm:$0xff]  ;;  %v33_v7 = vunpack.c.l.bf16 %v30_v5  ;;  %v34_v16 = vunpack.c.h.bf16 %v30_v5 }
   0x6   :  { %127 = vperm.xlu0 %476, %v32_v2   ;;  %151 = vperm.xlu1 %477, %v147_v6   ;;  %v500_v6 = vmov 839922192  }
   0x7   :  { %v36_v9 = vcombine.high %v33_v7, %v33_v7  ;;  %v39_v10 = vsel %vm38_vm1, %v33_v7, 0.0  ;;  %v53_v19 = vsel %vm38_vm1, %v34_v16, 0.0 }
   0x8   :  { %v40_v12 = vrot.slane %v39_v10, 4  ;;  %v54_v22 = vrot.slane %v53_v19, 4 }
   0x9   :  { %v46_v11 = vsel %vm38_vm1, %v36_v9, 0.0 }
   0xa   :  { %323 = vperm.xlu0 %476, %v317_v3   ;;  %156 = vperm.xlu1 %477, %v148_v8   ;;  %v47_v13 = vrot.slane %v46_v11, 4  ;;  %v41_v14 = vadd.f32 %v40_v12, %v39_v10  ;;  %v55_v25 = vadd.f32 %v54_v22, %v53_v19  ;;  %v118_v8 = vlaneseq }
   0xc   :  { %v48_v15 = vadd.f32 %v47_v13, %v46_v11  ;;  %v42_v17 = vrot.slane %v41_v14, 2  ;;  %v56_v28 = vrot.slane %v55_v25, 2  ;;  %v577_v11 = vshrl.u32 %v118_v8, 7 }
   0xe   :  { %v49_v18 = vrot.slane %v48_v15, 2  ;;  %v43_v20 = vadd.f32 %v42_v17, %v41_v14  ;;  %v57_v29 = vadd.f32 %v56_v28, %v55_v25 }
  0x10   :  { %v50_v21 = vadd.f32 %v49_v18, %v48_v15  ;;  %v44_v23 = vrot.slane %v43_v20, 1  ;;  %v58_v32 = vrot.slane %v57_v29, 1 }
  0x12   :  { %v51_v24 = vrot.slane %v50_v21, 1  ;;  %v45_v26 = vadd.f32 %v44_v23, %v43_v20  ;;  %v59_v34 = vadd.f32 %v58_v32, %v57_v29 }
  0x14   :  { %v52_v27 = vadd.f32 %v51_v24, %v50_v21  ;;  %v61_v30 = vmul.f32 0.25, %v45_v26  ;;  %v63_v36 = vmul.f32 0.25, %v59_v34 }
  0x16   :  { %v62_v31 = vmul.f32 0.25, %v52_v27  ;;  %v69_v38 = vsub.f32 %v34_v16, %v63_v36 }
  0x18   :  { %v66_v33 = vcombine.low %v61_v30, %v62_v31  ;;  %v71_v41 = vmul.f32 %v69_v38, %v69_v38  ;;  %v478_v31 = vld [vmem:[%s621_s3] sm:$0xff]  }
  0x1a   :  { %v68_v35 = vsub.f32 %v33_v7, %v66_v33  ;;  %v89_v45 = vsel %vm38_vm1, %v71_v41, 0.0  ;;  %v116_v7 = vunpack.c.l.s4 %v500_v6 }
  0x1b   :  { %v90_v48 = vrot.slane %v89_v45, 4 }
  0x1c   :  { %v70_v37 = vmul.f32 %v68_v35, %v68_v35  ;;  %v117_v10 = vunpack.c.0.s8 %v116_v7 }
  0x1d   :  { %v91_v51 = vadd.f32 %v90_v48, %v89_v45 }
  0x1e   :  { %v73_v39 = vcombine.high %v70_v37, %v70_v37  ;;  %v75_v40 = vsel %vm38_vm1, %v70_v37, 0.0  ;;  %v120_v13 = vsub.s32 %v117_v10, %v577_v11 }
  0x1f   :  { %v76_v43 = vrot.slane %v75_v40, 4  ;;  %v92_v54 = vrot.slane %v91_v51, 2 }
  0x20   :  { %v82_v42 = vsel %vm38_vm1, %v73_v39, 0.0 }
  0x21   :  { %v83_v44 = vrot.slane %v82_v42, 4  ;;  %v77_v46 = vadd.f32 %v76_v43, %v75_v40  ;;  %v93_v57 = vadd.f32 %v92_v54, %v91_v51 }
  0x23   :  { %v84_v47 = vadd.f32 %v83_v44, %v82_v42  ;;  %v78_v49 = vrot.slane %v77_v46, 2  ;;  %v94_v60 = vrot.slane %v93_v57, 1 }
  0x25   :  { %v85_v50 = vrot.slane %v84_v47, 2  ;;  %v79_v52 = vadd.f32 %v78_v49, %v77_v46  ;;  %v95_v62 = vadd.f32 %v94_v60, %v93_v57 }
  0x27   :  { %v86_v53 = vadd.f32 %v85_v50, %v84_v47  ;;  %v80_v55 = vrot.slane %v79_v52, 1  ;;  %v98_v2 = vmul.f32 0.25, %v95_v62 }
  0x29   :  { %v87_v56 = vrot.slane %v86_v53, 1  ;;  %v81_v58 = vadd.f32 %v80_v55, %v79_v52  ;;  %v101_v5 = vadd.f32 1e-05, %v98_v2 }
  0x2b   :  { %v88_v59 = vadd.f32 %v87_v56, %v86_v53  ;;  %v96_v61 = vmul.f32 0.25, %v81_v58 }
  0x2d   :  { %v97_v63 = vmul.f32 0.25, %v88_v59  ;;  %v99_v1 = vadd.f32 1e-05, %v96_v61 }
  0x2f   :  { %v100_v3 = vadd.f32 1e-05, %v97_v63  ;;  %479 = vrsqrt.f32 %v99_v1 }
  0x31   :  { %481 = vrsqrt.f32 %v100_v3 }
  0x32   :  { %483 = vrsqrt.f32 %v101_v5 }
  0x3c   :  { %v480_v9 = vpop.eup %479 }
  0x3e   :  { %v482_v12 = vpop.eup %481 }
  0x3f   :  { %v107_v14 = vcombine.low %v480_v9, %v482_v12  ;;  %v484_v15 = vpop.eup %483 }
  0x40   :  { %v110_v18 = vmul.f32 %v484_v15, %v69_v38 }
  0x41   :  { %v109_v17 = vmul.f32 %v107_v14, %v68_v35 }
  0x7d   :  { %v114_v16 = vpop.permute.xlu0 %113 }
  0x7e   :  { %v121_v19 = vrot.slane %v114_v16, %v120_v13 }
  0x80   :  { %v123_v21 = vmul.f32 %v121_v19, %v109_v17  ;;  %v124_v22 = vmul.f32 %v121_v19, %v110_v18 }
  0x81   :  { %v128_v20 = vpop.permute.xlu0 %127  ;;  %v152_v33 = vpop.permute.xlu1 %151 }
  0x82   :  { %v135_v23 = vrot.slane %v128_v20, %v120_v13 }
  0x84   :  { %v137_v24 = vadd.f32 %v135_v23, %v123_v21  ;;  %v138_v25 = vadd.f32 %v135_v23, %v124_v22 }
  0x85   :  { %v157_v36 = vpop.permute.xlu1 %156 }
  0x86   :  { %v144_v26 = vpack.c.bf16 %v138_v25, %v138_v25  ;;  %v140_v27 = vcombine.high %v137_v24, %v137_v24  ;;  %v142_v28 = vpack.c.bf16 %v137_v24, %v137_v24 }
  0x88   :  { %v176_v29 = vsel %vm168_vm2, %v144_v26, 0  ;;  %v143_v30 = vpack.c.bf16 %v140_v27, %v140_v27  ;;  %v170_v32 = vsel %vm168_vm2, %v142_v28, 0 }
  0x89   :  { %460 = vmatpush3.bf16.msra.mxu1 %v176_v29 }
  0x8a   :  { %449 = vmatprep.subr.msk.bf16.mxu0 %vm168_vm2, %v143_v30  ;;  %465 = vmatprep.subr.bf16.mxu1 %v498_v4 }
  0x8b   :  { %193 = vmatpush1.bf16.msra.mxu0 %v170_v32 }
  0x8c   :  { %462 = vmatmul.mubr.msk.bf16.vlgmr.msra.gmra.mxu1 %vm164_vm3, %v478_v31 }
  0x8d   :  { %467 = vmatprep.mubr.msk.bf16.mxu1 %vm499_vm0, %v498_v4 }
  0x8e   :  { %450 = vmatmul.mubr.msk.bf16.vlgmr.msra.gmra.mxu0 %vm164_vm3, %v478_v31 }
  0x8f   :  { %362 = vmatprep.mubr.bf16.mxu0 %v497_v0 }
 0x14c   :  { %v255_v34 = vpop.f32.mrf.mxu1 }
 0x14d   :  { %v587_v35 = vadd.f32 %v255_v34, %v152_v33 }
 0x14e   :  { %v212_v37 = vpop.f32.mrf.mxu0  ;;  %v463_v38 = vpop.f32.mrf.mxu1 }
 0x14f   :  { %v264_v39 = vmul.f32 %v587_v35, %v587_v35  ;;  %v591_v40 = vadd.f32 %v212_v37, %v152_v33 }
 0x150   :  { %v214_v41 = vpop.f32.mrf.mxu0  ;;  %v258_v42 = vpop.f32.mrf.mxu1 }
 0x151   :  { %v270_v43 = vmul.f32 %v264_v39, %v587_v35  ;;  %v262_v4 = vmul.f32 %v591_v40, %v591_v40  ;;  %v596_v0 = vadd.f32 %v214_v41, %v152_v33  ;;  %v259_v44 = vadd.f32 %v258_v42, %v157_v36  ;;  %v316_v39 = vld [vmem:[%s624_s5] sm:$0x3] }
 0x152   :  { %v216_v45 = vpop.f32.mrf.mxu0  ;;  %v464_v46 = vpop.f32.mrf.mxu1 }
 0x153   :  { %v276_v47 = vmul.f32 0.044715, %v270_v43  ;;  %v268_v48 = vmul.f32 %v262_v4, %v591_v40  ;;  %v263_v49 = vmul.f32 %v596_v0, %v596_v0  ;;  %v267_v50 = vmul.f32 %v259_v44, %v259_v44  ;;  %v324_v46 = vpop.permute.xlu0 %323 }
 0x154   :  { %v217_v51 = vadd.f32 %v216_v45, %v157_v36  ;;  %v218_v52 = vpop.f32.mrf.mxu0 }
 0x155   :  { %v282_v53 = vadd.f32 %v276_v47, %v587_v35  ;;  %v274_v54 = vmul.f32 0.044715, %v268_v48  ;;  %v269_v55 = vmul.f32 %v263_v49, %v596_v0  ;;  %v273_v56 = vmul.f32 %v267_v50, %v259_v44 }
 0x156   :  { %v265_v57 = vmul.f32 %v217_v51, %v217_v51  ;;  %v219_v58 = vadd.f32 %v218_v52, %v157_v36  ;;  %v501_v47 = vmov 1983009808  }
 0x157   :  { %v288_v59 = vmul.f32 0.7978846, %v282_v53  ;;  %v280_v60 = vadd.f32 %v274_v54, %v591_v40  ;;  %v275_v61 = vmul.f32 0.044715, %v269_v55  ;;  %v279_v62 = vmul.f32 0.044715, %v273_v56 }
 0x158   :  { %v271_v63 = vmul.f32 %v265_v57, %v217_v51  ;;  %v266_v1 = vmul.f32 %v219_v58, %v219_v58  ;;  %v428_v48 = vunpack.c.l.s4 %v501_v47 }
 0x159   :  { %485 = vtanh.f32 %v288_v59  ;;  %v286_v2 = vmul.f32 0.7978846, %v280_v60  ;;  %v281_v3 = vadd.f32 %v275_v61, %v596_v0  ;;  %v285_v5 = vadd.f32 %v279_v62, %v259_v44 }
 0x15a   :  { %v277_v6 = vmul.f32 0.044715, %v271_v63  ;;  %v272_v7 = vmul.f32 %v266_v1, %v219_v58  ;;  %v429_v53 = vunpack.c.0.s8 %v428_v48 }
 0x15b   :  { %v287_v8 = vmul.f32 0.7978846, %v281_v3  ;;  %v291_v9 = vmul.f32 0.7978846, %v285_v5  ;;  %487 = vtanh.f32 %v286_v2 }
 0x15c   :  { %v283_v10 = vadd.f32 %v277_v6, %v217_v51  ;;  %v278_v12 = vmul.f32 0.044715, %v272_v7  ;;  %v432_v61 = vsub.s32 %v429_v53, %v577_v11 }
 0x15d   :  { %489 = vtanh.f32 %v287_v8 }
 0x15e   :  { %491 = vtanh.f32 %v291_v9  ;;  %v289_v13 = vmul.f32 0.7978846, %v283_v10  ;;  %v284_v14 = vadd.f32 %v278_v12, %v219_v58 }
 0x160   :  { %493 = vtanh.f32 %v289_v13  ;;  %v290_v15 = vmul.f32 0.7978846, %v284_v14 }
 0x162   :  { %495 = vtanh.f32 %v290_v15 }
 0x166   :  { %v486_v16 = vpop.eup %485 }
 0x167   :  { %v300_v17 = vadd.f32 1.0, %v486_v16 }
 0x168   :  { %v488_v18 = vpop.eup %487 }
 0x169   :  { %v306_v21 = vmul.f32 0.5, %v300_v17  ;;  %v298_v25 = vadd.f32 1.0, %v488_v18 }
 0x16a   :  { %v490_v19 = vpop.eup %489 }
 0x16b   :  { %v492_v20 = vpop.eup %491  ;;  %v299_v23 = vadd.f32 1.0, %v490_v19  ;;  %v312_v29 = vmul.f32 %v306_v21, %v587_v35  ;;  %v304_v34 = vmul.f32 0.5, %v298_v25 }
 0x16c   :  { %v303_v22 = vadd.f32 1.0, %v492_v20 }
 0x16d   :  { %v494_v24 = vpop.eup %493  ;;  %v305_v33 = vmul.f32 0.5, %v299_v23  ;;  %v310_v43 = vmul.f32 %v304_v34, %v591_v40 }
 0x16e   :  { %v309_v26 = vmul.f32 0.5, %v303_v22  ;;  %v301_v27 = vadd.f32 1.0, %v494_v24 }
 0x16f   :  { %v496_v28 = vpop.eup %495  ;;  %v311_v41 = vmul.f32 %v305_v33, %v596_v0 }
 0x170   :  { %v315_v30 = vmul.f32 %v309_v26, %v259_v44  ;;  %v307_v31 = vmul.f32 0.5, %v301_v27  ;;  %v302_v32 = vadd.f32 1.0, %v496_v28  ;;  %v411_v44 = vld [vmem:[%s625_s7] sm:$0x3f] }
 0x171   :  { %v413_v50 = vunpack.c.h.bf16 %v411_v44  ;;  %v412_v0 = vunpack.c.l.bf16 %v411_v44 }
 0x172   :  { %v320_v36 = vpack.c.bf16 %v315_v30, %v312_v29  ;;  %v308_v37 = vmul.f32 0.5, %v302_v32  ;;  %v313_v38 = vmul.f32 %v307_v31, %v217_v51 }
 0x173   :  { %v415_v56 = vcombine.high %v412_v0, %v412_v0 }
 0x174   :  { %466 = vmatpush3.bf16.msra.mxu1 %v320_v36  ;;  %v314_v42 = vmul.f32 %v308_v37, %v219_v58  ;;  %v318_v4 = vpack.c.bf16 %v313_v38, %v310_v43 }
 0x176   :  { %v319_v35 = vpack.c.bf16 %v314_v42, %v311_v41 }
 0x177   :  { %468 = vmatmul.mubr.msk.bf16.vlgmr.msra.gmra.mxu1 %vm326_vm4, %v316_v39 }
 0x178   :  { %344 = vmatprep.subr.bf16.mxu0 %v319_v35 }
 0x179   :  { %345 = vmatpush1.bf16.msra.mxu0 %v318_v4 }
 0x17c   :  { %452 = vmatmul.mubr.msk.bf16.vlgmr.msra.gmra.mxu0 %vm326_vm4, %v316_v39 }
 0x237   :  { %v405_v45 = vpop.f32.mrf.mxu1 }
 0x238   :  { %v406_v49 = vadd.f32 %v405_v45, %v324_v46 }
 0x239   :  { %v469_v51 = vpop.f32.mrf.mxu1 }
 0x23a   :  { %v419_v54 = vadd.f32 %v413_v50, %v406_v49 }
 0x23b   :  { %v408_v52 = vpop.f32.mrf.mxu1 }
 0x23c   :  { %v364_v40 = vpop.f32.mrf.mxu0  ;;  %v422_v62 = vpack.c.bf16 %v419_v54, %v419_v54 }
 0x23d   :  { %v365_v55 = vadd.f32 %v364_v40, %v324_v46  ;;  %v470_v57 = vpop.f32.mrf.mxu1 }
 0x23e   :  { %v366_v58 = vpop.f32.mrf.mxu0  ;;  %v440_v5 = vrot.slane %v422_v62, %v432_v61 }
 0x23f   :  { %v367_v59 = vadd.f32 %v366_v58, %v324_v46  ;;  %v417_v63 = vadd.f32 %v412_v0, %v365_v55 }
 0x240   :  { %v368_v60 = vpop.f32.mrf.mxu0 }
 0x241   :  { %v418_v1 = vadd.f32 %v415_v56, %v367_v59 }
 0x242   :  { %v369_v2 = vpop.f32.mrf.mxu0 }
 0x243   :  { %v454_v3 = vpack.c.bf16 %v418_v1, %v417_v63 }
 0x245   :  { %v433_v6 = vrot.slane %v454_v3, %v432_v61 }
 0x247   :  { %v441_v7 = vcombine.low %v433_v6, %v440_v5 }
 0x249   :  { %443 = vst [vmem:[%s626_s8] sm:$0x3f] %v441_v7 }

// kernel: cwnet_fwd.53
= control target key start
LH: loop header
LB: loop body
LE: loop exit
PB: predicated region body
PF: predicated region fallthrough
CT: control target
= control target key end

     0   :  { %vm191_vm0 = vcmask 1041408   ;;  %v537_v2 = vmov 0   ;;  %vm187_vm1 = vcmask 818176   ;;  %vm317_vm2 = vcmask 1040384   ;;  %s675_s0 = inlined_call_operand.vmem [shape: bf16[100,512], index: 0, kind: input, shape index: {}]   ;;  %s676_s2 = inlined_call_operand.vmem [shape: f32[4,1], index: 2, kind: input, shape index: {}]   ;;  %s677_s4 = inlined_call_operand.vmem [shape: f32[4,1], index: 4, kind: input, shape index: {}]   ;;  %s678_s1 = inlined_call_operand.vmem [shape: bf16[4,100], index: 1, kind: input, shape index: {}]   ;;  %s679_s3 = inlined_call_operand.vmem [shape: bf16[4,2], index: 3, kind: input, shape index: {}]   ;;  %s680_s5 = inlined_call_operand.vmem [shape: bf16[4,512], index: 5, kind: input, shape index: {}]   ;;  %s681_s6 = inlined_call_operand.vmem [shape: bf16[4,512], index: 6, kind: output, shape index: {}]  }
   0x1   :  { %v48_v0 = vld [vmem:[%s675_s0 + $0xc0] sm:$0x33]  ;;  %v49_v1 = vld [vmem:[%s675_s0 + $0xc8] sm:$0x33]  ;;  %236 = vmatprep.mubr.bf16.mxu0 %v537_v2  ;;  %277 = vmatprep.mubr.bf16.mxu1 %v537_v2  ;;  %vm313_vm3 = vcmask 15360  }
   0x2   :  { %v481_v3 = vcombine.high %v48_v0, %v48_v0  ;;  %v483_v4 = vcombine.high %v49_v1, %v49_v1  ;;  %v480_v5 = vcombine.low %v48_v0, %v48_v0  ;;  %v482_v6 = vcombine.low %v49_v1, %v49_v1  ;;  %v501_v7 = vld [vmem:[%s675_s0 + $0xa4] ss:$16 sps:$4 sm:$0xff]   ;;  %496 = vset.pattern.permute.xlu0 %v537_v2  ;;  %v503_v8 = vld [vmem:[%s675_s0 + $0xac] ss:$16 sps:$4 sm:$0xff]   ;;  %v505_v11 = vld [vmem:[%s675_s0 + $0xa0] ss:$16 sps:$4 sm:$0xff]  }
   0x3   :  { %v506_v12 = vld [vmem:[%s675_s0 + $0xa8] ss:$16 sps:$4 sm:$0xff]   ;;  %v507_v13 = vld [vmem:[%s675_s0 + $0x84] ss:$16 sps:$4 sm:$0xff]   ;;  %v509_v14 = vld [vmem:[%s675_s0 + $0x8c] ss:$16 sps:$4 sm:$0xff]  }
   0x4   :  { %484 = vmatprep.subr.msk.bf16.mxu0 %vm191_vm0, %v481_v3  ;;  %486 = vmatprep.subr.msk.bf16.mxu1 %vm191_vm0, %v483_v4  ;;  %v193_v9 = vsel %vm191_vm0, %v480_v5, 0  ;;  %v199_v10 = vsel %vm191_vm0, %v482_v6, 0  ;;  %v511_v15 = vld [vmem:[%s675_s0 + $0x80] ss:$16 sps:$4 sm:$0xff]   ;;  %v512_v16 = vld [vmem:[%s675_s0 + $0x88] ss:$16 sps:$4 sm:$0xff]   ;;  %v438_v3 = vlaneseq }
   0x5   :  { %207 = vmatpush1.bf16.msra.mxu0 %v193_v9  ;;  %248 = vmatpush1.bf16.msra.mxu1 %v199_v10  ;;  %v513_v17 = vld [vmem:[%s675_s0 + $0x64] ss:$16 sps:$4 sm:$0xff]   ;;  %v515_v18 = vld [vmem:[%s675_s0 + $0x6c] ss:$16 sps:$4 sm:$0xff]   ;;  %v517_v19 = vld [vmem:[%s675_s0 + $0x60] ss:$16 sps:$4 sm:$0xff]  }
   0x6   :  { %208 = vmatprep.subr.bf16.mxu0 %v501_v7  ;;  %249 = vmatprep.subr.bf16.mxu1 %v503_v8  ;;  %v518_v20 = vld [vmem:[%s675_s0 + $0x68] ss:$16 sps:$4 sm:$0xff]   ;;  %v519_v21 = vld [vmem:[%s675_s0 + $0x44] ss:$16 sps:$4 sm:$0xff]   ;;  %v521_v22 = vld [vmem:[%s675_s0 + $0x4c] ss:$16 sps:$4 sm:$0xff]  }
   0x7   :  { %v523_v23 = vld [vmem:[%s675_s0 + $0x40] ss:$16 sps:$4 sm:$0xff]   ;;  %v524_v24 = vld [vmem:[%s675_s0 + $0x48] ss:$16 sps:$4 sm:$0xff]   ;;  %v525_v25 = vld [vmem:[%s675_s0 + $0x24] ss:$16 sps:$4 sm:$0xff]  }
   0x8   :  { %v527_v26 = vld [vmem:[%s675_s0 + $0x2c] ss:$16 sps:$4 sm:$0xff]   ;;  %v51_v27 = vld [vmem:[%s676_s2] sm:$0xf]  ;;  %v530_v30 = vld [vmem:[%s675_s0 + $0x28] ss:$16 sps:$4 sm:$0xff]  }
   0x9   :  { %209 = vmatpush1.bf16.msra.mxu0 %v505_v11  ;;  %250 = vmatpush1.bf16.msra.mxu1 %v506_v12  ;;  %v303_v28 = vld [vmem:[%s677_s4] sm:$0xf]  ;;  %v531_v31 = vld [vmem:[%s675_s0 + $0x4] ss:$16 sps:$4 sm:$0xff]   ;;  %v533_v32 = vld [vmem:[%s675_s0 + $0xc] ss:$16 sps:$4 sm:$0xff]  }
   0xa   :  { %210 = vmatprep.subr.bf16.mxu0 %v507_v13  ;;  %251 = vmatprep.subr.bf16.mxu1 %v509_v14  ;;  %v529_v29 = vld [vmem:[%s675_s0 + $0x20] ss:$16 sps:$4 sm:$0xff]   ;;  %v536_v34 = vld [vmem:[%s675_s0 + $0x8] ss:$16 sps:$4 sm:$0xff]   ;;  %v538_v1 = vmov 1983009808  }
   0xb   :  { %54 = vperm.xlu0 %496, %v51_v27   ;;  %v535_v33 = vld [vmem:[%s675_s0] ss:$16 sps:$4 sm:$0xff]   ;;  %v439_v10 = vshrl.u32 %v438_v3, 7 }
   0xc   :  { %v50_v35 = vld [vmem:[%s678_s1] sm:$0x3] }
   0xd   :  { %211 = vmatpush1.bf16.msra.mxu0 %v511_v15  ;;  %252 = vmatpush1.bf16.msra.mxu1 %v512_v16  ;;  %v302_v63 = vld [vmem:[%s679_s3] sm:$0x3] }
   0xe   :  { %212 = vmatprep.subr.bf16.mxu0 %v513_v17  ;;  %253 = vmatprep.subr.bf16.mxu1 %v515_v18  ;;  %v412_v0 = vld [vmem:[%s680_s5] sm:$0xff] }
   0xf   :  { %310 = vperm.xlu0 %496, %v303_v28   ;;  %v413_v4 = vunpack.c.l.bf16 %v412_v0  ;;  %v414_v5 = vunpack.c.h.bf16 %v412_v0 }
  0x11   :  { %213 = vmatpush1.bf16.msra.mxu0 %v517_v19  ;;  %254 = vmatpush1.bf16.msra.mxu1 %v518_v20  ;;  %v417_v13 = vcombine.high %v413_v4, %v413_v4  ;;  %v418_v14 = vcombine.high %v414_v5, %v414_v5 }
  0x12   :  { %214 = vmatprep.subr.bf16.mxu0 %v519_v21  ;;  %255 = vmatprep.subr.bf16.mxu1 %v521_v22 }
  0x15   :  { %215 = vmatpush1.bf16.msra.mxu0 %v523_v23  ;;  %256 = vmatpush1.bf16.msra.mxu1 %v524_v24 }
  0x16   :  { %216 = vmatprep.subr.bf16.mxu0 %v525_v25  ;;  %257 = vmatprep.subr.bf16.mxu1 %v527_v26 }
  0x19   :  { %217 = vmatpush1.bf16.msra.mxu0 %v529_v29  ;;  %258 = vmatpush1.bf16.msra.mxu1 %v530_v30 }
  0x1a   :  { %218 = vmatprep.subr.bf16.mxu0 %v531_v31  ;;  %259 = vmatprep.subr.bf16.mxu1 %v533_v32 }
  0x1d   :  { %219 = vmatpush1.bf16.msra.mxu0 %v535_v33  ;;  %260 = vmatpush1.bf16.msra.mxu1 %v536_v34 }
  0x20   :  { %485 = vmatmul.mubr.msk.bf16.vlgmr.msra.gmra.mxu0 %vm187_vm1, %v50_v35  ;;  %487 = vmatmul.mubr.msk.bf16.vlgmr.msra.gmra.mxu1 %vm187_vm1, %v50_v35 }
  0x21   :  { %362 = vmatprep.mubr.bf16.mxu0 %v537_v2  ;;  %403 = vmatprep.mubr.bf16.mxu1 %v537_v2  ;;  %v436_v2 = vunpack.c.l.s4 %v538_v1 }
  0x23   :  { %v437_v9 = vunpack.c.0.s8 %v436_v2 }
  0x25   :  { %v440_v19 = vsub.s32 %v437_v9, %v439_v10 }
  0x86   :  { %v55_v36 = vpop.permute.xlu0 %54 }
  0x8a   :  { %v311_v6 = vpop.permute.xlu0 %310 }
  0xe0   :  { %v238_v37 = vpop.f32.mrf.mxu0  ;;  %v279_v38 = vpop.f32.mrf.mxu1 }
  0xe1   :  { %v239_v39 = vadd.f32 %v238_v37, %v55_v36  ;;  %v280_v40 = vadd.f32 %v279_v38, %v55_v36 }
  0xe2   :  { %v240_v41 = vpop.f32.mrf.mxu0  ;;  %v281_v42 = vpop.f32.mrf.mxu1 }
  0xe3   :  { %v290_v43 = vrot.slane %v239_v39, 2  ;;  %v292_v44 = vrot.slane %v280_v40, 2  ;;  %v241_v45 = vadd.f32 %v240_v41, %v55_v36  ;;  %v282_v46 = vadd.f32 %v281_v42, %v55_v36 }
  0xe4   :  { %v242_v47 = vpop.f32.mrf.mxu0  ;;  %v283_v48 = vpop.f32.mrf.mxu1 }
  0xe5   :  { %v298_v49 = vmul.f32 %v290_v43, %v239_v39  ;;  %v300_v50 = vmul.f32 %v292_v44, %v280_v40  ;;  %v291_v51 = vrot.slane %v241_v45, 2  ;;  %v293_v52 = vrot.slane %v282_v46, 2 }
  0xe6   :  { %v243_v53 = vpop.f32.mrf.mxu0  ;;  %v284_v54 = vpop.f32.mrf.mxu1 }
  0xe7   :  { %v304_v55 = vpack.c.bf16 %v298_v49, %v298_v49  ;;  %v306_v56 = vpack.c.bf16 %v300_v50, %v300_v50  ;;  %v299_v57 = vmul.f32 %v291_v51, %v241_v45  ;;  %v301_v58 = vmul.f32 %v293_v52, %v282_v46 }
  0xe9   :  { %v305_v59 = vpack.c.bf16 %v299_v57, %v299_v57  ;;  %v307_v60 = vpack.c.bf16 %v301_v58, %v301_v58  ;;  %v319_v61 = vsel %vm317_vm2, %v304_v55, 0  ;;  %v325_v62 = vsel %vm317_vm2, %v306_v56, 0 }
  0xeb   :  { %488 = vmatprep.subr.msk.bf16.mxu0 %vm317_vm2, %v305_v59  ;;  %490 = vmatprep.subr.msk.bf16.mxu1 %vm317_vm2, %v307_v60 }
  0xec   :  { %345 = vmatpush1.bf16.msra.mxu0 %v319_v61  ;;  %386 = vmatpush1.bf16.msra.mxu1 %v325_v62 }
  0xef   :  { %489 = vmatmul.mubr.msk.bf16.vlgmr.msra.gmra.mxu0 %vm313_vm3, %v302_v63  ;;  %491 = vmatmul.mubr.msk.bf16.vlgmr.msra.gmra.mxu1 %vm313_vm3, %v302_v63 }
 0x1af   :  { %v364_v7 = vpop.f32.mrf.mxu0  ;;  %v405_v8 = vpop.f32.mrf.mxu1 }
 0x1b0   :  { %v365_v11 = vadd.f32 %v364_v7, %v311_v6  ;;  %v406_v12 = vadd.f32 %v405_v8, %v311_v6 }
 0x1b1   :  { %v366_v15 = vpop.f32.mrf.mxu0  ;;  %v407_v16 = vpop.f32.mrf.mxu1 }
 0x1b2   :  { %v367_v17 = vadd.f32 %v366_v15, %v311_v6  ;;  %v408_v18 = vadd.f32 %v407_v16, %v311_v6  ;;  %v421_v22 = vadd.f32 %v413_v4, %v365_v11  ;;  %v423_v23 = vadd.f32 %v414_v5, %v406_v12 }
 0x1b3   :  { %v368_v20 = vpop.f32.mrf.mxu0  ;;  %v409_v21 = vpop.f32.mrf.mxu1 }
 0x1b4   :  { %v422_v24 = vadd.f32 %v417_v13, %v367_v17  ;;  %v424_v25 = vadd.f32 %v418_v14, %v408_v18 }
 0x1b5   :  { %v369_v26 = vpop.f32.mrf.mxu0  ;;  %v410_v27 = vpop.f32.mrf.mxu1 }
 0x1b6   :  { %v492_v28 = vpack.c.bf16 %v422_v24, %v421_v22  ;;  %v493_v29 = vpack.c.bf16 %v424_v25, %v423_v23 }
 0x1b8   :  { %v441_v30 = vrot.slane %v492_v28, %v440_v19  ;;  %v448_v31 = vrot.slane %v493_v29, %v440_v19 }
 0x1ba   :  { %v449_v32 = vcombine.low %v441_v30, %v448_v31 }
 0x1bc   :  { %451 = vst [vmem:[%s681_s6] sm:$0xff] %v449_v32 }

// kernel: cwnet_fwd.54
= control target key start
LH: loop header
LB: loop body
LE: loop exit
PB: predicated region body
PF: predicated region fallthrough
CT: control target
= control target key end

     0   :  { %v485_v0 = vmov 0   ;;  %vm41_vm0 = vcmask 1043456   ;;  %vm204_vm1 = vcmask 1041408   ;;  %vm200_vm2 = vcmask 31744   ;;  %s585_s1 = inlined_call_operand.vmem [shape: f32[4,1], index: 1, kind: input, shape index: {}]   ;;  %s586_s2 = inlined_call_operand.vmem [shape: f32[4,1], index: 2, kind: input, shape index: {}]   ;;  %s587_s6 = inlined_call_operand.vmem [shape: f32[4,1], index: 6, kind: input, shape index: {}]   ;;  %s588_s0 = inlined_call_operand.vmem [shape: bf16[4,512], index: 0, kind: input, shape index: {}, may-alias: {0,7}]   ;;  %s589_s3 = inlined_call_operand.vmem [shape: bf16[16,4], index: 3, kind: input, shape index: {}]   ;;  %s590_s4 = inlined_call_operand.vmem [shape: f32[16,1], index: 4, kind: input, shape index: {}]   ;;  %s591_s5 = inlined_call_operand.vmem [shape: bf16[4,8], index: 5, kind: input, shape index: {}]   ;;  %s592_s7 = inlined_call_operand.vmem [shape: bf16[4,512], index: 7, kind: input, shape index: {}, may-alias: {0,7}]   ;;  %s593_s8 = inlined_call_operand.vmem [shape: bf16[4,512], index: 8, kind: output, shape index: {}]  }
   0x1   :  { %474 = vset.pattern.permute.xlu0 %v485_v0  ;;  %v31_v1 = vld [vmem:[%s585_s1] sm:$0xf]  ;;  %249 = vmatprep.mubr.bf16.mxu0 %v485_v0  ;;  %v184_v8 = vld [vmem:[%s590_s4 + $0x8] sm:$0xff]  ;;  %vm318_vm3 = vcmask 64512  }
   0x2   :  { %145 = vperm.xlu0 %474, %v31_v1   ;;  %292 = vmatprep.mubr.bf16.mxu1 %v485_v0  ;;  %v32_v2 = vld [vmem:[%s586_s2] sm:$0xf] }
   0x3   :  { %475 = vset.pattern.permute.xlu1 %v485_v0  ;;  %v308_v3 = vld [vmem:[%s587_s6] sm:$0xf] }
   0x4   :  { %v30_v4 = vld [vmem:[%s588_s0] sm:$0xff] }
   0x5   :  { %v33_v5 = vunpack.c.l.bf16 %v30_v4  ;;  %v183_v6 = vld [vmem:[%s590_s4] sm:$0xff]  ;;  %v34_v7 = vunpack.c.h.bf16 %v30_v4 }
   0x6   :  { %159 = vperm.xlu0 %474, %v32_v2   ;;  %187 = vperm.xlu1 %475, %v183_v6  }
   0x7   :  { %v37_v9 = vcombine.high %v33_v5, %v33_v5  ;;  %v38_v10 = vcombine.high %v34_v7, %v34_v7  ;;  %v42_v11 = vsel %vm41_vm0, %v33_v5, 0.0  ;;  %v56_v13 = vsel %vm41_vm0, %v34_v7, 0.0 }
   0x8   :  { %v43_v15 = vrot.slane %v42_v11, 4  ;;  %v57_v17 = vrot.slane %v56_v13, 4 }
   0x9   :  { %v49_v12 = vsel %vm41_vm0, %v37_v9, 0.0  ;;  %v63_v14 = vsel %vm41_vm0, %v38_v10, 0.0 }
   0xa   :  { %315 = vperm.xlu0 %474, %v308_v3   ;;  %192 = vperm.xlu1 %475, %v184_v8   ;;  %v50_v16 = vrot.slane %v49_v12, 4  ;;  %v64_v18 = vrot.slane %v63_v14, 4  ;;  %v44_v19 = vadd.f32 %v43_v15, %v42_v11  ;;  %v58_v21 = vadd.f32 %v57_v17, %v56_v13 }
   0xc   :  { %v51_v20 = vadd.f32 %v50_v16, %v49_v12  ;;  %v65_v22 = vadd.f32 %v64_v18, %v63_v14  ;;  %v45_v23 = vrot.slane %v44_v19, 2  ;;  %v59_v25 = vrot.slane %v58_v21, 2 }
   0xe   :  { %v52_v24 = vrot.slane %v51_v20, 2  ;;  %v66_v26 = vrot.slane %v65_v22, 2  ;;  %v46_v27 = vadd.f32 %v45_v23, %v44_v19  ;;  %v60_v29 = vadd.f32 %v59_v25, %v58_v21 }
  0x10   :  { %v53_v28 = vadd.f32 %v52_v24, %v51_v20  ;;  %v67_v30 = vadd.f32 %v66_v26, %v65_v22  ;;  %v47_v31 = vrot.slane %v46_v27, 1  ;;  %v61_v33 = vrot.slane %v60_v29, 1 }
  0x11   :  { %v486_v24 = vmov 839922192   ;;  %v150_v26 = vlaneseq }
  0x12   :  { %v54_v32 = vrot.slane %v53_v28, 1  ;;  %v68_v34 = vrot.slane %v67_v30, 1  ;;  %v48_v35 = vadd.f32 %v47_v31, %v46_v27  ;;  %v62_v37 = vadd.f32 %v61_v33, %v60_v29 }
  0x13   :  { %v148_v25 = vunpack.c.l.s4 %v486_v24  ;;  %v563_v31 = vshrl.u32 %v150_v26, 7 }
  0x14   :  { %v55_v36 = vadd.f32 %v54_v32, %v53_v28  ;;  %v69_v38 = vadd.f32 %v68_v34, %v67_v30  ;;  %v71_v39 = vmul.f32 0.25, %v48_v35  ;;  %v73_v41 = vmul.f32 0.25, %v62_v37 }
  0x15   :  { %v149_v30 = vunpack.c.0.s8 %v148_v25 }
  0x16   :  { %v72_v40 = vmul.f32 0.25, %v55_v36  ;;  %v74_v42 = vmul.f32 0.25, %v69_v38 }
  0x17   :  { %v152_v33 = vsub.s32 %v149_v30, %v563_v31 }
  0x18   :  { %v79_v43 = vcombine.low %v71_v39, %v72_v40  ;;  %v80_v44 = vcombine.low %v73_v41, %v74_v42 }
  0x1a   :  { %v83_v45 = vsub.f32 %v33_v5, %v79_v43  ;;  %v84_v46 = vsub.f32 %v34_v7, %v80_v44 }
  0x1c   :  { %v85_v47 = vmul.f32 %v83_v45, %v83_v45  ;;  %v86_v48 = vmul.f32 %v84_v46, %v84_v46 }
  0x1e   :  { %v89_v49 = vcombine.high %v85_v47, %v85_v47  ;;  %v90_v50 = vcombine.high %v86_v48, %v86_v48  ;;  %v93_v51 = vsel %vm41_vm0, %v85_v47, 0.0  ;;  %v107_v52 = vsel %vm41_vm0, %v86_v48, 0.0 }
  0x1f   :  { %v94_v54 = vrot.slane %v93_v51, 4  ;;  %v108_v56 = vrot.slane %v107_v52, 4 }
  0x20   :  { %v100_v53 = vsel %vm41_vm0, %v89_v49, 0.0  ;;  %v114_v55 = vsel %vm41_vm0, %v90_v50, 0.0 }
  0x21   :  { %v101_v57 = vrot.slane %v100_v53, 4  ;;  %v115_v58 = vrot.slane %v114_v55, 4  ;;  %v95_v59 = vadd.f32 %v94_v54, %v93_v51  ;;  %v109_v60 = vadd.f32 %v108_v56, %v107_v52 }
  0x23   :  { %v102_v61 = vadd.f32 %v101_v57, %v100_v53  ;;  %v116_v62 = vadd.f32 %v115_v58, %v114_v55  ;;  %v96_v63 = vrot.slane %v95_v59, 2  ;;  %v110_v1 = vrot.slane %v109_v60, 2 }
  0x25   :  { %v103_v2 = vrot.slane %v102_v61, 2  ;;  %v117_v3 = vrot.slane %v116_v62, 2  ;;  %v97_v4 = vadd.f32 %v96_v63, %v95_v59  ;;  %v111_v5 = vadd.f32 %v110_v1, %v109_v60 }
  0x27   :  { %v104_v6 = vadd.f32 %v103_v2, %v102_v61  ;;  %v118_v7 = vadd.f32 %v117_v3, %v116_v62  ;;  %v98_v8 = vrot.slane %v97_v4, 1  ;;  %v112_v9 = vrot.slane %v111_v5, 1 }
  0x29   :  { %v105_v10 = vrot.slane %v104_v6, 1  ;;  %v119_v11 = vrot.slane %v118_v7, 1  ;;  %v99_v12 = vadd.f32 %v98_v8, %v97_v4  ;;  %v113_v13 = vadd.f32 %v112_v9, %v111_v5 }
  0x2b   :  { %v106_v14 = vadd.f32 %v105_v10, %v104_v6  ;;  %v120_v15 = vadd.f32 %v119_v11, %v118_v7  ;;  %v121_v16 = vmul.f32 0.25, %v99_v12  ;;  %v123_v17 = vmul.f32 0.25, %v113_v13 }
  0x2d   :  { %v122_v18 = vmul.f32 0.25, %v106_v14  ;;  %v124_v19 = vmul.f32 0.25, %v120_v15  ;;  %v125_v20 = vadd.f32 1e-06, %v121_v16  ;;  %v127_v21 = vadd.f32 1e-06, %v123_v17 }
  0x2f   :  { %v126_v22 = vadd.f32 1e-06, %v122_v18  ;;  %v128_v23 = vadd.f32 1e-06, %v124_v19  ;;  %477 = vrsqrt.f32 %v125_v20  ;;  %v307_v19 = vld [vmem:[%s591_s5] sm:$0x3] }
  0x30   :  { %479 = vrsqrt.f32 %v127_v21  ;;  %v416_v20 = vld [vmem:[%s592_s7] sm:$0xff]  ;;  %v487_v21 = vmov 1983009808  }
  0x31   :  { %481 = vrsqrt.f32 %v126_v22  ;;  %v440_v22 = vunpack.c.l.s4 %v487_v21  ;;  %v418_v24 = vunpack.c.h.bf16 %v416_v20 }
  0x32   :  { %483 = vrsqrt.f32 %v128_v23  ;;  %v417_v23 = vunpack.c.l.bf16 %v416_v20 }
  0x33   :  { %v441_v26 = vunpack.c.0.s8 %v440_v22 }
  0x3c   :  { %v478_v27 = vpop.eup %477 }
  0x3d   :  { %v480_v28 = vpop.eup %479 }
  0x3e   :  { %v482_v29 = vpop.eup %481 }
  0x3f   :  { %v484_v32 = vpop.eup %483  ;;  %v137_v34 = vcombine.low %v478_v27, %v482_v29 }
  0x40   :  { %v138_v35 = vcombine.low %v480_v28, %v484_v32  ;;  %v421_v32 = vcombine.high %v417_v23, %v417_v23 }
  0x41   :  { %v141_v37 = vmul.f32 %v137_v34, %v83_v45  ;;  %v476_v45 = vld [vmem:[%s589_s3] sm:$0xff]  }
  0x42   :  { %v142_v38 = vmul.f32 %v138_v35, %v84_v46 }
  0x7d   :  { %v146_v36 = vpop.permute.xlu0 %145 }
  0x7e   :  { %v153_v39 = vrot.slane %v146_v36, %v152_v33 }
  0x80   :  { %v155_v41 = vmul.f32 %v153_v39, %v141_v37  ;;  %v156_v42 = vmul.f32 %v153_v39, %v142_v38  ;;  %v444_v38 = vsub.s32 %v441_v26, %v563_v31 }
  0x81   :  { %v160_v40 = vpop.permute.xlu0 %159  ;;  %v188_v46 = vpop.permute.xlu1 %187 }
  0x82   :  { %v167_v43 = vrot.slane %v160_v40, %v152_v33  ;;  %v422_v33 = vcombine.high %v418_v24, %v418_v24 }
  0x84   :  { %v169_v44 = vadd.f32 %v167_v43, %v155_v41  ;;  %v170_v47 = vadd.f32 %v167_v43, %v156_v42 }
  0x85   :  { %v193_v60 = vpop.permute.xlu1 %192  ;;  %v316_v25 = vpop.permute.xlu0 %315 }
  0x86   :  { %v173_v48 = vcombine.high %v169_v44, %v169_v44  ;;  %v174_v49 = vcombine.high %v170_v47, %v170_v47  ;;  %v177_v50 = vpack.c.bf16 %v169_v44, %v169_v44  ;;  %v179_v51 = vpack.c.bf16 %v170_v47, %v170_v47 }
  0x88   :  { %v178_v52 = vpack.c.bf16 %v173_v48, %v173_v48  ;;  %v180_v53 = vpack.c.bf16 %v174_v49, %v174_v49  ;;  %v206_v54 = vsel %vm204_vm1, %v177_v50, 0  ;;  %v212_v55 = vsel %vm204_vm1, %v179_v51, 0 }
  0x8a   :  { %461 = vmatprep.subr.msk.bf16.mxu0 %vm204_vm1, %v178_v52  ;;  %463 = vmatprep.subr.msk.bf16.mxu1 %vm204_vm1, %v180_v53 }
  0x8b   :  { %232 = vmatpush1.bf16.msra.mxu0 %v206_v54  ;;  %275 = vmatpush1.bf16.msra.mxu1 %v212_v55 }
  0x8e   :  { %462 = vmatmul.mubr.msk.bf16.vlgmr.msra.gmra.mxu0 %vm200_vm2, %v476_v45  ;;  %464 = vmatmul.mubr.msk.bf16.vlgmr.msra.gmra.mxu1 %vm200_vm2, %v476_v45 }
  0x8f   :  { %366 = vmatprep.mubr.bf16.mxu0 %v485_v0  ;;  %407 = vmatprep.mubr.bf16.mxu1 %v485_v0 }
 0x14e   :  { %v251_v56 = vpop.f32.mrf.mxu0  ;;  %v294_v57 = vpop.f32.mrf.mxu1 }
 0x14f   :  { %v252_v63 = vadd.f32 %v251_v56, %v188_v46  ;;  %v295_v1 = vadd.f32 %v294_v57, %v188_v46 }
 0x150   :  { %v253_v58 = vpop.f32.mrf.mxu0  ;;  %v296_v59 = vpop.f32.mrf.mxu1 }
 0x151   :  { %v254_v4 = vadd.f32 %v253_v58, %v188_v46  ;;  %v297_v5 = vadd.f32 %v296_v59, %v188_v46 }
 0x152   :  { %v255_v61 = vpop.f32.mrf.mxu0  ;;  %v298_v62 = vpop.f32.mrf.mxu1 }
 0x153   :  { %v256_v2 = vadd.f32 %v255_v61, %v193_v60  ;;  %v299_v3 = vadd.f32 %v298_v62, %v193_v60 }
 0x154   :  { %v257_v6 = vpop.f32.mrf.mxu0  ;;  %v300_v7 = vpop.f32.mrf.mxu1 }
 0x155   :  { %v303_v8 = vmul.f32 %v256_v2, %v252_v63  ;;  %v305_v9 = vmul.f32 %v299_v3, %v295_v1  ;;  %v258_v10 = vadd.f32 %v257_v6, %v193_v60  ;;  %v301_v0 = vadd.f32 %v300_v7, %v193_v60 }
 0x157   :  { %v309_v11 = vpack.c.bf16 %v303_v8, %v303_v8  ;;  %v311_v12 = vpack.c.bf16 %v305_v9, %v305_v9  ;;  %v304_v13 = vmul.f32 %v258_v10, %v254_v4  ;;  %v306_v14 = vmul.f32 %v301_v0, %v297_v5 }
 0x159   :  { %v310_v15 = vpack.c.bf16 %v304_v13, %v304_v13  ;;  %v312_v16 = vpack.c.bf16 %v306_v14, %v306_v14  ;;  %v323_v17 = vsel %vm41_vm0, %v309_v11, 0  ;;  %v329_v18 = vsel %vm41_vm0, %v311_v12, 0 }
 0x15b   :  { %465 = vmatprep.subr.msk.bf16.mxu0 %vm41_vm0, %v310_v15  ;;  %467 = vmatprep.subr.msk.bf16.mxu1 %vm41_vm0, %v312_v16 }
 0x15c   :  { %349 = vmatpush1.bf16.msra.mxu0 %v323_v17  ;;  %390 = vmatpush1.bf16.msra.mxu1 %v329_v18 }
 0x15f   :  { %466 = vmatmul.mubr.msk.bf16.vlgmr.msra.gmra.mxu0 %vm318_vm3, %v307_v19  ;;  %468 = vmatmul.mubr.msk.bf16.vlgmr.msra.gmra.mxu1 %vm318_vm3, %v307_v19 }
 0x21f   :  { %v368_v27 = vpop.f32.mrf.mxu0  ;;  %v409_v28 = vpop.f32.mrf.mxu1 }
 0x220   :  { %v369_v29 = vadd.f32 %v368_v27, %v316_v25  ;;  %v410_v30 = vadd.f32 %v409_v28, %v316_v25 }
 0x221   :  { %v370_v34 = vpop.f32.mrf.mxu0  ;;  %v411_v35 = vpop.f32.mrf.mxu1 }
 0x222   :  { %v371_v36 = vadd.f32 %v370_v34, %v316_v25  ;;  %v412_v37 = vadd.f32 %v411_v35, %v316_v25  ;;  %v425_v41 = vadd.f32 %v417_v23, %v369_v29  ;;  %v427_v42 = vadd.f32 %v418_v24, %v410_v30 }
 0x223   :  { %v372_v39 = vpop.f32.mrf.mxu0  ;;  %v413_v40 = vpop.f32.mrf.mxu1 }
 0x224   :  { %v426_v43 = vadd.f32 %v421_v32, %v371_v36  ;;  %v428_v44 = vadd.f32 %v422_v33, %v412_v37 }
 0x225   :  { %v373_v47 = vpop.f32.mrf.mxu0  ;;  %v414_v48 = vpop.f32.mrf.mxu1 }
 0x226   :  { %v469_v49 = vpack.c.bf16 %v426_v43, %v425_v41  ;;  %v470_v50 = vpack.c.bf16 %v428_v44, %v427_v42 }
 0x228   :  { %v445_v51 = vrot.slane %v469_v49, %v444_v38  ;;  %v452_v52 = vrot.slane %v470_v50, %v444_v38 }
 0x22a   :  { %v453_v53 = vcombine.low %v445_v51, %v452_v52 }
 0x22c   :  { %455 = vst [vmem:[%s593_s8] sm:$0xff] %v453_v53 }

// kernel: cwnet_fwd.55
= control target key start
LH: loop header
LB: loop body
LE: loop exit
PB: predicated region body
PF: predicated region fallthrough
CT: control target
= control target key end

     0   :  { %v95_v0 = vmov 0.0   ;;  %vm96_vm0 = vmmov 0   ;;  %v97_v2 = vmov 0   ;;  %vm30_vm1 = vcmask 130048   ;;  %s130_s0 = inlined_call_operand.vmem [shape: bf16[16,128], index: 0, kind: input, shape index: {}]   ;;  %s131_s1 = inlined_call_operand.vmem [shape: bf16[8,16], index: 1, kind: input, shape index: {}]   ;;  %s132_s2 = inlined_call_operand.vmem [shape: f32[8,1], index: 2, kind: input, shape index: {}]   ;;  %s133_s3 = inlined_call_operand.vmem [shape: bf16[8,128], index: 3, kind: output, shape index: {}]  }
   0x1   :  { %84 = vmatprep.subr.bf16.mxu0 %v95_v0  ;;  %v94_v1 = vld [vmem:[%s130_s0] sm:$0xff]   ;;  %86 = vmatprep.mubr.msk.bf16.mxu0 %vm96_vm0, %v95_v0 }
   0x2   :  { %93 = vset.pattern.permute.xlu0 %v97_v2  ;;  %v18_v3 = vld [vmem:[%s132_s2] sm:$0xff]  ;;  %85 = vmatpush3.bf16.msra.mxu0 %v94_v1 }
   0x3   :  { %v17_v4 = vld [vmem:[%s131_s1] sm:$0xf]  ;;  %21 = vperm.xlu0 %93, %v18_v3  }
   0x5   :  { %87 = vmatmul.mubr.msk.bf16.vlgmr.msra.gmra.mxu0 %vm30_vm1, %v17_v4 }
  0x7e   :  { %v22_v5 = vpop.permute.xlu0 %21 }
  0xc5   :  { %v68_v6 = vpop.f32.mrf.mxu0 }
  0xc6   :  { %v69_v7 = vadd.f32 %v68_v6, %v22_v5 }
  0xc7   :  { %v88_v8 = vpop.f32.mrf.mxu0 }
  0xc8   :  { %v74_v9 = vpack.c.bf16 %v69_v7, %v69_v7 }
  0xc9   :  { %v71_v10 = vpop.f32.mrf.mxu0 }
  0xca   :  { %75 = vst [vmem:[%s133_s3] sm:$0xf] %v74_v9 }
  0xcb   :  { %v89_v11 = vpop.f32.mrf.mxu0 }

// kernel: cwnet_fwd.58
= control target key start
LH: loop header
LB: loop body
LE: loop exit
PB: predicated region body
PF: predicated region fallthrough
CT: control target
= control target key end

     0   :  { %vm62_vm0 = vcmask 1043456   ;;  %v148_v0 = vmov 0.0   ;;  %vm149_vm1 = vmmov 0   ;;  %v150_v3 = vmov 0   ;;  %s195_s0 = inlined_call_operand.vmem [shape: bf16[72,96], index: 0, kind: input, shape index: {}]   ;;  %s196_s2 = inlined_call_operand.vmem [shape: f32[8,1], index: 2, kind: input, shape index: {}]   ;;  %s197_s1 = inlined_call_operand.vmem [shape: bf16[8,72], index: 1, kind: input, shape index: {}]   ;;  %s198_s3 = inlined_call_operand.vmem [shape: bf16[8,96], index: 3, kind: output, shape index: {}]  }
   0x1   :  { %125 = vmatprep.subr.bf16.mxu0 %v148_v0  ;;  %v143_v1 = vld [vmem:[%s195_s0 + $0x20] ss:$0 sps:$4 sm:$0xff]   ;;  %135 = vmatprep.mubr.msk.bf16.mxu0 %vm149_vm1, %v148_v0  ;;  %v144_v4 = vld [vmem:[%s195_s0 + $0x18] sm:$0xff]   ;;  %v145_v6 = vld [vmem:[%s195_s0 + $0x10] sm:$0xff]   ;;  %vm58_vm2 = vcmask 588800   ;;  %vm107_vm3 = vcmask 781312  }
   0x2   :  { %v64_v2 = vsel %vm62_vm0, %v143_v1, 0  ;;  %142 = vset.pattern.permute.xlu0 %v150_v3  ;;  %v25_v5 = vld [vmem:[%s196_s2] sm:$0xff]  ;;  %v146_v7 = vld [vmem:[%s195_s0 + $0x8] sm:$0xff]  }
   0x3   :  { %126 = vmatpush3.bf16.msra.mxu0 %v64_v2  ;;  %28 = vperm.xlu0 %142, %v25_v5   ;;  %v147_v8 = vld [vmem:[%s195_s0] sm:$0xff]  }
   0x4   :  { %127 = vmatprep.subr.bf16.mxu0 %v148_v0  ;;  %v24_v9 = vld [vmem:[%s197_s1] sm:$0xf] }
   0x7   :  { %128 = vmatpush3.bf16.msra.mxu0 %v144_v4 }
   0x8   :  { %129 = vmatprep.subr.bf16.mxu0 %v148_v0 }
   0xb   :  { %130 = vmatpush3.bf16.msra.mxu0 %v145_v6 }
   0xc   :  { %131 = vmatprep.subr.bf16.mxu0 %v148_v0 }
   0xf   :  { %132 = vmatpush3.bf16.msra.mxu0 %v146_v7 }
  0x10   :  { %133 = vmatprep.subr.bf16.mxu0 %v148_v0 }
  0x13   :  { %134 = vmatpush3.bf16.msra.mxu0 %v147_v8 }
  0x16   :  { %136 = vmatmul.mubr.msk.bf16.vlgmr.msra.gmra.mxu0 %vm58_vm2, %v24_v9 }
  0x7e   :  { %v29_v10 = vpop.permute.xlu0 %28 }
  0xd6   :  { %v100_v11 = vpop.f32.mrf.mxu0 }
  0xd7   :  { %v101_v12 = vadd.f32 %v100_v11, %v29_v10 }
  0xd8   :  { %v137_v13 = vpop.f32.mrf.mxu0 }
  0xd9   :  { %v106_v14 = vpack.c.bf16 %v101_v12, %v101_v12 }
  0xda   :  { %v103_v15 = vpop.f32.mrf.mxu0 }
  0xdb   :  { %108 = vst.msk [vmem:[%s198_s3] sm:$0xf] %vm107_vm3, %v106_v14 }
  0xdc   :  { %v138_v16 = vpop.f32.mrf.mxu0 }

// kernel: cwnet_fwd.56
= control target key start
LH: loop header
LB: loop body
LE: loop exit
PB: predicated region body
PF: predicated region fallthrough
CT: control target
= control target key end

     0   :  { %v216_v0 = vmov 0   ;;  %vm128_vm0 = vcmask 588800   ;;  %vm132_vm1 = vcmask 1043456   ;;  %vm177_vm2 = vcmask 257024   ;;  %s285_s0 = inlined_call_operand.vmem [shape: bf16[200,32], index: 0, kind: input, shape index: {}]   ;;  %s286_s1 = inlined_call_operand.vmem [shape: bf16[8,200], index: 1, kind: input, shape index: {}]   ;;  %s287_s2 = inlined_call_operand.vmem [shape: f32[8,1], index: 2, kind: input, shape index: {}]   ;;  %s288_s3 = inlined_call_operand.vmem [shape: bf16[8,32], index: 3, kind: output, shape index: {}]  }
   0x1   :  { %136 = vmatprep.subr.bf16.mxu0 %v216_v0  ;;  %v201_v1 = vld [vmem:[%s285_s0 + $0x38] sm:$0xff]   ;;  %200 = vset.pattern.permute.xlu0 %v216_v0  ;;  %v202_v2 = vld [vmem:[%s285_s0 + $0x30] sm:$0xff]   ;;  %v203_v3 = vld [vmem:[%s285_s0 + $0x28] sm:$0xff]  }
   0x2   :  { %137 = vmatpush1.bf16.msra.mxu0 %v201_v1  ;;  %v204_v4 = vld [vmem:[%s285_s0 + $0x20] sm:$0xff]   ;;  %v205_v8 = vld [vmem:[%s285_s0 + $0x18] sm:$0xff]   ;;  %v206_v9 = vld [vmem:[%s285_s0 + $0x10] sm:$0xff]  }
   0x3   :  { %138 = vmatprep.subr.bf16.mxu0 %v216_v0  ;;  %v40_v5 = vld [vmem:[%s286_s1] sm:$0xff]  ;;  %v207_v10 = vld [vmem:[%s285_s0 + $0x8] sm:$0xff]   ;;  %v210_v14 = vld [vmem:[%s285_s0 + $0x58] sm:$0xff]  }
   0x4   :  { %v184_v6 = vcombine.high %v40_v5, %v40_v5  ;;  %v41_v7 = vld [vmem:[%s287_s2] sm:$0xff]  ;;  %v211_v15 = vld [vmem:[%s285_s0 + $0x50] sm:$0xff]   ;;  %v212_v16 = vld [vmem:[%s285_s0 + $0x48] sm:$0xff]   ;;  %v183_v18 = vcombine.low %v40_v5, %v40_v5 }
   0x5   :  { %44 = vperm.xlu0 %200, %v41_v7   ;;  %v208_v11 = vld [vmem:[%s285_s0] sm:$0xff]  }
   0x6   :  { %139 = vmatpush1.bf16.msra.mxu0 %v202_v2  ;;  %198 = vmatprep.mubr.msk.bf16.mxu0 %vm128_vm0, %v184_v6  ;;  %v209_v12 = vld [vmem:[%s285_s0 + $0x60] ss:$0 sps:$4 sm:$0xff]  }
   0x7   :  { %140 = vmatprep.subr.bf16.mxu0 %v216_v0  ;;  %v134_v13 = vsel %vm132_vm1, %v209_v12, 0  ;;  %v213_v17 = vld [vmem:[%s285_s0 + $0x40] sm:$0xff]  }
   0xa   :  { %141 = vmatpush1.bf16.msra.mxu0 %v203_v3 }
   0xb   :  { %142 = vmatprep.subr.bf16.mxu0 %v216_v0 }
   0xe   :  { %143 = vmatpush1.bf16.msra.mxu0 %v204_v4 }
   0xf   :  { %144 = vmatprep.subr.bf16.mxu0 %v216_v0 }
  0x12   :  { %145 = vmatpush1.bf16.msra.mxu0 %v205_v8 }
  0x13   :  { %146 = vmatprep.subr.bf16.mxu0 %v216_v0 }
  0x16   :  { %147 = vmatpush1.bf16.msra.mxu0 %v206_v9 }
  0x17   :  { %148 = vmatprep.subr.bf16.mxu0 %v216_v0 }
  0x1a   :  { %149 = vmatpush1.bf16.msra.mxu0 %v207_v10 }
  0x1b   :  { %150 = vmatprep.subr.bf16.mxu0 %v216_v0 }
  0x1e   :  { %151 = vmatpush1.bf16.msra.mxu0 %v208_v11 }
  0x1f   :  { %158 = vmatprep.subr.bf16.mxu0 %v216_v0 }
  0x22   :  { %159 = vmatpush2.bf16.msra.mxu0 %v134_v13 }
  0x23   :  { %160 = vmatprep.subr.bf16.mxu0 %v216_v0 }
  0x26   :  { %161 = vmatpush2.bf16.msra.mxu0 %v210_v14 }
  0x27   :  { %162 = vmatprep.subr.bf16.mxu0 %v216_v0 }
  0x2a   :  { %163 = vmatpush2.bf16.msra.mxu0 %v211_v15 }
  0x2b   :  { %164 = vmatprep.subr.bf16.mxu0 %v216_v0 }
  0x2e   :  { %165 = vmatpush2.bf16.msra.mxu0 %v212_v16 }
  0x2f   :  { %166 = vmatprep.subr.bf16.mxu0 %v216_v0 }
  0x32   :  { %167 = vmatpush2.bf16.msra.mxu0 %v213_v17 }
  0x35   :  { %169 = vmatmul.mubr.bf16.vlgmr.msra.gmra.mxu0 %v183_v18 }
  0x80   :  { %v45_v19 = vpop.permute.xlu0 %44 }
  0xf5   :  { %v170_v20 = vpop.f32.mrf.mxu0 }
  0xf6   :  { %v171_v21 = vadd.f32 %v170_v20, %v45_v19 }
  0xf7   :  { %v172_v22 = vpop.f32.mrf.mxu0 }
  0xf8   :  { %v176_v23 = vpack.c.bf16 %v171_v21, %v171_v21 }
  0xf9   :  { %v173_v24 = vpop.f32.mrf.mxu0 }
  0xfa   :  { %178 = vst.msk [vmem:[%s288_s3] sm:$0xf] %vm177_vm2, %v176_v23 }
  0xfb   :  { %v174_v25 = vpop.f32.mrf.mxu0 }

// kernel: cwnet_fwd.59
= control target key start
LH: loop header
LB: loop body
LE: loop exit
PB: predicated region body
PF: predicated region fallthrough
CT: control target
= control target key end

     0   :  { %vm62_vm0 = vcmask 1043456   ;;  %v152_v0 = vmov 0.0   ;;  %vm153_vm1 = vmmov 0   ;;  %v154_v3 = vmov 0   ;;  %s202_s0 = inlined_call_operand.vmem [shape: bf16[72,32], index: 0, kind: input, shape index: {}]   ;;  %s203_s2 = inlined_call_operand.vmem [shape: f32[3,1], index: 2, kind: input, shape index: {}]   ;;  %s204_s1 = inlined_call_operand.vmem [shape: bf16[3,72], index: 1, kind: input, shape index: {}]   ;;  %s205_s3 = inlined_call_operand.vmem [shape: bf16[3,32], index: 3, kind: output, shape index: {}]  }
   0x1   :  { %129 = vmatprep.subr.bf16.mxu0 %v152_v0  ;;  %v147_v1 = vld [vmem:[%s202_s0 + $0x20] ss:$0 sps:$4 sm:$0xff]   ;;  %139 = vmatprep.mubr.msk.bf16.mxu0 %vm153_vm1, %v152_v0  ;;  %v148_v4 = vld [vmem:[%s202_s0 + $0x18] sm:$0xff]   ;;  %v149_v6 = vld [vmem:[%s202_s0 + $0x10] sm:$0xff]   ;;  %vm58_vm2 = vcmask 588800   ;;  %vm107_vm3 = vcmask 254976  }
   0x2   :  { %v64_v2 = vsel %vm62_vm0, %v147_v1, 0  ;;  %146 = vset.pattern.permute.xlu0 %v154_v3  ;;  %v25_v5 = vld [vmem:[%s203_s2] sm:$0x7]  ;;  %v150_v7 = vld [vmem:[%s202_s0 + $0x8] sm:$0xff]   ;;  %vm108_vm4 = vsmask.f32 1280 }
   0x3   :  { %130 = vmatpush3.bf16.msra.mxu0 %v64_v2  ;;  %28 = vperm.xlu0 %146, %v25_v5   ;;  %v151_v8 = vld [vmem:[%s202_s0] sm:$0xff]   ;;  %vm109_vm5 = vmand %vm107_vm3, %vm108_vm4 }
   0x4   :  { %131 = vmatprep.subr.bf16.mxu0 %v152_v0  ;;  %v24_v9 = vld [vmem:[%s204_s1] sm:$0x3] }
   0x5   :  { %v110_v13 = vld [vmem:[%s205_s3] sm:$0x3] }
   0x7   :  { %132 = vmatpush3.bf16.msra.mxu0 %v148_v4 }
   0x8   :  { %133 = vmatprep.subr.bf16.mxu0 %v152_v0 }
   0xb   :  { %134 = vmatpush3.bf16.msra.mxu0 %v149_v6 }
   0xc   :  { %135 = vmatprep.subr.bf16.mxu0 %v152_v0 }
   0xf   :  { %136 = vmatpush3.bf16.msra.mxu0 %v150_v7 }
  0x10   :  { %137 = vmatprep.subr.bf16.mxu0 %v152_v0 }
  0x13   :  { %138 = vmatpush3.bf16.msra.mxu0 %v151_v8 }
  0x16   :  { %140 = vmatmul.mubr.msk.bf16.vlgmr.msra.gmra.mxu0 %vm58_vm2, %v24_v9 }
  0x7e   :  { %v29_v10 = vpop.permute.xlu0 %28 }
  0xd6   :  { %v100_v11 = vpop.f32.mrf.mxu0 }
  0xd7   :  { %v101_v12 = vadd.f32 %v100_v11, %v29_v10 }
  0xd8   :  { %v141_v14 = vpop.f32.mrf.mxu0 }
  0xd9   :  { %v106_v15 = vpack.c.bf16 %v101_v12, %v101_v12 }
  0xda   :  { %v103_v16 = vpop.f32.mrf.mxu0 }
  0xdb   :  { %v111_v17 = vsel %vm109_vm5, %v106_v15, %v110_v13 }
  0xdc   :  { %112 = vst [vmem:[%s205_s3] sm:$0x3] %v111_v17  ;;  %v142_v18 = vpop.f32.mrf.mxu0 }

// kernel: cwnet_fwd.60
= control target key start
LH: loop header
LB: loop body
LE: loop exit
PB: predicated region body
PF: predicated region fallthrough
CT: control target
= control target key end

     0   :  { %v142_v0 = vmov 0.0   ;;  %vm143_vm0 = vmmov 0   ;;  %v144_v2 = vmov 0   ;;  %vm36_vm1 = vcmask 130048   ;;  %s193_s0 = inlined_call_operand.vmem [shape: bf16[16,96], index: 0, kind: input, shape index: {}]   ;;  %s194_s1 = inlined_call_operand.vmem [shape: bf16[8,16], index: 1, kind: input, shape index: {}]   ;;  %s195_s2 = inlined_call_operand.vmem [shape: f32[8,1], index: 2, kind: input, shape index: {}]   ;;  %s196_s4 = inlined_call_operand.vmem [shape: f32[8,1], index: 4, kind: input, shape index: {}]   ;;  %s197_s3 = inlined_call_operand.vmem [shape: f32[8,1], index: 3, kind: input, shape index: {}]   ;;  %s198_s5 = inlined_call_operand.vmem [shape: bf16[8,96], index: 5, kind: output, shape index: {}]  }
   0x1   :  { %128 = vmatprep.subr.bf16.mxu0 %v142_v0  ;;  %v139_v1 = vld [vmem:[%s193_s0] sm:$0xff]   ;;  %130 = vmatprep.mubr.msk.bf16.mxu0 %vm143_vm0, %v142_v0  ;;  %vm82_vm2 = vcmask 785408   ;;  %vm118_vm3 = vcmask 781312  }
   0x2   :  { %137 = vset.pattern.permute.xlu0 %v144_v2  ;;  %v24_v3 = vld [vmem:[%s195_s2] sm:$0xff]  ;;  %138 = vset.pattern.permute.xlu1 %v144_v2 }
   0x3   :  { %129 = vmatpush3.bf16.msra.mxu0 %v139_v1  ;;  %v23_v4 = vld [vmem:[%s194_s1] sm:$0xf]  ;;  %27 = vperm.xlu0 %137, %v24_v3  }
   0x4   :  { %v81_v5 = vld [vmem:[%s196_s4] sm:$0xff] }
   0x5   :  { %v80_v6 = vld [vmem:[%s197_s3] sm:$0xff]  ;;  %113 = vperm.xlu1 %138, %v81_v5  }
   0x6   :  { %131 = vmatmul.mubr.msk.bf16.vlgmr.msra.gmra.mxu0 %vm36_vm1, %v23_v4 }
   0x7   :  { %107 = vperm.xlu0 %137, %v80_v6  }
  0x7e   :  { %v28_v7 = vpop.permute.xlu0 %27 }
  0x80   :  { %v114_v35 = vpop.permute.xlu1 %113 }
  0x82   :  { %v108_v34 = vpop.permute.xlu0 %107 }
  0xc6   :  { %v74_v8 = vpop.f32.mrf.mxu0 }
  0xc7   :  { %v75_v9 = vadd.f32 %v74_v8, %v28_v7 }
  0xc8   :  { %v132_v10 = vpop.f32.mrf.mxu0 }
  0xc9   :  { %v83_v11 = vsel %vm82_vm2, %v75_v9, 0.0 }
  0xca   :  { %v84_v12 = vrot.slane %v83_v11, 4  ;;  %v77_v13 = vpop.f32.mrf.mxu0 }
  0xcc   :  { %v85_v14 = vadd.f32 %v84_v12, %v83_v11  ;;  %v133_v15 = vpop.f32.mrf.mxu0 }
  0xce   :  { %v86_v16 = vrot.slane %v85_v14, 2 }
  0xd0   :  { %v87_v17 = vadd.f32 %v86_v16, %v85_v14 }
  0xd2   :  { %v88_v18 = vrot.slane %v87_v17, 1 }
  0xd4   :  { %v89_v19 = vadd.f32 %v88_v18, %v87_v17 }
  0xd6   :  { %v91_v20 = vmul.f32 0.125, %v89_v19 }
  0xd8   :  { %v92_v21 = vsub.f32 %v75_v9, %v91_v20 }
  0xda   :  { %v93_v22 = vmul.f32 %v92_v21, %v92_v21 }
  0xdc   :  { %v94_v23 = vsel %vm82_vm2, %v93_v22, 0.0 }
  0xdd   :  { %v95_v24 = vrot.slane %v94_v23, 4 }
  0xdf   :  { %v96_v25 = vadd.f32 %v95_v24, %v94_v23 }
  0xe1   :  { %v97_v26 = vrot.slane %v96_v25, 2 }
  0xe3   :  { %v98_v27 = vadd.f32 %v97_v26, %v96_v25 }
  0xe5   :  { %v99_v28 = vrot.slane %v98_v27, 1 }
  0xe7   :  { %v100_v29 = vadd.f32 %v99_v28, %v98_v27 }
  0xe9   :  { %v101_v30 = vmul.f32 0.125, %v100_v29 }
  0xeb   :  { %v102_v31 = vadd.f32 1e-05, %v101_v30 }
  0xed   :  { %140 = vrsqrt.f32 %v102_v31 }
  0xfa   :  { %v141_v32 = vpop.eup %140 }
  0xfb   :  { %v104_v33 = vmul.f32 %v141_v32, %v92_v21 }
  0xfd   :  { %v110_v36 = vmul.f32 %v108_v34, %v104_v33 }
  0xff   :  { %v116_v37 = vadd.f32 %v114_v35, %v110_v36 }
 0x101   :  { %v117_v38 = vpack.c.bf16 %v116_v37, %v116_v37 }
 0x103   :  { %119 = vst.msk [vmem:[%s198_s5] sm:$0xf] %vm118_vm3, %v117_v38 }

// kernel: cwnet_fwd.61
= control target key start
LH: loop header
LB: loop body
LE: loop exit
PB: predicated region body
PF: predicated region fallthrough
CT: control target
= control target key end

     0   :  { %v310_v0 = vmov 0   ;;  %vm108_vm0 = vcmask 64512   ;;  %vm34_vm1 = vcmask 785408   ;;  %vm115_vm2 = vcmask 1043456   ;;  %s399_s1 = inlined_call_operand.vmem [shape: f32[8,1], index: 1, kind: input, shape index: {}]   ;;  %s400_s2 = inlined_call_operand.vmem [shape: f32[8,1], index: 2, kind: input, shape index: {}]   ;;  %s401_s4 = inlined_call_operand.vmem [shape: f32[32,1], index: 4, kind: input, shape index: {}]   ;;  %s402_s3 = inlined_call_operand.vmem [shape: bf16[32,8], index: 3, kind: input, shape index: {}]   ;;  %s403_s6 = inlined_call_operand.vmem [shape: f32[8,1], index: 6, kind: input, shape index: {}]   ;;  %s404_s0 = inlined_call_operand.vmem [shape: bf16[8,96], index: 0, kind: input, shape index: {}, may-alias: {0,7}]   ;;  %s405_s5 = inlined_call_operand.vmem [shape: bf16[8,32], index: 5, kind: input, shape index: {}]   ;;  %s406_s7 = inlined_call_operand.vmem [shape: bf16[8,96], index: 7, kind: input, shape index: {}, may-alias: {0,7}]   ;;  %s407_s8 = inlined_call_operand.vmem [shape: bf16[8,96], index: 8, kind: output, shape index: {}]  }
   0x1   :  { %296 = vset.pattern.permute.xlu0 %v310_v0  ;;  %v31_v1 = vld [vmem:[%s399_s1] sm:$0xff]  ;;  %297 = vset.pattern.permute.xlu1 %v310_v0  ;;  %v76_v5 = vld [vmem:[%s401_s4 + $0x10] sm:$0xff]  ;;  %v77_v7 = vld [vmem:[%s401_s4 + $0x18] sm:$0xff]  ;;  %v311_v39 = vmov 0.0   ;;  %vm312_vm3 = vmmov 0   ;;  %vm213_vm4 = vcmask 261120  }
   0x2   :  { %59 = vperm.xlu0 %296, %v31_v1   ;;  %v32_v2 = vld [vmem:[%s400_s2] sm:$0xff]  ;;  %90 = vperm.xlu1 %297, %v76_v5   ;;  %v75_v8 = vld [vmem:[%s401_s4 + $0x8] sm:$0xff]  ;;  %vm261_vm5 = vcmask 781312  }
   0x3   :  { %v74_v3 = vld [vmem:[%s401_s4] sm:$0xff]  ;;  %v299_v38 = vld [vmem:[%s402_s3 + $0x8] sm:$0xff]   ;;  %284 = vmatprep.subr.bf16.mxu1 %v311_v39  ;;  %288 = vmatprep.mubr.msk.bf16.mxu1 %vm312_vm3, %v311_v39 }
   0x4   :  { %v298_v4 = vld [vmem:[%s402_s3] sm:$0xff]  }
   0x5   :  { %280 = vmatprep.mubr.msk.bf16.mxu0 %vm108_vm0, %v298_v4  ;;  %v205_v6 = vld [vmem:[%s403_s6] sm:$0xff] }
   0x6   :  { %65 = vperm.xlu0 %296, %v32_v2   ;;  %95 = vperm.xlu1 %297, %v77_v7   ;;  %v30_v9 = vld [vmem:[%s404_s0] sm:$0xf] }
   0x7   :  { %v33_v10 = vunpack.c.l.bf16 %v30_v9 }
   0x9   :  { %v35_v11 = vsel %vm34_vm1, %v33_v10, 0.0 }
   0xa   :  { %80 = vperm.xlu0 %296, %v74_v3   ;;  %85 = vperm.xlu1 %297, %v75_v8   ;;  %v36_v12 = vrot.slane %v35_v11, 4 }
   0xc   :  { %v37_v13 = vadd.f32 %v36_v12, %v35_v11 }
   0xe   :  { %210 = vperm.xlu0 %296, %v205_v6   ;;  %v38_v14 = vrot.slane %v37_v13, 2 }
  0x10   :  { %v39_v15 = vadd.f32 %v38_v14, %v37_v13 }
  0x12   :  { %v40_v16 = vrot.slane %v39_v15, 1 }
  0x14   :  { %v41_v17 = vadd.f32 %v40_v16, %v39_v15 }
  0x16   :  { %v43_v18 = vmul.f32 0.125, %v41_v17 }
  0x18   :  { %v44_v19 = vsub.f32 %v33_v10, %v43_v18 }
  0x1a   :  { %v45_v20 = vmul.f32 %v44_v19, %v44_v19 }
  0x1c   :  { %v46_v21 = vsel %vm34_vm1, %v45_v20, 0.0 }
  0x1d   :  { %v47_v22 = vrot.slane %v46_v21, 4 }
  0x1f   :  { %v48_v23 = vadd.f32 %v47_v22, %v46_v21 }
  0x21   :  { %v49_v24 = vrot.slane %v48_v23, 2 }
  0x23   :  { %v50_v25 = vadd.f32 %v49_v24, %v48_v23 }
  0x25   :  { %v51_v26 = vrot.slane %v50_v25, 1 }
  0x27   :  { %v52_v27 = vadd.f32 %v51_v26, %v50_v25  ;;  %v204_v26 = vld [vmem:[%s405_s5] sm:$0xf] }
  0x29   :  { %v53_v28 = vmul.f32 0.125, %v52_v27  ;;  %v257_v27 = vld [vmem:[%s406_s7] sm:$0xf] }
  0x2b   :  { %v54_v29 = vadd.f32 1e-05, %v53_v28  ;;  %v258_v28 = vunpack.c.l.bf16 %v257_v27 }
  0x2d   :  { %300 = vrsqrt.f32 %v54_v29 }
  0x3a   :  { %v301_v30 = vpop.eup %300 }
  0x3b   :  { %v56_v31 = vmul.f32 %v301_v30, %v44_v19 }
  0x7d   :  { %v60_v32 = vpop.permute.xlu0 %59  ;;  %v91_v40 = vpop.permute.xlu1 %90 }
  0x7e   :  { %v62_v33 = vmul.f32 %v60_v32, %v56_v31 }
  0x81   :  { %v66_v34 = vpop.permute.xlu0 %65  ;;  %v96_v41 = vpop.permute.xlu1 %95 }
  0x82   :  { %v68_v35 = vadd.f32 %v66_v34, %v62_v33 }
  0x84   :  { %v69_v36 = vpack.c.bf16 %v68_v35, %v68_v35 }
  0x85   :  { %v81_v44 = vpop.permute.xlu0 %80  ;;  %v86_v52 = vpop.permute.xlu1 %85 }
  0x86   :  { %292 = vmatprep.subr.msk.bf16.mxu0 %vm115_vm2, %v69_v36  ;;  %v117_v37 = vsel %vm115_vm2, %v69_v36, 0 }
  0x87   :  { %279 = vmatpush3.bf16.msra.mxu0 %v117_v37 }
  0x89   :  { %v211_v29 = vpop.permute.xlu0 %210 }
  0x8a   :  { %281 = vmatmul.mubr.msk.bf16.vlgmr.msra.gmra.mxu0 %vm108_vm0, %v299_v38 }
 0x14a   :  { %v282_v42 = vpop.f32.mrf.mxu0 }
 0x14b   :  { %v162_v43 = vadd.f32 %v282_v42, %v91_v40 }
 0x14c   :  { %v153_v45 = vpop.f32.mrf.mxu0 }
 0x14d   :  { %v170_v46 = vmul.f32 %v162_v43, %v162_v43  ;;  %v154_v47 = vadd.f32 %v153_v45, %v81_v44 }
 0x14e   :  { %v283_v48 = vpop.f32.mrf.mxu0 }
 0x14f   :  { %v174_v49 = vmul.f32 %v170_v46, %v162_v43  ;;  %v168_v50 = vmul.f32 %v154_v47, %v154_v47  ;;  %v165_v51 = vadd.f32 %v283_v48, %v96_v41 }
 0x150   :  { %v156_v53 = vpop.f32.mrf.mxu0 }
 0x151   :  { %v178_v54 = vmul.f32 0.044715, %v174_v49  ;;  %v172_v55 = vmul.f32 %v168_v50, %v154_v47  ;;  %v171_v56 = vmul.f32 %v165_v51, %v165_v51  ;;  %v157_v57 = vadd.f32 %v156_v53, %v86_v52 }
 0x153   :  { %v182_v58 = vadd.f32 %v178_v54, %v162_v43  ;;  %v176_v59 = vmul.f32 0.044715, %v172_v55  ;;  %v175_v60 = vmul.f32 %v171_v56, %v165_v51  ;;  %v169_v61 = vmul.f32 %v157_v57, %v157_v57 }
 0x155   :  { %v186_v62 = vmul.f32 0.7978846, %v182_v58  ;;  %v180_v63 = vadd.f32 %v176_v59, %v154_v47  ;;  %v179_v0 = vmul.f32 0.044715, %v175_v60  ;;  %v173_v1 = vmul.f32 %v169_v61, %v157_v57 }
 0x157   :  { %v184_v2 = vmul.f32 0.7978846, %v180_v63  ;;  %v183_v3 = vadd.f32 %v179_v0, %v165_v51  ;;  %v177_v4 = vmul.f32 0.044715, %v173_v1  ;;  %302 = vtanh.f32 %v186_v62 }
 0x159   :  { %304 = vtanh.f32 %v184_v2  ;;  %v187_v5 = vmul.f32 0.7978846, %v183_v3  ;;  %v181_v6 = vadd.f32 %v177_v4, %v157_v57 }
 0x15b   :  { %v185_v7 = vmul.f32 0.7978846, %v181_v6  ;;  %306 = vtanh.f32 %v187_v5 }
 0x15d   :  { %308 = vtanh.f32 %v185_v7 }
 0x164   :  { %v303_v8 = vpop.eup %302 }
 0x165   :  { %v194_v9 = vadd.f32 1.0, %v303_v8 }
 0x166   :  { %v305_v10 = vpop.eup %304 }
 0x167   :  { %v198_v13 = vmul.f32 0.5, %v194_v9  ;;  %v192_v14 = vadd.f32 1.0, %v305_v10 }
 0x168   :  { %v307_v11 = vpop.eup %306 }
 0x169   :  { %v195_v12 = vadd.f32 1.0, %v307_v11  ;;  %v202_v18 = vmul.f32 %v198_v13, %v162_v43  ;;  %v196_v20 = vmul.f32 0.5, %v192_v14 }
 0x16a   :  { %v309_v15 = vpop.eup %308 }
 0x16b   :  { %v199_v16 = vmul.f32 0.5, %v195_v12  ;;  %v193_v17 = vadd.f32 1.0, %v309_v15  ;;  %v200_v24 = vmul.f32 %v196_v20, %v154_v47 }
 0x16d   :  { %v203_v19 = vmul.f32 %v199_v16, %v165_v51  ;;  %v197_v21 = vmul.f32 0.5, %v193_v17 }
 0x16f   :  { %v207_v22 = vpack.c.bf16 %v203_v19, %v202_v18  ;;  %v201_v23 = vmul.f32 %v197_v21, %v157_v57 }
 0x171   :  { %285 = vmatpush3.bf16.msra.mxu1 %v207_v22  ;;  %v206_v25 = vpack.c.bf16 %v201_v23, %v200_v24 }
 0x172   :  { %286 = vmatprep.subr.bf16.mxu1 %v311_v39 }
 0x175   :  { %287 = vmatpush3.bf16.msra.mxu1 %v206_v25 }
 0x178   :  { %289 = vmatmul.mubr.msk.bf16.vlgmr.msra.gmra.mxu1 %vm213_vm4, %v204_v26 }
 0x238   :  { %v251_v30 = vpop.f32.mrf.mxu1 }
 0x239   :  { %v252_v31 = vadd.f32 %v251_v30, %v211_v29 }
 0x23a   :  { %v290_v32 = vpop.f32.mrf.mxu1 }
 0x23b   :  { %v259_v33 = vadd.f32 %v258_v28, %v252_v31 }
 0x23c   :  { %v254_v34 = vpop.f32.mrf.mxu1 }
 0x23d   :  { %v260_v35 = vpack.c.bf16 %v259_v33, %v259_v33 }
 0x23e   :  { %v291_v36 = vpop.f32.mrf.mxu1 }
 0x23f   :  { %262 = vst.msk [vmem:[%s407_s8] sm:$0xf] %vm261_vm5, %v260_v35 }

// kernel: cwnet_fwd.62
= control target key start
LH: loop header
LB: loop body
LE: loop exit
PB: predicated region body
PF: predicated region fallthrough
CT: control target
= control target key end

     0   :  { %v298_v0 = vmov 0   ;;  %vm137_vm0 = vcmask 588800   ;;  %vm141_vm1 = vcmask 1043456   ;;  %v299_v20 = vmov 0.0   ;;  %s393_s0 = inlined_call_operand.vmem [shape: bf16[200,128], index: 0, kind: input, shape index: {}]   ;;  %s394_s1 = inlined_call_operand.vmem [shape: bf16[8,200], index: 1, kind: input, shape index: {}]   ;;  %s395_s2 = inlined_call_operand.vmem [shape: f32[8,1], index: 2, kind: input, shape index: {}]   ;;  %s396_s4 = inlined_call_operand.vmem [shape: f32[8,1], index: 4, kind: input, shape index: {}]   ;;  %s397_s3 = inlined_call_operand.vmem [shape: bf16[8,4], index: 3, kind: input, shape index: {}]   ;;  %s398_s5 = inlined_call_operand.vmem [shape: bf16[8,128], index: 5, kind: input, shape index: {}]   ;;  %s399_s6 = inlined_call_operand.vmem [shape: bf16[8,128], index: 6, kind: output, shape index: {}]  }
   0x1   :  { %145 = vmatprep.subr.bf16.mxu0 %v298_v0  ;;  %v283_v1 = vld [vmem:[%s393_s0 + $0x38] sm:$0xff]   ;;  %282 = vset.pattern.permute.xlu0 %v298_v0  ;;  %v284_v2 = vld [vmem:[%s393_s0 + $0x30] sm:$0xff]   ;;  %v285_v3 = vld [vmem:[%s393_s0 + $0x28] sm:$0xff]   ;;  %vm300_vm2 = vmmov 0   ;;  %vm201_vm3 = vcmask 1041408   ;;  %vm197_vm4 = vcmask 31744  }
   0x2   :  { %146 = vmatpush1.bf16.msra.mxu0 %v283_v1  ;;  %v286_v4 = vld [vmem:[%s393_s0 + $0x20] sm:$0xff]   ;;  %v287_v8 = vld [vmem:[%s393_s0 + $0x18] sm:$0xff]   ;;  %v288_v10 = vld [vmem:[%s393_s0 + $0x10] sm:$0xff]   ;;  %273 = vmatprep.subr.bf16.mxu1 %v299_v20 }
   0x3   :  { %147 = vmatprep.subr.bf16.mxu0 %v298_v0  ;;  %v49_v5 = vld [vmem:[%s394_s1] sm:$0xff]  ;;  %v289_v11 = vld [vmem:[%s393_s0 + $0x8] sm:$0xff]   ;;  %v292_v15 = vld [vmem:[%s393_s0 + $0x58] sm:$0xff]   ;;  %275 = vmatprep.mubr.msk.bf16.mxu1 %vm300_vm2, %v299_v20 }
   0x4   :  { %v255_v6 = vcombine.high %v49_v5, %v49_v5  ;;  %v50_v7 = vld [vmem:[%s395_s2] sm:$0xff]  ;;  %v293_v16 = vld [vmem:[%s393_s0 + $0x50] sm:$0xff]   ;;  %v294_v17 = vld [vmem:[%s393_s0 + $0x48] sm:$0xff]   ;;  %v254_v19 = vcombine.low %v49_v5, %v49_v5 }
   0x5   :  { %53 = vperm.xlu0 %282, %v50_v7   ;;  %v190_v9 = vld [vmem:[%s396_s4] sm:$0xff] }
   0x6   :  { %148 = vmatpush1.bf16.msra.mxu0 %v284_v2  ;;  %269 = vmatprep.mubr.msk.bf16.mxu0 %vm137_vm0, %v255_v6  ;;  %v290_v12 = vld [vmem:[%s393_s0] sm:$0xff]  }
   0x7   :  { %149 = vmatprep.subr.bf16.mxu0 %v298_v0  ;;  %v291_v13 = vld [vmem:[%s393_s0 + $0x60] ss:$0 sps:$4 sm:$0xff]  }
   0x8   :  { %v143_v14 = vsel %vm141_vm1, %v291_v13, 0  ;;  %v295_v18 = vld [vmem:[%s393_s0 + $0x40] sm:$0xff]  }
   0x9   :  { %194 = vperm.xlu0 %282, %v190_v9   ;;  %v189_v31 = vld [vmem:[%s397_s3] sm:$0xf] }
   0xa   :  { %150 = vmatpush1.bf16.msra.mxu0 %v285_v3  ;;  %v245_v32 = vld [vmem:[%s398_s5] sm:$0xf] }
   0xb   :  { %151 = vmatprep.subr.bf16.mxu0 %v298_v0  ;;  %v246_v33 = vunpack.c.l.bf16 %v245_v32 }
   0xe   :  { %152 = vmatpush1.bf16.msra.mxu0 %v286_v4 }
   0xf   :  { %153 = vmatprep.subr.bf16.mxu0 %v298_v0 }
  0x12   :  { %154 = vmatpush1.bf16.msra.mxu0 %v287_v8 }
  0x13   :  { %155 = vmatprep.subr.bf16.mxu0 %v298_v0 }
  0x16   :  { %156 = vmatpush1.bf16.msra.mxu0 %v288_v10 }
  0x17   :  { %157 = vmatprep.subr.bf16.mxu0 %v298_v0 }
  0x1a   :  { %158 = vmatpush1.bf16.msra.mxu0 %v289_v11 }
  0x1b   :  { %159 = vmatprep.subr.bf16.mxu0 %v298_v0 }
  0x1e   :  { %160 = vmatpush1.bf16.msra.mxu0 %v290_v12 }
  0x1f   :  { %167 = vmatprep.subr.bf16.mxu0 %v298_v0 }
  0x22   :  { %168 = vmatpush2.bf16.msra.mxu0 %v143_v14 }
  0x23   :  { %169 = vmatprep.subr.bf16.mxu0 %v298_v0 }
  0x26   :  { %170 = vmatpush2.bf16.msra.mxu0 %v292_v15 }
  0x27   :  { %171 = vmatprep.subr.bf16.mxu0 %v298_v0 }
  0x2a   :  { %172 = vmatpush2.bf16.msra.mxu0 %v293_v16 }
  0x2b   :  { %173 = vmatprep.subr.bf16.mxu0 %v298_v0 }
  0x2e   :  { %174 = vmatpush2.bf16.msra.mxu0 %v294_v17 }
  0x2f   :  { %175 = vmatprep.subr.bf16.mxu0 %v298_v0 }
  0x32   :  { %176 = vmatpush2.bf16.msra.mxu0 %v295_v18 }
  0x35   :  { %178 = vmatmul.mubr.bf16.vlgmr.msra.gmra.mxu0 %v254_v19 }
  0x80   :  { %v54_v21 = vpop.permute.xlu0 %53 }
  0x84   :  { %v195_v34 = vpop.permute.xlu0 %194 }
  0xf5   :  { %v179_v22 = vpop.f32.mrf.mxu0 }
  0xf6   :  { %v180_v23 = vadd.f32 %v179_v22, %v54_v21 }
  0xf7   :  { %v181_v24 = vpop.f32.mrf.mxu0 }
  0xf8   :  { %v186_v25 = vrot.slane %v180_v23, 4 }
  0xf9   :  { %v182_v26 = vpop.f32.mrf.mxu0 }
  0xfa   :  { %v188_v27 = vmul.f32 %v186_v25, %v180_v23 }
  0xfb   :  { %v183_v28 = vpop.f32.mrf.mxu0 }
  0xfc   :  { %v191_v29 = vpack.c.bf16 %v188_v27, %v188_v27 }
  0xfe   :  { %v203_v30 = vsel %vm201_vm3, %v191_v29, 0 }
  0xff   :  { %274 = vmatpush3.bf16.msra.mxu1 %v203_v30 }
 0x102   :  { %276 = vmatmul.mubr.msk.bf16.vlgmr.msra.gmra.mxu1 %vm197_vm4, %v189_v31 }
 0x1c2   :  { %v239_v35 = vpop.f32.mrf.mxu1 }
 0x1c3   :  { %v240_v36 = vadd.f32 %v239_v35, %v195_v34 }
 0x1c4   :  { %v277_v37 = vpop.f32.mrf.mxu1 }
 0x1c5   :  { %v247_v38 = vadd.f32 %v246_v33, %v240_v36 }
 0x1c6   :  { %v242_v39 = vpop.f32.mrf.mxu1 }
 0x1c7   :  { %v248_v40 = vpack.c.bf16 %v247_v38, %v247_v38 }
 0x1c8   :  { %v278_v41 = vpop.f32.mrf.mxu1 }
 0x1c9   :  { %249 = vst [vmem:[%s399_s6] sm:$0xf] %v248_v40 }

// kernel: cwnet_fwd.63
= control target key start
LH: loop header
LB: loop body
LE: loop exit
PB: predicated region body
PF: predicated region fallthrough
CT: control target
= control target key end

     0   :  { %v260_v0 = vmov 0   ;;  %vm105_vm0 = vcmask 64512   ;;  %vm112_vm1 = vcmask 1043456   ;;  %v261_v37 = vmov 0.0   ;;  %s349_s1 = inlined_call_operand.vmem [shape: f32[8,1], index: 1, kind: input, shape index: {}]   ;;  %s350_s2 = inlined_call_operand.vmem [shape: f32[8,1], index: 2, kind: input, shape index: {}]   ;;  %s351_s4 = inlined_call_operand.vmem [shape: f32[32,1], index: 4, kind: input, shape index: {}]   ;;  %s352_s3 = inlined_call_operand.vmem [shape: bf16[32,8], index: 3, kind: input, shape index: {}]   ;;  %s353_s6 = inlined_call_operand.vmem [shape: f32[8,1], index: 6, kind: input, shape index: {}]   ;;  %s354_s0 = inlined_call_operand.vmem [shape: bf16[8,128], index: 0, kind: input, shape index: {}, may-alias: {0,7}]   ;;  %s355_s5 = inlined_call_operand.vmem [shape: bf16[8,16], index: 5, kind: input, shape index: {}]   ;;  %s356_s7 = inlined_call_operand.vmem [shape: bf16[8,128], index: 7, kind: input, shape index: {}, may-alias: {0,7}]   ;;  %s357_s8 = inlined_call_operand.vmem [shape: bf16[8,128], index: 8, kind: output, shape index: {}]  }
   0x1   :  { %254 = vset.pattern.permute.xlu0 %v260_v0  ;;  %v31_v1 = vld [vmem:[%s349_s1] sm:$0xff]  ;;  %255 = vset.pattern.permute.xlu1 %v260_v0  ;;  %v73_v3 = vld [vmem:[%s351_s4 + $0x10] sm:$0xff]  ;;  %v72_v7 = vld [vmem:[%s351_s4 + $0x8] sm:$0xff]  ;;  %vm262_vm2 = vmmov 0   ;;  %vm175_vm3 = vcmask 130048  }
   0x2   :  { %56 = vperm.xlu0 %254, %v31_v1   ;;  %v32_v2 = vld [vmem:[%s350_s2] sm:$0xff]  ;;  %v74_v8 = vld [vmem:[%s351_s4 + $0x18] sm:$0xff]  ;;  %v257_v36 = vld [vmem:[%s352_s3 + $0x8] sm:$0xff]   ;;  %244 = vmatprep.subr.bf16.mxu1 %v261_v37 }
   0x3   :  { %v256_v4 = vld [vmem:[%s352_s3] sm:$0xff]   ;;  %246 = vmatprep.mubr.msk.bf16.mxu1 %vm262_vm2, %v261_v37 }
   0x4   :  { %240 = vmatprep.mubr.msk.bf16.mxu0 %vm105_vm0, %v256_v4  ;;  %v71_v5 = vld [vmem:[%s351_s4] sm:$0xff] }
   0x5   :  { %v168_v6 = vld [vmem:[%s353_s6] sm:$0xff]  ;;  %77 = vperm.xlu1 %255, %v71_v5  }
   0x6   :  { %62 = vperm.xlu0 %254, %v32_v2   ;;  %v30_v9 = vld [vmem:[%s354_s0] sm:$0xf] }
   0x7   :  { %v33_v10 = vunpack.c.l.bf16 %v30_v9  ;;  %v167_v53 = vld [vmem:[%s355_s5] sm:$0xf] }
   0x8   :  { %v219_v54 = vld [vmem:[%s356_s7] sm:$0xf] }
   0x9   :  { %82 = vperm.xlu1 %255, %v72_v7   ;;  %v34_v11 = vrot.slane %v33_v10, 4  ;;  %v220_v55 = vunpack.c.l.bf16 %v219_v54 }
   0xa   :  { %87 = vperm.xlu0 %254, %v73_v3  }
   0xb   :  { %v35_v12 = vadd.f32 %v34_v11, %v33_v10 }
   0xd   :  { %92 = vperm.xlu1 %255, %v74_v8   ;;  %v36_v13 = vrot.slane %v35_v12, 2 }
   0xe   :  { %172 = vperm.xlu0 %254, %v168_v6  }
   0xf   :  { %v37_v14 = vadd.f32 %v36_v13, %v35_v12 }
  0x11   :  { %v38_v15 = vrot.slane %v37_v14, 1 }
  0x13   :  { %v39_v16 = vadd.f32 %v38_v15, %v37_v14 }
  0x15   :  { %v41_v17 = vmul.f32 0.125, %v39_v16 }
  0x17   :  { %v42_v18 = vsub.f32 %v33_v10, %v41_v17 }
  0x19   :  { %v43_v19 = vmul.f32 %v42_v18, %v42_v18 }
  0x1b   :  { %v44_v20 = vrot.slane %v43_v19, 4 }
  0x1d   :  { %v45_v21 = vadd.f32 %v44_v20, %v43_v19 }
  0x1f   :  { %v46_v22 = vrot.slane %v45_v21, 2 }
  0x21   :  { %v47_v23 = vadd.f32 %v46_v22, %v45_v21 }
  0x23   :  { %v48_v24 = vrot.slane %v47_v23, 1 }
  0x25   :  { %v49_v25 = vadd.f32 %v48_v24, %v47_v23 }
  0x27   :  { %v50_v26 = vmul.f32 0.125, %v49_v25 }
  0x29   :  { %v51_v27 = vadd.f32 1e-06, %v50_v26 }
  0x2b   :  { %258 = vrsqrt.f32 %v51_v27 }
  0x38   :  { %v259_v28 = vpop.eup %258 }
  0x39   :  { %v53_v29 = vmul.f32 %v259_v28, %v42_v18 }
  0x7d   :  { %v57_v30 = vpop.permute.xlu0 %56 }
  0x7e   :  { %v59_v31 = vmul.f32 %v57_v30, %v53_v29 }
  0x80   :  { %v78_v38 = vpop.permute.xlu1 %77 }
  0x81   :  { %v63_v32 = vpop.permute.xlu0 %62 }
  0x82   :  { %v65_v33 = vadd.f32 %v63_v32, %v59_v31 }
  0x84   :  { %v66_v34 = vpack.c.bf16 %v65_v33, %v65_v33  ;;  %v83_v39 = vpop.permute.xlu1 %82 }
  0x85   :  { %v88_v43 = vpop.permute.xlu0 %87 }
  0x86   :  { %250 = vmatprep.subr.msk.bf16.mxu0 %vm112_vm1, %v66_v34  ;;  %v114_v35 = vsel %vm112_vm1, %v66_v34, 0 }
  0x87   :  { %239 = vmatpush3.bf16.msra.mxu0 %v114_v35 }
  0x88   :  { %v93_v45 = vpop.permute.xlu1 %92 }
  0x89   :  { %v173_v56 = vpop.permute.xlu0 %172 }
  0x8a   :  { %241 = vmatmul.mubr.msk.bf16.vlgmr.msra.gmra.mxu0 %vm105_vm0, %v257_v36 }
 0x14a   :  { %v242_v40 = vpop.f32.mrf.mxu0 }
 0x14b   :  { %v159_v47 = vadd.f32 %v242_v40, %v88_v43 }
 0x14c   :  { %v150_v41 = vpop.f32.mrf.mxu0 }
 0x14d   :  { %v151_v44 = vadd.f32 %v150_v41, %v78_v38 }
 0x14e   :  { %v243_v42 = vpop.f32.mrf.mxu0 }
 0x14f   :  { %v162_v48 = vadd.f32 %v243_v42, %v93_v45  ;;  %v165_v50 = vmul.f32 %v159_v47, %v151_v44 }
 0x150   :  { %v153_v46 = vpop.f32.mrf.mxu0 }
 0x151   :  { %v154_v49 = vadd.f32 %v153_v46, %v83_v39 }
 0x153   :  { %v166_v51 = vmul.f32 %v162_v48, %v154_v49 }
 0x155   :  { %v169_v52 = vpack.c.bf16 %v166_v51, %v165_v50 }
 0x157   :  { %245 = vmatpush3.bf16.msra.mxu1 %v169_v52 }
 0x15a   :  { %247 = vmatmul.mubr.msk.bf16.vlgmr.msra.gmra.mxu1 %vm175_vm3, %v167_v53 }
 0x21a   :  { %v213_v57 = vpop.f32.mrf.mxu1 }
 0x21b   :  { %v214_v58 = vadd.f32 %v213_v57, %v173_v56 }
 0x21c   :  { %v248_v59 = vpop.f32.mrf.mxu1 }
 0x21d   :  { %v221_v60 = vadd.f32 %v220_v55, %v214_v58 }
 0x21e   :  { %v216_v61 = vpop.f32.mrf.mxu1 }
 0x21f   :  { %v222_v62 = vpack.c.bf16 %v221_v60, %v221_v60 }
 0x220   :  { %v249_v63 = vpop.f32.mrf.mxu1 }
 0x221   :  { %223 = vst [vmem:[%s357_s8] sm:$0xf] %v222_v62 }

// kernel: cwnet_fwd.64
= control target key start
LH: loop header
LB: loop body
LE: loop exit
PB: predicated region body
PF: predicated region fallthrough
CT: control target
= control target key end

     0   :  { %v137_v0 = vmov 0.0   ;;  %vm138_vm0 = vmmov 0   ;;  %v139_v2 = vmov 0   ;;  %vm50_vm1 = vcmask 261120   ;;  %s181_s0 = inlined_call_operand.vmem [shape: bf16[32,32], index: 0, kind: input, shape index: {}]   ;;  %s182_s2 = inlined_call_operand.vmem [shape: f32[12,1], index: 2, kind: input, shape index: {}]   ;;  %s183_s1 = inlined_call_operand.vmem [shape: bf16[12,32], index: 1, kind: input, shape index: {}]   ;;  %s184_s3 = inlined_call_operand.vmem [shape: bf16[12,32], index: 3, kind: output, shape index: {}]  }
   0x1   :  { %122 = vmatprep.subr.bf16.mxu0 %v137_v0  ;;  %v134_v1 = vld [vmem:[%s181_s0 + $0x8] sm:$0xff]   ;;  %126 = vmatprep.mubr.msk.bf16.mxu0 %vm138_vm0, %v137_v0  ;;  %v135_v3 = vld [vmem:[%s181_s0] sm:$0xff]   ;;  %vm103_vm2 = vcmask 257024   ;;  %vm105_vm3 = vcmask 254976  }
   0x2   :  { %133 = vset.pattern.permute.xlu0 %v139_v2  ;;  %123 = vmatpush3.bf16.msra.mxu0 %v134_v1  ;;  %v21_v4 = vld [vmem:[%s182_s2] sm:$0xff]  ;;  %v22_v6 = vld [vmem:[%s182_s2 + $0x8] sm:$0xf] }
   0x3   :  { %124 = vmatprep.subr.bf16.mxu0 %v137_v0  ;;  %25 = vperm.xlu0 %133, %v21_v4   ;;  %v136_v5 = vld [vmem:[%s183_s1] sm:$0x3f]  }
   0x6   :  { %125 = vmatpush3.bf16.msra.mxu0 %v135_v3 }
   0x7   :  { %30 = vperm.xlu0 %133, %v22_v6  }
   0x9   :  { %127 = vmatmul.mubr.msk.bf16.vlgmr.msra.gmra.mxu0 %vm50_vm1, %v136_v5 }
  0x7e   :  { %v26_v7 = vpop.permute.xlu0 %25 }
  0x82   :  { %v31_v12 = vpop.permute.xlu0 %30 }
  0xc9   :  { %v88_v8 = vpop.f32.mrf.mxu0 }
  0xca   :  { %v89_v9 = vadd.f32 %v88_v8, %v26_v7 }
  0xcb   :  { %v128_v10 = vpop.f32.mrf.mxu0 }
  0xcc   :  { %v117_v11 = vpack.c.bf16 %v89_v9, %v89_v9 }
  0xcd   :  { %v91_v13 = vpop.f32.mrf.mxu0 }
  0xce   :  { %104 = vst.msk [vmem:[%s184_s3] sm:$0xf] %vm103_vm2, %v117_v11  ;;  %v92_v14 = vadd.f32 %v91_v13, %v31_v12 }
  0xcf   :  { %v129_v15 = vpop.f32.mrf.mxu0 }
  0xd0   :  { %v118_v16 = vpack.c.bf16 %v92_v14, %v92_v14 }
  0xd2   :  { %106 = vst.msk [vmem:[%s184_s3 + $0x4] sm:$0x3] %vm105_vm3, %v118_v16 }

// kernel: cwnet_fwd.67
= control target key start
LH: loop header
LB: loop body
LE: loop exit
PB: predicated region body
PF: predicated region fallthrough
CT: control target
= control target key end

     0   :  { %vm93_vm0 = vcmask 1045504   ;;  %v205_v0 = vmov 0.0   ;;  %vm206_vm1 = vmmov 0   ;;  %v207_v3 = vmov 0   ;;  %s264_s0 = inlined_call_operand.vmem [shape: bf16[108,24], index: 0, kind: input, shape index: {}]   ;;  %s265_s2 = inlined_call_operand.vmem [shape: f32[12,1], index: 2, kind: input, shape index: {}]   ;;  %s266_s1 = inlined_call_operand.vmem [shape: bf16[12,108], index: 1, kind: input, shape index: {}]   ;;  %s267_s3 = inlined_call_operand.vmem [shape: bf16[12,24], index: 3, kind: output, shape index: {}]  }
   0x1   :  { %175 = vmatprep.subr.bf16.mxu0 %v205_v0  ;;  %v197_v1 = vld [vmem:[%s264_s0 + $0x30] sm:$0x3f]   ;;  %189 = vmatprep.mubr.msk.bf16.mxu0 %vm206_vm1, %v205_v0  ;;  %v198_v4 = vld [vmem:[%s264_s0 + $0x28] sm:$0xff]   ;;  %v199_v5 = vld [vmem:[%s264_s0 + $0x20] sm:$0xff]   ;;  %vm89_vm2 = vcmask 883712   ;;  %vm146_vm3 = vcmask 191488  }
   0x2   :  { %v95_v2 = vsel %vm93_vm0, %v197_v1, 0  ;;  %196 = vset.pattern.permute.xlu0 %v207_v3  ;;  %v31_v6 = vld [vmem:[%s265_s2] sm:$0xff]  ;;  %v32_v7 = vld [vmem:[%s265_s2 + $0x8] sm:$0xf]  ;;  %v200_v8 = vld [vmem:[%s264_s0 + $0x18] sm:$0xff]   ;;  %vm148_vm4 = vcmask 189440  }
   0x3   :  { %176 = vmatpush3.bf16.msra.mxu0 %v95_v2  ;;  %35 = vperm.xlu0 %196, %v31_v6   ;;  %v201_v9 = vld [vmem:[%s264_s0 + $0x10] sm:$0xff]   ;;  %v202_v10 = vld [vmem:[%s264_s0 + $0x8] sm:$0xff]   ;;  %v203_v11 = vld [vmem:[%s264_s0] sm:$0xff]  }
   0x4   :  { %177 = vmatprep.subr.bf16.mxu0 %v205_v0  ;;  %v204_v12 = vld [vmem:[%s266_s1] sm:$0x3f]  }
   0x7   :  { %178 = vmatpush3.bf16.msra.mxu0 %v198_v4  ;;  %40 = vperm.xlu0 %196, %v32_v7  }
   0x8   :  { %179 = vmatprep.subr.bf16.mxu0 %v205_v0 }
   0xb   :  { %180 = vmatpush3.bf16.msra.mxu0 %v199_v5 }
   0xc   :  { %181 = vmatprep.subr.bf16.mxu0 %v205_v0 }
   0xf   :  { %182 = vmatpush3.bf16.msra.mxu0 %v200_v8 }
  0x10   :  { %183 = vmatprep.subr.bf16.mxu0 %v205_v0 }
  0x13   :  { %184 = vmatpush3.bf16.msra.mxu0 %v201_v9 }
  0x14   :  { %185 = vmatprep.subr.bf16.mxu0 %v205_v0 }
  0x17   :  { %186 = vmatpush3.bf16.msra.mxu0 %v202_v10 }
  0x18   :  { %187 = vmatprep.subr.bf16.mxu0 %v205_v0 }
  0x1b   :  { %188 = vmatpush3.bf16.msra.mxu0 %v203_v11 }
  0x1e   :  { %190 = vmatmul.mubr.msk.bf16.vlgmr.msra.gmra.mxu0 %vm89_vm2, %v204_v12 }
  0x7e   :  { %v36_v13 = vpop.permute.xlu0 %35 }
  0x82   :  { %v41_v18 = vpop.permute.xlu0 %40 }
  0xde   :  { %v131_v14 = vpop.f32.mrf.mxu0 }
  0xdf   :  { %v132_v15 = vadd.f32 %v131_v14, %v36_v13 }
  0xe0   :  { %v191_v16 = vpop.f32.mrf.mxu0 }
  0xe1   :  { %v165_v17 = vpack.c.bf16 %v132_v15, %v132_v15 }
  0xe2   :  { %v134_v19 = vpop.f32.mrf.mxu0 }
  0xe3   :  { %147 = vst.msk [vmem:[%s267_s3] sm:$0xf] %vm146_vm3, %v165_v17  ;;  %v135_v20 = vadd.f32 %v134_v19, %v41_v18 }
  0xe4   :  { %v192_v21 = vpop.f32.mrf.mxu0 }
  0xe5   :  { %v166_v22 = vpack.c.bf16 %v135_v20, %v135_v20 }
  0xe7   :  { %149 = vst.msk [vmem:[%s267_s3 + $0x4] sm:$0x3] %vm148_vm4, %v166_v22 }

// kernel: cwnet_fwd.65
= control target key start
LH: loop header
LB: loop body
LE: loop exit
PB: predicated region body
PF: predicated region fallthrough
CT: control target
= control target key end

     0   :  { %v393_v1 = vmov 0.0   ;;  %vm394_vm0 = vmmov 0   ;;  %v395_v3 = vmov 0   ;;  %vm201_vm1 = vcmask 1045504   ;;  %s494_s0 = inlined_call_operand.vmem [shape: bf16[300,8], index: 0, kind: input, shape index: {}]   ;;  %s495_s1 = inlined_call_operand.vmem [shape: bf16[12,300], index: 1, kind: input, shape index: {}]   ;;  %s496_s2 = inlined_call_operand.vmem [shape: f32[12,1], index: 2, kind: input, shape index: {}]   ;;  %s497_s3 = inlined_call_operand.vmem [shape: bf16[12,8], index: 3, kind: output, shape index: {}]  }
   0x1   :  { %v370_v0 = vld [vmem:[%s494_s0 + $0x78] sm:$0xff]   ;;  %356 = vmatprep.subr.bf16.mxu1 %v393_v1  ;;  %362 = vmatprep.mubr.msk.bf16.mxu1 %vm394_vm0, %v393_v1  ;;  %v372_v4 = vld [vmem:[%s494_s0 + $0x70] sm:$0xff]   ;;  %v374_v6 = vld [vmem:[%s494_s0 + $0x68] sm:$0xff]   ;;  %vm197_vm2 = vcmask 359424   ;;  %vm295_vm3 = vcmask 60416   ;;  %vm297_vm4 = vcmask 58368  }
   0x2   :  { %v371_v2 = vld [vmem:[%s494_s0 + $0x38] sm:$0xff]   ;;  %369 = vset.pattern.permute.xlu0 %v395_v3  ;;  %330 = vmatprep.subr.bf16.mxu0 %v370_v0  ;;  %v373_v5 = vld [vmem:[%s494_s0 + $0x30] sm:$0xff]   ;;  %v375_v7 = vld [vmem:[%s494_s0 + $0x28] sm:$0xff]  }
   0x3   :  { %331 = vmatpush3.bf16.msra.mxu0 %v371_v2  ;;  %v376_v8 = vld [vmem:[%s494_s0 + $0x60] sm:$0xff]   ;;  %v378_v10 = vld [vmem:[%s494_s0 + $0x58] sm:$0xff]   ;;  %v382_v11 = vld [vmem:[%s494_s0 + $0x90] sm:$0x3f]  }
   0x4   :  { %332 = vmatprep.subr.bf16.mxu0 %v372_v4  ;;  %v377_v9 = vld [vmem:[%s494_s0 + $0x20] sm:$0xff]   ;;  %v379_v12 = vld [vmem:[%s494_s0 + $0x18] sm:$0xff]   ;;  %v203_v13 = vsel %vm201_vm1, %v382_v11, 0  ;;  %v385_v14 = vld [vmem:[%s494_s0 + $0x88] sm:$0xff]  }
   0x5   :  { %357 = vmatpush3.bf16.msra.mxu1 %v203_v13  ;;  %v380_v15 = vld [vmem:[%s494_s0 + $0x50] sm:$0xff]   ;;  %v383_v17 = vld [vmem:[%s494_s0 + $0x48] sm:$0xff]   ;;  %v388_v18 = vld [vmem:[%s494_s0 + $0x80] sm:$0xff]  }
   0x6   :  { %358 = vmatprep.subr.bf16.mxu1 %v393_v1  ;;  %v381_v16 = vld [vmem:[%s494_s0 + $0x10] sm:$0xff]   ;;  %v57_v20 = vld [vmem:[%s496_s2] sm:$0xff]  ;;  %v58_v22 = vld [vmem:[%s496_s2 + $0x8] sm:$0xf] }
   0x7   :  { %333 = vmatpush3.bf16.msra.mxu0 %v373_v5  ;;  %v391_v19 = vld [vmem:[%s495_s1 + $0x4] ss:$12 sps:$4 sm:$0x3f]   ;;  %61 = vperm.xlu0 %369, %v57_v20   ;;  %v392_v21 = vld [vmem:[%s495_s1 + $0x8] ss:$12 sps:$4 sm:$0x3f]  }
   0x8   :  { %334 = vmatprep.subr.bf16.mxu0 %v374_v6  ;;  %237 = vmatprep.mubr.bf16.mxu0 %v391_v19  ;;  %v384_v23 = vld [vmem:[%s494_s0 + $0x8] sm:$0xff]   ;;  %v386_v24 = vld [vmem:[%s494_s0 + $0x40] sm:$0xff]  }
   0x9   :  { %359 = vmatpush3.bf16.msra.mxu1 %v385_v14  ;;  %v387_v25 = vld [vmem:[%s494_s0] sm:$0xff]  }
   0xa   :  { %360 = vmatprep.subr.bf16.mxu1 %v393_v1  ;;  %v389_v26 = vld [vmem:[%s495_s1] ss:$12 sps:$4 sm:$0x3f]  }
   0xb   :  { %335 = vmatpush3.bf16.msra.mxu0 %v375_v7  ;;  %66 = vperm.xlu0 %369, %v58_v22  }
   0xc   :  { %336 = vmatprep.subr.bf16.mxu0 %v376_v8 }
   0xd   :  { %361 = vmatpush3.bf16.msra.mxu1 %v388_v18 }
   0xf   :  { %337 = vmatpush3.bf16.msra.mxu0 %v377_v9 }
  0x10   :  { %338 = vmatprep.subr.bf16.mxu0 %v378_v10  ;;  %363 = vmatmul.mubr.msk.bf16.vlgmr.msra.gmra.mxu1 %vm197_vm2, %v392_v21 }
  0x13   :  { %339 = vmatpush3.bf16.msra.mxu0 %v379_v12 }
  0x14   :  { %340 = vmatprep.subr.bf16.mxu0 %v380_v15 }
  0x17   :  { %341 = vmatpush3.bf16.msra.mxu0 %v381_v16 }
  0x18   :  { %342 = vmatprep.subr.bf16.mxu0 %v383_v17 }
  0x1b   :  { %343 = vmatpush3.bf16.msra.mxu0 %v384_v23 }
  0x1c   :  { %344 = vmatprep.subr.bf16.mxu0 %v386_v24 }
  0x1f   :  { %345 = vmatpush3.bf16.msra.mxu0 %v387_v25 }
  0x22   :  { %238 = vmatmul.mubr.bf16.vlgmr.msra.gmra.mxu0 %v389_v26 }
  0x82   :  { %v62_v32 = vpop.permute.xlu0 %61 }
  0x86   :  { %v67_v40 = vpop.permute.xlu0 %66 }
  0xd0   :  { %v280_v27 = vpop.f32.mrf.mxu1 }
  0xd2   :  { %v364_v28 = vpop.f32.mrf.mxu1 }
  0xd4   :  { %v283_v29 = vpop.f32.mrf.mxu1 }
  0xd6   :  { %v365_v30 = vpop.f32.mrf.mxu1 }
  0xe2   :  { %v346_v31 = vpop.f32.mrf.mxu0 }
  0xe4   :  { %v347_v33 = vpop.f32.mrf.mxu0 }
  0xe5   :  { %v348_v34 = vadd.f32 %v347_v33, %v346_v31 }
  0xe6   :  { %v349_v35 = vpop.f32.mrf.mxu0 }
  0xe7   :  { %v240_v36 = vadd.f32 %v348_v34, %v62_v32 }
  0xe8   :  { %v350_v37 = vpop.f32.mrf.mxu0 }
  0xe9   :  { %v281_v38 = vadd.f32 %v280_v27, %v240_v36  ;;  %v351_v39 = vadd.f32 %v350_v37, %v349_v35 }
  0xeb   :  { %v328_v41 = vpack.c.bf16 %v281_v38, %v281_v38  ;;  %v243_v42 = vadd.f32 %v351_v39, %v67_v40 }
  0xed   :  { %296 = vst.msk [vmem:[%s497_s3] sm:$0xf] %vm295_vm3, %v328_v41  ;;  %v284_v43 = vadd.f32 %v283_v29, %v243_v42 }
  0xef   :  { %v329_v44 = vpack.c.bf16 %v284_v43, %v284_v43 }
  0xf1   :  { %298 = vst.msk [vmem:[%s497_s3 + $0x4] sm:$0x3] %vm297_vm4, %v329_v44 }

// kernel: cwnet_fwd.68
= control target key start
LH: loop header
LB: loop body
LE: loop exit
PB: predicated region body
PF: predicated region fallthrough
CT: control target
= control target key end

     0   :  { %vm81_vm0 = vcmask 1045504   ;;  %v181_v0 = vmov 0.0   ;;  %vm182_vm1 = vmmov 0   ;;  %v183_v3 = vmov 0   ;;  %s237_s0 = inlined_call_operand.vmem [shape: bf16[108,8], index: 0, kind: input, shape index: {}]   ;;  %s238_s2 = inlined_call_operand.vmem [shape: f32[3,1], index: 2, kind: input, shape index: {}]   ;;  %s239_s1 = inlined_call_operand.vmem [shape: bf16[3,108], index: 1, kind: input, shape index: {}]   ;;  %s240_s3 = inlined_call_operand.vmem [shape: bf16[3,8], index: 3, kind: output, shape index: {}]  }
   0x1   :  { %152 = vmatprep.subr.bf16.mxu0 %v181_v0  ;;  %v174_v1 = vld [vmem:[%s237_s0 + $0x30] sm:$0x3f]   ;;  %166 = vmatprep.mubr.msk.bf16.mxu0 %vm182_vm1, %v181_v0  ;;  %v175_v4 = vld [vmem:[%s237_s0 + $0x28] sm:$0xff]   ;;  %v176_v5 = vld [vmem:[%s237_s0 + $0x20] sm:$0xff]   ;;  %vm77_vm2 = vcmask 883712   ;;  %vm126_vm3 = vcmask 58368  }
   0x2   :  { %v83_v2 = vsel %vm81_vm0, %v174_v1, 0  ;;  %173 = vset.pattern.permute.xlu0 %v183_v3  ;;  %v30_v6 = vld [vmem:[%s238_s2] sm:$0x7]  ;;  %v177_v7 = vld [vmem:[%s237_s0 + $0x18] sm:$0xff]   ;;  %v178_v8 = vld [vmem:[%s237_s0 + $0x10] sm:$0xff]  }
   0x3   :  { %153 = vmatpush3.bf16.msra.mxu0 %v83_v2  ;;  %33 = vperm.xlu0 %173, %v30_v6   ;;  %v179_v9 = vld [vmem:[%s237_s0 + $0x8] sm:$0xff]   ;;  %v180_v10 = vld [vmem:[%s237_s0] sm:$0xff]   ;;  %vm127_vm4 = vsmask.f32 1280 }
   0x4   :  { %154 = vmatprep.subr.bf16.mxu0 %v181_v0  ;;  %v29_v11 = vld [vmem:[%s239_s1] sm:$0x3]  ;;  %vm128_vm5 = vmand %vm126_vm3, %vm127_vm4 }
   0x5   :  { %v129_v15 = vld [vmem:[%s240_s3] sm:$0x3] }
   0x7   :  { %155 = vmatpush3.bf16.msra.mxu0 %v175_v4 }
   0x8   :  { %156 = vmatprep.subr.bf16.mxu0 %v181_v0 }
   0xb   :  { %157 = vmatpush3.bf16.msra.mxu0 %v176_v5 }
   0xc   :  { %158 = vmatprep.subr.bf16.mxu0 %v181_v0 }
   0xf   :  { %159 = vmatpush3.bf16.msra.mxu0 %v177_v7 }
  0x10   :  { %160 = vmatprep.subr.bf16.mxu0 %v181_v0 }
  0x13   :  { %161 = vmatpush3.bf16.msra.mxu0 %v178_v8 }
  0x14   :  { %162 = vmatprep.subr.bf16.mxu0 %v181_v0 }
  0x17   :  { %163 = vmatpush3.bf16.msra.mxu0 %v179_v9 }
  0x18   :  { %164 = vmatprep.subr.bf16.mxu0 %v181_v0 }
  0x1b   :  { %165 = vmatpush3.bf16.msra.mxu0 %v180_v10 }
  0x1e   :  { %167 = vmatmul.mubr.msk.bf16.vlgmr.msra.gmra.mxu0 %vm77_vm2, %v29_v11 }
  0x7e   :  { %v34_v12 = vpop.permute.xlu0 %33 }
  0xde   :  { %v119_v13 = vpop.f32.mrf.mxu0 }
  0xdf   :  { %v120_v14 = vadd.f32 %v119_v13, %v34_v12 }
  0xe0   :  { %v168_v16 = vpop.f32.mrf.mxu0 }
  0xe1   :  { %v125_v17 = vpack.c.bf16 %v120_v14, %v120_v14 }
  0xe2   :  { %v122_v18 = vpop.f32.mrf.mxu0 }
  0xe3   :  { %v130_v19 = vsel %vm128_vm5, %v125_v17, %v129_v15 }
  0xe4   :  { %131 = vst [vmem:[%s240_s3] sm:$0x3] %v130_v19  ;;  %v169_v20 = vpop.f32.mrf.mxu0 }

// kernel: cwnet_fwd.69
= control target key start
LH: loop header
LB: loop body
LE: loop exit
PB: predicated region body
PF: predicated region fallthrough
CT: control target
= control target key end

     0   :  { %vm56_vm0 = vcmask 1043456   ;;  %v203_v0 = vmov 0.0   ;;  %vm204_vm1 = vmmov 0   ;;  %v205_v3 = vmov 0   ;;  %s275_s0 = inlined_call_operand.vmem [shape: bf16[24,24], index: 0, kind: input, shape index: {}]   ;;  %s276_s2 = inlined_call_operand.vmem [shape: f32[12,1], index: 2, kind: input, shape index: {}]   ;;  %s277_s1 = inlined_call_operand.vmem [shape: bf16[12,24], index: 1, kind: input, shape index: {}]   ;;  %s278_s3 = inlined_call_operand.vmem [shape: f32[12,1], index: 3, kind: input, shape index: {}]   ;;  %s279_s4 = inlined_call_operand.vmem [shape: f32[12,1], index: 4, kind: input, shape index: {}]   ;;  %s280_s5 = inlined_call_operand.vmem [shape: bf16[12,24], index: 5, kind: output, shape index: {}]  }
   0x1   :  { %185 = vmatprep.subr.bf16.mxu0 %v203_v0  ;;  %v198_v1 = vld [vmem:[%s275_s0 + $0x8] ss:$0 sps:$4 sm:$0xff]   ;;  %189 = vmatprep.mubr.msk.bf16.mxu0 %vm204_vm1, %v203_v0  ;;  %v26_v4 = vld [vmem:[%s276_s2] sm:$0xff]  ;;  %vm52_vm2 = vcmask 195584   ;;  %vm106_vm3 = vcmask 191488   ;;  %vm168_vm4 = vcmask 189440  }
   0x2   :  { %v58_v2 = vsel %vm56_vm0, %v198_v1, 0  ;;  %196 = vset.pattern.permute.xlu0 %v205_v3  ;;  %197 = vset.pattern.permute.xlu1 %v205_v3  ;;  %v199_v5 = vld [vmem:[%s275_s0] sm:$0xff]   ;;  %v27_v7 = vld [vmem:[%s276_s2 + $0x8] sm:$0xf] }
   0x3   :  { %186 = vmatpush3.bf16.msra.mxu0 %v58_v2  ;;  %30 = vperm.xlu0 %196, %v26_v4   ;;  %v101_v6 = vld [vmem:[%s278_s3] sm:$0xff]  ;;  %v102_v8 = vld [vmem:[%s278_s3 + $0x8] sm:$0xf] }
   0x4   :  { %187 = vmatprep.subr.bf16.mxu0 %v203_v0  ;;  %137 = vperm.xlu1 %197, %v101_v6   ;;  %v200_v9 = vld [vmem:[%s277_s1] sm:$0x3f]   ;;  %v104_v11 = vld [vmem:[%s279_s4 + $0x8] sm:$0xf] }
   0x5   :  { %v103_v10 = vld [vmem:[%s279_s4] sm:$0xff] }
   0x7   :  { %188 = vmatpush3.bf16.msra.mxu0 %v199_v5  ;;  %35 = vperm.xlu0 %196, %v27_v7  }
   0x8   :  { %142 = vperm.xlu1 %197, %v102_v8  }
   0xa   :  { %190 = vmatmul.mubr.msk.bf16.vlgmr.msra.gmra.mxu0 %vm52_vm2, %v200_v9 }
   0xb   :  { %149 = vperm.xlu0 %196, %v103_v10  }
   0xc   :  { %154 = vperm.xlu1 %197, %v104_v11  }
  0x7e   :  { %v31_v12 = vpop.permute.xlu0 %30 }
  0x7f   :  { %v138_v45 = vpop.permute.xlu1 %137 }
  0x82   :  { %v36_v16 = vpop.permute.xlu0 %35 }
  0x83   :  { %v143_v46 = vpop.permute.xlu1 %142 }
  0x86   :  { %v150_v52 = vpop.permute.xlu0 %149 }
  0x87   :  { %v155_v53 = vpop.permute.xlu1 %154 }
  0xca   :  { %v94_v13 = vpop.f32.mrf.mxu0 }
  0xcb   :  { %v95_v15 = vadd.f32 %v94_v13, %v31_v12 }
  0xcc   :  { %v191_v14 = vpop.f32.mrf.mxu0 }
  0xcd   :  { %v105_v20 = vsel %vm52_vm2, %v95_v15, 0.0 }
  0xce   :  { %v97_v17 = vpop.f32.mrf.mxu0 }
  0xcf   :  { %v98_v18 = vadd.f32 %v97_v17, %v36_v16 }
  0xd0   :  { %v192_v19 = vpop.f32.mrf.mxu0 }
  0xd1   :  { %v107_v21 = vsel %vm106_vm3, %v98_v18, 0.0 }
  0xd2   :  { %v108_v22 = vadd.f32 %v107_v21, %v105_v20 }
  0xd4   :  { %v109_v23 = vrot.slane %v108_v22, 4 }
  0xd6   :  { %v110_v24 = vadd.f32 %v109_v23, %v108_v22 }
  0xd8   :  { %v111_v25 = vrot.slane %v110_v24, 2 }
  0xda   :  { %v112_v26 = vadd.f32 %v111_v25, %v110_v24 }
  0xdc   :  { %v113_v27 = vrot.slane %v112_v26, 1 }
  0xde   :  { %v114_v28 = vadd.f32 %v113_v27, %v112_v26 }
  0xe0   :  { %v116_v29 = vmul.f32 0.083333336, %v114_v28 }
  0xe2   :  { %v118_v30 = vsub.f32 %v98_v18, %v116_v29  ;;  %v117_v31 = vsub.f32 %v95_v15, %v116_v29 }
  0xe4   :  { %v120_v32 = vmul.f32 %v118_v30, %v118_v30  ;;  %v119_v33 = vmul.f32 %v117_v31, %v117_v31 }
  0xe6   :  { %v122_v34 = vsel %vm106_vm3, %v120_v32, 0.0  ;;  %v121_v35 = vsel %vm52_vm2, %v119_v33, 0.0 }
  0xe7   :  { %v123_v36 = vadd.f32 %v122_v34, %v121_v35 }
  0xe9   :  { %v124_v37 = vrot.slane %v123_v36, 4 }
  0xeb   :  { %v125_v38 = vadd.f32 %v124_v37, %v123_v36 }
  0xed   :  { %v126_v39 = vrot.slane %v125_v38, 2 }
  0xef   :  { %v127_v40 = vadd.f32 %v126_v39, %v125_v38 }
  0xf1   :  { %v128_v41 = vrot.slane %v127_v40, 1 }
  0xf3   :  { %v129_v42 = vadd.f32 %v128_v41, %v127_v40 }
  0xf5   :  { %v130_v43 = vmul.f32 0.083333336, %v129_v42 }
  0xf7   :  { %v131_v44 = vadd.f32 1e-05, %v130_v43 }
  0xf9   :  { %201 = vrsqrt.f32 %v131_v44 }
 0x106   :  { %v202_v47 = vpop.eup %201 }
 0x107   :  { %v133_v48 = vmul.f32 %v202_v47, %v117_v31  ;;  %v134_v49 = vmul.f32 %v202_v47, %v118_v30 }
 0x109   :  { %v145_v50 = vmul.f32 %v138_v45, %v133_v48  ;;  %v146_v51 = vmul.f32 %v143_v46, %v134_v49 }
 0x10b   :  { %v157_v54 = vadd.f32 %v150_v52, %v145_v50  ;;  %v158_v55 = vadd.f32 %v155_v53, %v146_v51 }
 0x10d   :  { %v180_v56 = vpack.c.bf16 %v157_v54, %v157_v54  ;;  %v181_v57 = vpack.c.bf16 %v158_v55, %v158_v55 }
 0x10f   :  { %167 = vst.msk [vmem:[%s280_s5] sm:$0xf] %vm106_vm3, %v180_v56 }
 0x110   :  { %169 = vst.msk [vmem:[%s280_s5 + $0x4] sm:$0x3] %vm168_vm4, %v181_v57 }

// kernel: cwnet_fwd.70
= control target key start
LH: loop header
LB: loop body
LE: loop exit
PB: predicated region body
PF: predicated region fallthrough
CT: control target
= control target key end

     0   :  { %v431_v0 = vmov 0   ;;  %v432_v7 = vmov 0.0   ;;  %vm433_vm0 = vmmov 0   ;;  %vm38_vm1 = vcmask 195584   ;;  %s583_s2 = inlined_call_operand.vmem [shape: f32[12,1], index: 2, kind: input, shape index: {}]   ;;  %s584_s1 = inlined_call_operand.vmem [shape: f32[12,1], index: 1, kind: input, shape index: {}]   ;;  %s585_s4 = inlined_call_operand.vmem [shape: f32[48,1], index: 4, kind: input, shape index: {}]   ;;  %s586_s3 = inlined_call_operand.vmem [shape: bf16[48,12], index: 3, kind: input, shape index: {}]   ;;  %s587_s6 = inlined_call_operand.vmem [shape: f32[12,1], index: 6, kind: input, shape index: {}]   ;;  %s588_s0 = inlined_call_operand.vmem [shape: bf16[12,24], index: 0, kind: input, shape index: {}, may-alias: {0,7}]   ;;  %s589_s5 = inlined_call_operand.vmem [shape: bf16[12,48], index: 5, kind: input, shape index: {}]   ;;  %s590_s7 = inlined_call_operand.vmem [shape: bf16[12,24], index: 7, kind: input, shape index: {}, may-alias: {0,7}]   ;;  %s591_s8 = inlined_call_operand.vmem [shape: bf16[12,24], index: 8, kind: output, shape index: {}]  }
   0x1   :  { %412 = vset.pattern.permute.xlu1 %v431_v0  ;;  %411 = vset.pattern.permute.xlu0 %v431_v0  ;;  %v34_v1 = vld [vmem:[%s583_s2] sm:$0xff]  ;;  %v35_v3 = vld [vmem:[%s583_s2 + $0x8] sm:$0xf]  ;;  %v103_v8 = vld [vmem:[%s585_s4 + $0x18] sm:$0xff]  ;;  %vm40_vm2 = vcmask 191488   ;;  %vm161_vm3 = vcmask 1045504  }
   0x2   :  { %v32_v2 = vld [vmem:[%s584_s1] sm:$0xff]  ;;  %83 = vperm.xlu1 %412, %v34_v1   ;;  %v33_v4 = vld [vmem:[%s584_s1 + $0x8] sm:$0xf]  ;;  %384 = vmatprep.subr.bf16.mxu0 %v432_v7  ;;  %v102_v9 = vld [vmem:[%s585_s4 + $0x10] sm:$0xff]  ;;  %vm151_vm4 = vcmask 97280   ;;  %vm298_vm5 = vcmask 392192  }
   0x3   :  { %71 = vperm.xlu0 %411, %v32_v2   ;;  %v105_v5 = vld [vmem:[%s585_s4 + $0x28] sm:$0xff]  ;;  %v104_v6 = vld [vmem:[%s585_s4 + $0x20] sm:$0xff]  ;;  %398 = vmatprep.subr.bf16.mxu1 %v432_v7  ;;  %v415_v58 = vld [vmem:[%s586_s3 + $0x10] sm:$0xff]   ;;  %vm358_vm6 = vcmask 189440  }
   0x4   :  { %386 = vmatprep.mubr.msk.bf16.mxu0 %vm433_vm0, %v432_v7  ;;  %404 = vmatprep.mubr.msk.bf16.mxu1 %vm433_vm0, %v432_v7  ;;  %v101_v10 = vld [vmem:[%s585_s4 + $0x8] sm:$0xff]  ;;  %v100_v11 = vld [vmem:[%s585_s4] sm:$0xff] }
   0x5   :  { %v279_v12 = vld [vmem:[%s587_s6 + $0x8] sm:$0xf]  ;;  %v278_v13 = vld [vmem:[%s587_s6] sm:$0xff] }
   0x6   :  { %88 = vperm.xlu1 %412, %v35_v3   ;;  %v30_v14 = vld [vmem:[%s588_s0] sm:$0xf]  ;;  %v31_v15 = vld [vmem:[%s588_s0 + $0x4] sm:$0x3]  ;;  %v414_v57 = vld [vmem:[%s586_s3 + $0x8] sm:$0xff]  }
   0x7   :  { %76 = vperm.xlu0 %411, %v33_v4   ;;  %v36_v16 = vunpack.c.l.bf16 %v30_v14  ;;  %v37_v17 = vunpack.c.l.bf16 %v31_v15  ;;  %v413_v56 = vld [vmem:[%s586_s3] sm:$0xff]  }
   0x9   :  { %v39_v18 = vsel %vm38_vm1, %v36_v16, 0.0  ;;  %v41_v19 = vsel %vm40_vm2, %v37_v17, 0.0 }
   0xa   :  { %133 = vperm.xlu1 %412, %v105_v5   ;;  %v42_v20 = vadd.f32 %v41_v19, %v39_v18 }
   0xb   :  { %128 = vperm.xlu0 %411, %v104_v6  }
   0xc   :  { %v43_v21 = vrot.slane %v42_v20, 4 }
   0xe   :  { %123 = vperm.xlu1 %412, %v103_v8   ;;  %v44_v22 = vadd.f32 %v43_v21, %v42_v20 }
   0xf   :  { %118 = vperm.xlu0 %411, %v102_v9  }
  0x10   :  { %v45_v23 = vrot.slane %v44_v22, 2 }
  0x12   :  { %113 = vperm.xlu1 %412, %v101_v10   ;;  %v46_v24 = vadd.f32 %v45_v23, %v44_v22 }
  0x13   :  { %108 = vperm.xlu0 %411, %v100_v11  }
  0x14   :  { %v47_v25 = vrot.slane %v46_v24, 1 }
  0x16   :  { %290 = vperm.xlu1 %412, %v279_v12   ;;  %v48_v26 = vadd.f32 %v47_v25, %v46_v24 }
  0x17   :  { %285 = vperm.xlu0 %411, %v278_v13  }
  0x18   :  { %v50_v27 = vmul.f32 0.083333336, %v48_v26 }
  0x1a   :  { %v51_v28 = vsub.f32 %v36_v16, %v50_v27  ;;  %v52_v29 = vsub.f32 %v37_v17, %v50_v27 }
  0x1c   :  { %v53_v30 = vmul.f32 %v51_v28, %v51_v28  ;;  %v54_v31 = vmul.f32 %v52_v29, %v52_v29 }
  0x1e   :  { %v55_v32 = vsel %vm38_vm1, %v53_v30, 0.0  ;;  %v56_v33 = vsel %vm40_vm2, %v54_v31, 0.0 }
  0x1f   :  { %v57_v34 = vadd.f32 %v56_v33, %v55_v32 }
  0x21   :  { %v58_v35 = vrot.slane %v57_v34, 4 }
  0x23   :  { %v59_v36 = vadd.f32 %v58_v35, %v57_v34 }
  0x25   :  { %v60_v37 = vrot.slane %v59_v36, 2 }
  0x27   :  { %v61_v38 = vadd.f32 %v60_v37, %v59_v36 }
  0x29   :  { %v62_v39 = vrot.slane %v61_v38, 1 }
  0x2b   :  { %v63_v40 = vadd.f32 %v62_v39, %v61_v38 }
  0x2d   :  { %v64_v41 = vmul.f32 0.083333336, %v63_v40 }
  0x2f   :  { %v65_v42 = vadd.f32 1e-05, %v64_v41 }
  0x31   :  { %417 = vrsqrt.f32 %v65_v42 }
  0x3e   :  { %v418_v43 = vpop.eup %417 }
  0x3f   :  { %v67_v44 = vmul.f32 %v418_v43, %v51_v28  ;;  %v68_v47 = vmul.f32 %v418_v43, %v52_v29 }
  0x7d   :  { %v84_v45 = vpop.permute.xlu1 %83 }
  0x7e   :  { %v72_v46 = vpop.permute.xlu0 %71 }
  0x7f   :  { %v79_v48 = vmul.f32 %v72_v46, %v67_v44 }
  0x81   :  { %v89_v51 = vpop.permute.xlu1 %88  ;;  %v91_v52 = vadd.f32 %v84_v45, %v79_v48 }
  0x82   :  { %v77_v49 = vpop.permute.xlu0 %76 }
  0x83   :  { %v80_v50 = vmul.f32 %v77_v49, %v68_v47 }
  0x85   :  { %v92_v53 = vadd.f32 %v89_v51, %v80_v50  ;;  %v134_v59 = vpop.permute.xlu1 %133 }
  0x86   :  { %v129_v60 = vpop.permute.xlu0 %128 }
  0x87   :  { %v93_v54 = vpack.c.bf16 %v92_v53, %v91_v52 }
  0x89   :  { %v163_v55 = vsel %vm161_vm3, %v93_v54, 0  ;;  %v124_v62 = vpop.permute.xlu1 %123 }
  0x8a   :  { %385 = vmatpush3.bf16.msra.mxu0 %v163_v55  ;;  %v119_v0 = vpop.permute.xlu0 %118 }
  0x8d   :  { %387 = vmatmul.mubr.msk.bf16.vlgmr.msra.gmra.mxu0 %vm151_vm4, %v413_v56  ;;  %v114_v3 = vpop.permute.xlu1 %113 }
  0x8e   :  { %390 = vmatprep.mubr.msk.bf16.mxu0 %vm433_vm0, %v432_v7  ;;  %v109_v8 = vpop.permute.xlu0 %108 }
  0x95   :  { %391 = vmatmul.mubr.msk.bf16.gmra.mxu0 %vm151_vm4, %v414_v57 }
  0x96   :  { %394 = vmatprep.mubr.msk.bf16.mxu0 %vm433_vm0, %v432_v7 }
  0x9d   :  { %395 = vmatmul.mubr.msk.bf16.gmra.mxu0 %vm151_vm4, %v415_v58 }
 0x14d   :  { %v199_v61 = vpop.f32.mrf.mxu0 }
 0x14e   :  { %v548_v10 = vadd.f32 %v199_v61, %v109_v8 }
 0x14f   :  { %v388_v63 = vpop.f32.mrf.mxu0 }
 0x150   :  { %v222_v16 = vmul.f32 %v548_v10, %v548_v10 }
 0x151   :  { %v202_v1 = vpop.f32.mrf.mxu0 }
 0x152   :  { %v544_v4 = vadd.f32 %v202_v1, %v114_v3  ;;  %v228_v24 = vmul.f32 %v222_v16, %v548_v10 }
 0x153   :  { %v389_v2 = vpop.f32.mrf.mxu0 }
 0x154   :  { %v223_v12 = vmul.f32 %v544_v4, %v544_v4  ;;  %v234_v34 = vmul.f32 0.044715, %v228_v24 }
 0x155   :  { %v207_v5 = vpop.f32.mrf.mxu0 }
 0x156   :  { %v546_v6 = vadd.f32 %v207_v5, %v119_v0  ;;  %v229_v19 = vmul.f32 %v223_v12, %v544_v4  ;;  %v240_v42 = vadd.f32 %v234_v34, %v548_v10 }
 0x157   :  { %v392_v9 = vpop.f32.mrf.mxu0 }
 0x158   :  { %v224_v11 = vmul.f32 %v546_v6, %v546_v6  ;;  %v235_v28 = vmul.f32 0.044715, %v229_v19  ;;  %v246_v48 = vmul.f32 0.7978846, %v240_v42  ;;  %v286_v19 = vpop.permute.xlu0 %285 }
 0x159   :  { %v210_v13 = vpop.f32.mrf.mxu0 }
 0x15a   :  { %v211_v14 = vadd.f32 %v210_v13, %v124_v62  ;;  %v230_v17 = vmul.f32 %v224_v11, %v546_v6  ;;  %v241_v38 = vadd.f32 %v235_v28, %v544_v4 }
 0x15b   :  { %v393_v15 = vpop.f32.mrf.mxu0 }
 0x15c   :  { %v225_v18 = vmul.f32 %v211_v14, %v211_v14  ;;  %v236_v25 = vmul.f32 0.044715, %v230_v17  ;;  %v247_v46 = vmul.f32 0.7978846, %v241_v38 }
 0x15d   :  { %v215_v20 = vpop.f32.mrf.mxu0 }
 0x15e   :  { %v231_v21 = vmul.f32 %v225_v18, %v211_v14  ;;  %v216_v22 = vadd.f32 %v215_v20, %v129_v60  ;;  %v242_v35 = vadd.f32 %v236_v25, %v546_v6 }
 0x15f   :  { %v396_v23 = vpop.f32.mrf.mxu0 }
 0x160   :  { %v237_v26 = vmul.f32 0.044715, %v231_v21  ;;  %v226_v27 = vmul.f32 %v216_v22, %v216_v22  ;;  %v248_v43 = vmul.f32 0.7978846, %v242_v35  ;;  %v291_v23 = vpop.permute.xlu1 %290 }
 0x161   :  { %v218_v29 = vpop.f32.mrf.mxu0 }
 0x162   :  { %v243_v30 = vadd.f32 %v237_v26, %v211_v14  ;;  %v232_v31 = vmul.f32 %v226_v27, %v216_v22  ;;  %v219_v32 = vadd.f32 %v218_v29, %v134_v59 }
 0x163   :  { %v397_v33 = vpop.f32.mrf.mxu0 }
 0x164   :  { %v238_v36 = vmul.f32 0.044715, %v232_v31  ;;  %v227_v37 = vmul.f32 %v219_v32, %v219_v32  ;;  %v249_v39 = vmul.f32 0.7978846, %v243_v30 }
 0x166   :  { %v244_v40 = vadd.f32 %v238_v36, %v216_v22  ;;  %v233_v41 = vmul.f32 %v227_v37, %v219_v32  ;;  %419 = vtanh.f32 %v249_v39 }
 0x168   :  { %v250_v44 = vmul.f32 0.7978846, %v244_v40  ;;  %v239_v45 = vmul.f32 0.044715, %v233_v41 }
 0x16a   :  { %v245_v47 = vadd.f32 %v239_v45, %v219_v32  ;;  %421 = vtanh.f32 %v250_v44 }
 0x16b   :  { %423 = vtanh.f32 %v248_v43 }
 0x16c   :  { %v251_v49 = vmul.f32 0.7978846, %v245_v47  ;;  %425 = vtanh.f32 %v247_v46 }
 0x16e   :  { %427 = vtanh.f32 %v251_v49 }
 0x16f   :  { %429 = vtanh.f32 %v246_v48 }
 0x173   :  { %v420_v50 = vpop.eup %419 }
 0x174   :  { %v261_v55 = vadd.f32 1.0, %v420_v50 }
 0x176   :  { %v267_v62 = vmul.f32 0.5, %v261_v55 }
 0x177   :  { %v422_v51 = vpop.eup %421 }
 0x178   :  { %v262_v52 = vadd.f32 1.0, %v422_v51  ;;  %v424_v53 = vpop.eup %423  ;;  %v273_v8 = vmul.f32 %v267_v62, %v211_v14  ;;  %v416_v14 = vld [vmem:[%s589_s5] sm:$0x3f]  }
 0x179   :  { %v426_v54 = vpop.eup %425  ;;  %v260_v59 = vadd.f32 1.0, %v424_v53 }
 0x17a   :  { %v268_v58 = vmul.f32 0.5, %v262_v52  ;;  %v259_v63 = vadd.f32 1.0, %v426_v54 }
 0x17b   :  { %v428_v56 = vpop.eup %427  ;;  %v266_v2 = vmul.f32 0.5, %v260_v59 }
 0x17c   :  { %v263_v57 = vadd.f32 1.0, %v428_v56  ;;  %v430_v60 = vpop.eup %429  ;;  %v274_v0 = vmul.f32 %v268_v58, %v216_v22  ;;  %v265_v9 = vmul.f32 0.5, %v259_v63 }
 0x17d   :  { %v258_v3 = vadd.f32 1.0, %v430_v60  ;;  %v272_v11 = vmul.f32 %v266_v2, %v546_v6  ;;  %v343_v6 = vld [vmem:[%s590_s7] sm:$0xf] }
 0x17e   :  { %v269_v61 = vmul.f32 0.5, %v263_v57  ;;  %v271_v15 = vmul.f32 %v265_v9, %v544_v4  ;;  %v345_v18 = vunpack.c.l.bf16 %v343_v6 }
 0x17f   :  { %v264_v12 = vmul.f32 0.5, %v258_v3  ;;  %v281_v13 = vpack.c.bf16 %v273_v8, %v272_v11 }
 0x180   :  { %v275_v1 = vmul.f32 %v269_v61, %v219_v32 }
 0x181   :  { %v270_v16 = vmul.f32 %v264_v12, %v548_v10  ;;  %v344_v10 = vld [vmem:[%s590_s7 + $0x4] sm:$0x3] }
 0x182   :  { %v282_v5 = vpack.c.bf16 %v275_v1, %v274_v0  ;;  %v346_v22 = vunpack.c.l.bf16 %v344_v10 }
 0x183   :  { %v280_v17 = vpack.c.bf16 %v271_v15, %v270_v16 }
 0x184   :  { %399 = vmatpush3.bf16.msra.mxu1 %v282_v5 }
 0x185   :  { %400 = vmatprep.subr.bf16.mxu1 %v432_v7 }
 0x188   :  { %401 = vmatpush3.bf16.msra.mxu1 %v281_v13 }
 0x189   :  { %402 = vmatprep.subr.bf16.mxu1 %v432_v7 }
 0x18c   :  { %403 = vmatpush3.bf16.msra.mxu1 %v280_v17 }
 0x18f   :  { %405 = vmatmul.mubr.msk.bf16.vlgmr.msra.gmra.mxu1 %vm298_vm5, %v416_v14 }
 0x24f   :  { %v336_v4 = vpop.f32.mrf.mxu1 }
 0x250   :  { %v337_v7 = vadd.f32 %v336_v4, %v286_v19 }
 0x251   :  { %v406_v20 = vpop.f32.mrf.mxu1 }
 0x252   :  { %v347_v21 = vadd.f32 %v345_v18, %v337_v7 }
 0x253   :  { %v339_v24 = vpop.f32.mrf.mxu1 }
 0x254   :  { %v374_v25 = vpack.c.bf16 %v347_v21, %v347_v21  ;;  %v340_v26 = vadd.f32 %v339_v24, %v291_v23 }
 0x255   :  { %v407_v27 = vpop.f32.mrf.mxu1 }
 0x256   :  { %357 = vst.msk [vmem:[%s591_s8] sm:$0xf] %vm40_vm2, %v374_v25  ;;  %v348_v28 = vadd.f32 %v346_v22, %v340_v26 }
 0x258   :  { %v375_v29 = vpack.c.bf16 %v348_v28, %v348_v28 }
 0x25a   :  { %359 = vst.msk [vmem:[%s591_s8 + $0x4] sm:$0x3] %vm358_vm6, %v375_v29 }

// kernel: cwnet_fwd.72
= control target key start
LH: loop header
LB: loop body
LE: loop exit
PB: predicated region body
PF: predicated region fallthrough
CT: control target
= control target key end

     0   :  { %v370_v0 = vmov 0   ;;  %v371_v7 = vmov 0.0   ;;  %vm372_vm0 = vmmov 0   ;;  %vm38_vm1 = vcmask 261120   ;;  %s501_s2 = inlined_call_operand.vmem [shape: f32[12,1], index: 2, kind: input, shape index: {}]   ;;  %s502_s1 = inlined_call_operand.vmem [shape: f32[12,1], index: 1, kind: input, shape index: {}]   ;;  %s503_s4 = inlined_call_operand.vmem [shape: f32[48,1], index: 4, kind: input, shape index: {}]   ;;  %s504_s3 = inlined_call_operand.vmem [shape: bf16[48,12], index: 3, kind: input, shape index: {}]   ;;  %s505_s6 = inlined_call_operand.vmem [shape: f32[12,1], index: 6, kind: input, shape index: {}]   ;;  %s506_s0 = inlined_call_operand.vmem [shape: bf16[12,32], index: 0, kind: input, shape index: {}, may-alias: {0,7}]   ;;  %s507_s5 = inlined_call_operand.vmem [shape: bf16[12,24], index: 5, kind: input, shape index: {}]   ;;  %s508_s7 = inlined_call_operand.vmem [shape: bf16[12,32], index: 7, kind: input, shape index: {}, may-alias: {0,7}]   ;;  %s509_s8 = inlined_call_operand.vmem [shape: bf16[12,32], index: 8, kind: output, shape index: {}]  }
   0x1   :  { %363 = vset.pattern.permute.xlu1 %v370_v0  ;;  %362 = vset.pattern.permute.xlu0 %v370_v0  ;;  %v34_v1 = vld [vmem:[%s501_s2] sm:$0xff]  ;;  %v35_v3 = vld [vmem:[%s501_s2 + $0x8] sm:$0xf]  ;;  %v102_v6 = vld [vmem:[%s503_s4 + $0x10] sm:$0xff]  ;;  %vm40_vm2 = vcmask 257024   ;;  %vm161_vm3 = vcmask 1045504  }
   0x2   :  { %v32_v2 = vld [vmem:[%s502_s1] sm:$0xff]  ;;  %83 = vperm.xlu1 %363, %v34_v1   ;;  %v33_v4 = vld [vmem:[%s502_s1 + $0x8] sm:$0xf]  ;;  %335 = vmatprep.subr.bf16.mxu0 %v371_v7  ;;  %v103_v11 = vld [vmem:[%s503_s4 + $0x18] sm:$0xff]  ;;  %vm151_vm4 = vcmask 97280   ;;  %vm250_vm5 = vcmask 1043456  }
   0x3   :  { %71 = vperm.xlu0 %362, %v32_v2   ;;  %v105_v5 = vld [vmem:[%s503_s4 + $0x28] sm:$0xff]  ;;  %357 = vmatprep.subr.bf16.mxu1 %v371_v7  ;;  %v100_v9 = vld [vmem:[%s503_s4] sm:$0xff]  ;;  %v365_v57 = vld [vmem:[%s504_s3 + $0x10] sm:$0xff]   ;;  %vm246_vm6 = vcmask 195584   ;;  %vm310_vm7 = vcmask 254976  }
   0x4   :  { %v101_v8 = vld [vmem:[%s503_s4 + $0x8] sm:$0xff]  ;;  %337 = vmatprep.mubr.msk.bf16.mxu0 %vm372_vm0, %v371_v7  ;;  %345 = vmatprep.mubr.msk.bf16.mxu1 %vm372_vm0, %v371_v7  ;;  %v104_v10 = vld [vmem:[%s503_s4 + $0x20] sm:$0xff] }
   0x5   :  { %v228_v12 = vld [vmem:[%s505_s6 + $0x8] sm:$0xf]  ;;  %v227_v13 = vld [vmem:[%s505_s6] sm:$0xff] }
   0x6   :  { %88 = vperm.xlu1 %363, %v35_v3   ;;  %v30_v14 = vld [vmem:[%s506_s0] sm:$0xf]  ;;  %v31_v15 = vld [vmem:[%s506_s0 + $0x4] sm:$0x3]  ;;  %v366_v58 = vld [vmem:[%s504_s3 + $0x8] sm:$0xff]  }
   0x7   :  { %76 = vperm.xlu0 %362, %v33_v4   ;;  %v36_v16 = vunpack.c.l.bf16 %v30_v14  ;;  %v37_v17 = vunpack.c.l.bf16 %v31_v15  ;;  %v364_v56 = vld [vmem:[%s504_s3] sm:$0xff]  }
   0x9   :  { %v39_v18 = vsel %vm38_vm1, %v36_v16, 0.0  ;;  %v41_v19 = vsel %vm40_vm2, %v37_v17, 0.0 }
   0xa   :  { %133 = vperm.xlu1 %363, %v105_v5   ;;  %v42_v20 = vadd.f32 %v41_v19, %v39_v18 }
   0xb   :  { %118 = vperm.xlu0 %362, %v102_v6  }
   0xc   :  { %v43_v21 = vrot.slane %v42_v20, 4 }
   0xe   :  { %113 = vperm.xlu1 %363, %v101_v8   ;;  %v44_v22 = vadd.f32 %v43_v21, %v42_v20 }
   0xf   :  { %108 = vperm.xlu0 %362, %v100_v9  }
  0x10   :  { %v45_v23 = vrot.slane %v44_v22, 2 }
  0x12   :  { %128 = vperm.xlu1 %363, %v104_v10   ;;  %v46_v24 = vadd.f32 %v45_v23, %v44_v22 }
  0x13   :  { %123 = vperm.xlu0 %362, %v103_v11  }
  0x14   :  { %v47_v25 = vrot.slane %v46_v24, 1 }
  0x16   :  { %238 = vperm.xlu1 %363, %v228_v12   ;;  %v48_v26 = vadd.f32 %v47_v25, %v46_v24 }
  0x17   :  { %233 = vperm.xlu0 %362, %v227_v13  }
  0x18   :  { %v50_v27 = vmul.f32 0.083333336, %v48_v26  ;;  %v367_v26 = vld [vmem:[%s507_s5] sm:$0x3f]  }
  0x1a   :  { %v51_v28 = vsub.f32 %v36_v16, %v50_v27  ;;  %v52_v29 = vsub.f32 %v37_v17, %v50_v27  ;;  %v295_v27 = vld [vmem:[%s508_s7] sm:$0xf] }
  0x1c   :  { %v53_v30 = vmul.f32 %v51_v28, %v51_v28  ;;  %v54_v31 = vmul.f32 %v52_v29, %v52_v29 }
  0x1e   :  { %v55_v32 = vsel %vm38_vm1, %v53_v30, 0.0  ;;  %v56_v33 = vsel %vm40_vm2, %v54_v31, 0.0  ;;  %v296_v31 = vld [vmem:[%s508_s7 + $0x4] sm:$0x3] }
  0x1f   :  { %v57_v34 = vadd.f32 %v56_v33, %v55_v32 }
  0x21   :  { %v58_v35 = vrot.slane %v57_v34, 4 }
  0x23   :  { %v59_v36 = vadd.f32 %v58_v35, %v57_v34  ;;  %v298_v34 = vunpack.c.l.bf16 %v296_v31 }
  0x25   :  { %v60_v37 = vrot.slane %v59_v36, 2 }
  0x27   :  { %v61_v38 = vadd.f32 %v60_v37, %v59_v36 }
  0x29   :  { %v62_v39 = vrot.slane %v61_v38, 1 }
  0x2b   :  { %v63_v40 = vadd.f32 %v62_v39, %v61_v38 }
  0x2d   :  { %v64_v41 = vmul.f32 0.083333336, %v63_v40 }
  0x2f   :  { %v65_v42 = vadd.f32 1e-06, %v64_v41 }
  0x31   :  { %368 = vrsqrt.f32 %v65_v42 }
  0x3e   :  { %v369_v43 = vpop.eup %368 }
  0x3f   :  { %v67_v44 = vmul.f32 %v369_v43, %v51_v28  ;;  %v68_v47 = vmul.f32 %v369_v43, %v52_v29  ;;  %v297_v28 = vunpack.c.l.bf16 %v295_v27 }
  0x7d   :  { %v84_v45 = vpop.permute.xlu1 %83 }
  0x7e   :  { %v72_v46 = vpop.permute.xlu0 %71 }
  0x7f   :  { %v79_v48 = vmul.f32 %v72_v46, %v67_v44 }
  0x81   :  { %v89_v51 = vpop.permute.xlu1 %88  ;;  %v91_v52 = vadd.f32 %v84_v45, %v79_v48 }
  0x82   :  { %v77_v49 = vpop.permute.xlu0 %76 }
  0x83   :  { %v80_v50 = vmul.f32 %v77_v49, %v68_v47 }
  0x85   :  { %v92_v53 = vadd.f32 %v89_v51, %v80_v50  ;;  %v134_v59 = vpop.permute.xlu1 %133 }
  0x86   :  { %v119_v60 = vpop.permute.xlu0 %118 }
  0x87   :  { %v93_v54 = vpack.c.bf16 %v92_v53, %v91_v52 }
  0x89   :  { %v163_v55 = vsel %vm161_vm3, %v93_v54, 0  ;;  %v114_v3 = vpop.permute.xlu1 %113 }
  0x8a   :  { %336 = vmatpush3.bf16.msra.mxu0 %v163_v55  ;;  %358 = vmatpush3.bf16.msra.mxu1 %v163_v55  ;;  %v109_v4 = vpop.permute.xlu0 %108 }
  0x8b   :  { %349 = vmatprep.subr.bf16.mxu1 %v371_v7 }
  0x8d   :  { %338 = vmatmul.mubr.msk.bf16.vlgmr.msra.gmra.mxu0 %vm151_vm4, %v364_v56  ;;  %346 = vmatmul.mubr.msk.bf16.vlgmr.msra.gmra.mxu1 %vm151_vm4, %v365_v57  ;;  %v129_v12 = vpop.permute.xlu1 %128 }
  0x8e   :  { %341 = vmatprep.mubr.msk.bf16.mxu0 %vm372_vm0, %v371_v7  ;;  %353 = vmatprep.mubr.msk.bf16.mxu1 %vm372_vm0, %v371_v7  ;;  %v124_v15 = vpop.permute.xlu0 %123 }
  0x91   :  { %v239_v35 = vpop.permute.xlu1 %238 }
  0x92   :  { %v234_v29 = vpop.permute.xlu0 %233 }
  0x95   :  { %342 = vmatmul.mubr.msk.bf16.gmra.mxu0 %vm151_vm4, %v366_v58 }
 0x14d   :  { %v199_v61 = vpop.f32.mrf.mxu0  ;;  %v215_v62 = vpop.f32.mrf.mxu1 }
 0x14e   :  { %v200_v17 = vadd.f32 %v199_v61, %v109_v4  ;;  %v216_v18 = vadd.f32 %v215_v62, %v129_v12 }
 0x14f   :  { %v339_v63 = vpop.f32.mrf.mxu0  ;;  %v347_v0 = vpop.f32.mrf.mxu1 }
 0x151   :  { %v202_v1 = vpop.f32.mrf.mxu0  ;;  %v218_v2 = vpop.f32.mrf.mxu1 }
 0x152   :  { %v219_v9 = vadd.f32 %v218_v2, %v134_v59  ;;  %v203_v13 = vadd.f32 %v202_v1, %v114_v3 }
 0x153   :  { %v340_v5 = vpop.f32.mrf.mxu0  ;;  %v348_v6 = vpop.f32.mrf.mxu1 }
 0x154   :  { %v223_v22 = vmul.f32 %v216_v18, %v203_v13 }
 0x155   :  { %v207_v8 = vpop.f32.mrf.mxu0 }
 0x156   :  { %v208_v10 = vadd.f32 %v207_v8, %v119_v60 }
 0x157   :  { %v343_v11 = vpop.f32.mrf.mxu0 }
 0x158   :  { %v224_v14 = vmul.f32 %v219_v9, %v208_v10 }
 0x159   :  { %v210_v16 = vpop.f32.mrf.mxu0 }
 0x15a   :  { %v230_v19 = vpack.c.bf16 %v224_v14, %v224_v14  ;;  %v211_v20 = vadd.f32 %v210_v16, %v124_v15 }
 0x15b   :  { %v344_v21 = vpop.f32.mrf.mxu0 }
 0x15c   :  { %v222_v23 = vmul.f32 %v211_v20, %v200_v17  ;;  %v252_v24 = vsel %vm250_vm5, %v230_v19, 0 }
 0x15d   :  { %350 = vmatpush3.bf16.msra.mxu1 %v252_v24 }
 0x15e   :  { %v229_v25 = vpack.c.bf16 %v223_v22, %v222_v23  ;;  %351 = vmatprep.subr.bf16.mxu1 %v371_v7 }
 0x161   :  { %352 = vmatpush3.bf16.msra.mxu1 %v229_v25 }
 0x164   :  { %354 = vmatmul.mubr.msk.bf16.vlgmr.msra.gmra.mxu1 %vm246_vm6, %v367_v26 }
 0x224   :  { %v288_v30 = vpop.f32.mrf.mxu1 }
 0x225   :  { %v289_v32 = vadd.f32 %v288_v30, %v234_v29 }
 0x226   :  { %v355_v7 = vpop.f32.mrf.mxu1 }
 0x227   :  { %v299_v33 = vadd.f32 %v297_v28, %v289_v32 }
 0x228   :  { %v291_v36 = vpop.f32.mrf.mxu1 }
 0x229   :  { %v326_v37 = vpack.c.bf16 %v299_v33, %v299_v33  ;;  %v292_v38 = vadd.f32 %v291_v36, %v239_v35 }
 0x22a   :  { %v356_v39 = vpop.f32.mrf.mxu1 }
 0x22b   :  { %309 = vst.msk [vmem:[%s509_s8] sm:$0xf] %vm40_vm2, %v326_v37  ;;  %v300_v40 = vadd.f32 %v298_v34, %v292_v38 }
 0x22d   :  { %v327_v41 = vpack.c.bf16 %v300_v40, %v300_v40 }
 0x22f   :  { %311 = vst.msk [vmem:[%s509_s8 + $0x4] sm:$0x3] %vm310_vm7, %v327_v41 }

// kernel: cwnet_fwd.71
= control target key start
LH: loop header
LB: loop body
LE: loop exit
PB: predicated region body
PF: predicated region fallthrough
CT: control target
= control target key end

     0   :  { %v497_v1 = vmov 0.0   ;;  %vm498_vm0 = vmmov 0   ;;  %v499_v3 = vmov 0   ;;  %vm210_vm1 = vcmask 1045504   ;;  %s630_s0 = inlined_call_operand.vmem [shape: bf16[300,32], index: 0, kind: input, shape index: {}]   ;;  %s631_s1 = inlined_call_operand.vmem [shape: bf16[12,300], index: 1, kind: input, shape index: {}]   ;;  %s632_s2 = inlined_call_operand.vmem [shape: f32[12,1], index: 2, kind: input, shape index: {}]   ;;  %s633_s3 = inlined_call_operand.vmem [shape: bf16[12,6], index: 3, kind: input, shape index: {}]   ;;  %s634_s4 = inlined_call_operand.vmem [shape: f32[12,1], index: 4, kind: input, shape index: {}]   ;;  %s635_s5 = inlined_call_operand.vmem [shape: bf16[12,32], index: 5, kind: input, shape index: {}]   ;;  %s636_s6 = inlined_call_operand.vmem [shape: bf16[12,32], index: 6, kind: output, shape index: {}]  }
   0x1   :  { %v473_v0 = vld [vmem:[%s630_s0 + $0x78] sm:$0xff]   ;;  %452 = vmatprep.subr.bf16.mxu1 %v497_v1  ;;  %458 = vmatprep.mubr.msk.bf16.mxu1 %vm498_vm0, %v497_v1  ;;  %v475_v4 = vld [vmem:[%s630_s0 + $0x70] sm:$0xff]   ;;  %v477_v6 = vld [vmem:[%s630_s0 + $0x68] sm:$0xff]   ;;  %vm206_vm2 = vcmask 359424   ;;  %vm298_vm3 = vcmask 1041408   ;;  %vm328_vm4 = vcmask 1042432  }
   0x2   :  { %v474_v2 = vld [vmem:[%s630_s0 + $0x38] sm:$0xff]   ;;  %471 = vset.pattern.permute.xlu0 %v499_v3  ;;  %472 = vset.pattern.permute.xlu1 %v499_v3  ;;  %v476_v5 = vld [vmem:[%s630_s0 + $0x30] sm:$0xff]   ;;  %v478_v7 = vld [vmem:[%s630_s0 + $0x28] sm:$0xff]   ;;  %vm324_vm5 = vcmask 48128   ;;  %vm387_vm6 = vcmask 257024   ;;  %vm389_vm7 = vcmask 254976  }
   0x3   :  { %424 = vmatprep.subr.bf16.mxu0 %v473_v0  ;;  %v479_v8 = vld [vmem:[%s630_s0 + $0x60] sm:$0xff]   ;;  %v481_v10 = vld [vmem:[%s630_s0 + $0x58] sm:$0xff]   ;;  %v485_v11 = vld [vmem:[%s630_s0 + $0x90] sm:$0x3f]  }
   0x4   :  { %425 = vmatpush3.bf16.msra.mxu0 %v474_v2  ;;  %v480_v9 = vld [vmem:[%s630_s0 + $0x20] sm:$0xff]   ;;  %v482_v12 = vld [vmem:[%s630_s0 + $0x18] sm:$0xff]   ;;  %v212_v13 = vsel %vm210_vm1, %v485_v11, 0  ;;  %v488_v14 = vld [vmem:[%s630_s0 + $0x88] sm:$0xff]  }
   0x5   :  { %426 = vmatprep.subr.bf16.mxu0 %v475_v4  ;;  %453 = vmatpush3.bf16.msra.mxu1 %v212_v13  ;;  %v483_v15 = vld [vmem:[%s630_s0 + $0x50] sm:$0xff]   ;;  %v486_v17 = vld [vmem:[%s630_s0 + $0x48] sm:$0xff]   ;;  %v491_v18 = vld [vmem:[%s630_s0 + $0x80] sm:$0xff]  }
   0x6   :  { %454 = vmatprep.subr.bf16.mxu1 %v497_v1  ;;  %v484_v16 = vld [vmem:[%s630_s0 + $0x10] sm:$0xff]   ;;  %v66_v20 = vld [vmem:[%s632_s2] sm:$0xff]  ;;  %v67_v22 = vld [vmem:[%s632_s2 + $0x8] sm:$0xf] }
   0x7   :  { %v494_v19 = vld [vmem:[%s631_s1 + $0x4] ss:$12 sps:$4 sm:$0x3f]   ;;  %70 = vperm.xlu0 %471, %v66_v20   ;;  %v495_v21 = vld [vmem:[%s631_s1 + $0x8] ss:$12 sps:$4 sm:$0x3f]  }
   0x8   :  { %427 = vmatpush3.bf16.msra.mxu0 %v476_v5  ;;  %246 = vmatprep.mubr.bf16.mxu0 %v494_v19  ;;  %v487_v23 = vld [vmem:[%s630_s0 + $0x8] sm:$0xff]   ;;  %v489_v24 = vld [vmem:[%s630_s0 + $0x40] sm:$0xff]  }
   0x9   :  { %428 = vmatprep.subr.bf16.mxu0 %v477_v6  ;;  %455 = vmatpush3.bf16.msra.mxu1 %v488_v14  ;;  %v490_v25 = vld [vmem:[%s630_s0] sm:$0xff]   ;;  %v307_v28 = vld [vmem:[%s634_s4 + $0x8] sm:$0xf] }
   0xa   :  { %456 = vmatprep.subr.bf16.mxu1 %v497_v1  ;;  %v492_v26 = vld [vmem:[%s631_s1] ss:$12 sps:$4 sm:$0x3f]   ;;  %v374_v56 = vld [vmem:[%s635_s5 + $0x4] sm:$0x3] }
   0xb   :  { %75 = vperm.xlu0 %471, %v67_v22   ;;  %v306_v27 = vld [vmem:[%s634_s4] sm:$0xff]  ;;  %v376_v60 = vunpack.c.l.bf16 %v374_v56 }
   0xc   :  { %429 = vmatpush3.bf16.msra.mxu0 %v478_v7  ;;  %311 = vperm.xlu1 %472, %v306_v27   ;;  %v496_v51 = vld [vmem:[%s633_s3] sm:$0x3f]  }
   0xd   :  { %430 = vmatprep.subr.bf16.mxu0 %v479_v8  ;;  %457 = vmatpush3.bf16.msra.mxu1 %v491_v18  ;;  %v373_v52 = vld [vmem:[%s635_s5] sm:$0xf] }
   0xe   :  { %462 = vmatprep.subr.bf16.mxu1 %v497_v1  ;;  %v375_v54 = vunpack.c.l.bf16 %v373_v52 }
  0x10   :  { %431 = vmatpush3.bf16.msra.mxu0 %v480_v9  ;;  %459 = vmatmul.mubr.msk.bf16.vlgmr.msra.gmra.mxu1 %vm206_vm2, %v495_v21 }
  0x11   :  { %432 = vmatprep.subr.bf16.mxu0 %v481_v10  ;;  %464 = vmatprep.mubr.msk.bf16.mxu1 %vm498_vm0, %v497_v1 }
  0x12   :  { %316 = vperm.xlu1 %472, %v307_v28  }
  0x14   :  { %433 = vmatpush3.bf16.msra.mxu0 %v482_v12 }
  0x15   :  { %434 = vmatprep.subr.bf16.mxu0 %v483_v15 }
  0x18   :  { %435 = vmatpush3.bf16.msra.mxu0 %v484_v16 }
  0x19   :  { %436 = vmatprep.subr.bf16.mxu0 %v486_v17 }
  0x1c   :  { %437 = vmatpush3.bf16.msra.mxu0 %v487_v23 }
  0x1d   :  { %438 = vmatprep.subr.bf16.mxu0 %v489_v24 }
  0x20   :  { %439 = vmatpush3.bf16.msra.mxu0 %v490_v25 }
  0x23   :  { %247 = vmatmul.mubr.bf16.vlgmr.msra.gmra.mxu0 %v492_v26 }
  0x82   :  { %v71_v34 = vpop.permute.xlu0 %70 }
  0x86   :  { %v76_v41 = vpop.permute.xlu0 %75 }
  0x87   :  { %v312_v53 = vpop.permute.xlu1 %311 }
  0x8d   :  { %v317_v62 = vpop.permute.xlu1 %316 }
  0xd0   :  { %v289_v29 = vpop.f32.mrf.mxu1 }
  0xd2   :  { %v460_v30 = vpop.f32.mrf.mxu1 }
  0xd4   :  { %v292_v31 = vpop.f32.mrf.mxu1 }
  0xd6   :  { %v461_v32 = vpop.f32.mrf.mxu1 }
  0xe3   :  { %v440_v33 = vpop.f32.mrf.mxu0 }
  0xe5   :  { %v441_v35 = vpop.f32.mrf.mxu0 }
  0xe6   :  { %v442_v36 = vadd.f32 %v441_v35, %v440_v33 }
  0xe7   :  { %v443_v37 = vpop.f32.mrf.mxu0 }
  0xe8   :  { %v249_v38 = vadd.f32 %v442_v36, %v71_v34 }
  0xe9   :  { %v444_v39 = vpop.f32.mrf.mxu0 }
  0xea   :  { %v445_v40 = vadd.f32 %v444_v39, %v443_v37  ;;  %v290_v42 = vadd.f32 %v289_v29, %v249_v38 }
  0xec   :  { %v252_v43 = vadd.f32 %v445_v40, %v76_v41  ;;  %v299_v45 = vrot.slane %v290_v42, 6 }
  0xee   :  { %v293_v44 = vadd.f32 %v292_v31, %v252_v43 }
  0xf0   :  { %v300_v46 = vrot.slane %v293_v44, 6 }
  0xf2   :  { %v301_v47 = vsel %vm298_vm3, %v299_v45, %v300_v46 }
  0xf3   :  { %v303_v48 = vmul.f32 %v301_v47, %v290_v42 }
  0xf5   :  { %v308_v49 = vpack.c.bf16 %v303_v48, %v303_v48 }
  0xf7   :  { %v330_v50 = vsel %vm328_vm4, %v308_v49, 0 }
  0xf8   :  { %463 = vmatpush3.bf16.msra.mxu1 %v330_v50 }
  0xfb   :  { %465 = vmatmul.mubr.msk.bf16.vlgmr.msra.gmra.mxu1 %vm324_vm5, %v496_v51 }
 0x1bb   :  { %v366_v55 = vpop.f32.mrf.mxu1 }
 0x1bc   :  { %v367_v57 = vadd.f32 %v366_v55, %v312_v53 }
 0x1bd   :  { %v466_v58 = vpop.f32.mrf.mxu1 }
 0x1be   :  { %v377_v59 = vadd.f32 %v375_v54, %v367_v57 }
 0x1bf   :  { %v369_v61 = vpop.f32.mrf.mxu1 }
 0x1c0   :  { %v422_v63 = vpack.c.bf16 %v377_v59, %v377_v59  ;;  %v370_v0 = vadd.f32 %v369_v61, %v317_v62 }
 0x1c1   :  { %v467_v1 = vpop.f32.mrf.mxu1 }
 0x1c2   :  { %388 = vst.msk [vmem:[%s636_s6] sm:$0xf] %vm387_vm6, %v422_v63  ;;  %v378_v2 = vadd.f32 %v376_v60, %v370_v0 }
 0x1c4   :  { %v423_v3 = vpack.c.bf16 %v378_v2, %v378_v2 }
 0x1c6   :  { %390 = vst.msk [vmem:[%s636_s6 + $0x4] sm:$0x3] %vm389_vm7, %v423_v3 }

// kernel: cwnet_fwd.73
= control target key start
LH: loop header
LB: loop body
LE: loop exit
PB: predicated region body
PF: predicated region fallthrough
CT: control target
= control target key end

     0   :  { %vm38_vm0 = vcmask 1041408   ;;  %v108_v0 = vmov 0.0   ;;  %vm109_vm1 = vmmov 0   ;;  %v110_v5 = vmov 0   ;;  %s146_s0 = inlined_call_operand.vmem [shape: bf16[20,128], index: 0, kind: input, shape index: {}]   ;;  %s147_s2 = inlined_call_operand.vmem [shape: f32[8,1], index: 2, kind: input, shape index: {}]   ;;  %s148_s1 = inlined_call_operand.vmem [shape: bf16[8,20], index: 1, kind: input, shape index: {}]   ;;  %s149_s3 = inlined_call_operand.vmem [shape: bf16[8,128], index: 3, kind: output, shape index: {}]  }
   0x1   :  { %94 = vmatprep.subr.bf16.mxu0 %v108_v0  ;;  %v106_v1 = vld [vmem:[%s146_s0 + $0x8] ss:$0 sps:$4 sm:$0x33]   ;;  %98 = vmatprep.mubr.msk.bf16.mxu0 %vm109_vm1, %v108_v0  ;;  %v19_v3 = vld [vmem:[%s147_s2] sm:$0xff]  ;;  %vm34_vm2 = vcmask 162816  }
   0x2   :  { %v40_v2 = vsel %vm38_vm0, %v106_v1, 0  ;;  %v107_v4 = vld [vmem:[%s146_s0] sm:$0xff]   ;;  %105 = vset.pattern.permute.xlu0 %v110_v5 }
   0x3   :  { %95 = vmatpush3.bf16.msra.mxu0 %v40_v2  ;;  %22 = vperm.xlu0 %105, %v19_v3   ;;  %v18_v6 = vld [vmem:[%s148_s1] sm:$0xf] }
   0x4   :  { %96 = vmatprep.subr.bf16.mxu0 %v108_v0 }
   0x7   :  { %97 = vmatpush3.bf16.msra.mxu0 %v107_v4 }
   0xa   :  { %99 = vmatmul.mubr.msk.bf16.vlgmr.msra.gmra.mxu0 %vm34_vm2, %v18_v6 }
  0x7e   :  { %v23_v7 = vpop.permute.xlu0 %22 }
  0xca   :  { %v76_v8 = vpop.f32.mrf.mxu0 }
  0xcb   :  { %v77_v9 = vadd.f32 %v76_v8, %v23_v7 }
  0xcc   :  { %v100_v10 = vpop.f32.mrf.mxu0 }
  0xcd   :  { %v82_v11 = vpack.c.bf16 %v77_v9, %v77_v9 }
  0xce   :  { %v79_v12 = vpop.f32.mrf.mxu0 }
  0xcf   :  { %83 = vst [vmem:[%s149_s3] sm:$0xf] %v82_v11 }
  0xd0   :  { %v101_v13 = vpop.f32.mrf.mxu0 }

// kernel: cwnet_fwd.82
= control target key start
LH: loop header
LB: loop body
LE: loop exit
PB: predicated region body
PF: predicated region fallthrough
CT: control target
= control target key end

     0   :  { %vm46_vm0 = vcmask 1045504   ;;  %v191_v1 = vmov 0   ;;  %vm42_vm1 = vcmask 97280   ;;  %v192_v9 = vmov 1983009808   ;;  %s234_s0 = inlined_call_operand.vmem [shape: bf16[12,512], index: 0, kind: input, shape index: {}]   ;;  %s235_s2 = inlined_call_operand.vmem [shape: f32[4,1], index: 2, kind: input, shape index: {}]   ;;  %s236_s1 = inlined_call_operand.vmem [shape: bf16[4,12], index: 1, kind: input, shape index: {}]   ;;  %s237_s3 = inlined_call_operand.vmem [shape: bf16[4,512], index: 3, kind: output, shape index: {}]  }
   0x1   :  { %v185_v0 = vld [vmem:[%s234_s0 + $0x4] ss:$16 sps:$4 sm:$0x3f]   ;;  %91 = vmatprep.mubr.bf16.mxu0 %v191_v1  ;;  %132 = vmatprep.mubr.bf16.mxu1 %v191_v1  ;;  %v187_v2 = vld [vmem:[%s234_s0 + $0xc] ss:$16 sps:$4 sm:$0x3f]   ;;  %v152_v10 = vunpack.c.l.s4 %v192_v9  ;;  %v154_v11 = vlaneseq }
   0x2   :  { %184 = vset.pattern.permute.xlu0 %v191_v1  ;;  %176 = vmatprep.subr.msk.bf16.mxu0 %vm46_vm0, %v185_v0  ;;  %v189_v3 = vld [vmem:[%s234_s0] ss:$16 sps:$4 sm:$0x3f]   ;;  %v190_v4 = vld [vmem:[%s234_s0 + $0x8] ss:$16 sps:$4 sm:$0x3f]  }
   0x3   :  { %178 = vmatprep.subr.msk.bf16.mxu1 %vm46_vm0, %v187_v2  ;;  %v20_v5 = vld [vmem:[%s235_s2] sm:$0xf]  ;;  %v48_v6 = vsel %vm46_vm0, %v189_v3, 0  ;;  %v54_v7 = vsel %vm46_vm0, %v190_v4, 0  ;;  %v153_v12 = vunpack.c.0.s8 %v152_v10  ;;  %v155_v13 = vshrl.u32 %v154_v11, 7 }
   0x4   :  { %23 = vperm.xlu0 %184, %v20_v5   ;;  %74 = vmatpush1.bf16.msra.mxu0 %v48_v6  ;;  %v19_v8 = vld [vmem:[%s236_s1] sm:$0x3] }
   0x5   :  { %115 = vmatpush1.bf16.msra.mxu1 %v54_v7  ;;  %v156_v18 = vsub.s32 %v153_v12, %v155_v13 }
   0x7   :  { %177 = vmatmul.mubr.msk.bf16.vlgmr.msra.gmra.mxu0 %vm42_vm1, %v19_v8 }
   0x8   :  { %179 = vmatmul.mubr.msk.bf16.vlgmr.msra.gmra.mxu1 %vm42_vm1, %v19_v8 }
  0x7f   :  { %v24_v14 = vpop.permute.xlu0 %23 }
  0xc7   :  { %v93_v15 = vpop.f32.mrf.mxu0 }
  0xc8   :  { %v134_v16 = vpop.f32.mrf.mxu1  ;;  %v94_v20 = vadd.f32 %v93_v15, %v24_v14 }
  0xc9   :  { %v95_v17 = vpop.f32.mrf.mxu0  ;;  %v135_v21 = vadd.f32 %v134_v16, %v24_v14 }
  0xca   :  { %v136_v19 = vpop.f32.mrf.mxu1  ;;  %v96_v22 = vadd.f32 %v95_v17, %v24_v14 }
  0xcb   :  { %v137_v23 = vadd.f32 %v136_v19, %v24_v14  ;;  %v97_v24 = vpop.f32.mrf.mxu0 }
  0xcc   :  { %v138_v25 = vpop.f32.mrf.mxu1  ;;  %v180_v26 = vpack.c.bf16 %v96_v22, %v94_v20 }
  0xcd   :  { %v181_v27 = vpack.c.bf16 %v137_v23, %v135_v21  ;;  %v98_v28 = vpop.f32.mrf.mxu0 }
  0xce   :  { %v139_v29 = vpop.f32.mrf.mxu1  ;;  %v157_v30 = vrot.slane %v180_v26, %v156_v18 }
  0xcf   :  { %v164_v31 = vrot.slane %v181_v27, %v156_v18 }
  0xd1   :  { %v165_v32 = vcombine.low %v157_v30, %v164_v31 }
  0xd3   :  { %167 = vst [vmem:[%s237_s3] sm:$0xff] %v165_v32 }

// kernel: cwnet_fwd.91
= control target key start
LH: loop header
LB: loop body
LE: loop exit
PB: predicated region body
PF: predicated region fallthrough
CT: control target
= control target key end

     0   :  { %v31_v0 = vlaneseq  ;;  %v179_v2 = vmov 1983009808   ;;  %v180_v4 = vmov 0   ;;  %vm48_vm0 = vcmask 1041408   ;;  %s227_s0 = inlined_call_operand.vmem [shape: bf16[4,512], index: 0, kind: input, shape index: {}]   ;;  %s228_s2 = inlined_call_operand.vmem [shape: f32[3,1], index: 2, kind: input, shape index: {}]   ;;  %s229_s1 = inlined_call_operand.vmem [shape: bf16[3,4], index: 1, kind: input, shape index: {}]   ;;  %s230_s3 = inlined_call_operand.vmem [shape: f32[3,512], index: 3, kind: input, shape index: {}]   ;;  %s231_s4 = inlined_call_operand.vmem [shape: f32[3,512], index: 4, kind: output, shape index: {}]  }
   0x1   :  { %v18_v1 = vld [vmem:[%s227_s0] sm:$0xff]  ;;  %v29_v3 = vunpack.c.l.s4 %v179_v2  ;;  %93 = vmatprep.mubr.bf16.mxu0 %v180_v4  ;;  %134 = vmatprep.mubr.bf16.mxu1 %v180_v4  ;;  %vm44_vm1 = vcmask 31744   ;;  %v144_v19 = vld [vmem:[%s230_s3 + $0x8] sm:$0x77] }
   0x2   :  { %v20_v5 = vld [vmem:[%s228_s2] sm:$0x7]  ;;  %v32_v6 = vshrl.u32 %v31_v0, 7  ;;  %175 = vset.pattern.permute.xlu0 %v180_v4  ;;  %v27_v8 = vcombine.high %v18_v1, %v18_v1  ;;  %v148_v25 = vcombine.high %v144_v19, %v144_v19 }
   0x3   :  { %v30_v7 = vunpack.c.0.s8 %v29_v3  ;;  %23 = vperm.xlu0 %175, %v20_v5   ;;  %v19_v16 = vld [vmem:[%s229_s1] sm:$0x3] }
   0x4   :  { %v143_v18 = vld [vmem:[%s230_s3] sm:$0x77] }
   0x5   :  { %v33_v9 = vsub.s32 %v30_v7, %v32_v6  ;;  %v147_v24 = vcombine.high %v143_v18, %v143_v18 }
   0x7   :  { %v34_v10 = vrot.slane %v18_v1, %v33_v9  ;;  %v41_v11 = vrot.slane %v27_v8, %v33_v9 }
   0x9   :  { %v42_v12 = vcombine.high %v34_v10, %v34_v10  ;;  %v43_v13 = vcombine.high %v41_v11, %v41_v11  ;;  %v50_v14 = vsel %vm48_vm0, %v34_v10, 0  ;;  %v56_v15 = vsel %vm48_vm0, %v41_v11, 0 }
   0xb   :  { %169 = vmatprep.subr.msk.bf16.mxu0 %vm48_vm0, %v42_v12  ;;  %171 = vmatprep.subr.msk.bf16.mxu1 %vm48_vm0, %v43_v13 }
   0xc   :  { %76 = vmatpush1.bf16.msra.mxu0 %v50_v14  ;;  %117 = vmatpush1.bf16.msra.mxu1 %v56_v15 }
   0xf   :  { %170 = vmatmul.mubr.msk.bf16.vlgmr.msra.gmra.mxu0 %vm44_vm1, %v19_v16  ;;  %172 = vmatmul.mubr.msk.bf16.vlgmr.msra.gmra.mxu1 %vm44_vm1, %v19_v16 }
  0x7e   :  { %v24_v17 = vpop.permute.xlu0 %23 }
  0xcf   :  { %v95_v20 = vpop.f32.mrf.mxu0  ;;  %v136_v21 = vpop.f32.mrf.mxu1 }
  0xd0   :  { %v96_v22 = vadd.f32 %v95_v20, %v24_v17  ;;  %v137_v23 = vadd.f32 %v136_v21, %v24_v17 }
  0xd1   :  { %v97_v26 = vpop.f32.mrf.mxu0  ;;  %v138_v27 = vpop.f32.mrf.mxu1 }
  0xd2   :  { %v98_v28 = vadd.f32 %v97_v26, %v24_v17  ;;  %v139_v29 = vadd.f32 %v138_v27, %v24_v17  ;;  %v151_v32 = vadd.f32 %v143_v18, %v96_v22  ;;  %v153_v33 = vadd.f32 %v144_v19, %v137_v23 }
  0xd3   :  { %v99_v30 = vpop.f32.mrf.mxu0  ;;  %v140_v31 = vpop.f32.mrf.mxu1 }
  0xd4   :  { %v152_v34 = vadd.f32 %v147_v24, %v98_v28  ;;  %v154_v35 = vadd.f32 %v148_v25, %v139_v29 }
  0xd5   :  { %v100_v36 = vpop.f32.mrf.mxu0  ;;  %v141_v37 = vpop.f32.mrf.mxu1 }
  0xd6   :  { %v159_v38 = vcombine.low %v151_v32, %v152_v34  ;;  %v160_v39 = vcombine.low %v153_v33, %v154_v35 }
  0xd8   :  { %163 = vst [vmem:[%s231_s4] sm:$0x77] %v159_v38  ;;  %164 = vst [vmem:[%s231_s4 + $0x8] sm:$0x77] %v160_v39 }

</bundles_post_ra>
